<compile_context>
chip_gen: v6e
topology: v6e:2x2x1
jax: 0.10.0
libtpu: 0.0.40
codegen_flags: <defaults>
</compile_context>

<pallas_src>
import functools
import math

import jax
import jax.numpy as jnp
from jax.experimental import pallas as pl
from jax.experimental.pallas import tpu as pltpu

_TILE_M = 512              # rows (B*L_out) per grid step for conv kernels
_BN_EPS = 1e-5
_MM_DTYPE = jnp.bfloat16   # MXU operand dtype (accumulation is always f32)


def _round_up(n, m):
    return ((n + m - 1) // m) * m


def _tile_rows(m):
    """Pick (tile_m, m_padded) for the flattened row dimension."""
    if m >= _TILE_M:
        return _TILE_M, _round_up(m, _TILE_M)
    t = _round_up(m, 8)
    return t, t


def _pad_rows(a, m_pad):
    m = a.shape[0]
    if m == m_pad:
        return a
    return jnp.pad(a, ((0, m_pad - m), (0, 0)))


# -----------------------------------------------------------------------------
# Fused conv + BN(train) [+ downsample 1x1 conv+BN] [+ residual] [+ ReLU] kernel
# -----------------------------------------------------------------------------

def _conv_bn_fused_kernel(*refs, c_in, c_main, c_ds, relu_main, inv_count,
                          has_res, tile_m):
    """Two-sweep fused kernel on grid (phase, row_tile).

    refs = [taps, w_main, (w_ds), gamma, beta, (residual),
            out_main, (out_ds), conv_scratch, stat_scratch]

    phase 0: z = taps @ w_main (+ centre-tap @ w_ds concatenated along C),
             stored into the full-size VMEM conv scratch; per-channel sum and
             sum-of-squares accumulated into the resident (2, C) stat scratch.
    phase 1: at the first tile fold stats into (scale, shift) once; then
             y = z*scale + shift (+ residual) (+ ReLU) streamed to outputs.
    Padded rows are all-zero taps, so they contribute exactly zero to both
    sums; the mean/var divisor is the true row count (inv_count).
    """
    it = iter(refs)
    taps_ref = next(it)
    w_ref = next(it)
    wds_ref = next(it) if c_ds else None
    g_ref = next(it)
    b_ref = next(it)
    res_ref = next(it) if has_res else None
    out_ref = next(it)
    outds_ref = next(it) if c_ds else None
    conv_ref = next(it)            # VMEM scratch (m_pad, c_tot) f32
    stat_ref = next(it)            # VMEM scratch (2, c_tot) f32

    p = pl.program_id(0)
    i = pl.program_id(1)
    rows = pl.ds(pl.multiple_of(i * tile_m, tile_m), tile_m)

    @pl.when(p == 0)
    def _conv_and_stats():
        z = jnp.dot(taps_ref[...], w_ref[...],
                    preferred_element_type=jnp.float32)
        if c_ds:
            # Downsample 1x1 conv reuses the (already loaded) centre tap.
            z_ds = jnp.dot(taps_ref[:, :c_in], wds_ref[...],
                           preferred_element_type=jnp.float32)
            z = jnp.concatenate([z, z_ds], axis=-1)
        conv_ref[rows, :] = z

        @pl.when(i == 0)
        def _init():
            stat_ref[...] = jnp.zeros_like(stat_ref)

        stat_ref[...] += jnp.concatenate(
            [jnp.sum(z, axis=0, keepdims=True),
             jnp.sum(z * z, axis=0, keepdims=True)], axis=0)

    @pl.when(p == 1)
    def _normalize():
        @pl.when(i == 0)
        def _fold_stats():
            mean = stat_ref[0:1, :] * inv_count
            var = stat_ref[1:2, :] * inv_count - mean * mean   # biased variance
            scale = g_ref[...] * jax.lax.rsqrt(var + _BN_EPS)
            shift = b_ref[...] - mean * scale
            stat_ref[...] = jnp.concatenate([scale, shift], axis=0)

        y = conv_ref[rows, :] * stat_ref[0:1, :] + stat_ref[1:2, :]
        ym = y[:, :c_main] if c_ds else y
        if has_res:
            ym = ym + res_ref[...]
        if relu_main:
            ym = jnp.maximum(ym, 0.0)
        out_ref[...] = ym
        if c_ds:
            outds_ref[...] = y[:, c_main:]       # downsample branch: no ReLU


def _conv_bn_call(taps, w_main, gamma, beta, *, true_rows, relu,
                  residual=None, ds_w=None, c_in=0):
    """Single fused pallas_call for conv + BN [+ ds conv+BN] [+ res] [+ ReLU].

    taps:      (m_pad, k_tot) bf16 packed row operand (zero-padded rows).
    w_main:    (k_tot, c_main) bf16.
    ds_w:      optional (c_in, c_ds) bf16 — 1x1 downsample weight (centre tap).
    gamma/beta:(1, c_main + c_ds) f32 concatenated per segment.
    residual:  optional (m_pad, c_main) f32 added before the final ReLU.
    Returns [out_main (m_pad, c_main) f32, (out_ds (m_pad, c_ds) f32)].
    """
    m_pad, k_tot = taps.shape
    c_main = int(w_main.shape[1])
    c_ds = int(ds_w.shape[1]) if ds_w is not None else 0
    c_tot = c_main + c_ds
    tile_m = m_pad if m_pad <= _TILE_M else _TILE_M
    n_tiles = m_pad // tile_m
    has_res = residual is not None

    inputs = [taps, w_main]
    in_specs = [
        # Row tiles only needed in phase 0; phase 1 parks on block 0.
        pl.BlockSpec((tile_m, k_tot), lambda p, i: (i * (1 - p), 0)),
        pl.BlockSpec((k_tot, c_main), lambda p, i: (0, 0)),
    ]
    if c_ds:
        inputs.append(ds_w)
        in_specs.append(pl.BlockSpec((c_in, c_ds), lambda p, i: (0, 0)))
    inputs += [gamma, beta]
    in_specs += [pl.BlockSpec((1, c_tot), lambda p, i: (0, 0)),
                 pl.BlockSpec((1, c_tot), lambda p, i: (0, 0))]
    if has_res:
        inputs.append(residual)
        in_specs.append(pl.BlockSpec((tile_m, c_main), lambda p, i: (i * p, 0)))

    # Outputs are only produced in phase 1; the i*p map keeps block 0 resident
    # (and never flushed) throughout phase 0, so each block is written once.
    out_specs = [pl.BlockSpec((tile_m, c_main), lambda p, i: (i * p, 0))]
    out_shape = [jax.ShapeDtypeStruct((m_pad, c_main), jnp.float32)]
    if c_ds:
        out_specs.append(pl.BlockSpec((tile_m, c_ds), lambda p, i: (i * p, 0)))
        out_shape.append(jax.ShapeDtypeStruct((m_pad, c_ds), jnp.float32))

    scratch_shapes = [pltpu.VMEM((m_pad, c_tot), jnp.float32),
                      pltpu.VMEM((2, c_tot), jnp.float32)]

    flops = 2 * m_pad * (k_tot * c_main + c_in * c_ds)
    bytes_accessed = int(taps.size * 2 + w_main.size * 2
                         + (ds_w.size * 2 if ds_w is not None else 0)
                         + (residual.size * 4 if has_res else 0)
                         + m_pad * c_tot * 4 + 4 * c_tot * 4)

    # VMEM budget: only raise the scoped limit when we actually need it.
    needed = (m_pad * c_tot * 4 + 8 * c_tot * 4
              + 2 * tile_m * k_tot * 2
              + 2 * (k_tot * c_main + c_in * c_ds) * 2
              + 2 * tile_m * c_tot * 4
              + (2 * tile_m * c_main * 4 if has_res else 0))
    vmem_limit = None
    if needed > (24 << 20):
        vmem_limit = min(int(needed * 5 // 4) + (4 << 20), 96 << 20)

    kernel = functools.partial(
        _conv_bn_fused_kernel, c_in=c_in, c_main=c_main, c_ds=c_ds,
        relu_main=relu, inv_count=1.0 / float(true_rows),
        has_res=has_res, tile_m=tile_m)

    outs = pl.pallas_call(
        kernel,
        grid=(2, n_tiles),
        in_specs=in_specs,
        out_specs=tuple(out_specs),
        out_shape=tuple(out_shape),
        scratch_shapes=scratch_shapes,
        compiler_params=pltpu.CompilerParams(
            dimension_semantics=("arbitrary", "arbitrary"),
            vmem_limit_bytes=vmem_limit),
        cost_estimate=pl.CostEstimate(flops=flops, transcendentals=0,
                                      bytes_accessed=bytes_accessed),
    )(*inputs)
    return list(outs)


# -----------------------------------------------------------------------------
# Other kernels: maxpool, avgpool+fc
# -----------------------------------------------------------------------------

def _maxpool_kernel(xe_ref, xo_ref, o_ref):
    """MaxPool1d(k=3, s=2, p=1): window i = max(even[i], odd[i], even[i+1])."""
    lo = o_ref.shape[1]
    e = xe_ref[...]
    o_ref[...] = jnp.maximum(jnp.maximum(e[:, :lo, :], xo_ref[...]),
                             e[:, 1:lo + 1, :])


def _pool_fc_kernel(x_ref, w_ref, b_ref, o_ref, acc_ref, *, true_l):
    """AdaptiveAvgPool1d(1) + Linear, tiled over L with a resident accumulator."""
    @pl.when(pl.program_id(0) == 0)
    def _init():
        acc_ref[...] = jnp.zeros_like(acc_ref)

    acc_ref[...] += jnp.sum(x_ref[...], axis=1)

    @pl.when(pl.program_id(0) == pl.num_programs(0) - 1)
    def _fini():
        pooled = (acc_ref[...] * (1.0 / true_l)).astype(w_ref.dtype)
        o_ref[...] = jnp.dot(pooled, w_ref[...],
                             preferred_element_type=jnp.float32) + b_ref[...]


# -----------------------------------------------------------------------------
# Layer wrappers (XLA glue is only cheap pad / slice / concat / reshape / cast)
# -----------------------------------------------------------------------------

def conv_stem_bn(x_blc, w, gamma, beta, stride, pad):
    """Large-kernel stem Conv1d (im2col, bf16 patches) + BN(train) + ReLU."""
    B, L, _ = x_blc.shape
    c_out, c_in, k = w.shape
    l_out = (L + 2 * pad - k) // stride + 1
    m = B * l_out
    _, m_pad = _tile_rows(m)

    xp = jnp.pad(x_blc, ((0, 0), (pad, pad), (0, 0)))
    idx = stride * jnp.arange(l_out)[:, None] + jnp.arange(k)[None, :]
    patches = jnp.transpose(xp[:, idx, :], (0, 1, 3, 2))     # (B, Lout, Cin, K)
    taps = _pad_rows(patches.reshape(m, c_in * k).astype(_MM_DTYPE), m_pad)
    w_mat = jnp.transpose(w.reshape(c_out, c_in * k)).astype(_MM_DTYPE)
    g = gamma.reshape(1, c_out).astype(jnp.float32)
    b = beta.reshape(1, c_out).astype(jnp.float32)

    outs = _conv_bn_call(taps, w_mat, g, b, true_rows=m, relu=True)
    return outs[0][:m].reshape(B, l_out, c_out)


def conv3_bn(x_blc, w, gamma, beta, stride, *, ds=None, residual=None):
    """Conv1d(k=3, p=1) + BN(train) + ReLU as ONE K-packed matmul.

    The three taps are packed centre-first into a single (m, 3*C_in) operand.
    ds=(w1x1, g, b): fuse the 1x1/stride-s downsample conv+BN (no ReLU) — it
    reuses the centre C_in columns of the same packed operand.
    residual: (B, Lout, C_out) added before the final ReLU (conv2 of a block).
    Returns y, or (y, y_downsample) when ds is given.
    """
    B, L, c_in = x_blc.shape
    c_out = w.shape[0]
    l_out = (L - 1) // stride + 1
    m = B * l_out
    _, m_pad = _tile_rows(m)

    xp = jnp.pad(x_blc, ((0, 0), (1, 1), (0, 0)))

    def tap(k):
        return xp[:, k:k + stride * (l_out - 1) + 1:stride, :]   # (B, Lout, Cin)

    packed = jnp.concatenate([tap(1), tap(0), tap(2)], axis=-1)  # centre first
    taps = _pad_rows(packed.reshape(m, 3 * c_in).astype(_MM_DTYPE), m_pad)
    w_main = jnp.concatenate([w[:, :, 1], w[:, :, 0], w[:, :, 2]],
                             axis=1).T.astype(_MM_DTYPE)          # (3*Cin, Cout)

    g_list = [gamma.astype(jnp.float32)]
    b_list = [beta.astype(jnp.float32)]
    ds_w_mat = None
    c_ds = 0
    if ds is not None:
        ds_w, ds_g, ds_b = ds
        ds_w_mat = jnp.transpose(ds_w[:, :, 0]).astype(_MM_DTYPE)  # (Cin, Cds)
        c_ds = int(ds_w.shape[0])
        g_list.append(ds_g.astype(jnp.float32))
        b_list.append(ds_b.astype(jnp.float32))
    gcat = jnp.concatenate(g_list).reshape(1, -1)
    bcat = jnp.concatenate(b_list).reshape(1, -1)

    res = None
    if residual is not None:
        res = _pad_rows(residual.reshape(m, c_out).astype(jnp.float32), m_pad)

    outs = _conv_bn_call(taps, w_main, gcat, bcat, true_rows=m, relu=True,
                         residual=res, ds_w=ds_w_mat, c_in=c_in)
    y = outs[0][:m].reshape(B, l_out, c_out)
    if ds is None:
        return y
    return y, outs[1][:m].reshape(B, l_out, c_ds)


def maxpool3s2p1(x_blc):
    """nn.MaxPool1d(kernel_size=3, stride=2, padding=1) on (B, L, C)."""
    B, L, C = x_blc.shape
    l_out = (L - 1) // 2 + 1
    xp = jnp.pad(x_blc, ((0, 0), (1, 1), (0, 0)),
                 constant_values=jnp.float32(-jnp.inf))
    xe = xp[:, 0:2 * l_out + 1:2, :]      # (B, l_out+1, C)
    xo = xp[:, 1:2 * l_out:2, :]          # (B, l_out,   C)
    return pl.pallas_call(
        _maxpool_kernel,
        grid=(1,),
        in_specs=[pl.BlockSpec((B, l_out + 1, C), lambda i: (0, 0, 0)),
                  pl.BlockSpec((B, l_out, C), lambda i: (0, 0, 0))],
        out_specs=pl.BlockSpec((B, l_out, C), lambda i: (0, 0, 0)),
        out_shape=jax.ShapeDtypeStruct((B, l_out, C), jnp.float32),
    )(xe, xo)


def avgpool_fc(x_blc, fc_w, fc_b):
    """AdaptiveAvgPool1d(1) + flatten + Linear.  fc_w: (C, num_classes)."""
    B, L, C = x_blc.shape
    n_cls = fc_w.shape[1]
    tile_l = L if L <= 128 else 128
    l_pad = _round_up(L, tile_l)
    if l_pad != L:
        x_blc = jnp.pad(x_blc, ((0, 0), (0, l_pad - L), (0, 0)))
    n_tiles = l_pad // tile_l
    b2 = fc_b.reshape(1, n_cls).astype(jnp.float32)
    return pl.pallas_call(
        functools.partial(_pool_fc_kernel, true_l=L),
        grid=(n_tiles,),
        in_specs=[pl.BlockSpec((B, tile_l, C), lambda i: (0, i, 0)),
                  pl.BlockSpec((C, n_cls), lambda i: (0, 0)),
                  pl.BlockSpec((1, n_cls), lambda i: (0, 0))],
        out_specs=pl.BlockSpec((B, n_cls), lambda i: (0, 0)),
        out_shape=jax.ShapeDtypeStruct((B, n_cls), jnp.float32),
        scratch_shapes=[pltpu.VMEM((B, C), jnp.float32)],
        compiler_params=pltpu.CompilerParams(
            dimension_semantics=("arbitrary",)),
    )(x_blc, fc_w.astype(_MM_DTYPE), b2)


# -----------------------------------------------------------------------------
# Model (BasicBlock, expansion = 1)
# -----------------------------------------------------------------------------

def basic_block(x, p):
    """out = relu(bn2(conv2(relu(bn1(conv1(x))))) + downsample(x))."""
    s = p["stride"]
    if "ds_w" in p:
        out1, identity = conv3_bn(x, p["conv1_w"], p["bn1_g"], p["bn1_b"], s,
                                  ds=(p["ds_w"], p["ds_g"], p["ds_b"]))
    else:
        out1 = conv3_bn(x, p["conv1_w"], p["bn1_g"], p["bn1_b"], s)
        identity = x
    return conv3_bn(out1, p["conv2_w"], p["bn2_g"], p["bn2_b"], 1,
                    residual=identity)


def resnet_big_forward(params, x_ncl):
    """x_ncl: (B, 12, L) like the PyTorch module. Returns (B, num_classes)."""
    x = jnp.transpose(x_ncl.astype(jnp.float32), (0, 2, 1))      # -> (B, L, C)
    x = conv_stem_bn(x, params["conv0_w"], params["bn0_g"], params["bn0_b"], 2, 15)
    x = conv_stem_bn(x, params["conv1_w"], params["bn1_g"], params["bn1_b"], 2, 7)
    x = maxpool3s2p1(x)
    for layer in params["layers"]:
        for blk in layer:
            x = basic_block(x, blk)
    return avgpool_fc(x, params["fc_w"], params["fc_b"])


# -----------------------------------------------------------------------------
# Deterministic parameter initialization (mirrors the module's __init__)
# -----------------------------------------------------------------------------

def _conv_weight(key, c_out, c_in, k):
    # matches the PyTorch init: n = kernel_size[0]**2 * out_channels
    n = k * k * c_out
    std = math.sqrt(2.0 / n)
    return std * jax.random.normal(key, (c_out, c_in, k), jnp.float32)


def init_params(key, layers=(1, 1, 1, 1), num_classes=18):
    keys = iter(jax.random.split(key, 64))
    params = {
        "conv0_w": _conv_weight(next(keys), 32, 12, 31),
        "bn0_g": jnp.ones((32,), jnp.float32),
        "bn0_b": jnp.zeros((32,), jnp.float32),
        "conv1_w": _conv_weight(next(keys), 64, 32, 15),
        "bn1_g": jnp.ones((64,), jnp.float32),
        "bn1_b": jnp.zeros((64,), jnp.float32),
    }

    inplanes = 64
    layer_params = []
    for planes, nblocks, stride in zip((64, 128, 256, 512), layers, (1, 2, 2, 2)):
        blocks = []
        for bi in range(nblocks):
            s = stride if bi == 0 else 1
            blk = {
                "stride": s,
                "conv1_w": _conv_weight(next(keys), planes, inplanes, 3),
                "bn1_g": jnp.ones((planes,), jnp.float32),
                "bn1_b": jnp.zeros((planes,), jnp.float32),
                "conv2_w": _conv_weight(next(keys), planes, planes, 3),
                "bn2_g": jnp.ones((planes,), jnp.float32),
                "bn2_b": jnp.zeros((planes,), jnp.float32),
            }
            if bi == 0 and (s != 1 or inplanes != planes):
                blk["ds_w"] = _conv_weight(next(keys), planes, inplanes, 1)
                blk["ds_g"] = jnp.ones((planes,), jnp.float32)
                blk["ds_b"] = jnp.zeros((planes,), jnp.float32)
            blocks.append(blk)
            inplanes = planes
        layer_params.append(blocks)
    params["layers"] = layer_params

    # fc: Linear(512, num_classes) — PyTorch default U(-1/sqrt(in), 1/sqrt(in))
    bound = 1.0 / math.sqrt(512)
    params["fc_w"] = jax.random.uniform(next(keys), (512, num_classes),
                                        jnp.float32, -bound, bound)
    params["fc_b"] = jax.random.uniform(next(keys), (num_classes,),
                                        jnp.float32, -bound, bound)
    return params


# -----------------------------------------------------------------------------
# Demo
# -----------------------------------------------------------------------------

if __name__ == "__main__":
    key = jax.random.PRNGKey(0)
    pkey, xkey = jax.random.split(key)

    params = init_params(pkey, layers=(1, 1, 1, 1), num_classes=18)

    # Input like the PyTorch module: (B, 12 leads, L samples)
    B, C_in, L = 2, 12, 256
    x = jax.random.normal(xkey, (B, C_in, L), jnp.float32)

    fwd = jax.jit(lambda inp: resnet_big_forward(params, inp))
    out = jax.block_until_ready(fwd(x))

    assert out.shape == (B, 18), out.shape
    assert bool(jnp.all(jnp.isfinite(out)))
    print("KERNEL_OK")
</pallas_src>

<mosaic_0001>
module attributes {stable_mosaic.version = 11 : i64} {
  func.func @_conv_bn_fused_kernel(%arg0: i32, %arg1: i32, %arg2: memref<256x372xbf16, #tpu.memory_space<vmem>>, %arg3: memref<372x32xbf16, #tpu.memory_space<vmem>>, %arg4: memref<1x32xf32, #tpu.memory_space<vmem>>, %arg5: memref<1x32xf32, #tpu.memory_space<vmem>>, %arg6: memref<256x32xf32, #tpu.memory_space<vmem>>, %arg7: memref<256x32xf32, #tpu.memory_space<vmem>>, %arg8: memref<2x32xf32, #tpu.memory_space<vmem>>) attributes {dimension_semantics = [#tpu.dimension_semantics<arbitrary>, #tpu.dimension_semantics<arbitrary>], iteration_bounds = array<i64: 2, 1>, scalar_prefetch = 0 : i64, scratch_operands = 2 : i64, tpu.core_type = #tpu.core_type<tc>, window_params = [{transform_indices = @transform_0, window_bounds = array<i64: 256, 372>}, {pipeline_mode = #tpu.pipeline_mode<synchronous>, transform_indices = @transform_1, window_bounds = array<i64: 372, 32>}, {pipeline_mode = #tpu.pipeline_mode<synchronous>, transform_indices = @transform_2, window_bounds = array<i64: 1, 32>}, {pipeline_mode = #tpu.pipeline_mode<synchronous>, transform_indices = @transform_3, window_bounds = array<i64: 1, 32>}, {transform_indices = @transform_4, window_bounds = array<i64: 256, 32>}]} {
    %c256_i32 = arith.constant 256 : i32
    %0 = arith.muli %arg1, %c256_i32 : i32
    %1 = tpu.assume_multiple %0, 256 : i32
    %c0_i32 = arith.constant 0 : i32
    %2 = arith.cmpi eq, %arg0, %c0_i32 : i32
    %3 = arith.extui %2 : i1 to i32
    %c0_i32_0 = arith.constant 0 : i32
    %4 = arith.cmpi ne, %3, %c0_i32_0 : i32
    scf.if %4 {
      %c0 = arith.constant 0 : index
      %c0_2 = arith.constant 0 : index
      %8 = vector.load %arg2[%c0, %c0_2] : memref<256x372xbf16, #tpu.memory_space<vmem>>, vector<256x372xbf16>
      %c0_3 = arith.constant 0 : index
      %c0_4 = arith.constant 0 : index
      %9 = vector.load %arg3[%c0_3, %c0_4] : memref<372x32xbf16, #tpu.memory_space<vmem>>, vector<372x32xbf16>
      %cst = arith.constant dense<0.000000e+00> : vector<256x32xf32>
      %10 = tpu.matmul %8, %9, %cst {dimension_numbers = #tpu.dot_dimension_numbers<[1], [0], [0], [1], [0, 0, 1, 1], [], []>} : vector<256x372xbf16>, vector<372x32xbf16>, vector<256x32xf32> -> vector<256x32xf32>
      %11 = arith.index_cast %1 : i32 to index
      %c0_5 = arith.constant 0 : index
      %12 = vector.load %arg7[%11, %c0_5] : memref<256x32xf32, #tpu.memory_space<vmem>>, vector<256x32xf32>
      tpu.vector_store %arg7[%11, %c0_5], %10 {strides = array<i32>} : memref<256x32xf32, #tpu.memory_space<vmem>>, vector<256x32xf32>,
      %c0_i32_6 = arith.constant 0 : i32
      %13 = arith.cmpi eq, %arg1, %c0_i32_6 : i32
      %14 = arith.extui %13 : i1 to i32
      %c0_i32_7 = arith.constant 0 : i32
      %15 = arith.cmpi ne, %14, %c0_i32_7 : i32
      scf.if %15 {
        %cst_14 = arith.constant 0.000000e+00 : f32
        %25 = vector.broadcast %cst_14 : f32 to vector<2x32xf32>
        %c0_15 = arith.constant 0 : index
        %c0_16 = arith.constant 0 : index
        %26 = vector.load %arg8[%c0_15, %c0_16] : memref<2x32xf32, #tpu.memory_space<vmem>>, vector<2x32xf32>
        tpu.vector_store %arg8[%c0_15, %c0_16], %25 {strides = array<i32>} : memref<2x32xf32, #tpu.memory_space<vmem>>, vector<2x32xf32>,
      } else {
      }
      %c0_8 = arith.constant 0 : index
      %c0_9 = arith.constant 0 : index
      %16 = vector.load %arg8[%c0_8, %c0_9] : memref<2x32xf32, #tpu.memory_space<vmem>>, vector<2x32xf32>
      %cst_10 = arith.constant dense<0.000000e+00> : vector<32xf32>
      %17 = vector.multi_reduction <add>, %10, %cst_10 [0] : vector<256x32xf32> to vector<32xf32>
      %18 = vector.shape_cast %17 : vector<32xf32> to vector<1x32xf32>
      %19 = arith.mulf %10, %10 : vector<256x32xf32>
      %cst_11 = arith.constant dense<0.000000e+00> : vector<32xf32>
      %20 = vector.multi_reduction <add>, %19, %cst_11 [0] : vector<256x32xf32> to vector<32xf32>
      %21 = vector.shape_cast %20 : vector<32xf32> to vector<1x32xf32>
      %22 = tpu.concatenate %18, %21 in 0 : vector<1x32xf32>, vector<1x32xf32> -> vector<2x32xf32>
      %23 = arith.addf %16, %22 : vector<2x32xf32>
      %c0_12 = arith.constant 0 : index
      %c0_13 = arith.constant 0 : index
      %24 = vector.load %arg8[%c0_12, %c0_13] : memref<2x32xf32, #tpu.memory_space<vmem>>, vector<2x32xf32>
      tpu.vector_store %arg8[%c0_12, %c0_13], %23 {strides = array<i32>} : memref<2x32xf32, #tpu.memory_space<vmem>>, vector<2x32xf32>,
    } else {
    }
    %c1_i32 = arith.constant 1 : i32
    %5 = arith.cmpi eq, %arg0, %c1_i32 : i32
    %6 = arith.extui %5 : i1 to i32
    %c0_i32_1 = arith.constant 0 : i32
    %7 = arith.cmpi ne, %6, %c0_i32_1 : i32
    scf.if %7 {
      %c0_i32_2 = arith.constant 0 : i32
      %8 = arith.cmpi eq, %arg1, %c0_i32_2 : i32
      %9 = arith.extui %8 : i1 to i32
      %c0_i32_3 = arith.constant 0 : i32
      %10 = arith.cmpi ne, %9, %c0_i32_3 : i32
      scf.if %10 {
        %c0_9 = arith.constant 0 : index
        %c0_10 = arith.constant 0 : index
        %22 = vector.load %arg8[%c0_9, %c0_10] : memref<2x32xf32, #tpu.memory_space<vmem>>, vector<1x32xf32>
        %cst_11 = arith.constant 3.906250e-03 : f32
        %23 = vector.broadcast %cst_11 : f32 to vector<1x32xf32>
        %24 = arith.mulf %22, %23 : vector<1x32xf32>
        %c1_12 = arith.constant 1 : index
        %c0_13 = arith.constant 0 : index
        %25 = vector.load %arg8[%c1_12, %c0_13] : memref<2x32xf32, #tpu.memory_space<vmem>>, vector<1x32xf32>
        %cst_14 = arith.constant 3.906250e-03 : f32
        %26 = vector.broadcast %cst_14 : f32 to vector<1x32xf32>
        %27 = arith.mulf %25, %26 : vector<1x32xf32>
        %28 = arith.mulf %24, %24 : vector<1x32xf32>
        %29 = arith.subf %27, %28 : vector<1x32xf32>
        %c0_15 = arith.constant 0 : index
        %c0_16 = arith.constant 0 : index
        %30 = vector.load %arg4[%c0_15, %c0_16] : memref<1x32xf32, #tpu.memory_space<vmem>>, vector<1x32xf32>
        %cst_17 = arith.constant 9.99999974E-6 : f32
        %31 = vector.broadcast %cst_17 : f32 to vector<1x32xf32>
        %32 = arith.addf %29, %31 : vector<1x32xf32>
        %33 = math.rsqrt %32 : vector<1x32xf32>
        %34 = arith.mulf %30, %33 : vector<1x32xf32>
        %c0_18 = arith.constant 0 : index
        %c0_19 = arith.constant 0 : index
        %35 = vector.load %arg5[%c0_18, %c0_19] : memref<1x32xf32, #tpu.memory_space<vmem>>, vector<1x32xf32>
        %36 = arith.mulf %24, %34 : vector<1x32xf32>
        %37 = arith.subf %35, %36 : vector<1x32xf32>
        %38 = tpu.concatenate %34, %37 in 0 : vector<1x32xf32>, vector<1x32xf32> -> vector<2x32xf32>
        %c0_20 = arith.constant 0 : index
        %c0_21 = arith.constant 0 : index
        %39 = vector.load %arg8[%c0_20, %c0_21] : memref<2x32xf32, #tpu.memory_space<vmem>>, vector<2x32xf32>
        tpu.vector_store %arg8[%c0_20, %c0_21], %38 {strides = array<i32>} : memref<2x32xf32, #tpu.memory_space<vmem>>, vector<2x32xf32>,
      } else {
      }
      %11 = arith.index_cast %1 : i32 to index
      %c0 = arith.constant 0 : index
      %12 = vector.load %arg7[%11, %c0] : memref<256x32xf32, #tpu.memory_space<vmem>>, vector<256x32xf32>
      %c0_4 = arith.constant 0 : index
      %c0_5 = arith.constant 0 : index
      %13 = vector.load %arg8[%c0_4, %c0_5] : memref<2x32xf32, #tpu.memory_space<vmem>>, vector<1x32xf32>
      %14 = vector.broadcast %13 : vector<1x32xf32> to vector<256x32xf32>
      %15 = arith.mulf %12, %14 : vector<256x32xf32>
      %c1 = arith.constant 1 : index
      %c0_6 = arith.constant 0 : index
      %16 = vector.load %arg8[%c1, %c0_6] : memref<2x32xf32, #tpu.memory_space<vmem>>, vector<1x32xf32>
      %17 = vector.broadcast %16 : vector<1x32xf32> to vector<256x32xf32>
      %18 = arith.addf %15, %17 : vector<256x32xf32>
      %cst = arith.constant 0.000000e+00 : f32
      %19 = vector.broadcast %cst : f32 to vector<256x32xf32>
      %20 = arith.maximumf %18, %19 : vector<256x32xf32>
      %c0_7 = arith.constant 0 : index
      %c0_8 = arith.constant 0 : index
      %21 = vector.load %arg6[%c0_7, %c0_8] : memref<256x32xf32, #tpu.memory_space<vmem>>, vector<256x32xf32>
      tpu.vector_store %arg6[%c0_7, %c0_8], %20 {strides = array<i32>} : memref<256x32xf32, #tpu.memory_space<vmem>>, vector<256x32xf32>,
    } else {
    }
    return
  }
  func.func @transform_0(%arg0: i32, %arg1: i32) -> (i32, i32) {
    %c1_i32 = arith.constant 1 : i32
    %0 = arith.subi %c1_i32, %arg0 : i32
    %1 = arith.muli %arg1, %0 : i32
    %c0_i32 = arith.constant 0 : i32
    %c0_i32_0 = arith.constant 0 : i32
    return %1, %c0_i32 : i32, i32
  }
  func.func @transform_1(%arg0: i32, %arg1: i32) -> (i32, i32) {
    %c0_i32 = arith.constant 0 : i32
    %c0_i32_0 = arith.constant 0 : i32
    %c0_i32_1 = arith.constant 0 : i32
    return %c0_i32, %c0_i32_0 : i32, i32
  }
  func.func @transform_2(%arg0: i32, %arg1: i32) -> (i32, i32) {
    %c0_i32 = arith.constant 0 : i32
    %c0_i32_0 = arith.constant 0 : i32
    %c0_i32_1 = arith.constant 0 : i32
    return %c0_i32, %c0_i32_0 : i32, i32
  }
  func.func @transform_3(%arg0: i32, %arg1: i32) -> (i32, i32) {
    %c0_i32 = arith.constant 0 : i32
    %c0_i32_0 = arith.constant 0 : i32
    %c0_i32_1 = arith.constant 0 : i32
    return %c0_i32, %c0_i32_0 : i32, i32
  }
  func.func @transform_4(%arg0: i32, %arg1: i32) -> (i32, i32) {
    %0 = arith.muli %arg1, %arg0 : i32
    %c0_i32 = arith.constant 0 : i32
    %c0_i32_0 = arith.constant 0 : i32
    return %0, %c0_i32 : i32, i32
  }
}

module attributes {stable_mosaic.version = 11 : i64} {
  func.func @_conv_bn_fused_kernel(%arg0: i32, %arg1: i32, %arg2: memref<128x480xbf16, #tpu.memory_space<vmem>>, %arg3: memref<480x64xbf16, #tpu.memory_space<vmem>>, %arg4: memref<1x64xf32, #tpu.memory_space<vmem>>, %arg5: memref<1x64xf32, #tpu.memory_space<vmem>>, %arg6: memref<128x64xf32, #tpu.memory_space<vmem>>, %arg7: memref<128x64xf32, #tpu.memory_space<vmem>>, %arg8: memref<2x64xf32, #tpu.memory_space<vmem>>) attributes {dimension_semantics = [#tpu.dimension_semantics<arbitrary>, #tpu.dimension_semantics<arbitrary>], iteration_bounds = array<i64: 2, 1>, scalar_prefetch = 0 : i64, scratch_operands = 2 : i64, tpu.core_type = #tpu.core_type<tc>, window_params = [{transform_indices = @transform_0, window_bounds = array<i64: 128, 480>}, {pipeline_mode = #tpu.pipeline_mode<synchronous>, transform_indices = @transform_1, window_bounds = array<i64: 480, 64>}, {pipeline_mode = #tpu.pipeline_mode<synchronous>, transform_indices = @transform_2, window_bounds = array<i64: 1, 64>}, {pipeline_mode = #tpu.pipeline_mode<synchronous>, transform_indices = @transform_3, window_bounds = array<i64: 1, 64>}, {transform_indices = @transform_4, window_bounds = array<i64: 128, 64>}]} {
    %c128_i32 = arith.constant 128 : i32
    %0 = arith.muli %arg1, %c128_i32 : i32
    %1 = tpu.assume_multiple %0, 128 : i32
    %c0_i32 = arith.constant 0 : i32
    %2 = arith.cmpi eq, %arg0, %c0_i32 : i32
    %3 = arith.extui %2 : i1 to i32
    %c0_i32_0 = arith.constant 0 : i32
    %4 = arith.cmpi ne, %3, %c0_i32_0 : i32
    scf.if %4 {
      %c0 = arith.constant 0 : index
      %c0_2 = arith.constant 0 : index
      %8 = vector.load %arg2[%c0, %c0_2] : memref<128x480xbf16, #tpu.memory_space<vmem>>, vector<128x480xbf16>
      %c0_3 = arith.constant 0 : index
      %c0_4 = arith.constant 0 : index
      %9 = vector.load %arg3[%c0_3, %c0_4] : memref<480x64xbf16, #tpu.memory_space<vmem>>, vector<480x64xbf16>
      %cst = arith.constant dense<0.000000e+00> : vector<128x64xf32>
      %10 = tpu.matmul %8, %9, %cst {dimension_numbers = #tpu.dot_dimension_numbers<[1], [0], [0], [1], [0, 0, 1, 1], [], []>} : vector<128x480xbf16>, vector<480x64xbf16>, vector<128x64xf32> -> vector<128x64xf32>
      %11 = arith.index_cast %1 : i32 to index
      %c0_5 = arith.constant 0 : index
      %12 = vector.load %arg7[%11, %c0_5] : memref<128x64xf32, #tpu.memory_space<vmem>>, vector<128x64xf32>
      tpu.vector_store %arg7[%11, %c0_5], %10 {strides = array<i32>} : memref<128x64xf32, #tpu.memory_space<vmem>>, vector<128x64xf32>,
      %c0_i32_6 = arith.constant 0 : i32
      %13 = arith.cmpi eq, %arg1, %c0_i32_6 : i32
      %14 = arith.extui %13 : i1 to i32
      %c0_i32_7 = arith.constant 0 : i32
      %15 = arith.cmpi ne, %14, %c0_i32_7 : i32
      scf.if %15 {
        %cst_14 = arith.constant 0.000000e+00 : f32
        %25 = vector.broadcast %cst_14 : f32 to vector<2x64xf32>
        %c0_15 = arith.constant 0 : index
        %c0_16 = arith.constant 0 : index
        %26 = vector.load %arg8[%c0_15, %c0_16] : memref<2x64xf32, #tpu.memory_space<vmem>>, vector<2x64xf32>
        tpu.vector_store %arg8[%c0_15, %c0_16], %25 {strides = array<i32>} : memref<2x64xf32, #tpu.memory_space<vmem>>, vector<2x64xf32>,
      } else {
      }
      %c0_8 = arith.constant 0 : index
      %c0_9 = arith.constant 0 : index
      %16 = vector.load %arg8[%c0_8, %c0_9] : memref<2x64xf32, #tpu.memory_space<vmem>>, vector<2x64xf32>
      %cst_10 = arith.constant dense<0.000000e+00> : vector<64xf32>
      %17 = vector.multi_reduction <add>, %10, %cst_10 [0] : vector<128x64xf32> to vector<64xf32>
      %18 = vector.shape_cast %17 : vector<64xf32> to vector<1x64xf32>
      %19 = arith.mulf %10, %10 : vector<128x64xf32>
      %cst_11 = arith.constant dense<0.000000e+00> : vector<64xf32>
      %20 = vector.multi_reduction <add>, %19, %cst_11 [0] : vector<128x64xf32> to vector<64xf32>
      %21 = vector.shape_cast %20 : vector<64xf32> to vector<1x64xf32>
      %22 = tpu.concatenate %18, %21 in 0 : vector<1x64xf32>, vector<1x64xf32> -> vector<2x64xf32>
      %23 = arith.addf %16, %22 : vector<2x64xf32>
      %c0_12 = arith.constant 0 : index
      %c0_13 = arith.constant 0 : index
      %24 = vector.load %arg8[%c0_12, %c0_13] : memref<2x64xf32, #tpu.memory_space<vmem>>, vector<2x64xf32>
      tpu.vector_store %arg8[%c0_12, %c0_13], %23 {strides = array<i32>} : memref<2x64xf32, #tpu.memory_space<vmem>>, vector<2x64xf32>,
    } else {
    }
    %c1_i32 = arith.constant 1 : i32
    %5 = arith.cmpi eq, %arg0, %c1_i32 : i32
    %6 = arith.extui %5 : i1 to i32
    %c0_i32_1 = arith.constant 0 : i32
    %7 = arith.cmpi ne, %6, %c0_i32_1 : i32
    scf.if %7 {
      %c0_i32_2 = arith.constant 0 : i32
      %8 = arith.cmpi eq, %arg1, %c0_i32_2 : i32
      %9 = arith.extui %8 : i1 to i32
      %c0_i32_3 = arith.constant 0 : i32
      %10 = arith.cmpi ne, %9, %c0_i32_3 : i32
      scf.if %10 {
        %c0_9 = arith.constant 0 : index
        %c0_10 = arith.constant 0 : index
        %22 = vector.load %arg8[%c0_9, %c0_10] : memref<2x64xf32, #tpu.memory_space<vmem>>, vector<1x64xf32>
        %cst_11 = arith.constant 7.812500e-03 : f32
        %23 = vector.broadcast %cst_11 : f32 to vector<1x64xf32>
        %24 = arith.mulf %22, %23 : vector<1x64xf32>
        %c1_12 = arith.constant 1 : index
        %c0_13 = arith.constant 0 : index
        %25 = vector.load %arg8[%c1_12, %c0_13] : memref<2x64xf32, #tpu.memory_space<vmem>>, vector<1x64xf32>
        %cst_14 = arith.constant 7.812500e-03 : f32
        %26 = vector.broadcast %cst_14 : f32 to vector<1x64xf32>
        %27 = arith.mulf %25, %26 : vector<1x64xf32>
        %28 = arith.mulf %24, %24 : vector<1x64xf32>
        %29 = arith.subf %27, %28 : vector<1x64xf32>
        %c0_15 = arith.constant 0 : index
        %c0_16 = arith.constant 0 : index
        %30 = vector.load %arg4[%c0_15, %c0_16] : memref<1x64xf32, #tpu.memory_space<vmem>>, vector<1x64xf32>
        %cst_17 = arith.constant 9.99999974E-6 : f32
        %31 = vector.broadcast %cst_17 : f32 to vector<1x64xf32>
        %32 = arith.addf %29, %31 : vector<1x64xf32>
        %33 = math.rsqrt %32 : vector<1x64xf32>
        %34 = arith.mulf %30, %33 : vector<1x64xf32>
        %c0_18 = arith.constant 0 : index
        %c0_19 = arith.constant 0 : index
        %35 = vector.load %arg5[%c0_18, %c0_19] : memref<1x64xf32, #tpu.memory_space<vmem>>, vector<1x64xf32>
        %36 = arith.mulf %24, %34 : vector<1x64xf32>
        %37 = arith.subf %35, %36 : vector<1x64xf32>
        %38 = tpu.concatenate %34, %37 in 0 : vector<1x64xf32>, vector<1x64xf32> -> vector<2x64xf32>
        %c0_20 = arith.constant 0 : index
        %c0_21 = arith.constant 0 : index
        %39 = vector.load %arg8[%c0_20, %c0_21] : memref<2x64xf32, #tpu.memory_space<vmem>>, vector<2x64xf32>
        tpu.vector_store %arg8[%c0_20, %c0_21], %38 {strides = array<i32>} : memref<2x64xf32, #tpu.memory_space<vmem>>, vector<2x64xf32>,
      } else {
      }
      %11 = arith.index_cast %1 : i32 to index
      %c0 = arith.constant 0 : index
      %12 = vector.load %arg7[%11, %c0] : memref<128x64xf32, #tpu.memory_space<vmem>>, vector<128x64xf32>
      %c0_4 = arith.constant 0 : index
      %c0_5 = arith.constant 0 : index
      %13 = vector.load %arg8[%c0_4, %c0_5] : memref<2x64xf32, #tpu.memory_space<vmem>>, vector<1x64xf32>
      %14 = vector.broadcast %13 : vector<1x64xf32> to vector<128x64xf32>
      %15 = arith.mulf %12, %14 : vector<128x64xf32>
      %c1 = arith.constant 1 : index
      %c0_6 = arith.constant 0 : index
      %16 = vector.load %arg8[%c1, %c0_6] : memref<2x64xf32, #tpu.memory_space<vmem>>, vector<1x64xf32>
      %17 = vector.broadcast %16 : vector<1x64xf32> to vector<128x64xf32>
      %18 = arith.addf %15, %17 : vector<128x64xf32>
      %cst = arith.constant 0.000000e+00 : f32
      %19 = vector.broadcast %cst : f32 to vector<128x64xf32>
      %20 = arith.maximumf %18, %19 : vector<128x64xf32>
      %c0_7 = arith.constant 0 : index
      %c0_8 = arith.constant 0 : index
      %21 = vector.load %arg6[%c0_7, %c0_8] : memref<128x64xf32, #tpu.memory_space<vmem>>, vector<128x64xf32>
      tpu.vector_store %arg6[%c0_7, %c0_8], %20 {strides = array<i32>} : memref<128x64xf32, #tpu.memory_space<vmem>>, vector<128x64xf32>,
    } else {
    }
    return
  }
  func.func @transform_0(%arg0: i32, %arg1: i32) -> (i32, i32) {
    %c1_i32 = arith.constant 1 : i32
    %0 = arith.subi %c1_i32, %arg0 : i32
    %1 = arith.muli %arg1, %0 : i32
    %c0_i32 = arith.constant 0 : i32
    %c0_i32_0 = arith.constant 0 : i32
    return %1, %c0_i32 : i32, i32
  }
  func.func @transform_1(%arg0: i32, %arg1: i32) -> (i32, i32) {
    %c0_i32 = arith.constant 0 : i32
    %c0_i32_0 = arith.constant 0 : i32
    %c0_i32_1 = arith.constant 0 : i32
    return %c0_i32, %c0_i32_0 : i32, i32
  }
  func.func @transform_2(%arg0: i32, %arg1: i32) -> (i32, i32) {
    %c0_i32 = arith.constant 0 : i32
    %c0_i32_0 = arith.constant 0 : i32
    %c0_i32_1 = arith.constant 0 : i32
    return %c0_i32, %c0_i32_0 : i32, i32
  }
  func.func @transform_3(%arg0: i32, %arg1: i32) -> (i32, i32) {
    %c0_i32 = arith.constant 0 : i32
    %c0_i32_0 = arith.constant 0 : i32
    %c0_i32_1 = arith.constant 0 : i32
    return %c0_i32, %c0_i32_0 : i32, i32
  }
  func.func @transform_4(%arg0: i32, %arg1: i32) -> (i32, i32) {
    %0 = arith.muli %arg1, %arg0 : i32
    %c0_i32 = arith.constant 0 : i32
    %c0_i32_0 = arith.constant 0 : i32
    return %0, %c0_i32 : i32, i32
  }
}

module attributes {stable_mosaic.version = 11 : i64} {
  func.func @_maxpool_kernel(%arg0: i32, %arg1: memref<2x33x64xf32, #tpu.memory_space<vmem>>, %arg2: memref<2x32x64xf32, #tpu.memory_space<vmem>>, %arg3: memref<2x32x64xf32, #tpu.memory_space<vmem>>) attributes {dimension_semantics = [#tpu.dimension_semantics<arbitrary>], iteration_bounds = array<i64: 1>, scalar_prefetch = 0 : i64, scratch_operands = 0 : i64, tpu.core_type = #tpu.core_type<tc>, window_params = [{pipeline_mode = #tpu.pipeline_mode<synchronous>, transform_indices = @transform_0, window_bounds = array<i64: 2, 33, 64>}, {pipeline_mode = #tpu.pipeline_mode<synchronous>, transform_indices = @transform_1, window_bounds = array<i64: 2, 32, 64>}, {pipeline_mode = #tpu.pipeline_mode<synchronous>, transform_indices = @transform_2, window_bounds = array<i64: 2, 32, 64>}]} {
    %c0 = arith.constant 0 : index
    %c0_0 = arith.constant 0 : index
    %c0_1 = arith.constant 0 : index
    %0 = vector.load %arg1[%c0, %c0_0, %c0_1] : memref<2x33x64xf32, #tpu.memory_space<vmem>>, vector<2x33x64xf32>
    %1 = vector.extract_strided_slice %0 {offsets = [0, 0, 0], sizes = [2, 32, 64], strides = [1, 1, 1]} : vector<2x33x64xf32> to vector<2x32x64xf32>
    %c0_2 = arith.constant 0 : index
    %c0_3 = arith.constant 0 : index
    %c0_4 = arith.constant 0 : index
    %2 = vector.load %arg2[%c0_2, %c0_3, %c0_4] : memref<2x32x64xf32, #tpu.memory_space<vmem>>, vector<2x32x64xf32>
    %3 = arith.maximumf %1, %2 : vector<2x32x64xf32>
    %4 = vector.extract_strided_slice %0 {offsets = [0, 1, 0], sizes = [2, 32, 64], strides = [1, 1, 1]} : vector<2x33x64xf32> to vector<2x32x64xf32>
    %5 = arith.maximumf %3, %4 : vector<2x32x64xf32>
    %c0_5 = arith.constant 0 : index
    %c0_6 = arith.constant 0 : index
    %c0_7 = arith.constant 0 : index
    %6 = vector.load %arg3[%c0_5, %c0_6, %c0_7] : memref<2x32x64xf32, #tpu.memory_space<vmem>>, vector<2x32x64xf32>
    tpu.vector_store %arg3[%c0_5, %c0_6, %c0_7], %5 {strides = array<i32>} : memref<2x32x64xf32, #tpu.memory_space<vmem>>, vector<2x32x64xf32>,
    return
  }
  func.func @transform_0(%arg0: i32) -> (i32, i32, i32) {
    %c0_i32 = arith.constant 0 : i32
    %c0_i32_0 = arith.constant 0 : i32
    %c0_i32_1 = arith.constant 0 : i32
    %c0_i32_2 = arith.constant 0 : i32
    return %c0_i32, %c0_i32_0, %c0_i32_1 : i32, i32, i32
  }
  func.func @transform_1(%arg0: i32) -> (i32, i32, i32) {
    %c0_i32 = arith.constant 0 : i32
    %c0_i32_0 = arith.constant 0 : i32
    %c0_i32_1 = arith.constant 0 : i32
    %c0_i32_2 = arith.constant 0 : i32
    return %c0_i32, %c0_i32_0, %c0_i32_1 : i32, i32, i32
  }
  func.func @transform_2(%arg0: i32) -> (i32, i32, i32) {
    %c0_i32 = arith.constant 0 : i32
    %c0_i32_0 = arith.constant 0 : i32
    %c0_i32_1 = arith.constant 0 : i32
    %c0_i32_2 = arith.constant 0 : i32
    return %c0_i32, %c0_i32_0, %c0_i32_1 : i32, i32, i32
  }
}

module attributes {stable_mosaic.version = 11 : i64} {
  func.func @_conv_bn_fused_kernel(%arg0: i32, %arg1: i32, %arg2: memref<64x192xbf16, #tpu.memory_space<vmem>>, %arg3: memref<192x64xbf16, #tpu.memory_space<vmem>>, %arg4: memref<1x64xf32, #tpu.memory_space<vmem>>, %arg5: memref<1x64xf32, #tpu.memory_space<vmem>>, %arg6: memref<64x64xf32, #tpu.memory_space<vmem>>, %arg7: memref<64x64xf32, #tpu.memory_space<vmem>>, %arg8: memref<2x64xf32, #tpu.memory_space<vmem>>) attributes {dimension_semantics = [#tpu.dimension_semantics<arbitrary>, #tpu.dimension_semantics<arbitrary>], iteration_bounds = array<i64: 2, 1>, scalar_prefetch = 0 : i64, scratch_operands = 2 : i64, tpu.core_type = #tpu.core_type<tc>, window_params = [{transform_indices = @transform_0, window_bounds = array<i64: 64, 192>}, {pipeline_mode = #tpu.pipeline_mode<synchronous>, transform_indices = @transform_1, window_bounds = array<i64: 192, 64>}, {pipeline_mode = #tpu.pipeline_mode<synchronous>, transform_indices = @transform_2, window_bounds = array<i64: 1, 64>}, {pipeline_mode = #tpu.pipeline_mode<synchronous>, transform_indices = @transform_3, window_bounds = array<i64: 1, 64>}, {transform_indices = @transform_4, window_bounds = array<i64: 64, 64>}]} {
    %c64_i32 = arith.constant 64 : i32
    %0 = arith.muli %arg1, %c64_i32 : i32
    %1 = tpu.assume_multiple %0, 64 : i32
    %c0_i32 = arith.constant 0 : i32
    %2 = arith.cmpi eq, %arg0, %c0_i32 : i32
    %3 = arith.extui %2 : i1 to i32
    %c0_i32_0 = arith.constant 0 : i32
    %4 = arith.cmpi ne, %3, %c0_i32_0 : i32
    scf.if %4 {
      %c0 = arith.constant 0 : index
      %c0_2 = arith.constant 0 : index
      %8 = vector.load %arg2[%c0, %c0_2] : memref<64x192xbf16, #tpu.memory_space<vmem>>, vector<64x192xbf16>
      %c0_3 = arith.constant 0 : index
      %c0_4 = arith.constant 0 : index
      %9 = vector.load %arg3[%c0_3, %c0_4] : memref<192x64xbf16, #tpu.memory_space<vmem>>, vector<192x64xbf16>
      %cst = arith.constant dense<0.000000e+00> : vector<64x64xf32>
      %10 = tpu.matmul %8, %9, %cst {dimension_numbers = #tpu.dot_dimension_numbers<[1], [0], [0], [1], [0, 0, 1, 1], [], []>} : vector<64x192xbf16>, vector<192x64xbf16>, vector<64x64xf32> -> vector<64x64xf32>
      %11 = arith.index_cast %1 : i32 to index
      %c0_5 = arith.constant 0 : index
      %12 = vector.load %arg7[%11, %c0_5] : memref<64x64xf32, #tpu.memory_space<vmem>>, vector<64x64xf32>
      tpu.vector_store %arg7[%11, %c0_5], %10 {strides = array<i32>} : memref<64x64xf32, #tpu.memory_space<vmem>>, vector<64x64xf32>,
      %c0_i32_6 = arith.constant 0 : i32
      %13 = arith.cmpi eq, %arg1, %c0_i32_6 : i32
      %14 = arith.extui %13 : i1 to i32
      %c0_i32_7 = arith.constant 0 : i32
      %15 = arith.cmpi ne, %14, %c0_i32_7 : i32
      scf.if %15 {
        %cst_14 = arith.constant 0.000000e+00 : f32
        %25 = vector.broadcast %cst_14 : f32 to vector<2x64xf32>
        %c0_15 = arith.constant 0 : index
        %c0_16 = arith.constant 0 : index
        %26 = vector.load %arg8[%c0_15, %c0_16] : memref<2x64xf32, #tpu.memory_space<vmem>>, vector<2x64xf32>
        tpu.vector_store %arg8[%c0_15, %c0_16], %25 {strides = array<i32>} : memref<2x64xf32, #tpu.memory_space<vmem>>, vector<2x64xf32>,
      } else {
      }
      %c0_8 = arith.constant 0 : index
      %c0_9 = arith.constant 0 : index
      %16 = vector.load %arg8[%c0_8, %c0_9] : memref<2x64xf32, #tpu.memory_space<vmem>>, vector<2x64xf32>
      %cst_10 = arith.constant dense<0.000000e+00> : vector<64xf32>
      %17 = vector.multi_reduction <add>, %10, %cst_10 [0] : vector<64x64xf32> to vector<64xf32>
      %18 = vector.shape_cast %17 : vector<64xf32> to vector<1x64xf32>
      %19 = arith.mulf %10, %10 : vector<64x64xf32>
      %cst_11 = arith.constant dense<0.000000e+00> : vector<64xf32>
      %20 = vector.multi_reduction <add>, %19, %cst_11 [0] : vector<64x64xf32> to vector<64xf32>
      %21 = vector.shape_cast %20 : vector<64xf32> to vector<1x64xf32>
      %22 = tpu.concatenate %18, %21 in 0 : vector<1x64xf32>, vector<1x64xf32> -> vector<2x64xf32>
      %23 = arith.addf %16, %22 : vector<2x64xf32>
      %c0_12 = arith.constant 0 : index
      %c0_13 = arith.constant 0 : index
      %24 = vector.load %arg8[%c0_12, %c0_13] : memref<2x64xf32, #tpu.memory_space<vmem>>, vector<2x64xf32>
      tpu.vector_store %arg8[%c0_12, %c0_13], %23 {strides = array<i32>} : memref<2x64xf32, #tpu.memory_space<vmem>>, vector<2x64xf32>,
    } else {
    }
    %c1_i32 = arith.constant 1 : i32
    %5 = arith.cmpi eq, %arg0, %c1_i32 : i32
    %6 = arith.extui %5 : i1 to i32
    %c0_i32_1 = arith.constant 0 : i32
    %7 = arith.cmpi ne, %6, %c0_i32_1 : i32
    scf.if %7 {
      %c0_i32_2 = arith.constant 0 : i32
      %8 = arith.cmpi eq, %arg1, %c0_i32_2 : i32
      %9 = arith.extui %8 : i1 to i32
      %c0_i32_3 = arith.constant 0 : i32
      %10 = arith.cmpi ne, %9, %c0_i32_3 : i32
      scf.if %10 {
        %c0_9 = arith.constant 0 : index
        %c0_10 = arith.constant 0 : index
        %22 = vector.load %arg8[%c0_9, %c0_10] : memref<2x64xf32, #tpu.memory_space<vmem>>, vector<1x64xf32>
        %cst_11 = arith.constant 1.562500e-02 : f32
        %23 = vector.broadcast %cst_11 : f32 to vector<1x64xf32>
        %24 = arith.mulf %22, %23 : vector<1x64xf32>
        %c1_12 = arith.constant 1 : index
        %c0_13 = arith.constant 0 : index
        %25 = vector.load %arg8[%c1_12, %c0_13] : memref<2x64xf32, #tpu.memory_space<vmem>>, vector<1x64xf32>
        %cst_14 = arith.constant 1.562500e-02 : f32
        %26 = vector.broadcast %cst_14 : f32 to vector<1x64xf32>
        %27 = arith.mulf %25, %26 : vector<1x64xf32>
        %28 = arith.mulf %24, %24 : vector<1x64xf32>
        %29 = arith.subf %27, %28 : vector<1x64xf32>
        %c0_15 = arith.constant 0 : index
        %c0_16 = arith.constant 0 : index
        %30 = vector.load %arg4[%c0_15, %c0_16] : memref<1x64xf32, #tpu.memory_space<vmem>>, vector<1x64xf32>
        %cst_17 = arith.constant 9.99999974E-6 : f32
        %31 = vector.broadcast %cst_17 : f32 to vector<1x64xf32>
        %32 = arith.addf %29, %31 : vector<1x64xf32>
        %33 = math.rsqrt %32 : vector<1x64xf32>
        %34 = arith.mulf %30, %33 : vector<1x64xf32>
        %c0_18 = arith.constant 0 : index
        %c0_19 = arith.constant 0 : index
        %35 = vector.load %arg5[%c0_18, %c0_19] : memref<1x64xf32, #tpu.memory_space<vmem>>, vector<1x64xf32>
        %36 = arith.mulf %24, %34 : vector<1x64xf32>
        %37 = arith.subf %35, %36 : vector<1x64xf32>
        %38 = tpu.concatenate %34, %37 in 0 : vector<1x64xf32>, vector<1x64xf32> -> vector<2x64xf32>
        %c0_20 = arith.constant 0 : index
        %c0_21 = arith.constant 0 : index
        %39 = vector.load %arg8[%c0_20, %c0_21] : memref<2x64xf32, #tpu.memory_space<vmem>>, vector<2x64xf32>
        tpu.vector_store %arg8[%c0_20, %c0_21], %38 {strides = array<i32>} : memref<2x64xf32, #tpu.memory_space<vmem>>, vector<2x64xf32>,
      } else {
      }
      %11 = arith.index_cast %1 : i32 to index
      %c0 = arith.constant 0 : index
      %12 = vector.load %arg7[%11, %c0] : memref<64x64xf32, #tpu.memory_space<vmem>>, vector<64x64xf32>
      %c0_4 = arith.constant 0 : index
      %c0_5 = arith.constant 0 : index
      %13 = vector.load %arg8[%c0_4, %c0_5] : memref<2x64xf32, #tpu.memory_space<vmem>>, vector<1x64xf32>
      %14 = vector.broadcast %13 : vector<1x64xf32> to vector<64x64xf32>
      %15 = arith.mulf %12, %14 : vector<64x64xf32>
      %c1 = arith.constant 1 : index
      %c0_6 = arith.constant 0 : index
      %16 = vector.load %arg8[%c1, %c0_6] : memref<2x64xf32, #tpu.memory_space<vmem>>, vector<1x64xf32>
      %17 = vector.broadcast %16 : vector<1x64xf32> to vector<64x64xf32>
      %18 = arith.addf %15, %17 : vector<64x64xf32>
      %cst = arith.constant 0.000000e+00 : f32
      %19 = vector.broadcast %cst : f32 to vector<64x64xf32>
      %20 = arith.maximumf %18, %19 : vector<64x64xf32>
      %c0_7 = arith.constant 0 : index
      %c0_8 = arith.constant 0 : index
      %21 = vector.load %arg6[%c0_7, %c0_8] : memref<64x64xf32, #tpu.memory_space<vmem>>, vector<64x64xf32>
      tpu.vector_store %arg6[%c0_7, %c0_8], %20 {strides = array<i32>} : memref<64x64xf32, #tpu.memory_space<vmem>>, vector<64x64xf32>,
    } else {
    }
    return
  }
  func.func @transform_0(%arg0: i32, %arg1: i32) -> (i32, i32) {
    %c1_i32 = arith.constant 1 : i32
    %0 = arith.subi %c1_i32, %arg0 : i32
    %1 = arith.muli %arg1, %0 : i32
    %c0_i32 = arith.constant 0 : i32
    %c0_i32_0 = arith.constant 0 : i32
    return %1, %c0_i32 : i32, i32
  }
  func.func @transform_1(%arg0: i32, %arg1: i32) -> (i32, i32) {
    %c0_i32 = arith.constant 0 : i32
    %c0_i32_0 = arith.constant 0 : i32
    %c0_i32_1 = arith.constant 0 : i32
    return %c0_i32, %c0_i32_0 : i32, i32
  }
  func.func @transform_2(%arg0: i32, %arg1: i32) -> (i32, i32) {
    %c0_i32 = arith.constant 0 : i32
    %c0_i32_0 = arith.constant 0 : i32
    %c0_i32_1 = arith.constant 0 : i32
    return %c0_i32, %c0_i32_0 : i32, i32
  }
  func.func @transform_3(%arg0: i32, %arg1: i32) -> (i32, i32) {
    %c0_i32 = arith.constant 0 : i32
    %c0_i32_0 = arith.constant 0 : i32
    %c0_i32_1 = arith.constant 0 : i32
    return %c0_i32, %c0_i32_0 : i32, i32
  }
  func.func @transform_4(%arg0: i32, %arg1: i32) -> (i32, i32) {
    %0 = arith.muli %arg1, %arg0 : i32
    %c0_i32 = arith.constant 0 : i32
    %c0_i32_0 = arith.constant 0 : i32
    return %0, %c0_i32 : i32, i32
  }
}

module attributes {stable_mosaic.version = 11 : i64} {
  func.func @_conv_bn_fused_kernel(%arg0: i32, %arg1: i32, %arg2: memref<64x192xbf16, #tpu.memory_space<vmem>>, %arg3: memref<192x64xbf16, #tpu.memory_space<vmem>>, %arg4: memref<1x64xf32, #tpu.memory_space<vmem>>, %arg5: memref<1x64xf32, #tpu.memory_space<vmem>>, %arg6: memref<64x64xf32, #tpu.memory_space<vmem>>, %arg7: memref<64x64xf32, #tpu.memory_space<vmem>>, %arg8: memref<64x64xf32, #tpu.memory_space<vmem>>, %arg9: memref<2x64xf32, #tpu.memory_space<vmem>>) attributes {dimension_semantics = [#tpu.dimension_semantics<arbitrary>, #tpu.dimension_semantics<arbitrary>], iteration_bounds = array<i64: 2, 1>, scalar_prefetch = 0 : i64, scratch_operands = 2 : i64, tpu.core_type = #tpu.core_type<tc>, window_params = [{transform_indices = @transform_0, window_bounds = array<i64: 64, 192>}, {pipeline_mode = #tpu.pipeline_mode<synchronous>, transform_indices = @transform_1, window_bounds = array<i64: 192, 64>}, {pipeline_mode = #tpu.pipeline_mode<synchronous>, transform_indices = @transform_2, window_bounds = array<i64: 1, 64>}, {pipeline_mode = #tpu.pipeline_mode<synchronous>, transform_indices = @transform_3, window_bounds = array<i64: 1, 64>}, {transform_indices = @transform_4, window_bounds = array<i64: 64, 64>}, {transform_indices = @transform_5, window_bounds = array<i64: 64, 64>}]} {
    %c64_i32 = arith.constant 64 : i32
    %0 = arith.muli %arg1, %c64_i32 : i32
    %1 = tpu.assume_multiple %0, 64 : i32
    %c0_i32 = arith.constant 0 : i32
    %2 = arith.cmpi eq, %arg0, %c0_i32 : i32
    %3 = arith.extui %2 : i1 to i32
    %c0_i32_0 = arith.constant 0 : i32
    %4 = arith.cmpi ne, %3, %c0_i32_0 : i32
    scf.if %4 {
      %c0 = arith.constant 0 : index
      %c0_2 = arith.constant 0 : index
      %8 = vector.load %arg2[%c0, %c0_2] : memref<64x192xbf16, #tpu.memory_space<vmem>>, vector<64x192xbf16>
      %c0_3 = arith.constant 0 : index
      %c0_4 = arith.constant 0 : index
      %9 = vector.load %arg3[%c0_3, %c0_4] : memref<192x64xbf16, #tpu.memory_space<vmem>>, vector<192x64xbf16>
      %cst = arith.constant dense<0.000000e+00> : vector<64x64xf32>
      %10 = tpu.matmul %8, %9, %cst {dimension_numbers = #tpu.dot_dimension_numbers<[1], [0], [0], [1], [0, 0, 1, 1], [], []>} : vector<64x192xbf16>, vector<192x64xbf16>, vector<64x64xf32> -> vector<64x64xf32>
      %11 = arith.index_cast %1 : i32 to index
      %c0_5 = arith.constant 0 : index
      %12 = vector.load %arg8[%11, %c0_5] : memref<64x64xf32, #tpu.memory_space<vmem>>, vector<64x64xf32>
      tpu.vector_store %arg8[%11, %c0_5], %10 {strides = array<i32>} : memref<64x64xf32, #tpu.memory_space<vmem>>, vector<64x64xf32>,
      %c0_i32_6 = arith.constant 0 : i32
      %13 = arith.cmpi eq, %arg1, %c0_i32_6 : i32
      %14 = arith.extui %13 : i1 to i32
      %c0_i32_7 = arith.constant 0 : i32
      %15 = arith.cmpi ne, %14, %c0_i32_7 : i32
      scf.if %15 {
        %cst_14 = arith.constant 0.000000e+00 : f32
        %25 = vector.broadcast %cst_14 : f32 to vector<2x64xf32>
        %c0_15 = arith.constant 0 : index
        %c0_16 = arith.constant 0 : index
        %26 = vector.load %arg9[%c0_15, %c0_16] : memref<2x64xf32, #tpu.memory_space<vmem>>, vector<2x64xf32>
        tpu.vector_store %arg9[%c0_15, %c0_16], %25 {strides = array<i32>} : memref<2x64xf32, #tpu.memory_space<vmem>>, vector<2x64xf32>,
      } else {
      }
      %c0_8 = arith.constant 0 : index
      %c0_9 = arith.constant 0 : index
      %16 = vector.load %arg9[%c0_8, %c0_9] : memref<2x64xf32, #tpu.memory_space<vmem>>, vector<2x64xf32>
      %cst_10 = arith.constant dense<0.000000e+00> : vector<64xf32>
      %17 = vector.multi_reduction <add>, %10, %cst_10 [0] : vector<64x64xf32> to vector<64xf32>
      %18 = vector.shape_cast %17 : vector<64xf32> to vector<1x64xf32>
      %19 = arith.mulf %10, %10 : vector<64x64xf32>
      %cst_11 = arith.constant dense<0.000000e+00> : vector<64xf32>
      %20 = vector.multi_reduction <add>, %19, %cst_11 [0] : vector<64x64xf32> to vector<64xf32>
      %21 = vector.shape_cast %20 : vector<64xf32> to vector<1x64xf32>
      %22 = tpu.concatenate %18, %21 in 0 : vector<1x64xf32>, vector<1x64xf32> -> vector<2x64xf32>
      %23 = arith.addf %16, %22 : vector<2x64xf32>
      %c0_12 = arith.constant 0 : index
      %c0_13 = arith.constant 0 : index
      %24 = vector.load %arg9[%c0_12, %c0_13] : memref<2x64xf32, #tpu.memory_space<vmem>>, vector<2x64xf32>
      tpu.vector_store %arg9[%c0_12, %c0_13], %23 {strides = array<i32>} : memref<2x64xf32, #tpu.memory_space<vmem>>, vector<2x64xf32>,
    } else {
    }
    %c1_i32 = arith.constant 1 : i32
    %5 = arith.cmpi eq, %arg0, %c1_i32 : i32
    %6 = arith.extui %5 : i1 to i32
    %c0_i32_1 = arith.constant 0 : i32
    %7 = arith.cmpi ne, %6, %c0_i32_1 : i32
    scf.if %7 {
      %c0_i32_2 = arith.constant 0 : i32
      %8 = arith.cmpi eq, %arg1, %c0_i32_2 : i32
      %9 = arith.extui %8 : i1 to i32
      %c0_i32_3 = arith.constant 0 : i32
      %10 = arith.cmpi ne, %9, %c0_i32_3 : i32
      scf.if %10 {
        %c0_11 = arith.constant 0 : index
        %c0_12 = arith.constant 0 : index
        %24 = vector.load %arg9[%c0_11, %c0_12] : memref<2x64xf32, #tpu.memory_space<vmem>>, vector<1x64xf32>
        %cst_13 = arith.constant 1.562500e-02 : f32
        %25 = vector.broadcast %cst_13 : f32 to vector<1x64xf32>
        %26 = arith.mulf %24, %25 : vector<1x64xf32>
        %c1_14 = arith.constant 1 : index
        %c0_15 = arith.constant 0 : index
        %27 = vector.load %arg9[%c1_14, %c0_15] : memref<2x64xf32, #tpu.memory_space<vmem>>, vector<1x64xf32>
        %cst_16 = arith.constant 1.562500e-02 : f32
        %28 = vector.broadcast %cst_16 : f32 to vector<1x64xf32>
        %29 = arith.mulf %27, %28 : vector<1x64xf32>
        %30 = arith.mulf %26, %26 : vector<1x64xf32>
        %31 = arith.subf %29, %30 : vector<1x64xf32>
        %c0_17 = arith.constant 0 : index
        %c0_18 = arith.constant 0 : index
        %32 = vector.load %arg4[%c0_17, %c0_18] : memref<1x64xf32, #tpu.memory_space<vmem>>, vector<1x64xf32>
        %cst_19 = arith.constant 9.99999974E-6 : f32
        %33 = vector.broadcast %cst_19 : f32 to vector<1x64xf32>
        %34 = arith.addf %31, %33 : vector<1x64xf32>
        %35 = math.rsqrt %34 : vector<1x64xf32>
        %36 = arith.mulf %32, %35 : vector<1x64xf32>
        %c0_20 = arith.constant 0 : index
        %c0_21 = arith.constant 0 : index
        %37 = vector.load %arg5[%c0_20, %c0_21] : memref<1x64xf32, #tpu.memory_space<vmem>>, vector<1x64xf32>
        %38 = arith.mulf %26, %36 : vector<1x64xf32>
        %39 = arith.subf %37, %38 : vector<1x64xf32>
        %40 = tpu.concatenate %36, %39 in 0 : vector<1x64xf32>, vector<1x64xf32> -> vector<2x64xf32>
        %c0_22 = arith.constant 0 : index
        %c0_23 = arith.constant 0 : index
        %41 = vector.load %arg9[%c0_22, %c0_23] : memref<2x64xf32, #tpu.memory_space<vmem>>, vector<2x64xf32>
        tpu.vector_store %arg9[%c0_22, %c0_23], %40 {strides = array<i32>} : memref<2x64xf32, #tpu.memory_space<vmem>>, vector<2x64xf32>,
      } else {
      }
      %11 = arith.index_cast %1 : i32 to index
      %c0 = arith.constant 0 : index
      %12 = vector.load %arg8[%11, %c0] : memref<64x64xf32, #tpu.memory_space<vmem>>, vector<64x64xf32>
      %c0_4 = arith.constant 0 : index
      %c0_5 = arith.constant 0 : index
      %13 = vector.load %arg9[%c0_4, %c0_5] : memref<2x64xf32, #tpu.memory_space<vmem>>, vector<1x64xf32>
      %14 = vector.broadcast %13 : vector<1x64xf32> to vector<64x64xf32>
      %15 = arith.mulf %12, %14 : vector<64x64xf32>
      %c1 = arith.constant 1 : index
      %c0_6 = arith.constant 0 : index
      %16 = vector.load %arg9[%c1, %c0_6] : memref<2x64xf32, #tpu.memory_space<vmem>>, vector<1x64xf32>
      %17 = vector.broadcast %16 : vector<1x64xf32> to vector<64x64xf32>
      %18 = arith.addf %15, %17 : vector<64x64xf32>
      %c0_7 = arith.constant 0 : index
      %c0_8 = arith.constant 0 : index
      %19 = vector.load %arg6[%c0_7, %c0_8] : memref<64x64xf32, #tpu.memory_space<vmem>>, vector<64x64xf32>
      %20 = arith.addf %18, %19 : vector<64x64xf32>
      %cst = arith.constant 0.000000e+00 : f32
      %21 = vector.broadcast %cst : f32 to vector<64x64xf32>
      %22 = arith.maximumf %20, %21 : vector<64x64xf32>
      %c0_9 = arith.constant 0 : index
      %c0_10 = arith.constant 0 : index
      %23 = vector.load %arg7[%c0_9, %c0_10] : memref<64x64xf32, #tpu.memory_space<vmem>>, vector<64x64xf32>
      tpu.vector_store %arg7[%c0_9, %c0_10], %22 {strides = array<i32>} : memref<64x64xf32, #tpu.memory_space<vmem>>, vector<64x64xf32>,
    } else {
    }
    return
  }
  func.func @transform_0(%arg0: i32, %arg1: i32) -> (i32, i32) {
    %c1_i32 = arith.constant 1 : i32
    %0 = arith.subi %c1_i32, %arg0 : i32
    %1 = arith.muli %arg1, %0 : i32
    %c0_i32 = arith.constant 0 : i32
    %c0_i32_0 = arith.constant 0 : i32
    return %1, %c0_i32 : i32, i32
  }
  func.func @transform_1(%arg0: i32, %arg1: i32) -> (i32, i32) {
    %c0_i32 = arith.constant 0 : i32
    %c0_i32_0 = arith.constant 0 : i32
    %c0_i32_1 = arith.constant 0 : i32
    return %c0_i32, %c0_i32_0 : i32, i32
  }
  func.func @transform_2(%arg0: i32, %arg1: i32) -> (i32, i32) {
    %c0_i32 = arith.constant 0 : i32
    %c0_i32_0 = arith.constant 0 : i32
    %c0_i32_1 = arith.constant 0 : i32
    return %c0_i32, %c0_i32_0 : i32, i32
  }
  func.func @transform_3(%arg0: i32, %arg1: i32) -> (i32, i32) {
    %c0_i32 = arith.constant 0 : i32
    %c0_i32_0 = arith.constant 0 : i32
    %c0_i32_1 = arith.constant 0 : i32
    return %c0_i32, %c0_i32_0 : i32, i32
  }
  func.func @transform_4(%arg0: i32, %arg1: i32) -> (i32, i32) {
    %0 = arith.muli %arg1, %arg0 : i32
    %c0_i32 = arith.constant 0 : i32
    %c0_i32_0 = arith.constant 0 : i32
    return %0, %c0_i32 : i32, i32
  }
  func.func @transform_5(%arg0: i32, %arg1: i32) -> (i32, i32) {
    %0 = arith.muli %arg1, %arg0 : i32
    %c0_i32 = arith.constant 0 : i32
    %c0_i32_0 = arith.constant 0 : i32
    return %0, %c0_i32 : i32, i32
  }
}

module attributes {stable_mosaic.version = 11 : i64} {
  func.func @_conv_bn_fused_kernel(%arg0: i32, %arg1: i32, %arg2: memref<16x384xbf16, #tpu.memory_space<vmem>>, %arg3: memref<384x256xbf16, #tpu.memory_space<vmem>>, %arg4: memref<128x256xbf16, #tpu.memory_space<vmem>>, %arg5: memref<1x512xf32, #tpu.memory_space<vmem>>, %arg6: memref<1x512xf32, #tpu.memory_space<vmem>>, %arg7: memref<16x256xf32, #tpu.memory_space<vmem>>, %arg8: memref<16x256xf32, #tpu.memory_space<vmem>>, %arg9: memref<16x512xf32, #tpu.memory_space<vmem>>, %arg10: memref<2x512xf32, #tpu.memory_space<vmem>>) attributes {dimension_semantics = [#tpu.dimension_semantics<arbitrary>, #tpu.dimension_semantics<arbitrary>], iteration_bounds = array<i64: 2, 1>, scalar_prefetch = 0 : i64, scratch_operands = 2 : i64, tpu.core_type = #tpu.core_type<tc>, window_params = [{transform_indices = @transform_0, window_bounds = array<i64: 16, 384>}, {pipeline_mode = #tpu.pipeline_mode<synchronous>, transform_indices = @transform_1, window_bounds = array<i64: 384, 256>}, {pipeline_mode = #tpu.pipeline_mode<synchronous>, transform_indices = @transform_2, window_bounds = array<i64: 128, 256>}, {pipeline_mode = #tpu.pipeline_mode<synchronous>, transform_indices = @transform_3, window_bounds = array<i64: 1, 512>}, {pipeline_mode = #tpu.pipeline_mode<synchronous>, transform_indices = @transform_4, window_bounds = array<i64: 1, 512>}, {transform_indices = @transform_5, window_bounds = array<i64: 16, 256>}, {transform_indices = @transform_6, window_bounds = array<i64: 16, 256>}]} {
    %c16_i32 = arith.constant 16 : i32
    %0 = arith.muli %arg1, %c16_i32 : i32
    %1 = tpu.assume_multiple %0, 16 : i32
    %c0_i32 = arith.constant 0 : i32
    %2 = arith.cmpi eq, %arg0, %c0_i32 : i32
    %3 = arith.extui %2 : i1 to i32
    %c0_i32_0 = arith.constant 0 : i32
    %4 = arith.cmpi ne, %3, %c0_i32_0 : i32
    scf.if %4 {
      %c0 = arith.constant 0 : index
      %c0_2 = arith.constant 0 : index
      %8 = vector.load %arg2[%c0, %c0_2] : memref<16x384xbf16, #tpu.memory_space<vmem>>, vector<16x384xbf16>
      %c0_3 = arith.constant 0 : index
      %c0_4 = arith.constant 0 : index
      %9 = vector.load %arg3[%c0_3, %c0_4] : memref<384x256xbf16, #tpu.memory_space<vmem>>, vector<384x256xbf16>
      %cst = arith.constant dense<0.000000e+00> : vector<16x256xf32>
      %10 = tpu.matmul %8, %9, %cst {dimension_numbers = #tpu.dot_dimension_numbers<[1], [0], [0], [1], [0, 0, 1, 1], [], []>} : vector<16x384xbf16>, vector<384x256xbf16>, vector<16x256xf32> -> vector<16x256xf32>
      %c0_5 = arith.constant 0 : index
      %c0_6 = arith.constant 0 : index
      %11 = vector.load %arg2[%c0_5, %c0_6] : memref<16x384xbf16, #tpu.memory_space<vmem>>, vector<16x128xbf16>
      %c0_7 = arith.constant 0 : index
      %c0_8 = arith.constant 0 : index
      %12 = vector.load %arg4[%c0_7, %c0_8] : memref<128x256xbf16, #tpu.memory_space<vmem>>, vector<128x256xbf16>
      %cst_9 = arith.constant dense<0.000000e+00> : vector<16x256xf32>
      %13 = tpu.matmul %11, %12, %cst_9 {dimension_numbers = #tpu.dot_dimension_numbers<[1], [0], [0], [1], [0, 0, 1, 1], [], []>} : vector<16x128xbf16>, vector<128x256xbf16>, vector<16x256xf32> -> vector<16x256xf32>
      %14 = tpu.concatenate %10, %13 in 1 : vector<16x256xf32>, vector<16x256xf32> -> vector<16x512xf32>
      %15 = arith.index_cast %1 : i32 to index
      %c0_10 = arith.constant 0 : index
      %16 = vector.load %arg9[%15, %c0_10] : memref<16x512xf32, #tpu.memory_space<vmem>>, vector<16x512xf32>
      tpu.vector_store %arg9[%15, %c0_10], %14 {strides = array<i32>} : memref<16x512xf32, #tpu.memory_space<vmem>>, vector<16x512xf32>,
      %c0_i32_11 = arith.constant 0 : i32
      %17 = arith.cmpi eq, %arg1, %c0_i32_11 : i32
      %18 = arith.extui %17 : i1 to i32
      %c0_i32_12 = arith.constant 0 : i32
      %19 = arith.cmpi ne, %18, %c0_i32_12 : i32
      scf.if %19 {
        %cst_19 = arith.constant 0.000000e+00 : f32
        %29 = vector.broadcast %cst_19 : f32 to vector<2x512xf32>
        %c0_20 = arith.constant 0 : index
        %c0_21 = arith.constant 0 : index
        %30 = vector.load %arg10[%c0_20, %c0_21] : memref<2x512xf32, #tpu.memory_space<vmem>>, vector<2x512xf32>
        tpu.vector_store %arg10[%c0_20, %c0_21], %29 {strides = array<i32>} : memref<2x512xf32, #tpu.memory_space<vmem>>, vector<2x512xf32>,
      } else {
      }
      %c0_13 = arith.constant 0 : index
      %c0_14 = arith.constant 0 : index
      %20 = vector.load %arg10[%c0_13, %c0_14] : memref<2x512xf32, #tpu.memory_space<vmem>>, vector<2x512xf32>
      %cst_15 = arith.constant dense<0.000000e+00> : vector<512xf32>
      %21 = vector.multi_reduction <add>, %14, %cst_15 [0] : vector<16x512xf32> to vector<512xf32>
      %22 = vector.shape_cast %21 : vector<512xf32> to vector<1x512xf32>
      %23 = arith.mulf %14, %14 : vector<16x512xf32>
      %cst_16 = arith.constant dense<0.000000e+00> : vector<512xf32>
      %24 = vector.multi_reduction <add>, %23, %cst_16 [0] : vector<16x512xf32> to vector<512xf32>
      %25 = vector.shape_cast %24 : vector<512xf32> to vector<1x512xf32>
      %26 = tpu.concatenate %22, %25 in 0 : vector<1x512xf32>, vector<1x512xf32> -> vector<2x512xf32>
      %27 = arith.addf %20, %26 : vector<2x512xf32>
      %c0_17 = arith.constant 0 : index
      %c0_18 = arith.constant 0 : index
      %28 = vector.load %arg10[%c0_17, %c0_18] : memref<2x512xf32, #tpu.memory_space<vmem>>, vector<2x512xf32>
      tpu.vector_store %arg10[%c0_17, %c0_18], %27 {strides = array<i32>} : memref<2x512xf32, #tpu.memory_space<vmem>>, vector<2x512xf32>,
    } else {
    }
    %c1_i32 = arith.constant 1 : i32
    %5 = arith.cmpi eq, %arg0, %c1_i32 : i32
    %6 = arith.extui %5 : i1 to i32
    %c0_i32_1 = arith.constant 0 : i32
    %7 = arith.cmpi ne, %6, %c0_i32_1 : i32
    scf.if %7 {
      %c0_i32_2 = arith.constant 0 : i32
      %8 = arith.cmpi eq, %arg1, %c0_i32_2 : i32
      %9 = arith.extui %8 : i1 to i32
      %c0_i32_3 = arith.constant 0 : i32
      %10 = arith.cmpi ne, %9, %c0_i32_3 : i32
      scf.if %10 {
        %c0_11 = arith.constant 0 : index
        %c0_12 = arith.constant 0 : index
        %25 = vector.load %arg10[%c0_11, %c0_12] : memref<2x512xf32, #tpu.memory_space<vmem>>, vector<1x512xf32>
        %cst_13 = arith.constant 6.250000e-02 : f32
        %26 = vector.broadcast %cst_13 : f32 to vector<1x512xf32>
        %27 = arith.mulf %25, %26 : vector<1x512xf32>
        %c1_14 = arith.constant 1 : index
        %c0_15 = arith.constant 0 : index
        %28 = vector.load %arg10[%c1_14, %c0_15] : memref<2x512xf32, #tpu.memory_space<vmem>>, vector<1x512xf32>
        %cst_16 = arith.constant 6.250000e-02 : f32
        %29 = vector.broadcast %cst_16 : f32 to vector<1x512xf32>
        %30 = arith.mulf %28, %29 : vector<1x512xf32>
        %31 = arith.mulf %27, %27 : vector<1x512xf32>
        %32 = arith.subf %30, %31 : vector<1x512xf32>
        %c0_17 = arith.constant 0 : index
        %c0_18 = arith.constant 0 : index
        %33 = vector.load %arg5[%c0_17, %c0_18] : memref<1x512xf32, #tpu.memory_space<vmem>>, vector<1x512xf32>
        %cst_19 = arith.constant 9.99999974E-6 : f32
        %34 = vector.broadcast %cst_19 : f32 to vector<1x512xf32>
        %35 = arith.addf %32, %34 : vector<1x512xf32>
        %36 = math.rsqrt %35 : vector<1x512xf32>
        %37 = arith.mulf %33, %36 : vector<1x512xf32>
        %c0_20 = arith.constant 0 : index
        %c0_21 = arith.constant 0 : index
        %38 = vector.load %arg6[%c0_20, %c0_21] : memref<1x512xf32, #tpu.memory_space<vmem>>, vector<1x512xf32>
        %39 = arith.mulf %27, %37 : vector<1x512xf32>
        %40 = arith.subf %38, %39 : vector<1x512xf32>
        %41 = tpu.concatenate %37, %40 in 0 : vector<1x512xf32>, vector<1x512xf32> -> vector<2x512xf32>
        %c0_22 = arith.constant 0 : index
        %c0_23 = arith.constant 0 : index
        %42 = vector.load %arg10[%c0_22, %c0_23] : memref<2x512xf32, #tpu.memory_space<vmem>>, vector<2x512xf32>
        tpu.vector_store %arg10[%c0_22, %c0_23], %41 {strides = array<i32>} : memref<2x512xf32, #tpu.memory_space<vmem>>, vector<2x512xf32>,
      } else {
      }
      %11 = arith.index_cast %1 : i32 to index
      %c0 = arith.constant 0 : index
      %12 = vector.load %arg9[%11, %c0] : memref<16x512xf32, #tpu.memory_space<vmem>>, vector<16x512xf32>
      %c0_4 = arith.constant 0 : index
      %c0_5 = arith.constant 0 : index
      %13 = vector.load %arg10[%c0_4, %c0_5] : memref<2x512xf32, #tpu.memory_space<vmem>>, vector<1x512xf32>
      %14 = vector.broadcast %13 : vector<1x512xf32> to vector<16x512xf32>
      %15 = arith.mulf %12, %14 : vector<16x512xf32>
      %c1 = arith.constant 1 : index
      %c0_6 = arith.constant 0 : index
      %16 = vector.load %arg10[%c1, %c0_6] : memref<2x512xf32, #tpu.memory_space<vmem>>, vector<1x512xf32>
      %17 = vector.broadcast %16 : vector<1x512xf32> to vector<16x512xf32>
      %18 = arith.addf %15, %17 : vector<16x512xf32>
      %19 = vector.extract_strided_slice %18 {offsets = [0, 0], sizes = [16, 256], strides = [1, 1]} : vector<16x512xf32> to vector<16x256xf32>
      %cst = arith.constant 0.000000e+00 : f32
      %20 = vector.broadcast %cst : f32 to vector<16x256xf32>
      %21 = arith.maximumf %19, %20 : vector<16x256xf32>
      %c0_7 = arith.constant 0 : index
      %c0_8 = arith.constant 0 : index
      %22 = vector.load %arg7[%c0_7, %c0_8] : memref<16x256xf32, #tpu.memory_space<vmem>>, vector<16x256xf32>
      tpu.vector_store %arg7[%c0_7, %c0_8], %21 {strides = array<i32>} : memref<16x256xf32, #tpu.memory_space<vmem>>, vector<16x256xf32>,
      %23 = vector.extract_strided_slice %18 {offsets = [0, 256], sizes = [16, 256], strides = [1, 1]} : vector<16x512xf32> to vector<16x256xf32>
      %c0_9 = arith.constant 0 : index
      %c0_10 = arith.constant 0 : index
      %24 = vector.load %arg8[%c0_9, %c0_10] : memref<16x256xf32, #tpu.memory_space<vmem>>, vector<16x256xf32>
      tpu.vector_store %arg8[%c0_9, %c0_10], %23 {strides = array<i32>} : memref<16x256xf32, #tpu.memory_space<vmem>>, vector<16x256xf32>,
    } else {
    }
    return
  }
  func.func @transform_0(%arg0: i32, %arg1: i32) -> (i32, i32) {
    %c1_i32 = arith.constant 1 : i32
    %0 = arith.subi %c1_i32, %arg0 : i32
    %1 = arith.muli %arg1, %0 : i32
    %c0_i32 = arith.constant 0 : i32
    %c0_i32_0 = arith.constant 0 : i32
    return %1, %c0_i32 : i32, i32
  }
  func.func @transform_1(%arg0: i32, %arg1: i32) -> (i32, i32) {
    %c0_i32 = arith.constant 0 : i32
    %c0_i32_0 = arith.constant 0 : i32
    %c0_i32_1 = arith.constant 0 : i32
    return %c0_i32, %c0_i32_0 : i32, i32
  }
  func.func @transform_2(%arg0: i32, %arg1: i32) -> (i32, i32) {
    %c0_i32 = arith.constant 0 : i32
    %c0_i32_0 = arith.constant 0 : i32
    %c0_i32_1 = arith.constant 0 : i32
    return %c0_i32, %c0_i32_0 : i32, i32
  }
  func.func @transform_3(%arg0: i32, %arg1: i32) -> (i32, i32) {
    %c0_i32 = arith.constant 0 : i32
    %c0_i32_0 = arith.constant 0 : i32
    %c0_i32_1 = arith.constant 0 : i32
    return %c0_i32, %c0_i32_0 : i32, i32
  }
  func.func @transform_4(%arg0: i32, %arg1: i32) -> (i32, i32) {
    %c0_i32 = arith.constant 0 : i32
    %c0_i32_0 = arith.constant 0 : i32
    %c0_i32_1 = arith.constant 0 : i32
    return %c0_i32, %c0_i32_0 : i32, i32
  }
  func.func @transform_5(%arg0: i32, %arg1: i32) -> (i32, i32) {
    %0 = arith.muli %arg1, %arg0 : i32
    %c0_i32 = arith.constant 0 : i32
    %c0_i32_0 = arith.constant 0 : i32
    return %0, %c0_i32 : i32, i32
  }
  func.func @transform_6(%arg0: i32, %arg1: i32) -> (i32, i32) {
    %0 = arith.muli %arg1, %arg0 : i32
    %c0_i32 = arith.constant 0 : i32
    %c0_i32_0 = arith.constant 0 : i32
    return %0, %c0_i32 : i32, i32
  }
}

module attributes {stable_mosaic.version = 11 : i64} {
  func.func @_conv_bn_fused_kernel(%arg0: i32, %arg1: i32, %arg2: memref<32x192xbf16, #tpu.memory_space<vmem>>, %arg3: memref<192x128xbf16, #tpu.memory_space<vmem>>, %arg4: memref<64x128xbf16, #tpu.memory_space<vmem>>, %arg5: memref<1x256xf32, #tpu.memory_space<vmem>>, %arg6: memref<1x256xf32, #tpu.memory_space<vmem>>, %arg7: memref<32x128xf32, #tpu.memory_space<vmem>>, %arg8: memref<32x128xf32, #tpu.memory_space<vmem>>, %arg9: memref<32x256xf32, #tpu.memory_space<vmem>>, %arg10: memref<2x256xf32, #tpu.memory_space<vmem>>) attributes {dimension_semantics = [#tpu.dimension_semantics<arbitrary>, #tpu.dimension_semantics<arbitrary>], iteration_bounds = array<i64: 2, 1>, scalar_prefetch = 0 : i64, scratch_operands = 2 : i64, tpu.core_type = #tpu.core_type<tc>, window_params = [{transform_indices = @transform_0, window_bounds = array<i64: 32, 192>}, {pipeline_mode = #tpu.pipeline_mode<synchronous>, transform_indices = @transform_1, window_bounds = array<i64: 192, 128>}, {pipeline_mode = #tpu.pipeline_mode<synchronous>, transform_indices = @transform_2, window_bounds = array<i64: 64, 128>}, {pipeline_mode = #tpu.pipeline_mode<synchronous>, transform_indices = @transform_3, window_bounds = array<i64: 1, 256>}, {pipeline_mode = #tpu.pipeline_mode<synchronous>, transform_indices = @transform_4, window_bounds = array<i64: 1, 256>}, {transform_indices = @transform_5, window_bounds = array<i64: 32, 128>}, {transform_indices = @transform_6, window_bounds = array<i64: 32, 128>}]} {
    %c32_i32 = arith.constant 32 : i32
    %0 = arith.muli %arg1, %c32_i32 : i32
    %1 = tpu.assume_multiple %0, 32 : i32
    %c0_i32 = arith.constant 0 : i32
    %2 = arith.cmpi eq, %arg0, %c0_i32 : i32
    %3 = arith.extui %2 : i1 to i32
    %c0_i32_0 = arith.constant 0 : i32
    %4 = arith.cmpi ne, %3, %c0_i32_0 : i32
    scf.if %4 {
      %c0 = arith.constant 0 : index
      %c0_2 = arith.constant 0 : index
      %8 = vector.load %arg2[%c0, %c0_2] : memref<32x192xbf16, #tpu.memory_space<vmem>>, vector<32x192xbf16>
      %c0_3 = arith.constant 0 : index
      %c0_4 = arith.constant 0 : index
      %9 = vector.load %arg3[%c0_3, %c0_4] : memref<192x128xbf16, #tpu.memory_space<vmem>>, vector<192x128xbf16>
      %cst = arith.constant dense<0.000000e+00> : vector<32x128xf32>
      %10 = tpu.matmul %8, %9, %cst {dimension_numbers = #tpu.dot_dimension_numbers<[1], [0], [0], [1], [0, 0, 1, 1], [], []>} : vector<32x192xbf16>, vector<192x128xbf16>, vector<32x128xf32> -> vector<32x128xf32>
      %c0_5 = arith.constant 0 : index
      %c0_6 = arith.constant 0 : index
      %11 = vector.load %arg2[%c0_5, %c0_6] : memref<32x192xbf16, #tpu.memory_space<vmem>>, vector<32x64xbf16>
      %c0_7 = arith.constant 0 : index
      %c0_8 = arith.constant 0 : index
      %12 = vector.load %arg4[%c0_7, %c0_8] : memref<64x128xbf16, #tpu.memory_space<vmem>>, vector<64x128xbf16>
      %cst_9 = arith.constant dense<0.000000e+00> : vector<32x128xf32>
      %13 = tpu.matmul %11, %12, %cst_9 {dimension_numbers = #tpu.dot_dimension_numbers<[1], [0], [0], [1], [0, 0, 1, 1], [], []>} : vector<32x64xbf16>, vector<64x128xbf16>, vector<32x128xf32> -> vector<32x128xf32>
      %14 = tpu.concatenate %10, %13 in 1 : vector<32x128xf32>, vector<32x128xf32> -> vector<32x256xf32>
      %15 = arith.index_cast %1 : i32 to index
      %c0_10 = arith.constant 0 : index
      %16 = vector.load %arg9[%15, %c0_10] : memref<32x256xf32, #tpu.memory_space<vmem>>, vector<32x256xf32>
      tpu.vector_store %arg9[%15, %c0_10], %14 {strides = array<i32>} : memref<32x256xf32, #tpu.memory_space<vmem>>, vector<32x256xf32>,
      %c0_i32_11 = arith.constant 0 : i32
      %17 = arith.cmpi eq, %arg1, %c0_i32_11 : i32
      %18 = arith.extui %17 : i1 to i32
      %c0_i32_12 = arith.constant 0 : i32
      %19 = arith.cmpi ne, %18, %c0_i32_12 : i32
      scf.if %19 {
        %cst_19 = arith.constant 0.000000e+00 : f32
        %29 = vector.broadcast %cst_19 : f32 to vector<2x256xf32>
        %c0_20 = arith.constant 0 : index
        %c0_21 = arith.constant 0 : index
        %30 = vector.load %arg10[%c0_20, %c0_21] : memref<2x256xf32, #tpu.memory_space<vmem>>, vector<2x256xf32>
        tpu.vector_store %arg10[%c0_20, %c0_21], %29 {strides = array<i32>} : memref<2x256xf32, #tpu.memory_space<vmem>>, vector<2x256xf32>,
      } else {
      }
      %c0_13 = arith.constant 0 : index
      %c0_14 = arith.constant 0 : index
      %20 = vector.load %arg10[%c0_13, %c0_14] : memref<2x256xf32, #tpu.memory_space<vmem>>, vector<2x256xf32>
      %cst_15 = arith.constant dense<0.000000e+00> : vector<256xf32>
      %21 = vector.multi_reduction <add>, %14, %cst_15 [0] : vector<32x256xf32> to vector<256xf32>
      %22 = vector.shape_cast %21 : vector<256xf32> to vector<1x256xf32>
      %23 = arith.mulf %14, %14 : vector<32x256xf32>
      %cst_16 = arith.constant dense<0.000000e+00> : vector<256xf32>
      %24 = vector.multi_reduction <add>, %23, %cst_16 [0] : vector<32x256xf32> to vector<256xf32>
      %25 = vector.shape_cast %24 : vector<256xf32> to vector<1x256xf32>
      %26 = tpu.concatenate %22, %25 in 0 : vector<1x256xf32>, vector<1x256xf32> -> vector<2x256xf32>
      %27 = arith.addf %20, %26 : vector<2x256xf32>
      %c0_17 = arith.constant 0 : index
      %c0_18 = arith.constant 0 : index
      %28 = vector.load %arg10[%c0_17, %c0_18] : memref<2x256xf32, #tpu.memory_space<vmem>>, vector<2x256xf32>
      tpu.vector_store %arg10[%c0_17, %c0_18], %27 {strides = array<i32>} : memref<2x256xf32, #tpu.memory_space<vmem>>, vector<2x256xf32>,
    } else {
    }
    %c1_i32 = arith.constant 1 : i32
    %5 = arith.cmpi eq, %arg0, %c1_i32 : i32
    %6 = arith.extui %5 : i1 to i32
    %c0_i32_1 = arith.constant 0 : i32
    %7 = arith.cmpi ne, %6, %c0_i32_1 : i32
    scf.if %7 {
      %c0_i32_2 = arith.constant 0 : i32
      %8 = arith.cmpi eq, %arg1, %c0_i32_2 : i32
      %9 = arith.extui %8 : i1 to i32
      %c0_i32_3 = arith.constant 0 : i32
      %10 = arith.cmpi ne, %9, %c0_i32_3 : i32
      scf.if %10 {
        %c0_11 = arith.constant 0 : index
        %c0_12 = arith.constant 0 : index
        %25 = vector.load %arg10[%c0_11, %c0_12] : memref<2x256xf32, #tpu.memory_space<vmem>>, vector<1x256xf32>
        %cst_13 = arith.constant 3.125000e-02 : f32
        %26 = vector.broadcast %cst_13 : f32 to vector<1x256xf32>
        %27 = arith.mulf %25, %26 : vector<1x256xf32>
        %c1_14 = arith.constant 1 : index
        %c0_15 = arith.constant 0 : index
        %28 = vector.load %arg10[%c1_14, %c0_15] : memref<2x256xf32, #tpu.memory_space<vmem>>, vector<1x256xf32>
        %cst_16 = arith.constant 3.125000e-02 : f32
        %29 = vector.broadcast %cst_16 : f32 to vector<1x256xf32>
        %30 = arith.mulf %28, %29 : vector<1x256xf32>
        %31 = arith.mulf %27, %27 : vector<1x256xf32>
        %32 = arith.subf %30, %31 : vector<1x256xf32>
        %c0_17 = arith.constant 0 : index
        %c0_18 = arith.constant 0 : index
        %33 = vector.load %arg5[%c0_17, %c0_18] : memref<1x256xf32, #tpu.memory_space<vmem>>, vector<1x256xf32>
        %cst_19 = arith.constant 9.99999974E-6 : f32
        %34 = vector.broadcast %cst_19 : f32 to vector<1x256xf32>
        %35 = arith.addf %32, %34 : vector<1x256xf32>
        %36 = math.rsqrt %35 : vector<1x256xf32>
        %37 = arith.mulf %33, %36 : vector<1x256xf32>
        %c0_20 = arith.constant 0 : index
        %c0_21 = arith.constant 0 : index
        %38 = vector.load %arg6[%c0_20, %c0_21] : memref<1x256xf32, #tpu.memory_space<vmem>>, vector<1x256xf32>
        %39 = arith.mulf %27, %37 : vector<1x256xf32>
        %40 = arith.subf %38, %39 : vector<1x256xf32>
        %41 = tpu.concatenate %37, %40 in 0 : vector<1x256xf32>, vector<1x256xf32> -> vector<2x256xf32>
        %c0_22 = arith.constant 0 : index
        %c0_23 = arith.constant 0 : index
        %42 = vector.load %arg10[%c0_22, %c0_23] : memref<2x256xf32, #tpu.memory_space<vmem>>, vector<2x256xf32>
        tpu.vector_store %arg10[%c0_22, %c0_23], %41 {strides = array<i32>} : memref<2x256xf32, #tpu.memory_space<vmem>>, vector<2x256xf32>,
      } else {
      }
      %11 = arith.index_cast %1 : i32 to index
      %c0 = arith.constant 0 : index
      %12 = vector.load %arg9[%11, %c0] : memref<32x256xf32, #tpu.memory_space<vmem>>, vector<32x256xf32>
      %c0_4 = arith.constant 0 : index
      %c0_5 = arith.constant 0 : index
      %13 = vector.load %arg10[%c0_4, %c0_5] : memref<2x256xf32, #tpu.memory_space<vmem>>, vector<1x256xf32>
      %14 = vector.broadcast %13 : vector<1x256xf32> to vector<32x256xf32>
      %15 = arith.mulf %12, %14 : vector<32x256xf32>
      %c1 = arith.constant 1 : index
      %c0_6 = arith.constant 0 : index
      %16 = vector.load %arg10[%c1, %c0_6] : memref<2x256xf32, #tpu.memory_space<vmem>>, vector<1x256xf32>
      %17 = vector.broadcast %16 : vector<1x256xf32> to vector<32x256xf32>
      %18 = arith.addf %15, %17 : vector<32x256xf32>
      %19 = vector.extract_strided_slice %18 {offsets = [0, 0], sizes = [32, 128], strides = [1, 1]} : vector<32x256xf32> to vector<32x128xf32>
      %cst = arith.constant 0.000000e+00 : f32
      %20 = vector.broadcast %cst : f32 to vector<32x128xf32>
      %21 = arith.maximumf %19, %20 : vector<32x128xf32>
      %c0_7 = arith.constant 0 : index
      %c0_8 = arith.constant 0 : index
      %22 = vector.load %arg7[%c0_7, %c0_8] : memref<32x128xf32, #tpu.memory_space<vmem>>, vector<32x128xf32>
      tpu.vector_store %arg7[%c0_7, %c0_8], %21 {strides = array<i32>} : memref<32x128xf32, #tpu.memory_space<vmem>>, vector<32x128xf32>,
      %23 = vector.extract_strided_slice %18 {offsets = [0, 128], sizes = [32, 128], strides = [1, 1]} : vector<32x256xf32> to vector<32x128xf32>
      %c0_9 = arith.constant 0 : index
      %c0_10 = arith.constant 0 : index
      %24 = vector.load %arg8[%c0_9, %c0_10] : memref<32x128xf32, #tpu.memory_space<vmem>>, vector<32x128xf32>
      tpu.vector_store %arg8[%c0_9, %c0_10], %23 {strides = array<i32>} : memref<32x128xf32, #tpu.memory_space<vmem>>, vector<32x128xf32>,
    } else {
    }
    return
  }
  func.func @transform_0(%arg0: i32, %arg1: i32) -> (i32, i32) {
    %c1_i32 = arith.constant 1 : i32
    %0 = arith.subi %c1_i32, %arg0 : i32
    %1 = arith.muli %arg1, %0 : i32
    %c0_i32 = arith.constant 0 : i32
    %c0_i32_0 = arith.constant 0 : i32
    return %1, %c0_i32 : i32, i32
  }
  func.func @transform_1(%arg0: i32, %arg1: i32) -> (i32, i32) {
    %c0_i32 = arith.constant 0 : i32
    %c0_i32_0 = arith.constant 0 : i32
    %c0_i32_1 = arith.constant 0 : i32
    return %c0_i32, %c0_i32_0 : i32, i32
  }
  func.func @transform_2(%arg0: i32, %arg1: i32) -> (i32, i32) {
    %c0_i32 = arith.constant 0 : i32
    %c0_i32_0 = arith.constant 0 : i32
    %c0_i32_1 = arith.constant 0 : i32
    return %c0_i32, %c0_i32_0 : i32, i32
  }
  func.func @transform_3(%arg0: i32, %arg1: i32) -> (i32, i32) {
    %c0_i32 = arith.constant 0 : i32
    %c0_i32_0 = arith.constant 0 : i32
    %c0_i32_1 = arith.constant 0 : i32
    return %c0_i32, %c0_i32_0 : i32, i32
  }
  func.func @transform_4(%arg0: i32, %arg1: i32) -> (i32, i32) {
    %c0_i32 = arith.constant 0 : i32
    %c0_i32_0 = arith.constant 0 : i32
    %c0_i32_1 = arith.constant 0 : i32
    return %c0_i32, %c0_i32_0 : i32, i32
  }
  func.func @transform_5(%arg0: i32, %arg1: i32) -> (i32, i32) {
    %0 = arith.muli %arg1, %arg0 : i32
    %c0_i32 = arith.constant 0 : i32
    %c0_i32_0 = arith.constant 0 : i32
    return %0, %c0_i32 : i32, i32
  }
  func.func @transform_6(%arg0: i32, %arg1: i32) -> (i32, i32) {
    %0 = arith.muli %arg1, %arg0 : i32
    %c0_i32 = arith.constant 0 : i32
    %c0_i32_0 = arith.constant 0 : i32
    return %0, %c0_i32 : i32, i32
  }
}

module attributes {stable_mosaic.version = 11 : i64} {
  func.func @_conv_bn_fused_kernel(%arg0: i32, %arg1: i32, %arg2: memref<32x384xbf16, #tpu.memory_space<vmem>>, %arg3: memref<384x128xbf16, #tpu.memory_space<vmem>>, %arg4: memref<1x128xf32, #tpu.memory_space<vmem>>, %arg5: memref<1x128xf32, #tpu.memory_space<vmem>>, %arg6: memref<32x128xf32, #tpu.memory_space<vmem>>, %arg7: memref<32x128xf32, #tpu.memory_space<vmem>>, %arg8: memref<32x128xf32, #tpu.memory_space<vmem>>, %arg9: memref<2x128xf32, #tpu.memory_space<vmem>>) attributes {dimension_semantics = [#tpu.dimension_semantics<arbitrary>, #tpu.dimension_semantics<arbitrary>], iteration_bounds = array<i64: 2, 1>, scalar_prefetch = 0 : i64, scratch_operands = 2 : i64, tpu.core_type = #tpu.core_type<tc>, window_params = [{transform_indices = @transform_0, window_bounds = array<i64: 32, 384>}, {pipeline_mode = #tpu.pipeline_mode<synchronous>, transform_indices = @transform_1, window_bounds = array<i64: 384, 128>}, {pipeline_mode = #tpu.pipeline_mode<synchronous>, transform_indices = @transform_2, window_bounds = array<i64: 1, 128>}, {pipeline_mode = #tpu.pipeline_mode<synchronous>, transform_indices = @transform_3, window_bounds = array<i64: 1, 128>}, {transform_indices = @transform_4, window_bounds = array<i64: 32, 128>}, {transform_indices = @transform_5, window_bounds = array<i64: 32, 128>}]} {
    %c32_i32 = arith.constant 32 : i32
    %0 = arith.muli %arg1, %c32_i32 : i32
    %1 = tpu.assume_multiple %0, 32 : i32
    %c0_i32 = arith.constant 0 : i32
    %2 = arith.cmpi eq, %arg0, %c0_i32 : i32
    %3 = arith.extui %2 : i1 to i32
    %c0_i32_0 = arith.constant 0 : i32
    %4 = arith.cmpi ne, %3, %c0_i32_0 : i32
    scf.if %4 {
      %c0 = arith.constant 0 : index
      %c0_2 = arith.constant 0 : index
      %8 = vector.load %arg2[%c0, %c0_2] : memref<32x384xbf16, #tpu.memory_space<vmem>>, vector<32x384xbf16>
      %c0_3 = arith.constant 0 : index
      %c0_4 = arith.constant 0 : index
      %9 = vector.load %arg3[%c0_3, %c0_4] : memref<384x128xbf16, #tpu.memory_space<vmem>>, vector<384x128xbf16>
      %cst = arith.constant dense<0.000000e+00> : vector<32x128xf32>
      %10 = tpu.matmul %8, %9, %cst {dimension_numbers = #tpu.dot_dimension_numbers<[1], [0], [0], [1], [0, 0, 1, 1], [], []>} : vector<32x384xbf16>, vector<384x128xbf16>, vector<32x128xf32> -> vector<32x128xf32>
      %11 = arith.index_cast %1 : i32 to index
      %c0_5 = arith.constant 0 : index
      %12 = vector.load %arg8[%11, %c0_5] : memref<32x128xf32, #tpu.memory_space<vmem>>, vector<32x128xf32>
      tpu.vector_store %arg8[%11, %c0_5], %10 {strides = array<i32>} : memref<32x128xf32, #tpu.memory_space<vmem>>, vector<32x128xf32>,
      %c0_i32_6 = arith.constant 0 : i32
      %13 = arith.cmpi eq, %arg1, %c0_i32_6 : i32
      %14 = arith.extui %13 : i1 to i32
      %c0_i32_7 = arith.constant 0 : i32
      %15 = arith.cmpi ne, %14, %c0_i32_7 : i32
      scf.if %15 {
        %cst_14 = arith.constant 0.000000e+00 : f32
        %25 = vector.broadcast %cst_14 : f32 to vector<2x128xf32>
        %c0_15 = arith.constant 0 : index
        %c0_16 = arith.constant 0 : index
        %26 = vector.load %arg9[%c0_15, %c0_16] : memref<2x128xf32, #tpu.memory_space<vmem>>, vector<2x128xf32>
        tpu.vector_store %arg9[%c0_15, %c0_16], %25 {strides = array<i32>} : memref<2x128xf32, #tpu.memory_space<vmem>>, vector<2x128xf32>,
      } else {
      }
      %c0_8 = arith.constant 0 : index
      %c0_9 = arith.constant 0 : index
      %16 = vector.load %arg9[%c0_8, %c0_9] : memref<2x128xf32, #tpu.memory_space<vmem>>, vector<2x128xf32>
      %cst_10 = arith.constant dense<0.000000e+00> : vector<128xf32>
      %17 = vector.multi_reduction <add>, %10, %cst_10 [0] : vector<32x128xf32> to vector<128xf32>
      %18 = vector.shape_cast %17 : vector<128xf32> to vector<1x128xf32>
      %19 = arith.mulf %10, %10 : vector<32x128xf32>
      %cst_11 = arith.constant dense<0.000000e+00> : vector<128xf32>
      %20 = vector.multi_reduction <add>, %19, %cst_11 [0] : vector<32x128xf32> to vector<128xf32>
      %21 = vector.shape_cast %20 : vector<128xf32> to vector<1x128xf32>
      %22 = tpu.concatenate %18, %21 in 0 : vector<1x128xf32>, vector<1x128xf32> -> vector<2x128xf32>
      %23 = arith.addf %16, %22 : vector<2x128xf32>
      %c0_12 = arith.constant 0 : index
      %c0_13 = arith.constant 0 : index
      %24 = vector.load %arg9[%c0_12, %c0_13] : memref<2x128xf32, #tpu.memory_space<vmem>>, vector<2x128xf32>
      tpu.vector_store %arg9[%c0_12, %c0_13], %23 {strides = array<i32>} : memref<2x128xf32, #tpu.memory_space<vmem>>, vector<2x128xf32>,
    } else {
    }
    %c1_i32 = arith.constant 1 : i32
    %5 = arith.cmpi eq, %arg0, %c1_i32 : i32
    %6 = arith.extui %5 : i1 to i32
    %c0_i32_1 = arith.constant 0 : i32
    %7 = arith.cmpi ne, %6, %c0_i32_1 : i32
    scf.if %7 {
      %c0_i32_2 = arith.constant 0 : i32
      %8 = arith.cmpi eq, %arg1, %c0_i32_2 : i32
      %9 = arith.extui %8 : i1 to i32
      %c0_i32_3 = arith.constant 0 : i32
      %10 = arith.cmpi ne, %9, %c0_i32_3 : i32
      scf.if %10 {
        %c0_11 = arith.constant 0 : index
        %c0_12 = arith.constant 0 : index
        %24 = vector.load %arg9[%c0_11, %c0_12] : memref<2x128xf32, #tpu.memory_space<vmem>>, vector<1x128xf32>
        %cst_13 = arith.constant 3.125000e-02 : f32
        %25 = vector.broadcast %cst_13 : f32 to vector<1x128xf32>
        %26 = arith.mulf %24, %25 : vector<1x128xf32>
        %c1_14 = arith.constant 1 : index
        %c0_15 = arith.constant 0 : index
        %27 = vector.load %arg9[%c1_14, %c0_15] : memref<2x128xf32, #tpu.memory_space<vmem>>, vector<1x128xf32>
        %cst_16 = arith.constant 3.125000e-02 : f32
        %28 = vector.broadcast %cst_16 : f32 to vector<1x128xf32>
        %29 = arith.mulf %27, %28 : vector<1x128xf32>
        %30 = arith.mulf %26, %26 : vector<1x128xf32>
        %31 = arith.subf %29, %30 : vector<1x128xf32>
        %c0_17 = arith.constant 0 : index
        %c0_18 = arith.constant 0 : index
        %32 = vector.load %arg4[%c0_17, %c0_18] : memref<1x128xf32, #tpu.memory_space<vmem>>, vector<1x128xf32>
        %cst_19 = arith.constant 9.99999974E-6 : f32
        %33 = vector.broadcast %cst_19 : f32 to vector<1x128xf32>
        %34 = arith.addf %31, %33 : vector<1x128xf32>
        %35 = math.rsqrt %34 : vector<1x128xf32>
        %36 = arith.mulf %32, %35 : vector<1x128xf32>
        %c0_20 = arith.constant 0 : index
        %c0_21 = arith.constant 0 : index
        %37 = vector.load %arg5[%c0_20, %c0_21] : memref<1x128xf32, #tpu.memory_space<vmem>>, vector<1x128xf32>
        %38 = arith.mulf %26, %36 : vector<1x128xf32>
        %39 = arith.subf %37, %38 : vector<1x128xf32>
        %40 = tpu.concatenate %36, %39 in 0 : vector<1x128xf32>, vector<1x128xf32> -> vector<2x128xf32>
        %c0_22 = arith.constant 0 : index
        %c0_23 = arith.constant 0 : index
        %41 = vector.load %arg9[%c0_22, %c0_23] : memref<2x128xf32, #tpu.memory_space<vmem>>, vector<2x128xf32>
        tpu.vector_store %arg9[%c0_22, %c0_23], %40 {strides = array<i32>} : memref<2x128xf32, #tpu.memory_space<vmem>>, vector<2x128xf32>,
      } else {
      }
      %11 = arith.index_cast %1 : i32 to index
      %c0 = arith.constant 0 : index
      %12 = vector.load %arg8[%11, %c0] : memref<32x128xf32, #tpu.memory_space<vmem>>, vector<32x128xf32>
      %c0_4 = arith.constant 0 : index
      %c0_5 = arith.constant 0 : index
      %13 = vector.load %arg9[%c0_4, %c0_5] : memref<2x128xf32, #tpu.memory_space<vmem>>, vector<1x128xf32>
      %14 = vector.broadcast %13 : vector<1x128xf32> to vector<32x128xf32>
      %15 = arith.mulf %12, %14 : vector<32x128xf32>
      %c1 = arith.constant 1 : index
      %c0_6 = arith.constant 0 : index
      %16 = vector.load %arg9[%c1, %c0_6] : memref<2x128xf32, #tpu.memory_space<vmem>>, vector<1x128xf32>
      %17 = vector.broadcast %16 : vector<1x128xf32> to vector<32x128xf32>
      %18 = arith.addf %15, %17 : vector<32x128xf32>
      %c0_7 = arith.constant 0 : index
      %c0_8 = arith.constant 0 : index
      %19 = vector.load %arg6[%c0_7, %c0_8] : memref<32x128xf32, #tpu.memory_space<vmem>>, vector<32x128xf32>
      %20 = arith.addf %18, %19 : vector<32x128xf32>
      %cst = arith.constant 0.000000e+00 : f32
      %21 = vector.broadcast %cst : f32 to vector<32x128xf32>
      %22 = arith.maximumf %20, %21 : vector<32x128xf32>
      %c0_9 = arith.constant 0 : index
      %c0_10 = arith.constant 0 : index
      %23 = vector.load %arg7[%c0_9, %c0_10] : memref<32x128xf32, #tpu.memory_space<vmem>>, vector<32x128xf32>
      tpu.vector_store %arg7[%c0_9, %c0_10], %22 {strides = array<i32>} : memref<32x128xf32, #tpu.memory_space<vmem>>, vector<32x128xf32>,
    } else {
    }
    return
  }
  func.func @transform_0(%arg0: i32, %arg1: i32) -> (i32, i32) {
    %c1_i32 = arith.constant 1 : i32
    %0 = arith.subi %c1_i32, %arg0 : i32
    %1 = arith.muli %arg1, %0 : i32
    %c0_i32 = arith.constant 0 : i32
    %c0_i32_0 = arith.constant 0 : i32
    return %1, %c0_i32 : i32, i32
  }
  func.func @transform_1(%arg0: i32, %arg1: i32) -> (i32, i32) {
    %c0_i32 = arith.constant 0 : i32
    %c0_i32_0 = arith.constant 0 : i32
    %c0_i32_1 = arith.constant 0 : i32
    return %c0_i32, %c0_i32_0 : i32, i32
  }
  func.func @transform_2(%arg0: i32, %arg1: i32) -> (i32, i32) {
    %c0_i32 = arith.constant 0 : i32
    %c0_i32_0 = arith.constant 0 : i32
    %c0_i32_1 = arith.constant 0 : i32
    return %c0_i32, %c0_i32_0 : i32, i32
  }
  func.func @transform_3(%arg0: i32, %arg1: i32) -> (i32, i32) {
    %c0_i32 = arith.constant 0 : i32
    %c0_i32_0 = arith.constant 0 : i32
    %c0_i32_1 = arith.constant 0 : i32
    return %c0_i32, %c0_i32_0 : i32, i32
  }
  func.func @transform_4(%arg0: i32, %arg1: i32) -> (i32, i32) {
    %0 = arith.muli %arg1, %arg0 : i32
    %c0_i32 = arith.constant 0 : i32
    %c0_i32_0 = arith.constant 0 : i32
    return %0, %c0_i32 : i32, i32
  }
  func.func @transform_5(%arg0: i32, %arg1: i32) -> (i32, i32) {
    %0 = arith.muli %arg1, %arg0 : i32
    %c0_i32 = arith.constant 0 : i32
    %c0_i32_0 = arith.constant 0 : i32
    return %0, %c0_i32 : i32, i32
  }
}

module attributes {stable_mosaic.version = 11 : i64} {
  func.func @_conv_bn_fused_kernel(%arg0: i32, %arg1: i32, %arg2: memref<16x768xbf16, #tpu.memory_space<vmem>>, %arg3: memref<768x256xbf16, #tpu.memory_space<vmem>>, %arg4: memref<1x256xf32, #tpu.memory_space<vmem>>, %arg5: memref<1x256xf32, #tpu.memory_space<vmem>>, %arg6: memref<16x256xf32, #tpu.memory_space<vmem>>, %arg7: memref<16x256xf32, #tpu.memory_space<vmem>>, %arg8: memref<16x256xf32, #tpu.memory_space<vmem>>, %arg9: memref<2x256xf32, #tpu.memory_space<vmem>>) attributes {dimension_semantics = [#tpu.dimension_semantics<arbitrary>, #tpu.dimension_semantics<arbitrary>], iteration_bounds = array<i64: 2, 1>, scalar_prefetch = 0 : i64, scratch_operands = 2 : i64, tpu.core_type = #tpu.core_type<tc>, window_params = [{transform_indices = @transform_0, window_bounds = array<i64: 16, 768>}, {pipeline_mode = #tpu.pipeline_mode<synchronous>, transform_indices = @transform_1, window_bounds = array<i64: 768, 256>}, {pipeline_mode = #tpu.pipeline_mode<synchronous>, transform_indices = @transform_2, window_bounds = array<i64: 1, 256>}, {pipeline_mode = #tpu.pipeline_mode<synchronous>, transform_indices = @transform_3, window_bounds = array<i64: 1, 256>}, {transform_indices = @transform_4, window_bounds = array<i64: 16, 256>}, {transform_indices = @transform_5, window_bounds = array<i64: 16, 256>}]} {
    %c16_i32 = arith.constant 16 : i32
    %0 = arith.muli %arg1, %c16_i32 : i32
    %1 = tpu.assume_multiple %0, 16 : i32
    %c0_i32 = arith.constant 0 : i32
    %2 = arith.cmpi eq, %arg0, %c0_i32 : i32
    %3 = arith.extui %2 : i1 to i32
    %c0_i32_0 = arith.constant 0 : i32
    %4 = arith.cmpi ne, %3, %c0_i32_0 : i32
    scf.if %4 {
      %c0 = arith.constant 0 : index
      %c0_2 = arith.constant 0 : index
      %8 = vector.load %arg2[%c0, %c0_2] : memref<16x768xbf16, #tpu.memory_space<vmem>>, vector<16x768xbf16>
      %c0_3 = arith.constant 0 : index
      %c0_4 = arith.constant 0 : index
      %9 = vector.load %arg3[%c0_3, %c0_4] : memref<768x256xbf16, #tpu.memory_space<vmem>>, vector<768x256xbf16>
      %cst = arith.constant dense<0.000000e+00> : vector<16x256xf32>
      %10 = tpu.matmul %8, %9, %cst {dimension_numbers = #tpu.dot_dimension_numbers<[1], [0], [0], [1], [0, 0, 1, 1], [], []>} : vector<16x768xbf16>, vector<768x256xbf16>, vector<16x256xf32> -> vector<16x256xf32>
      %11 = arith.index_cast %1 : i32 to index
      %c0_5 = arith.constant 0 : index
      %12 = vector.load %arg8[%11, %c0_5] : memref<16x256xf32, #tpu.memory_space<vmem>>, vector<16x256xf32>
      tpu.vector_store %arg8[%11, %c0_5], %10 {strides = array<i32>} : memref<16x256xf32, #tpu.memory_space<vmem>>, vector<16x256xf32>,
      %c0_i32_6 = arith.constant 0 : i32
      %13 = arith.cmpi eq, %arg1, %c0_i32_6 : i32
      %14 = arith.extui %13 : i1 to i32
      %c0_i32_7 = arith.constant 0 : i32
      %15 = arith.cmpi ne, %14, %c0_i32_7 : i32
      scf.if %15 {
        %cst_14 = arith.constant 0.000000e+00 : f32
        %25 = vector.broadcast %cst_14 : f32 to vector<2x256xf32>
        %c0_15 = arith.constant 0 : index
        %c0_16 = arith.constant 0 : index
        %26 = vector.load %arg9[%c0_15, %c0_16] : memref<2x256xf32, #tpu.memory_space<vmem>>, vector<2x256xf32>
        tpu.vector_store %arg9[%c0_15, %c0_16], %25 {strides = array<i32>} : memref<2x256xf32, #tpu.memory_space<vmem>>, vector<2x256xf32>,
      } else {
      }
      %c0_8 = arith.constant 0 : index
      %c0_9 = arith.constant 0 : index
      %16 = vector.load %arg9[%c0_8, %c0_9] : memref<2x256xf32, #tpu.memory_space<vmem>>, vector<2x256xf32>
      %cst_10 = arith.constant dense<0.000000e+00> : vector<256xf32>
      %17 = vector.multi_reduction <add>, %10, %cst_10 [0] : vector<16x256xf32> to vector<256xf32>
      %18 = vector.shape_cast %17 : vector<256xf32> to vector<1x256xf32>
      %19 = arith.mulf %10, %10 : vector<16x256xf32>
      %cst_11 = arith.constant dense<0.000000e+00> : vector<256xf32>
      %20 = vector.multi_reduction <add>, %19, %cst_11 [0] : vector<16x256xf32> to vector<256xf32>
      %21 = vector.shape_cast %20 : vector<256xf32> to vector<1x256xf32>
      %22 = tpu.concatenate %18, %21 in 0 : vector<1x256xf32>, vector<1x256xf32> -> vector<2x256xf32>
      %23 = arith.addf %16, %22 : vector<2x256xf32>
      %c0_12 = arith.constant 0 : index
      %c0_13 = arith.constant 0 : index
      %24 = vector.load %arg9[%c0_12, %c0_13] : memref<2x256xf32, #tpu.memory_space<vmem>>, vector<2x256xf32>
      tpu.vector_store %arg9[%c0_12, %c0_13], %23 {strides = array<i32>} : memref<2x256xf32, #tpu.memory_space<vmem>>, vector<2x256xf32>,
    } else {
    }
    %c1_i32 = arith.constant 1 : i32
    %5 = arith.cmpi eq, %arg0, %c1_i32 : i32
    %6 = arith.extui %5 : i1 to i32
    %c0_i32_1 = arith.constant 0 : i32
    %7 = arith.cmpi ne, %6, %c0_i32_1 : i32
    scf.if %7 {
      %c0_i32_2 = arith.constant 0 : i32
      %8 = arith.cmpi eq, %arg1, %c0_i32_2 : i32
      %9 = arith.extui %8 : i1 to i32
      %c0_i32_3 = arith.constant 0 : i32
      %10 = arith.cmpi ne, %9, %c0_i32_3 : i32
      scf.if %10 {
        %c0_11 = arith.constant 0 : index
        %c0_12 = arith.constant 0 : index
        %24 = vector.load %arg9[%c0_11, %c0_12] : memref<2x256xf32, #tpu.memory_space<vmem>>, vector<1x256xf32>
        %cst_13 = arith.constant 6.250000e-02 : f32
        %25 = vector.broadcast %cst_13 : f32 to vector<1x256xf32>
        %26 = arith.mulf %24, %25 : vector<1x256xf32>
        %c1_14 = arith.constant 1 : index
        %c0_15 = arith.constant 0 : index
        %27 = vector.load %arg9[%c1_14, %c0_15] : memref<2x256xf32, #tpu.memory_space<vmem>>, vector<1x256xf32>
        %cst_16 = arith.constant 6.250000e-02 : f32
        %28 = vector.broadcast %cst_16 : f32 to vector<1x256xf32>
        %29 = arith.mulf %27, %28 : vector<1x256xf32>
        %30 = arith.mulf %26, %26 : vector<1x256xf32>
        %31 = arith.subf %29, %30 : vector<1x256xf32>
        %c0_17 = arith.constant 0 : index
        %c0_18 = arith.constant 0 : index
        %32 = vector.load %arg4[%c0_17, %c0_18] : memref<1x256xf32, #tpu.memory_space<vmem>>, vector<1x256xf32>
        %cst_19 = arith.constant 9.99999974E-6 : f32
        %33 = vector.broadcast %cst_19 : f32 to vector<1x256xf32>
        %34 = arith.addf %31, %33 : vector<1x256xf32>
        %35 = math.rsqrt %34 : vector<1x256xf32>
        %36 = arith.mulf %32, %35 : vector<1x256xf32>
        %c0_20 = arith.constant 0 : index
        %c0_21 = arith.constant 0 : index
        %37 = vector.load %arg5[%c0_20, %c0_21] : memref<1x256xf32, #tpu.memory_space<vmem>>, vector<1x256xf32>
        %38 = arith.mulf %26, %36 : vector<1x256xf32>
        %39 = arith.subf %37, %38 : vector<1x256xf32>
        %40 = tpu.concatenate %36, %39 in 0 : vector<1x256xf32>, vector<1x256xf32> -> vector<2x256xf32>
        %c0_22 = arith.constant 0 : index
        %c0_23 = arith.constant 0 : index
        %41 = vector.load %arg9[%c0_22, %c0_23] : memref<2x256xf32, #tpu.memory_space<vmem>>, vector<2x256xf32>
        tpu.vector_store %arg9[%c0_22, %c0_23], %40 {strides = array<i32>} : memref<2x256xf32, #tpu.memory_space<vmem>>, vector<2x256xf32>,
      } else {
      }
      %11 = arith.index_cast %1 : i32 to index
      %c0 = arith.constant 0 : index
      %12 = vector.load %arg8[%11, %c0] : memref<16x256xf32, #tpu.memory_space<vmem>>, vector<16x256xf32>
      %c0_4 = arith.constant 0 : index
      %c0_5 = arith.constant 0 : index
      %13 = vector.load %arg9[%c0_4, %c0_5] : memref<2x256xf32, #tpu.memory_space<vmem>>, vector<1x256xf32>
      %14 = vector.broadcast %13 : vector<1x256xf32> to vector<16x256xf32>
      %15 = arith.mulf %12, %14 : vector<16x256xf32>
      %c1 = arith.constant 1 : index
      %c0_6 = arith.constant 0 : index
      %16 = vector.load %arg9[%c1, %c0_6] : memref<2x256xf32, #tpu.memory_space<vmem>>, vector<1x256xf32>
      %17 = vector.broadcast %16 : vector<1x256xf32> to vector<16x256xf32>
      %18 = arith.addf %15, %17 : vector<16x256xf32>
      %c0_7 = arith.constant 0 : index
      %c0_8 = arith.constant 0 : index
      %19 = vector.load %arg6[%c0_7, %c0_8] : memref<16x256xf32, #tpu.memory_space<vmem>>, vector<16x256xf32>
      %20 = arith.addf %18, %19 : vector<16x256xf32>
      %cst = arith.constant 0.000000e+00 : f32
      %21 = vector.broadcast %cst : f32 to vector<16x256xf32>
      %22 = arith.maximumf %20, %21 : vector<16x256xf32>
      %c0_9 = arith.constant 0 : index
      %c0_10 = arith.constant 0 : index
      %23 = vector.load %arg7[%c0_9, %c0_10] : memref<16x256xf32, #tpu.memory_space<vmem>>, vector<16x256xf32>
      tpu.vector_store %arg7[%c0_9, %c0_10], %22 {strides = array<i32>} : memref<16x256xf32, #tpu.memory_space<vmem>>, vector<16x256xf32>,
    } else {
    }
    return
  }
  func.func @transform_0(%arg0: i32, %arg1: i32) -> (i32, i32) {
    %c1_i32 = arith.constant 1 : i32
    %0 = arith.subi %c1_i32, %arg0 : i32
    %1 = arith.muli %arg1, %0 : i32
    %c0_i32 = arith.constant 0 : i32
    %c0_i32_0 = arith.constant 0 : i32
    return %1, %c0_i32 : i32, i32
  }
  func.func @transform_1(%arg0: i32, %arg1: i32) -> (i32, i32) {
    %c0_i32 = arith.constant 0 : i32
    %c0_i32_0 = arith.constant 0 : i32
    %c0_i32_1 = arith.constant 0 : i32
    return %c0_i32, %c0_i32_0 : i32, i32
  }
  func.func @transform_2(%arg0: i32, %arg1: i32) -> (i32, i32) {
    %c0_i32 = arith.constant 0 : i32
    %c0_i32_0 = arith.constant 0 : i32
    %c0_i32_1 = arith.constant 0 : i32
    return %c0_i32, %c0_i32_0 : i32, i32
  }
  func.func @transform_3(%arg0: i32, %arg1: i32) -> (i32, i32) {
    %c0_i32 = arith.constant 0 : i32
    %c0_i32_0 = arith.constant 0 : i32
    %c0_i32_1 = arith.constant 0 : i32
    return %c0_i32, %c0_i32_0 : i32, i32
  }
  func.func @transform_4(%arg0: i32, %arg1: i32) -> (i32, i32) {
    %0 = arith.muli %arg1, %arg0 : i32
    %c0_i32 = arith.constant 0 : i32
    %c0_i32_0 = arith.constant 0 : i32
    return %0, %c0_i32 : i32, i32
  }
  func.func @transform_5(%arg0: i32, %arg1: i32) -> (i32, i32) {
    %0 = arith.muli %arg1, %arg0 : i32
    %c0_i32 = arith.constant 0 : i32
    %c0_i32_0 = arith.constant 0 : i32
    return %0, %c0_i32 : i32, i32
  }
}

module attributes {stable_mosaic.version = 11 : i64} {
  func.func @_conv_bn_fused_kernel(%arg0: i32, %arg1: i32, %arg2: memref<8x768xbf16, #tpu.memory_space<vmem>>, %arg3: memref<768x512xbf16, #tpu.memory_space<vmem>>, %arg4: memref<256x512xbf16, #tpu.memory_space<vmem>>, %arg5: memref<1x1024xf32, #tpu.memory_space<vmem>>, %arg6: memref<1x1024xf32, #tpu.memory_space<vmem>>, %arg7: memref<8x512xf32, #tpu.memory_space<vmem>>, %arg8: memref<8x512xf32, #tpu.memory_space<vmem>>, %arg9: memref<8x1024xf32, #tpu.memory_space<vmem>>, %arg10: memref<2x1024xf32, #tpu.memory_space<vmem>>) attributes {dimension_semantics = [#tpu.dimension_semantics<arbitrary>, #tpu.dimension_semantics<arbitrary>], iteration_bounds = array<i64: 2, 1>, scalar_prefetch = 0 : i64, scratch_operands = 2 : i64, tpu.core_type = #tpu.core_type<tc>, window_params = [{transform_indices = @transform_0, window_bounds = array<i64: 8, 768>}, {pipeline_mode = #tpu.pipeline_mode<synchronous>, transform_indices = @transform_1, window_bounds = array<i64: 768, 512>}, {pipeline_mode = #tpu.pipeline_mode<synchronous>, transform_indices = @transform_2, window_bounds = array<i64: 256, 512>}, {pipeline_mode = #tpu.pipeline_mode<synchronous>, transform_indices = @transform_3, window_bounds = array<i64: 1, 1024>}, {pipeline_mode = #tpu.pipeline_mode<synchronous>, transform_indices = @transform_4, window_bounds = array<i64: 1, 1024>}, {transform_indices = @transform_5, window_bounds = array<i64: 8, 512>}, {transform_indices = @transform_6, window_bounds = array<i64: 8, 512>}]} {
    %c8_i32 = arith.constant 8 : i32
    %0 = arith.muli %arg1, %c8_i32 : i32
    %1 = tpu.assume_multiple %0, 8 : i32
    %c0_i32 = arith.constant 0 : i32
    %2 = arith.cmpi eq, %arg0, %c0_i32 : i32
    %3 = arith.extui %2 : i1 to i32
    %c0_i32_0 = arith.constant 0 : i32
    %4 = arith.cmpi ne, %3, %c0_i32_0 : i32
    scf.if %4 {
      %c0 = arith.constant 0 : index
      %c0_2 = arith.constant 0 : index
      %8 = vector.load %arg2[%c0, %c0_2] : memref<8x768xbf16, #tpu.memory_space<vmem>>, vector<8x768xbf16>
      %c0_3 = arith.constant 0 : index
      %c0_4 = arith.constant 0 : index
      %9 = vector.load %arg3[%c0_3, %c0_4] : memref<768x512xbf16, #tpu.memory_space<vmem>>, vector<768x512xbf16>
      %cst = arith.constant dense<0.000000e+00> : vector<8x512xf32>
      %10 = tpu.matmul %8, %9, %cst {dimension_numbers = #tpu.dot_dimension_numbers<[1], [0], [0], [1], [0, 0, 1, 1], [], []>} : vector<8x768xbf16>, vector<768x512xbf16>, vector<8x512xf32> -> vector<8x512xf32>
      %c0_5 = arith.constant 0 : index
      %c0_6 = arith.constant 0 : index
      %11 = vector.load %arg2[%c0_5, %c0_6] : memref<8x768xbf16, #tpu.memory_space<vmem>>, vector<8x256xbf16>
      %c0_7 = arith.constant 0 : index
      %c0_8 = arith.constant 0 : index
      %12 = vector.load %arg4[%c0_7, %c0_8] : memref<256x512xbf16, #tpu.memory_space<vmem>>, vector<256x512xbf16>
      %cst_9 = arith.constant dense<0.000000e+00> : vector<8x512xf32>
      %13 = tpu.matmul %11, %12, %cst_9 {dimension_numbers = #tpu.dot_dimension_numbers<[1], [0], [0], [1], [0, 0, 1, 1], [], []>} : vector<8x256xbf16>, vector<256x512xbf16>, vector<8x512xf32> -> vector<8x512xf32>
      %14 = tpu.concatenate %10, %13 in 1 : vector<8x512xf32>, vector<8x512xf32> -> vector<8x1024xf32>
      %15 = arith.index_cast %1 : i32 to index
      %c0_10 = arith.constant 0 : index
      %16 = vector.load %arg9[%15, %c0_10] : memref<8x1024xf32, #tpu.memory_space<vmem>>, vector<8x1024xf32>
      tpu.vector_store %arg9[%15, %c0_10], %14 {strides = array<i32>} : memref<8x1024xf32, #tpu.memory_space<vmem>>, vector<8x1024xf32>,
      %c0_i32_11 = arith.constant 0 : i32
      %17 = arith.cmpi eq, %arg1, %c0_i32_11 : i32
      %18 = arith.extui %17 : i1 to i32
      %c0_i32_12 = arith.constant 0 : i32
      %19 = arith.cmpi ne, %18, %c0_i32_12 : i32
      scf.if %19 {
        %cst_19 = arith.constant 0.000000e+00 : f32
        %29 = vector.broadcast %cst_19 : f32 to vector<2x1024xf32>
        %c0_20 = arith.constant 0 : index
        %c0_21 = arith.constant 0 : index
        %30 = vector.load %arg10[%c0_20, %c0_21] : memref<2x1024xf32, #tpu.memory_space<vmem>>, vector<2x1024xf32>
        tpu.vector_store %arg10[%c0_20, %c0_21], %29 {strides = array<i32>} : memref<2x1024xf32, #tpu.memory_space<vmem>>, vector<2x1024xf32>,
      } else {
      }
      %c0_13 = arith.constant 0 : index
      %c0_14 = arith.constant 0 : index
      %20 = vector.load %arg10[%c0_13, %c0_14] : memref<2x1024xf32, #tpu.memory_space<vmem>>, vector<2x1024xf32>
      %cst_15 = arith.constant dense<0.000000e+00> : vector<1024xf32>
      %21 = vector.multi_reduction <add>, %14, %cst_15 [0] : vector<8x1024xf32> to vector<1024xf32>
      %22 = vector.shape_cast %21 : vector<1024xf32> to vector<1x1024xf32>
      %23 = arith.mulf %14, %14 : vector<8x1024xf32>
      %cst_16 = arith.constant dense<0.000000e+00> : vector<1024xf32>
      %24 = vector.multi_reduction <add>, %23, %cst_16 [0] : vector<8x1024xf32> to vector<1024xf32>
      %25 = vector.shape_cast %24 : vector<1024xf32> to vector<1x1024xf32>
      %26 = tpu.concatenate %22, %25 in 0 : vector<1x1024xf32>, vector<1x1024xf32> -> vector<2x1024xf32>
      %27 = arith.addf %20, %26 : vector<2x1024xf32>
      %c0_17 = arith.constant 0 : index
      %c0_18 = arith.constant 0 : index
      %28 = vector.load %arg10[%c0_17, %c0_18] : memref<2x1024xf32, #tpu.memory_space<vmem>>, vector<2x1024xf32>
      tpu.vector_store %arg10[%c0_17, %c0_18], %27 {strides = array<i32>} : memref<2x1024xf32, #tpu.memory_space<vmem>>, vector<2x1024xf32>,
    } else {
    }
    %c1_i32 = arith.constant 1 : i32
    %5 = arith.cmpi eq, %arg0, %c1_i32 : i32
    %6 = arith.extui %5 : i1 to i32
    %c0_i32_1 = arith.constant 0 : i32
    %7 = arith.cmpi ne, %6, %c0_i32_1 : i32
    scf.if %7 {
      %c0_i32_2 = arith.constant 0 : i32
      %8 = arith.cmpi eq, %arg1, %c0_i32_2 : i32
      %9 = arith.extui %8 : i1 to i32
      %c0_i32_3 = arith.constant 0 : i32
      %10 = arith.cmpi ne, %9, %c0_i32_3 : i32
      scf.if %10 {
        %c0_11 = arith.constant 0 : index
        %c0_12 = arith.constant 0 : index
        %25 = vector.load %arg10[%c0_11, %c0_12] : memref<2x1024xf32, #tpu.memory_space<vmem>>, vector<1x1024xf32>
        %cst_13 = arith.constant 1.250000e-01 : f32
        %26 = vector.broadcast %cst_13 : f32 to vector<1x1024xf32>
        %27 = arith.mulf %25, %26 : vector<1x1024xf32>
        %c1_14 = arith.constant 1 : index
        %c0_15 = arith.constant 0 : index
        %28 = vector.load %arg10[%c1_14, %c0_15] : memref<2x1024xf32, #tpu.memory_space<vmem>>, vector<1x1024xf32>
        %cst_16 = arith.constant 1.250000e-01 : f32
        %29 = vector.broadcast %cst_16 : f32 to vector<1x1024xf32>
        %30 = arith.mulf %28, %29 : vector<1x1024xf32>
        %31 = arith.mulf %27, %27 : vector<1x1024xf32>
        %32 = arith.subf %30, %31 : vector<1x1024xf32>
        %c0_17 = arith.constant 0 : index
        %c0_18 = arith.constant 0 : index
        %33 = vector.load %arg5[%c0_17, %c0_18] : memref<1x1024xf32, #tpu.memory_space<vmem>>, vector<1x1024xf32>
        %cst_19 = arith.constant 9.99999974E-6 : f32
        %34 = vector.broadcast %cst_19 : f32 to vector<1x1024xf32>
        %35 = arith.addf %32, %34 : vector<1x1024xf32>
        %36 = math.rsqrt %35 : vector<1x1024xf32>
        %37 = arith.mulf %33, %36 : vector<1x1024xf32>
        %c0_20 = arith.constant 0 : index
        %c0_21 = arith.constant 0 : index
        %38 = vector.load %arg6[%c0_20, %c0_21] : memref<1x1024xf32, #tpu.memory_space<vmem>>, vector<1x1024xf32>
        %39 = arith.mulf %27, %37 : vector<1x1024xf32>
        %40 = arith.subf %38, %39 : vector<1x1024xf32>
        %41 = tpu.concatenate %37, %40 in 0 : vector<1x1024xf32>, vector<1x1024xf32> -> vector<2x1024xf32>
        %c0_22 = arith.constant 0 : index
        %c0_23 = arith.constant 0 : index
        %42 = vector.load %arg10[%c0_22, %c0_23] : memref<2x1024xf32, #tpu.memory_space<vmem>>, vector<2x1024xf32>
        tpu.vector_store %arg10[%c0_22, %c0_23], %41 {strides = array<i32>} : memref<2x1024xf32, #tpu.memory_space<vmem>>, vector<2x1024xf32>,
      } else {
      }
      %11 = arith.index_cast %1 : i32 to index
      %c0 = arith.constant 0 : index
      %12 = vector.load %arg9[%11, %c0] : memref<8x1024xf32, #tpu.memory_space<vmem>>, vector<8x1024xf32>
      %c0_4 = arith.constant 0 : index
      %c0_5 = arith.constant 0 : index
      %13 = vector.load %arg10[%c0_4, %c0_5] : memref<2x1024xf32, #tpu.memory_space<vmem>>, vector<1x1024xf32>
      %14 = vector.broadcast %13 : vector<1x1024xf32> to vector<8x1024xf32>
      %15 = arith.mulf %12, %14 : vector<8x1024xf32>
      %c1 = arith.constant 1 : index
      %c0_6 = arith.constant 0 : index
      %16 = vector.load %arg10[%c1, %c0_6] : memref<2x1024xf32, #tpu.memory_space<vmem>>, vector<1x1024xf32>
      %17 = vector.broadcast %16 : vector<1x1024xf32> to vector<8x1024xf32>
      %18 = arith.addf %15, %17 : vector<8x1024xf32>
      %19 = vector.extract_strided_slice %18 {offsets = [0, 0], sizes = [8, 512], strides = [1, 1]} : vector<8x1024xf32> to vector<8x512xf32>
      %cst = arith.constant 0.000000e+00 : f32
      %20 = vector.broadcast %cst : f32 to vector<8x512xf32>
      %21 = arith.maximumf %19, %20 : vector<8x512xf32>
      %c0_7 = arith.constant 0 : index
      %c0_8 = arith.constant 0 : index
      %22 = vector.load %arg7[%c0_7, %c0_8] : memref<8x512xf32, #tpu.memory_space<vmem>>, vector<8x512xf32>
      tpu.vector_store %arg7[%c0_7, %c0_8], %21 {strides = array<i32>} : memref<8x512xf32, #tpu.memory_space<vmem>>, vector<8x512xf32>,
      %23 = vector.extract_strided_slice %18 {offsets = [0, 512], sizes = [8, 512], strides = [1, 1]} : vector<8x1024xf32> to vector<8x512xf32>
      %c0_9 = arith.constant 0 : index
      %c0_10 = arith.constant 0 : index
      %24 = vector.load %arg8[%c0_9, %c0_10] : memref<8x512xf32, #tpu.memory_space<vmem>>, vector<8x512xf32>
      tpu.vector_store %arg8[%c0_9, %c0_10], %23 {strides = array<i32>} : memref<8x512xf32, #tpu.memory_space<vmem>>, vector<8x512xf32>,
    } else {
    }
    return
  }
  func.func @transform_0(%arg0: i32, %arg1: i32) -> (i32, i32) {
    %c1_i32 = arith.constant 1 : i32
    %0 = arith.subi %c1_i32, %arg0 : i32
    %1 = arith.muli %arg1, %0 : i32
    %c0_i32 = arith.constant 0 : i32
    %c0_i32_0 = arith.constant 0 : i32
    return %1, %c0_i32 : i32, i32
  }
  func.func @transform_1(%arg0: i32, %arg1: i32) -> (i32, i32) {
    %c0_i32 = arith.constant 0 : i32
    %c0_i32_0 = arith.constant 0 : i32
    %c0_i32_1 = arith.constant 0 : i32
    return %c0_i32, %c0_i32_0 : i32, i32
  }
  func.func @transform_2(%arg0: i32, %arg1: i32) -> (i32, i32) {
    %c0_i32 = arith.constant 0 : i32
    %c0_i32_0 = arith.constant 0 : i32
    %c0_i32_1 = arith.constant 0 : i32
    return %c0_i32, %c0_i32_0 : i32, i32
  }
  func.func @transform_3(%arg0: i32, %arg1: i32) -> (i32, i32) {
    %c0_i32 = arith.constant 0 : i32
    %c0_i32_0 = arith.constant 0 : i32
    %c0_i32_1 = arith.constant 0 : i32
    return %c0_i32, %c0_i32_0 : i32, i32
  }
  func.func @transform_4(%arg0: i32, %arg1: i32) -> (i32, i32) {
    %c0_i32 = arith.constant 0 : i32
    %c0_i32_0 = arith.constant 0 : i32
    %c0_i32_1 = arith.constant 0 : i32
    return %c0_i32, %c0_i32_0 : i32, i32
  }
  func.func @transform_5(%arg0: i32, %arg1: i32) -> (i32, i32) {
    %0 = arith.muli %arg1, %arg0 : i32
    %c0_i32 = arith.constant 0 : i32
    %c0_i32_0 = arith.constant 0 : i32
    return %0, %c0_i32 : i32, i32
  }
  func.func @transform_6(%arg0: i32, %arg1: i32) -> (i32, i32) {
    %0 = arith.muli %arg1, %arg0 : i32
    %c0_i32 = arith.constant 0 : i32
    %c0_i32_0 = arith.constant 0 : i32
    return %0, %c0_i32 : i32, i32
  }
}

module attributes {stable_mosaic.version = 11 : i64} {
  func.func @_pool_fc_kernel(%arg0: i32, %arg1: memref<2x4x512xf32, #tpu.memory_space<vmem>>, %arg2: memref<512x18xbf16, #tpu.memory_space<vmem>>, %arg3: memref<1x18xf32, #tpu.memory_space<vmem>>, %arg4: memref<2x18xf32, #tpu.memory_space<vmem>>, %arg5: memref<2x512xf32, #tpu.memory_space<vmem>>) attributes {dimension_semantics = [#tpu.dimension_semantics<arbitrary>], iteration_bounds = array<i64: 1>, scalar_prefetch = 0 : i64, scratch_operands = 1 : i64, tpu.core_type = #tpu.core_type<tc>, window_params = [{transform_indices = @transform_0, window_bounds = array<i64: 2, 4, 512>}, {pipeline_mode = #tpu.pipeline_mode<synchronous>, transform_indices = @transform_1, window_bounds = array<i64: 512, 18>}, {pipeline_mode = #tpu.pipeline_mode<synchronous>, transform_indices = @transform_2, window_bounds = array<i64: 1, 18>}, {pipeline_mode = #tpu.pipeline_mode<synchronous>, transform_indices = @transform_3, window_bounds = array<i64: 2, 18>}]} {
    %c0_i32 = arith.constant 0 : i32
    %0 = arith.cmpi eq, %arg0, %c0_i32 : i32
    %1 = arith.extui %0 : i1 to i32
    %c0_i32_0 = arith.constant 0 : i32
    %2 = arith.cmpi ne, %1, %c0_i32_0 : i32
    scf.if %2 {
      %cst_9 = arith.constant 0.000000e+00 : f32
      %11 = vector.broadcast %cst_9 : f32 to vector<2x512xf32>
      %c0_10 = arith.constant 0 : index
      %c0_11 = arith.constant 0 : index
      %12 = vector.load %arg5[%c0_10, %c0_11] : memref<2x512xf32, #tpu.memory_space<vmem>>, vector<2x512xf32>
      tpu.vector_store %arg5[%c0_10, %c0_11], %11 {strides = array<i32>} : memref<2x512xf32, #tpu.memory_space<vmem>>, vector<2x512xf32>,
    } else {
    }
    %c0 = arith.constant 0 : index
    %c0_1 = arith.constant 0 : index
    %3 = vector.load %arg5[%c0, %c0_1] : memref<2x512xf32, #tpu.memory_space<vmem>>, vector<2x512xf32>
    %c0_2 = arith.constant 0 : index
    %c0_3 = arith.constant 0 : index
    %c0_4 = arith.constant 0 : index
    %4 = vector.load %arg1[%c0_2, %c0_3, %c0_4] : memref<2x4x512xf32, #tpu.memory_space<vmem>>, vector<2x4x512xf32>
    %cst = arith.constant dense<0.000000e+00> : vector<2x512xf32>
    %5 = vector.multi_reduction <add>, %4, %cst [1] : vector<2x4x512xf32> to vector<2x512xf32>
    %6 = arith.addf %3, %5 : vector<2x512xf32>
    %c0_5 = arith.constant 0 : index
    %c0_6 = arith.constant 0 : index
    %7 = vector.load %arg5[%c0_5, %c0_6] : memref<2x512xf32, #tpu.memory_space<vmem>>, vector<2x512xf32>
    tpu.vector_store %arg5[%c0_5, %c0_6], %6 {strides = array<i32>} : memref<2x512xf32, #tpu.memory_space<vmem>>, vector<2x512xf32>,
    %c0_i32_7 = arith.constant 0 : i32
    %8 = arith.cmpi eq, %arg0, %c0_i32_7 : i32
    %9 = arith.extui %8 : i1 to i32
    %c0_i32_8 = arith.constant 0 : i32
    %10 = arith.cmpi ne, %9, %c0_i32_8 : i32
    scf.if %10 {
      %c0_9 = arith.constant 0 : index
      %c0_10 = arith.constant 0 : index
      %11 = vector.load %arg5[%c0_9, %c0_10] : memref<2x512xf32, #tpu.memory_space<vmem>>, vector<2x512xf32>
      %cst_11 = arith.constant 2.500000e-01 : f32
      %12 = vector.broadcast %cst_11 : f32 to vector<2x512xf32>
      %13 = arith.mulf %11, %12 : vector<2x512xf32>
      %14 = arith.truncf %13 : vector<2x512xf32> to vector<2x512xbf16>
      %c0_12 = arith.constant 0 : index
      %c0_13 = arith.constant 0 : index
      %15 = vector.load %arg2[%c0_12, %c0_13] : memref<512x18xbf16, #tpu.memory_space<vmem>>, vector<512x18xbf16>
      %cst_14 = arith.constant dense<0.000000e+00> : vector<2x18xf32>
      %16 = tpu.matmul %14, %15, %cst_14 {dimension_numbers = #tpu.dot_dimension_numbers<[1], [0], [0], [1], [0, 0, 1, 1], [], []>} : vector<2x512xbf16>, vector<512x18xbf16>, vector<2x18xf32> -> vector<2x18xf32>
      %c0_15 = arith.constant 0 : index
      %c0_16 = arith.constant 0 : index
      %17 = vector.load %arg3[%c0_15, %c0_16] : memref<1x18xf32, #tpu.memory_space<vmem>>, vector<1x18xf32>
      %18 = vector.broadcast %17 : vector<1x18xf32> to vector<2x18xf32>
      %19 = arith.addf %16, %18 : vector<2x18xf32>
      %c0_17 = arith.constant 0 : index
      %c0_18 = arith.constant 0 : index
      %20 = vector.load %arg4[%c0_17, %c0_18] : memref<2x18xf32, #tpu.memory_space<vmem>>, vector<2x18xf32>
      tpu.vector_store %arg4[%c0_17, %c0_18], %19 {strides = array<i32>} : memref<2x18xf32, #tpu.memory_space<vmem>>, vector<2x18xf32>,
    } else {
    }
    return
  }
  func.func @transform_0(%arg0: i32) -> (i32, i32, i32) {
    %c0_i32 = arith.constant 0 : i32
    %c0_i32_0 = arith.constant 0 : i32
    %c0_i32_1 = arith.constant 0 : i32
    return %c0_i32, %arg0, %c0_i32_0 : i32, i32, i32
  }
  func.func @transform_1(%arg0: i32) -> (i32, i32) {
    %c0_i32 = arith.constant 0 : i32
    %c0_i32_0 = arith.constant 0 : i32
    %c0_i32_1 = arith.constant 0 : i32
    return %c0_i32, %c0_i32_0 : i32, i32
  }
  func.func @transform_2(%arg0: i32) -> (i32, i32) {
    %c0_i32 = arith.constant 0 : i32
    %c0_i32_0 = arith.constant 0 : i32
    %c0_i32_1 = arith.constant 0 : i32
    return %c0_i32, %c0_i32_0 : i32, i32
  }
  func.func @transform_3(%arg0: i32) -> (i32, i32) {
    %c0_i32 = arith.constant 0 : i32
    %c0_i32_0 = arith.constant 0 : i32
    %c0_i32_1 = arith.constant 0 : i32
    return %c0_i32, %c0_i32_0 : i32, i32
  }
}

module attributes {stable_mosaic.version = 11 : i64} {
  func.func @_conv_bn_fused_kernel(%arg0: i32, %arg1: i32, %arg2: memref<8x1536xbf16, #tpu.memory_space<vmem>>, %arg3: memref<1536x512xbf16, #tpu.memory_space<vmem>>, %arg4: memref<1x512xf32, #tpu.memory_space<vmem>>, %arg5: memref<1x512xf32, #tpu.memory_space<vmem>>, %arg6: memref<8x512xf32, #tpu.memory_space<vmem>>, %arg7: memref<8x512xf32, #tpu.memory_space<vmem>>, %arg8: memref<8x512xf32, #tpu.memory_space<vmem>>, %arg9: memref<2x512xf32, #tpu.memory_space<vmem>>) attributes {dimension_semantics = [#tpu.dimension_semantics<arbitrary>, #tpu.dimension_semantics<arbitrary>], iteration_bounds = array<i64: 2, 1>, scalar_prefetch = 0 : i64, scratch_operands = 2 : i64, tpu.core_type = #tpu.core_type<tc>, window_params = [{transform_indices = @transform_0, window_bounds = array<i64: 8, 1536>}, {pipeline_mode = #tpu.pipeline_mode<synchronous>, transform_indices = @transform_1, window_bounds = array<i64: 1536, 512>}, {pipeline_mode = #tpu.pipeline_mode<synchronous>, transform_indices = @transform_2, window_bounds = array<i64: 1, 512>}, {pipeline_mode = #tpu.pipeline_mode<synchronous>, transform_indices = @transform_3, window_bounds = array<i64: 1, 512>}, {transform_indices = @transform_4, window_bounds = array<i64: 8, 512>}, {transform_indices = @transform_5, window_bounds = array<i64: 8, 512>}]} {
    %c8_i32 = arith.constant 8 : i32
    %0 = arith.muli %arg1, %c8_i32 : i32
    %1 = tpu.assume_multiple %0, 8 : i32
    %c0_i32 = arith.constant 0 : i32
    %2 = arith.cmpi eq, %arg0, %c0_i32 : i32
    %3 = arith.extui %2 : i1 to i32
    %c0_i32_0 = arith.constant 0 : i32
    %4 = arith.cmpi ne, %3, %c0_i32_0 : i32
    scf.if %4 {
      %c0 = arith.constant 0 : index
      %c0_2 = arith.constant 0 : index
      %8 = vector.load %arg2[%c0, %c0_2] : memref<8x1536xbf16, #tpu.memory_space<vmem>>, vector<8x1536xbf16>
      %c0_3 = arith.constant 0 : index
      %c0_4 = arith.constant 0 : index
      %9 = vector.load %arg3[%c0_3, %c0_4] : memref<1536x512xbf16, #tpu.memory_space<vmem>>, vector<1536x512xbf16>
      %cst = arith.constant dense<0.000000e+00> : vector<8x512xf32>
      %10 = tpu.matmul %8, %9, %cst {dimension_numbers = #tpu.dot_dimension_numbers<[1], [0], [0], [1], [0, 0, 1, 1], [], []>} : vector<8x1536xbf16>, vector<1536x512xbf16>, vector<8x512xf32> -> vector<8x512xf32>
      %11 = arith.index_cast %1 : i32 to index
      %c0_5 = arith.constant 0 : index
      %12 = vector.load %arg8[%11, %c0_5] : memref<8x512xf32, #tpu.memory_space<vmem>>, vector<8x512xf32>
      tpu.vector_store %arg8[%11, %c0_5], %10 {strides = array<i32>} : memref<8x512xf32, #tpu.memory_space<vmem>>, vector<8x512xf32>,
      %c0_i32_6 = arith.constant 0 : i32
      %13 = arith.cmpi eq, %arg1, %c0_i32_6 : i32
      %14 = arith.extui %13 : i1 to i32
      %c0_i32_7 = arith.constant 0 : i32
      %15 = arith.cmpi ne, %14, %c0_i32_7 : i32
      scf.if %15 {
        %cst_14 = arith.constant 0.000000e+00 : f32
        %25 = vector.broadcast %cst_14 : f32 to vector<2x512xf32>
        %c0_15 = arith.constant 0 : index
        %c0_16 = arith.constant 0 : index
        %26 = vector.load %arg9[%c0_15, %c0_16] : memref<2x512xf32, #tpu.memory_space<vmem>>, vector<2x512xf32>
        tpu.vector_store %arg9[%c0_15, %c0_16], %25 {strides = array<i32>} : memref<2x512xf32, #tpu.memory_space<vmem>>, vector<2x512xf32>,
      } else {
      }
      %c0_8 = arith.constant 0 : index
      %c0_9 = arith.constant 0 : index
      %16 = vector.load %arg9[%c0_8, %c0_9] : memref<2x512xf32, #tpu.memory_space<vmem>>, vector<2x512xf32>
      %cst_10 = arith.constant dense<0.000000e+00> : vector<512xf32>
      %17 = vector.multi_reduction <add>, %10, %cst_10 [0] : vector<8x512xf32> to vector<512xf32>
      %18 = vector.shape_cast %17 : vector<512xf32> to vector<1x512xf32>
      %19 = arith.mulf %10, %10 : vector<8x512xf32>
      %cst_11 = arith.constant dense<0.000000e+00> : vector<512xf32>
      %20 = vector.multi_reduction <add>, %19, %cst_11 [0] : vector<8x512xf32> to vector<512xf32>
      %21 = vector.shape_cast %20 : vector<512xf32> to vector<1x512xf32>
      %22 = tpu.concatenate %18, %21 in 0 : vector<1x512xf32>, vector<1x512xf32> -> vector<2x512xf32>
      %23 = arith.addf %16, %22 : vector<2x512xf32>
      %c0_12 = arith.constant 0 : index
      %c0_13 = arith.constant 0 : index
      %24 = vector.load %arg9[%c0_12, %c0_13] : memref<2x512xf32, #tpu.memory_space<vmem>>, vector<2x512xf32>
      tpu.vector_store %arg9[%c0_12, %c0_13], %23 {strides = array<i32>} : memref<2x512xf32, #tpu.memory_space<vmem>>, vector<2x512xf32>,
    } else {
    }
    %c1_i32 = arith.constant 1 : i32
    %5 = arith.cmpi eq, %arg0, %c1_i32 : i32
    %6 = arith.extui %5 : i1 to i32
    %c0_i32_1 = arith.constant 0 : i32
    %7 = arith.cmpi ne, %6, %c0_i32_1 : i32
    scf.if %7 {
      %c0_i32_2 = arith.constant 0 : i32
      %8 = arith.cmpi eq, %arg1, %c0_i32_2 : i32
      %9 = arith.extui %8 : i1 to i32
      %c0_i32_3 = arith.constant 0 : i32
      %10 = arith.cmpi ne, %9, %c0_i32_3 : i32
      scf.if %10 {
        %c0_11 = arith.constant 0 : index
        %c0_12 = arith.constant 0 : index
        %24 = vector.load %arg9[%c0_11, %c0_12] : memref<2x512xf32, #tpu.memory_space<vmem>>, vector<1x512xf32>
        %cst_13 = arith.constant 1.250000e-01 : f32
        %25 = vector.broadcast %cst_13 : f32 to vector<1x512xf32>
        %26 = arith.mulf %24, %25 : vector<1x512xf32>
        %c1_14 = arith.constant 1 : index
        %c0_15 = arith.constant 0 : index
        %27 = vector.load %arg9[%c1_14, %c0_15] : memref<2x512xf32, #tpu.memory_space<vmem>>, vector<1x512xf32>
        %cst_16 = arith.constant 1.250000e-01 : f32
        %28 = vector.broadcast %cst_16 : f32 to vector<1x512xf32>
        %29 = arith.mulf %27, %28 : vector<1x512xf32>
        %30 = arith.mulf %26, %26 : vector<1x512xf32>
        %31 = arith.subf %29, %30 : vector<1x512xf32>
        %c0_17 = arith.constant 0 : index
        %c0_18 = arith.constant 0 : index
        %32 = vector.load %arg4[%c0_17, %c0_18] : memref<1x512xf32, #tpu.memory_space<vmem>>, vector<1x512xf32>
        %cst_19 = arith.constant 9.99999974E-6 : f32
        %33 = vector.broadcast %cst_19 : f32 to vector<1x512xf32>
        %34 = arith.addf %31, %33 : vector<1x512xf32>
        %35 = math.rsqrt %34 : vector<1x512xf32>
        %36 = arith.mulf %32, %35 : vector<1x512xf32>
        %c0_20 = arith.constant 0 : index
        %c0_21 = arith.constant 0 : index
        %37 = vector.load %arg5[%c0_20, %c0_21] : memref<1x512xf32, #tpu.memory_space<vmem>>, vector<1x512xf32>
        %38 = arith.mulf %26, %36 : vector<1x512xf32>
        %39 = arith.subf %37, %38 : vector<1x512xf32>
        %40 = tpu.concatenate %36, %39 in 0 : vector<1x512xf32>, vector<1x512xf32> -> vector<2x512xf32>
        %c0_22 = arith.constant 0 : index
        %c0_23 = arith.constant 0 : index
        %41 = vector.load %arg9[%c0_22, %c0_23] : memref<2x512xf32, #tpu.memory_space<vmem>>, vector<2x512xf32>
        tpu.vector_store %arg9[%c0_22, %c0_23], %40 {strides = array<i32>} : memref<2x512xf32, #tpu.memory_space<vmem>>, vector<2x512xf32>,
      } else {
      }
      %11 = arith.index_cast %1 : i32 to index
      %c0 = arith.constant 0 : index
      %12 = vector.load %arg8[%11, %c0] : memref<8x512xf32, #tpu.memory_space<vmem>>, vector<8x512xf32>
      %c0_4 = arith.constant 0 : index
      %c0_5 = arith.constant 0 : index
      %13 = vector.load %arg9[%c0_4, %c0_5] : memref<2x512xf32, #tpu.memory_space<vmem>>, vector<1x512xf32>
      %14 = vector.broadcast %13 : vector<1x512xf32> to vector<8x512xf32>
      %15 = arith.mulf %12, %14 : vector<8x512xf32>
      %c1 = arith.constant 1 : index
      %c0_6 = arith.constant 0 : index
      %16 = vector.load %arg9[%c1, %c0_6] : memref<2x512xf32, #tpu.memory_space<vmem>>, vector<1x512xf32>
      %17 = vector.broadcast %16 : vector<1x512xf32> to vector<8x512xf32>
      %18 = arith.addf %15, %17 : vector<8x512xf32>
      %c0_7 = arith.constant 0 : index
      %c0_8 = arith.constant 0 : index
      %19 = vector.load %arg6[%c0_7, %c0_8] : memref<8x512xf32, #tpu.memory_space<vmem>>, vector<8x512xf32>
      %20 = arith.addf %18, %19 : vector<8x512xf32>
      %cst = arith.constant 0.000000e+00 : f32
      %21 = vector.broadcast %cst : f32 to vector<8x512xf32>
      %22 = arith.maximumf %20, %21 : vector<8x512xf32>
      %c0_9 = arith.constant 0 : index
      %c0_10 = arith.constant 0 : index
      %23 = vector.load %arg7[%c0_9, %c0_10] : memref<8x512xf32, #tpu.memory_space<vmem>>, vector<8x512xf32>
      tpu.vector_store %arg7[%c0_9, %c0_10], %22 {strides = array<i32>} : memref<8x512xf32, #tpu.memory_space<vmem>>, vector<8x512xf32>,
    } else {
    }
    return
  }
  func.func @transform_0(%arg0: i32, %arg1: i32) -> (i32, i32) {
    %c1_i32 = arith.constant 1 : i32
    %0 = arith.subi %c1_i32, %arg0 : i32
    %1 = arith.muli %arg1, %0 : i32
    %c0_i32 = arith.constant 0 : i32
    %c0_i32_0 = arith.constant 0 : i32
    return %1, %c0_i32 : i32, i32
  }
  func.func @transform_1(%arg0: i32, %arg1: i32) -> (i32, i32) {
    %c0_i32 = arith.constant 0 : i32
    %c0_i32_0 = arith.constant 0 : i32
    %c0_i32_1 = arith.constant 0 : i32
    return %c0_i32, %c0_i32_0 : i32, i32
  }
  func.func @transform_2(%arg0: i32, %arg1: i32) -> (i32, i32) {
    %c0_i32 = arith.constant 0 : i32
    %c0_i32_0 = arith.constant 0 : i32
    %c0_i32_1 = arith.constant 0 : i32
    return %c0_i32, %c0_i32_0 : i32, i32
  }
  func.func @transform_3(%arg0: i32, %arg1: i32) -> (i32, i32) {
    %c0_i32 = arith.constant 0 : i32
    %c0_i32_0 = arith.constant 0 : i32
    %c0_i32_1 = arith.constant 0 : i32
    return %c0_i32, %c0_i32_0 : i32, i32
  }
  func.func @transform_4(%arg0: i32, %arg1: i32) -> (i32, i32) {
    %0 = arith.muli %arg1, %arg0 : i32
    %c0_i32 = arith.constant 0 : i32
    %c0_i32_0 = arith.constant 0 : i32
    return %0, %c0_i32 : i32, i32
  }
  func.func @transform_5(%arg0: i32, %arg1: i32) -> (i32, i32) {
    %0 = arith.muli %arg1, %arg0 : i32
    %c0_i32 = arith.constant 0 : i32
    %c0_i32_0 = arith.constant 0 : i32
    return %0, %c0_i32 : i32, i32
  }
}

</mosaic_0001>

<bundles_post_ra>
// kernel: _lambda_.12
= control target key start
LH: loop header
LB: loop body
LE: loop exit
PB: predicated region body
PF: predicated region fallthrough
CT: control target
= control target key end

     0   :  { %s2067_s15 = smov 0   ;;  %s2069_s16 = smov 0   ;;  %s2708_s0 = inlined_call_operand.vmem [shape: bf16[256,372], index: 0, kind: input, shape index: {}]   ;;  %s2709_s1 = inlined_call_operand.vmem [shape: bf16[372,32], index: 1, kind: input, shape index: {}]   ;;  %s2710_s2 = inlined_call_operand.vmem [shape: f32[1,32], index: 2, kind: input, shape index: {}]   ;;  %s2711_s3 = inlined_call_operand.vmem [shape: f32[1,32], index: 3, kind: input, shape index: {}]   ;;  %s2712_s4 = inlined_call_operand.vmem [shape: f32[256,32], index: 4, kind: output, shape index: {}]  }
   0x1   :  { %s2071_s17 = smov 0  }
   0x2 LB: > { %s26_s18 = sadd.s32 1, %s2035_s16  ;;  %p1604_p0 = scmp.ge.s32.totalorder %s2039_s17, 1  ;;  %s2039_s17 = sphi %s2071_s17, %s14_s17   ;;  %s2035_s16 = sphi %s2069_s16, %s2714_s16   ;;  %s2031_s15 = sphi %s2067_s15, %s2713_s15  }
   0x3   : > { %p28_p1 = scmp.ge.s32.totalorder %s26_s18, 2  ;;  %p186_p2 = scmp.lt.s32.totalorder %s2039_s17, 3 }
   0x5   : > { %s2716_s18 = smov (%p28_p1, %s26_s18), 0  ;;  %p187_p3 = pnand %p1604_p0, %p186_p2 }
   0x6   : > { %p1605_p4 = scmp.ne.s32.totalorder (!%p187_p3), %s2031_s15, 0 }
   0x7   : > { %190 = sbr.rel (%p187_p3) target bundleno = 456 (0x1c8), region = 36 }
   0xc   : > { %240 = sbr.rel (%p1605_p4) target bundleno = 378 (0x17a), region = 40 }
  0x11   : > { %v1927_v0 = vld [vmem:[%s2709_s1 + $0x78] sm:$0xff]   ;;  %v1929_v2 = vld [vmem:[%s2709_s1 + $0x70] sm:$0xff]   ;;  %v1931_v4 = vld [vmem:[%s2709_s1 + $0x68] sm:$0xff]   ;;  %vm782_vm0 = vcmask 1041408   ;;  %vm733_vm1 = vcmask 949248   ;;  %vm1146_vm2 = vcmask 254976  }
  0x12   : > { %v1928_v1 = vld [vmem:[%s2709_s1 + $0x38] sm:$0xff]   ;;  %1701 = vmatprep.subr.bf16.mxu0 %v1927_v0  ;;  %1885 = vmatprep.subr.bf16.mxu1 %v1927_v0  ;;  %v1930_v3 = vld [vmem:[%s2709_s1 + $0x30] sm:$0xff]   ;;  %v1932_v5 = vld [vmem:[%s2709_s1 + $0x28] sm:$0xff]   ;;  %vm1109_vm3 = vcmask 261120   ;;  %vm1319_vm4 = vcmask 1040384  }
  0x13   : > { %1702 = vmatpush3.bf16.msra.mxu0 %v1928_v1  ;;  %1893 = vmatpush3.bf16.msra.mxu1 %v1928_v1  ;;  %v1933_v6 = vld [vmem:[%s2709_s1 + $0x60] sm:$0xff]   ;;  %v1935_v8 = vld [vmem:[%s2709_s1 + $0x58] sm:$0xff]   ;;  %v1937_v10 = vld [vmem:[%s2709_s1 + $0x50] sm:$0xff]  }
  0x14   : > { %1703 = vmatprep.subr.bf16.mxu0 %v1929_v2  ;;  %1886 = vmatprep.subr.bf16.mxu1 %v1929_v2  ;;  %v1934_v7 = vld [vmem:[%s2709_s1 + $0x20] sm:$0xff]   ;;  %v1936_v9 = vld [vmem:[%s2709_s1 + $0x18] sm:$0xff]   ;;  %v1938_v13 = vld [vmem:[%s2709_s1 + $0x10] sm:$0xff]  }
  0x15   : > { %v1945_v11 = vld [vmem:[%s2708_s0 + $0x4] ss:$12 sps:$4 sm:$0xff]   ;;  %v1939_v14 = vld [vmem:[%s2709_s1 + $0x48] sm:$0xff]   ;;  %v1949_v18 = vld [vmem:[%s2709_s1 + $0xb8] ss:$0 sps:$4 sm:$0x33]  }
  0x16   : > { %v1948_v12 = vld [vmem:[%s2708_s0 + $0x124] ss:$12 sps:$4 sm:$0xff]   ;;  %818 = vmatprep.mubr.bf16.mxu0 %v1945_v11  ;;  %v1940_v15 = vld [vmem:[%s2709_s1 + $0x8] sm:$0xff]   ;;  %v784_v21 = vsel %vm782_vm0, %v1949_v18, 0  ;;  %v1959_v29 = vld [vmem:[%s2708_s0 + $0x34] ss:$12 sps:$4 sm:$0xff]  }
  0x17   : > { %1704 = vmatpush3.bf16.msra.mxu0 %v1930_v3  ;;  %1894 = vmatpush3.bf16.msra.mxu1 %v1930_v3  ;;  %v1941_v16 = vld [vmem:[%s2709_s1 + $0x40] sm:$0xff]   ;;  %v1950_v22 = vld [vmem:[%s2709_s1 + $0xb0] sm:$0xff]   ;;  %v1951_v23 = vld [vmem:[%s2708_s0 + $0x1c] ss:$12 sps:$4 sm:$0xff]  }
  0x18   : > { %1705 = vmatprep.subr.bf16.mxu0 %v1931_v4  ;;  %1887 = vmatprep.subr.bf16.mxu1 %v1931_v4  ;;  %v1942_v17 = vld [vmem:[%s2709_s1] sm:$0xff]   ;;  %v1953_v24 = vld [vmem:[%s2708_s0 + $0x13c] ss:$12 sps:$4 sm:$0xff]   ;;  %v1966_v34 = vld [vmem:[%s2709_s1 + $0x90] sm:$0xff]  }
  0x19   : > { %914 = vmatprep.mubr.bf16.mxu1 %v1948_v12  ;;  %v1943_v19 = vld [vmem:[%s2708_s0] ss:$12 sps:$4 sm:$0xff]   ;;  %v1955_v26 = vld [vmem:[%s2708_s0 + $0x18] ss:$12 sps:$4 sm:$0xff]   ;;  %v1963_v32 = vld [vmem:[%s2708_s0 + $0x30] ss:$12 sps:$4 sm:$0xff]  }
  0x1a   : > { %v1946_v20 = vld [vmem:[%s2708_s0 + $0x120] ss:$12 sps:$4 sm:$0xff]   ;;  %v1956_v27 = vld [vmem:[%s2708_s0 + $0x138] ss:$12 sps:$4 sm:$0xff]   ;;  %v1964_v33 = vld [vmem:[%s2708_s0 + $0x150] ss:$12 sps:$4 sm:$0xff]  }
  0x1b   : > { %1706 = vmatpush3.bf16.msra.mxu0 %v1932_v5  ;;  %1895 = vmatpush3.bf16.msra.mxu1 %v1932_v5  ;;  %v1957_v25 = vld [vmem:[%s2709_s1 + $0xa8] sm:$0xff]   ;;  %v1958_v28 = vld [vmem:[%s2709_s1 + $0xa0] sm:$0xff]   ;;  %v1965_v31 = vld [vmem:[%s2709_s1 + $0x98] sm:$0xff]  }
  0x1c   : > { %1707 = vmatprep.subr.bf16.mxu0 %v1933_v6  ;;  %1888 = vmatprep.subr.bf16.mxu1 %v1933_v6  ;;  %v1961_v30 = vld [vmem:[%s2708_s0 + $0x154] ss:$12 sps:$4 sm:$0xff]   ;;  %v1967_v35 = vld [vmem:[%s2708_s0 + $0x4c] ss:$12 sps:$4 sm:$0xff]   ;;  %v1975_v40 = vld [vmem:[%s2708_s0 + $0x64] ss:$12 sps:$4 sm:$0xff]  }
  0x1d   : > { %v1969_v36 = vld [vmem:[%s2708_s0 + $0x16c] ss:$12 sps:$4 sm:$0xff]   ;;  %v1971_v38 = vld [vmem:[%s2708_s0 + $0x48] ss:$12 sps:$4 sm:$0xff]   ;;  %v1974_v41 = vld [vmem:[%s2709_s1 + $0x80] sm:$0xff]  }
  0x1e   : > { %v1973_v37 = vld [vmem:[%s2709_s1 + $0x88] sm:$0xff]   ;;  %v1982_v46 = vld [vmem:[%s2708_s0 + $0x38] ss:$12 sps:$4 sm:$0xff]   ;;  %v1984_v48 = vld [vmem:[%s2708_s0 + $0x50] ss:$12 sps:$4 sm:$0xff]  }
  0x1f   : > { %1708 = vmatpush3.bf16.msra.mxu0 %v1934_v7  ;;  %1896 = vmatpush3.bf16.msra.mxu1 %v1934_v7  ;;  %v1972_v39 = vld [vmem:[%s2708_s0 + $0x168] ss:$12 sps:$4 sm:$0xff]   ;;  %v1978_v43 = vld [vmem:[%s2708_s0 + $0x60] ss:$12 sps:$4 sm:$0xff]   ;;  %v1983_v47 = vld [vmem:[%s2708_s0 + $0x78] ss:$12 sps:$4 sm:$0xff]  }
  0x20   : > { %1709 = vmatprep.subr.bf16.mxu0 %v1935_v8  ;;  %1889 = vmatprep.subr.bf16.mxu1 %v1935_v8  ;;  %v1977_v42 = vld [vmem:[%s2708_s0 + $0x8] ss:$12 sps:$4 sm:$0xff]   ;;  %v1979_v44 = vld [vmem:[%s2708_s0 + $0x20] ss:$12 sps:$4 sm:$0xff]   ;;  %v1988_v51 = vld [vmem:[%s2708_s0 + $0x90] ss:$12 sps:$4 sm:$0xff]  }
  0x21   : > { %v1980_v45 = vld [vmem:[%s2708_s0 + $0x7c] ss:$12 sps:$4 sm:$0xff]   ;;  %v1985_v49 = vld [vmem:[%s2708_s0 + $0x94] ss:$12 sps:$4 sm:$0xff]   ;;  %v1990_v53 = vld [vmem:[%s2708_s0 + $0xac] ss:$12 sps:$4 sm:$0xff]  }
  0x22   : > { %v1987_v50 = vld [vmem:[%s2708_s0 + $0x68] ss:$12 sps:$4 sm:$0xff]   ;;  %v1989_v52 = vld [vmem:[%s2708_s0 + $0x80] ss:$12 sps:$4 sm:$0xff]   ;;  %v1992_v54 = vld [vmem:[%s2708_s0 + $0x98] ss:$12 sps:$4 sm:$0xff]  }
  0x23   : > { %1710 = vmatpush3.bf16.msra.mxu0 %v1936_v9  ;;  %1897 = vmatpush3.bf16.msra.mxu1 %v1936_v9  ;;  %v1993_v55 = vld [vmem:[%s2708_s0 + $0xa8] ss:$12 sps:$4 sm:$0xff]   ;;  %v1994_v56 = vld [vmem:[%s2708_s0 + $0xb0] ss:$12 sps:$4 sm:$0xff]   ;;  %v1998_v59 = vld [vmem:[%s2708_s0 + $0xc0] ss:$12 sps:$4 sm:$0xff]  }
  0x24   : > { %1711 = vmatprep.subr.bf16.mxu0 %v1937_v10  ;;  %1890 = vmatprep.subr.bf16.mxu1 %v1937_v10  ;;  %v1995_v57 = vld [vmem:[%s2708_s0 + $0xc4] ss:$12 sps:$4 sm:$0xff]   ;;  %v1997_v58 = vld [vmem:[%s2708_s0 + $0xc8] ss:$12 sps:$4 sm:$0xff]   ;;  %v1999_v60 = vld [vmem:[%s2708_s0 + $0xe0] ss:$12 sps:$4 sm:$0xff]  }
  0x25   : > { %v2000_v61 = vld [vmem:[%s2708_s0 + $0xdc] ss:$12 sps:$4 sm:$0xff]   ;;  %v2002_v62 = vld [vmem:[%s2708_s0 + $0xf8] ss:$12 sps:$4 sm:$0xff]   ;;  %v2005_v1 = vld [vmem:[%s2708_s0 + $0xf4] ss:$12 sps:$4 sm:$0xff]  }
  0x26   : > { %v2003_v63 = vld [vmem:[%s2708_s0 + $0xd8] ss:$12 sps:$4 sm:$0xff]   ;;  %v2004_v0 = vld [vmem:[%s2708_s0 + $0x110] ss:$12 sps:$4 sm:$0xff]   ;;  %v2007_v2 = vld [vmem:[%s2708_s0 + $0x128] ss:$12 sps:$4 sm:$0xff]  }
  0x27   : > { %1712 = vmatpush3.bf16.msra.mxu0 %v1938_v13  ;;  %1898 = vmatpush3.bf16.msra.mxu1 %v1938_v13  ;;  %v2008_v3 = vld [vmem:[%s2708_s0 + $0xf0] ss:$12 sps:$4 sm:$0xff]   ;;  %v2009_v4 = vld [vmem:[%s2708_s0 + $0x140] ss:$12 sps:$4 sm:$0xff]   ;;  %v2012_v6 = vld [vmem:[%s2708_s0 + $0x158] ss:$12 sps:$4 sm:$0xff]  }
  0x28   : > { %1713 = vmatprep.subr.bf16.mxu0 %v1939_v14  ;;  %1891 = vmatprep.subr.bf16.mxu1 %v1939_v14  ;;  %v2010_v5 = vld [vmem:[%s2708_s0 + $0x10c] ss:$12 sps:$4 sm:$0xff]   ;;  %v2013_v7 = vld [vmem:[%s2708_s0 + $0x108] ss:$12 sps:$4 sm:$0xff]   ;;  %v2014_v8 = vld [vmem:[%s2708_s0 + $0x170] ss:$12 sps:$4 sm:$0xff]  }
  0x29   : > { %v2041_v9 = vmov 0.0  }
  0x2a   : > { %1147 = vst.msk [vmem:[#allocation3] sm:$0x3] %vm1146_vm2, %v2041_v9 }
  0x2b   : > { %1714 = vmatpush3.bf16.msra.mxu0 %v1940_v15  ;;  %1899 = vmatpush3.bf16.msra.mxu1 %v1940_v15 }
  0x2c   : > { %1715 = vmatprep.subr.bf16.mxu0 %v1941_v16  ;;  %1892 = vmatprep.subr.bf16.mxu1 %v1941_v16 }
  0x2f   : > { %1716 = vmatpush3.bf16.msra.mxu0 %v1942_v17  ;;  %1900 = vmatpush3.bf16.msra.mxu1 %v1942_v17 }
  0x30   : > { %1901 = vmatprep.subr.msk.bf16.mxu1 %vm782_vm0, %v1949_v18 }
  0x32   : > { %819 = vmatmul.mubr.bf16.vlgmr.msra.gmra.mxu0 %v1943_v19  ;;  %915 = vmatmul.mubr.bf16.vlgmr.msra.gmra.mxu1 %v1946_v20 }
  0x33   : > { %1838 = vmatpush3.bf16.msra.mxu1 %v784_v21  ;;  %826 = vmatprep.mubr.bf16.mxu0 %v1951_v23 }
  0x34   : > { %1839 = vmatprep.subr.bf16.mxu1 %v1950_v22  ;;  %922 = vmatprep.mubr.bf16.mxu1 %v1953_v24 }
  0x37   : > { %1840 = vmatpush3.bf16.msra.mxu1 %v1950_v22 }
  0x38   : > { %1841 = vmatprep.subr.bf16.mxu1 %v1957_v25 }
  0x3a   : > { %827 = vmatmul.mubr.bf16.gmra.mxu0 %v1955_v26  ;;  %923 = vmatmul.mubr.bf16.gmra.mxu1 %v1956_v27 }
  0x3b   : > { %1842 = vmatpush3.bf16.msra.mxu1 %v1957_v25  ;;  %834 = vmatprep.mubr.bf16.mxu0 %v1959_v29 }
  0x3c   : > { %1843 = vmatprep.subr.bf16.mxu1 %v1958_v28  ;;  %930 = vmatprep.mubr.bf16.mxu1 %v1961_v30 }
  0x3f   : > { %1844 = vmatpush3.bf16.msra.mxu1 %v1958_v28 }
  0x40   : > { %1845 = vmatprep.subr.bf16.mxu1 %v1965_v31 }
  0x42   : > { %835 = vmatmul.mubr.bf16.gmra.mxu0 %v1963_v32  ;;  %931 = vmatmul.mubr.bf16.gmra.mxu1 %v1964_v33 }
  0x43   : > { %1846 = vmatpush3.bf16.msra.mxu1 %v1965_v31  ;;  %842 = vmatprep.mubr.bf16.mxu0 %v1967_v35 }
  0x44   : > { %1847 = vmatprep.subr.bf16.mxu1 %v1966_v34  ;;  %938 = vmatprep.mubr.bf16.mxu1 %v1969_v36 }
  0x47   : > { %1848 = vmatpush3.bf16.msra.mxu1 %v1966_v34 }
  0x48   : > { %1849 = vmatprep.subr.bf16.mxu1 %v1973_v37 }
  0x4a   : > { %843 = vmatmul.mubr.bf16.gmra.mxu0 %v1971_v38  ;;  %939 = vmatmul.mubr.bf16.gmra.mxu1 %v1972_v39 }
  0x4b   : > { %1850 = vmatpush3.bf16.msra.mxu1 %v1973_v37  ;;  %850 = vmatprep.mubr.bf16.mxu0 %v1975_v40 }
  0x4c   : > { %1851 = vmatprep.subr.bf16.mxu1 %v1974_v41  ;;  %1853 = vmatprep.mubr.msk.bf16.mxu1 %vm733_vm1, %v1977_v42 }
  0x4f   : > { %1852 = vmatpush3.bf16.msra.mxu1 %v1974_v41 }
  0x52   : > { %851 = vmatmul.mubr.bf16.gmra.mxu0 %v1978_v43  ;;  %1854 = vmatmul.mubr.msk.bf16.vlgmr.msra.gmra.mxu1 %vm733_vm1, %v1979_v44 }
  0x53   : > { %858 = vmatprep.mubr.bf16.mxu0 %v1980_v45  ;;  %1857 = vmatprep.mubr.msk.bf16.mxu1 %vm733_vm1, %v1982_v46 }
  0x5a   : > { %859 = vmatmul.mubr.bf16.gmra.mxu0 %v1983_v47  ;;  %1858 = vmatmul.mubr.msk.bf16.gmra.mxu1 %vm733_vm1, %v1984_v48 }
  0x5b   : > { %866 = vmatprep.mubr.bf16.mxu0 %v1985_v49  ;;  %1861 = vmatprep.mubr.msk.bf16.mxu1 %vm733_vm1, %v1987_v50 }
  0x62   : > { %867 = vmatmul.mubr.bf16.gmra.mxu0 %v1988_v51  ;;  %1862 = vmatmul.mubr.msk.bf16.gmra.mxu1 %vm733_vm1, %v1989_v52 }
  0x63   : > { %874 = vmatprep.mubr.bf16.mxu0 %v1990_v53  ;;  %1865 = vmatprep.mubr.msk.bf16.mxu1 %vm733_vm1, %v1992_v54 }
  0x6a   : > { %875 = vmatmul.mubr.bf16.gmra.mxu0 %v1993_v55  ;;  %1866 = vmatmul.mubr.msk.bf16.gmra.mxu1 %vm733_vm1, %v1994_v56 }
  0x6b   : > { %882 = vmatprep.mubr.bf16.mxu0 %v1995_v57  ;;  %1869 = vmatprep.mubr.msk.bf16.mxu1 %vm733_vm1, %v1997_v58 }
  0x72   : > { %883 = vmatmul.mubr.bf16.gmra.mxu0 %v1998_v59  ;;  %1870 = vmatmul.mubr.msk.bf16.gmra.mxu1 %vm733_vm1, %v1999_v60 }
  0x73   : > { %890 = vmatprep.mubr.bf16.mxu0 %v2000_v61  ;;  %1873 = vmatprep.mubr.msk.bf16.mxu1 %vm733_vm1, %v2002_v62 }
  0x7a   : > { %891 = vmatmul.mubr.bf16.gmra.mxu0 %v2003_v63  ;;  %1874 = vmatmul.mubr.msk.bf16.gmra.mxu1 %vm733_vm1, %v2004_v0 }
  0x7b   : > { %898 = vmatprep.mubr.bf16.mxu0 %v2005_v1  ;;  %1877 = vmatprep.mubr.msk.bf16.mxu1 %vm733_vm1, %v2007_v2 }
  0x82   : > { %899 = vmatmul.mubr.bf16.gmra.mxu0 %v2008_v3  ;;  %1878 = vmatmul.mubr.msk.bf16.gmra.mxu1 %vm733_vm1, %v2009_v4 }
  0x83   : > { %906 = vmatprep.mubr.bf16.mxu0 %v2010_v5  ;;  %1881 = vmatprep.mubr.msk.bf16.mxu1 %vm733_vm1, %v2012_v6 }
  0x8a   : > { %907 = vmatmul.mubr.bf16.gmra.mxu0 %v2013_v7  ;;  %1882 = vmatmul.mubr.msk.bf16.gmra.mxu1 %vm733_vm1, %v2014_v8 }
  0xf2   : > { %v1717_v10 = vpop.f32.mrf.mxu0  ;;  %v1789_v11 = vpop.f32.mrf.mxu1 }
  0xf4   : > { %v1718_v12 = vpop.f32.mrf.mxu0  ;;  %v1790_v13 = vpop.f32.mrf.mxu1 }
  0xf5   : > { %v2321_v14 = vadd.f32 %v1790_v13, %v1789_v11  ;;  %v1719_v51 = vadd.f32 %v1718_v12, %v1717_v10 }
  0xf6   : > { %v1720_v15 = vpop.f32.mrf.mxu0  ;;  %v1792_v16 = vpop.f32.mrf.mxu1 }
  0xf8   : > { %v1721_v17 = vpop.f32.mrf.mxu0  ;;  %v1793_v18 = vpop.f32.mrf.mxu1 }
  0xf9   : > { %v2323_v19 = vadd.f32 %v1793_v18, %v1792_v16  ;;  %v1722_v60 = vadd.f32 %v1721_v17, %v1720_v15 }
  0xfa   : > { %v1723_v20 = vpop.f32.mrf.mxu0  ;;  %v1795_v21 = vpop.f32.mrf.mxu1 }
  0xfc   : > { %v1724_v22 = vpop.f32.mrf.mxu0  ;;  %v1796_v23 = vpop.f32.mrf.mxu1 }
  0xfd   : > { %v2325_v24 = vadd.f32 %v1796_v23, %v1795_v21  ;;  %v1725_v48 = vadd.f32 %v1724_v22, %v1723_v20 }
  0xfe   : > { %v1726_v25 = vpop.f32.mrf.mxu0  ;;  %v1798_v26 = vpop.f32.mrf.mxu1 }
 0x100   : > { %v1727_v27 = vpop.f32.mrf.mxu0  ;;  %v1799_v28 = vpop.f32.mrf.mxu1 }
 0x101   : > { %v2327_v29 = vadd.f32 %v1799_v28, %v1798_v26  ;;  %v1728_v55 = vadd.f32 %v1727_v27, %v1726_v25 }
 0x102   : > { %v1729_v30 = vpop.f32.mrf.mxu0  ;;  %v1801_v31 = vpop.f32.mrf.mxu1 }
 0x104   : > { %v1730_v32 = vpop.f32.mrf.mxu0  ;;  %v1802_v33 = vpop.f32.mrf.mxu1 }
 0x105   : > { %v2329_v34 = vadd.f32 %v1802_v33, %v1801_v31  ;;  %v1731_v4 = vadd.f32 %v1730_v32, %v1729_v30 }
 0x106   : > { %v1732_v35 = vpop.f32.mrf.mxu0  ;;  %v1804_v36 = vpop.f32.mrf.mxu1 }
 0x108   : > { %v1733_v37 = vpop.f32.mrf.mxu0  ;;  %v1805_v38 = vpop.f32.mrf.mxu1 }
 0x109   : > { %v2331_v39 = vadd.f32 %v1805_v38, %v1804_v36  ;;  %v1734_v27 = vadd.f32 %v1733_v37, %v1732_v35 }
 0x10a   : > { %v1735_v40 = vpop.f32.mrf.mxu0  ;;  %v2333_v41 = vpop.f32.mrf.mxu1 }
 0x10c   : > { %v1736_v42 = vpop.f32.mrf.mxu0  ;;  %v2335_v43 = vpop.f32.mrf.mxu1 }
 0x10d   : > { %v1737_v63 = vadd.f32 %v1736_v42, %v1735_v40 }
 0x10e   : > { %v1738_v44 = vpop.f32.mrf.mxu0  ;;  %v2337_v45 = vpop.f32.mrf.mxu1 }
 0x110   : > { %v1739_v46 = vpop.f32.mrf.mxu0  ;;  %v2339_v47 = vpop.f32.mrf.mxu1 }
 0x111   : > { %v1740_v12 = vadd.f32 %v1739_v46, %v1738_v44 }
 0x112   : > { %v1741_v49 = vpop.f32.mrf.mxu0  ;;  %v1855_v50 = vpop.f32.mrf.mxu1 }
 0x113   : > { %v990_v52 = vadd.f32 %v1855_v50, %v1725_v48 }
 0x114   : > { %v1742_v53 = vpop.f32.mrf.mxu0  ;;  %v981_v54 = vpop.f32.mrf.mxu1 }
 0x115   : > { %1112 = vst.msk [vmem:[#allocation2 + $0x10] sm:$0xff] %vm1109_vm3, %v990_v52  ;;  %v982_v56 = vadd.f32 %v1719_v51, %v981_v54  ;;  %v1220_v6 = vmul.f32 %v990_v52, %v990_v52  ;;  %v1152_v13 = vsel %vm1109_vm3, %v990_v52, 0.0  ;;  %v1743_v48 = vadd.f32 %v1742_v53, %v1741_v49 }
 0x116   : > { %v2342_v57 = vpop.f32.mrf.mxu0  ;;  %v1856_v58 = vpop.f32.mrf.mxu1 }
 0x117   : > { %1110 = vst.msk [vmem:[#allocation2] sm:$0xff] %vm1109_vm3, %v982_v56  ;;  %v993_v59 = vadd.f32 %v1856_v58, %v1728_v55  ;;  %v1218_v0 = vmul.f32 %v982_v56, %v982_v56  ;;  %v1149_v7 = vsel %vm1109_vm3, %v982_v56, 0.0  ;;  %v1253_v28 = vsel %vm1109_vm3, %v1220_v6, 0.0 }
 0x118   : > { %v2345_v61 = vpop.f32.mrf.mxu0  ;;  %v984_v62 = vpop.f32.mrf.mxu1 }
 0x119   : > { %1113 = vst.msk [vmem:[#allocation2 + $0x18] sm:$0xff] %vm1109_vm3, %v993_v59  ;;  %v985_v1 = vadd.f32 %v1722_v60, %v984_v62  ;;  %v1250_v16 = vsel %vm1109_vm3, %v1218_v0, 0.0  ;;  %v1221_v17 = vmul.f32 %v993_v59, %v993_v59  ;;  %v1154_v30 = vsel %vm1109_vm3, %v993_v59, 0.0 }
 0x11a   : > { %v1747_v2 = vpop.f32.mrf.mxu0  ;;  %v1859_v3 = vpop.f32.mrf.mxu1 }
 0x11b   : > { %v1006_v5 = vadd.f32 %v1859_v3, %v1737_v63  ;;  %1111 = vst.msk [vmem:[#allocation2 + $0x8] sm:$0xff] %vm1109_vm3, %v985_v1  ;;  %v1150_v8 = vsel %vm1109_vm3, %v985_v1, 0.0  ;;  %v1219_v9 = vmul.f32 %v985_v1, %v985_v1  ;;  %v1255_v42 = vsel %vm1109_vm3, %v1221_v17, 0.0 }
 0x11c   : > { %v1748_v10 = vpop.f32.mrf.mxu0  ;;  %v997_v11 = vpop.f32.mrf.mxu1  ;;  %v1151_v15 = vadd.f32 %v1150_v8, %v1149_v7 }
 0x11d   : > { %1116 = vst.msk [vmem:[#allocation2 + $0x30] sm:$0xff] %vm1109_vm3, %v1006_v5  ;;  %v1251_v18 = vsel %vm1109_vm3, %v1219_v9, 0.0  ;;  %v998_v20 = vadd.f32 %v1731_v4, %v997_v11  ;;  %v1749_v38 = vadd.f32 %v1748_v10, %v1747_v2  ;;  %v1224_v54 = vmul.f32 %v1006_v5, %v1006_v5 }
 0x11e   : > { %v1750_v21 = vpop.f32.mrf.mxu0  ;;  %v1860_v22 = vpop.f32.mrf.mxu1  ;;  %v1153_v23 = vadd.f32 %v1152_v13, %v1151_v15  ;;  %v1252_v25 = vadd.f32 %v1251_v18, %v1250_v16  ;;  %v1160_v49 = vsel %vm1109_vm3, %v1006_v5, 0.0  ;;  %v1746_v9 = vadd.f32 %v2345_v61, %v2342_v57 }
 0x11f   : > { %v1009_v26 = vadd.f32 %v1860_v22, %v1740_v12  ;;  %1114 = vst.msk [vmem:[#allocation2 + $0x20] sm:$0xff] %vm1109_vm3, %v998_v20  ;;  %v1222_v31 = vmul.f32 %v998_v20, %v998_v20  ;;  %v1156_v44 = vsel %vm1109_vm3, %v998_v20, 0.0  ;;  %v1261_v10 = vsel %vm1109_vm3, %v1224_v54, 0.0 }
 0x120   : > { %v1751_v32 = vpop.f32.mrf.mxu0  ;;  %v1000_v33 = vpop.f32.mrf.mxu1  ;;  %v1254_v36 = vadd.f32 %v1253_v28, %v1252_v25  ;;  %v1155_v40 = vadd.f32 %v1154_v30, %v1153_v23 }
 0x121   : > { %1117 = vst.msk [vmem:[#allocation2 + $0x38] sm:$0xff] %vm1109_vm3, %v1009_v26  ;;  %v1001_v46 = vadd.f32 %v1734_v27, %v1000_v33  ;;  %v1257_v55 = vsel %vm1109_vm3, %v1222_v31, 0.0  ;;  %v1752_v63 = vadd.f32 %v1751_v32, %v1750_v21  ;;  %v1225_v53 = vmul.f32 %v1009_v26, %v1009_v26 }
 0x122   : > { %v1753_v35 = vpop.f32.mrf.mxu0  ;;  %v1863_v37 = vpop.f32.mrf.mxu1  ;;  %v1157_v50 = vadd.f32 %v1156_v44, %v1155_v40  ;;  %v1256_v51 = vadd.f32 %v1255_v42, %v1254_v36  ;;  %v1162_v11 = vsel %vm1109_vm3, %v1009_v26, 0.0 }
 0x123   : > { %v1022_v52 = vadd.f32 %v1863_v37, %v1749_v38  ;;  %1115 = vst.msk [vmem:[#allocation2 + $0x28] sm:$0xff] %vm1109_vm3, %v1001_v46  ;;  %v1158_v56 = vsel %vm1109_vm3, %v1001_v46, 0.0  ;;  %v1223_v58 = vmul.f32 %v1001_v46, %v1001_v46  ;;  %v1263_v17 = vsel %vm1109_vm3, %v1225_v53, 0.0 }
 0x124   : > { %v1754_v59 = vpop.f32.mrf.mxu0  ;;  %v1013_v60 = vpop.f32.mrf.mxu1  ;;  %v1258_v62 = vadd.f32 %v1257_v55, %v1256_v51  ;;  %v1159_v0 = vadd.f32 %v1158_v56, %v1157_v50 }
 0x125   : > { %1120 = vst.msk [vmem:[#allocation2 + $0x50] sm:$0xff] %vm1109_vm3, %v1022_v52  ;;  %v1259_v1 = vsel %vm1109_vm3, %v1223_v58, 0.0  ;;  %v1014_v2 = vadd.f32 %v1743_v48, %v1013_v60  ;;  %v1755_v61 = vadd.f32 %v1754_v59, %v1753_v35  ;;  %v1228_v25 = vmul.f32 %v1022_v52, %v1022_v52 }
 0x126   : > { %v1756_v3 = vpop.f32.mrf.mxu0  ;;  %v1864_v4 = vpop.f32.mrf.mxu1  ;;  %v1161_v6 = vadd.f32 %v1160_v49, %v1159_v0  ;;  %v1260_v7 = vadd.f32 %v1259_v1, %v1258_v62  ;;  %v1168_v37 = vsel %vm1109_vm3, %v1022_v52, 0.0 }
 0x127   : > { %v1025_v8 = vadd.f32 %v1864_v4, %v1752_v63  ;;  %1118 = vst.msk [vmem:[#allocation2 + $0x40] sm:$0xff] %vm1109_vm3, %v1014_v2  ;;  %v1226_v12 = vmul.f32 %v1014_v2, %v1014_v2  ;;  %v1164_v18 = vsel %vm1109_vm3, %v1014_v2, 0.0  ;;  %v1269_v54 = vsel %vm1109_vm3, %v1228_v25, 0.0 }
 0x128   : > { %v1757_v5 = vpop.f32.mrf.mxu0  ;;  %v1016_v13 = vpop.f32.mrf.mxu1  ;;  %v1262_v15 = vadd.f32 %v1261_v10, %v1260_v7  ;;  %v1163_v16 = vadd.f32 %v1162_v11, %v1161_v6 }
 0x129   : > { %1121 = vst.msk [vmem:[#allocation2 + $0x58] sm:$0xff] %vm1109_vm3, %v1025_v8  ;;  %v1017_v20 = vadd.f32 %v1746_v9, %v1016_v13  ;;  %v1265_v26 = vsel %vm1109_vm3, %v1226_v12, 0.0  ;;  %v1758_v48 = vadd.f32 %v1757_v5, %v1756_v3  ;;  %v1229_v55 = vmul.f32 %v1025_v8, %v1025_v8 }
 0x12a   : > { %v1759_v21 = vpop.f32.mrf.mxu0  ;;  %v1867_v57 = vpop.f32.mrf.mxu1  ;;  %v1165_v22 = vadd.f32 %v1164_v18, %v1163_v16  ;;  %v1264_v23 = vadd.f32 %v1263_v17, %v1262_v15  ;;  %v1170_v0 = vsel %vm1109_vm3, %v1025_v8, 0.0 }
 0x12b   : > { %1119 = vst.msk [vmem:[#allocation2 + $0x48] sm:$0xff] %vm1109_vm3, %v1017_v20  ;;  %v1166_v27 = vsel %vm1109_vm3, %v1017_v20, 0.0  ;;  %v1227_v28 = vmul.f32 %v1017_v20, %v1017_v20  ;;  %v1271_v1 = vsel %vm1109_vm3, %v1229_v55, 0.0 }
 0x12c   : > { %v1760_v30 = vpop.f32.mrf.mxu0  ;;  %v1029_v31 = vpop.f32.mrf.mxu1  ;;  %v1266_v32 = vadd.f32 %v1265_v26, %v1264_v23  ;;  %v1167_v33 = vadd.f32 %v1166_v27, %v1165_v22 }
 0x12d   : > { %v1761_v36 = vadd.f32 %v1760_v30, %v1759_v21  ;;  %v1030_v38 = vadd.f32 %v1755_v61, %v1029_v31  ;;  %v1267_v40 = vsel %vm1109_vm3, %v1227_v28, 0.0 }
 0x12e   : > { %v1762_v42 = vpop.f32.mrf.mxu0  ;;  %v1868_v44 = vpop.f32.mrf.mxu1  ;;  %v1268_v46 = vadd.f32 %v1267_v40, %v1266_v32  ;;  %v1169_v56 = vadd.f32 %v1168_v37, %v1167_v33 }
 0x12f   : > { %v1038_v35 = vadd.f32 %v1867_v57, %v1761_v36  ;;  %1122 = vst.msk [vmem:[#allocation2 + $0x60] sm:$0xff] %vm1109_vm3, %v1030_v38  ;;  %v1230_v3 = vmul.f32 %v1030_v38, %v1030_v38  ;;  %v1172_v12 = vsel %vm1109_vm3, %v1030_v38, 0.0 }
 0x130   : > { %v1763_v50 = vpop.f32.mrf.mxu0  ;;  %v1032_v51 = vpop.f32.mrf.mxu1  ;;  %v1270_v58 = vadd.f32 %v1269_v54, %v1268_v46  ;;  %v1171_v2 = vadd.f32 %v1170_v0, %v1169_v56 }
 0x131   : > { %1124 = vst.msk [vmem:[#allocation2 + $0x70] sm:$0xff] %vm1109_vm3, %v1038_v35  ;;  %v1764_v59 = vadd.f32 %v1763_v50, %v1762_v42  ;;  %v1033_v60 = vadd.f32 %v1758_v48, %v1032_v51  ;;  %v1273_v15 = vsel %vm1109_vm3, %v1230_v3, 0.0  ;;  %v1232_v25 = vmul.f32 %v1038_v35, %v1038_v35 }
 0x132   : > { %v1765_v62 = vpop.f32.mrf.mxu0  ;;  %v1871_v63 = vpop.f32.mrf.mxu1  ;;  %v1272_v6 = vadd.f32 %v1271_v1, %v1270_v58  ;;  %v1173_v13 = vadd.f32 %v1172_v12, %v1171_v2  ;;  %v1176_v33 = vsel %vm1109_vm3, %v1038_v35, 0.0 }
 0x133   : > { %v1041_v49 = vadd.f32 %v1868_v44, %v1764_v59  ;;  %1123 = vst.msk [vmem:[#allocation2 + $0x68] sm:$0xff] %vm1109_vm3, %v1033_v60  ;;  %v1231_v10 = vmul.f32 %v1033_v60, %v1033_v60  ;;  %v1174_v17 = vsel %vm1109_vm3, %v1033_v60, 0.0  ;;  %v1277_v40 = vsel %vm1109_vm3, %v1232_v25, 0.0 }
 0x134   : > { %v1766_v52 = vpop.f32.mrf.mxu0  ;;  %v1045_v53 = vpop.f32.mrf.mxu1  ;;  %v1274_v16 = vadd.f32 %v1273_v15, %v1272_v6  ;;  %v1175_v26 = vadd.f32 %v1174_v17, %v1173_v13 }
 0x135   : > { %v1767_v4 = vadd.f32 %v1766_v52, %v1765_v62  ;;  %1125 = vst.msk [vmem:[#allocation2 + $0x78] sm:$0xff] %vm1109_vm3, %v1041_v49  ;;  %v1275_v57 = vsel %vm1109_vm3, %v1231_v10, 0.0  ;;  %v1233_v42 = vmul.f32 %v1041_v49, %v1041_v49  ;;  %v1178_v56 = vsel %vm1109_vm3, %v1041_v49, 0.0 }
 0x136   : > { %v1768_v7 = vpop.f32.mrf.mxu0  ;;  %v1872_v9 = vpop.f32.mrf.mxu1  ;;  %v1276_v28 = vadd.f32 %v1275_v57, %v1274_v16  ;;  %v1177_v44 = vadd.f32 %v1176_v33, %v1175_v26 }
 0x137   : > { %v1046_v11 = vadd.f32 %v1767_v4, %v1045_v53  ;;  %v1279_v59 = vsel %vm1109_vm3, %v1233_v42, 0.0 }
 0x138   : > { %v1769_v8 = vpop.f32.mrf.mxu0  ;;  %v1048_v5 = vpop.f32.mrf.mxu1  ;;  %v1278_v37 = vadd.f32 %v1277_v40, %v1276_v28  ;;  %v1179_v60 = vadd.f32 %v1178_v56, %v1177_v44 }
 0x139   : > { %1126 = vst.msk [vmem:[#allocation2 + $0x80] sm:$0xff] %vm1109_vm3, %v1046_v11  ;;  %v1770_v18 = vadd.f32 %v1769_v8, %v1768_v7  ;;  %v1234_v51 = vmul.f32 %v1046_v11, %v1046_v11 }
 0x13a   : > { %v1771_v20 = vpop.f32.mrf.mxu0  ;;  %v2391_v21 = vpop.f32.mrf.mxu1  ;;  %v1280_v0 = vadd.f32 %v1279_v59, %v1278_v37 }
 0x13b   : > { %v1049_v61 = vadd.f32 %v1770_v18, %v1048_v5  ;;  %v1281_v1 = vsel %vm1109_vm3, %v1234_v51, 0.0 }
 0x13c   : > { %v1772_v22 = vpop.f32.mrf.mxu0  ;;  %v1061_v23 = vpop.f32.mrf.mxu1  ;;  %v1282_v8 = vadd.f32 %v1281_v1, %v1280_v0 }
 0x13d   : > { %v1773_v27 = vadd.f32 %v1772_v22, %v1771_v20  ;;  %1127 = vst.msk [vmem:[#allocation2 + $0x88] sm:$0xff] %vm1109_vm3, %v1049_v61  ;;  %v1235_v62 = vmul.f32 %v1049_v61, %v1049_v61  ;;  %v1182_v4 = vsel %vm1109_vm3, %v1049_v61, 0.0 }
 0x13e   : > { %v1774_v30 = vpop.f32.mrf.mxu0  ;;  %v2395_v31 = vpop.f32.mrf.mxu1 }
 0x13f   : > { %v1054_v32 = vadd.f32 %v1871_v63, %v1773_v27  ;;  %v1180_v63 = vsel %vm1109_vm3, %v1046_v11, 0.0 }
 0x140   : > { %v1775_v36 = vpop.f32.mrf.mxu0  ;;  %v1064_v38 = vpop.f32.mrf.mxu1  ;;  %v1181_v10 = vadd.f32 %v1180_v63, %v1179_v60 }
 0x141   : > { %1128 = vst.msk [vmem:[#allocation2 + $0x90] sm:$0xff] %vm1109_vm3, %v1054_v32  ;;  %v1776_v46 = vadd.f32 %v1775_v36, %v1774_v30  ;;  %v1236_v2 = vmul.f32 %v1054_v32, %v1054_v32  ;;  %v1184_v5 = vsel %vm1109_vm3, %v1054_v32, 0.0 }
 0x142   : > { %v1777_v48 = vpop.f32.mrf.mxu0  ;;  %v1879_v50 = vpop.f32.mrf.mxu1  ;;  %v1183_v17 = vadd.f32 %v1182_v4, %v1181_v10 }
 0x143   : > { %v1057_v54 = vadd.f32 %v1872_v9, %v1776_v46  ;;  %v2401_v55 = vadd.f32 %v1879_v50, %v2325_v24  ;;  %v1285_v18 = vsel %vm1109_vm3, %v1236_v2, 0.0 }
 0x144   : > { %v1778_v35 = vpop.f32.mrf.mxu0  ;;  %v1077_v58 = vpop.f32.mrf.mxu1  ;;  %v1185_v25 = vadd.f32 %v1184_v5, %v1183_v17 }
 0x145   : > { %1129 = vst.msk [vmem:[#allocation2 + $0x98] sm:$0xff] %vm1109_vm3, %v1057_v54  ;;  %1136 = vst.msk [vmem:[#allocation2 + $0xd0] sm:$0xff] %vm1109_vm3, %v2401_v55  ;;  %v1779_v52 = vadd.f32 %v1778_v35, %v1777_v48  ;;  %v2410_v24 = vadd.f32 %v2321_v14, %v1077_v58  ;;  %v1283_v14 = vsel %vm1109_vm3, %v1235_v62, 0.0  ;;  %v1237_v13 = vmul.f32 %v1057_v54, %v1057_v54 }
 0x146   : > { %v1780_v53 = vpop.f32.mrf.mxu0  ;;  %v1880_v49 = vpop.f32.mrf.mxu1  ;;  %v1186_v57 = vsel %vm1109_vm3, %v1057_v54, 0.0 }
 0x147   : > { %v2414_v3 = vadd.f32 %v1880_v49, %v2327_v29  ;;  %v1062_v6 = vadd.f32 %v1779_v52, %v1061_v23  ;;  %1134 = vst.msk [vmem:[#allocation2 + $0xc0] sm:$0xff] %vm1109_vm3, %v2410_v24  ;;  %v1809_v29 = vadd.f32 %v2335_v43, %v2333_v41  ;;  %v1812_v23 = vadd.f32 %v2339_v47, %v2337_v45 }
 0x148   : > { %v1781_v7 = vpop.f32.mrf.mxu0  ;;  %v1080_v9 = vpop.f32.mrf.mxu1  ;;  %v1287_v28 = vsel %vm1109_vm3, %v1237_v13, 0.0  ;;  %v1242_v0 = vmul.f32 %v2410_v24, %v2410_v24 }
 0x149   : > { %1137 = vst.msk [vmem:[#allocation2 + $0xd8] sm:$0xff] %vm1109_vm3, %v2414_v3  ;;  %v1782_v11 = vadd.f32 %v1781_v7, %v1780_v53  ;;  %v2423_v12 = vadd.f32 %v2323_v19, %v1080_v9  ;;  %1130 = vst.msk [vmem:[#allocation2 + $0xa0] sm:$0xff] %vm1109_vm3, %v1062_v6  ;;  %v1284_v19 = vadd.f32 %v1283_v14, %v1282_v8  ;;  %v1188_v30 = vsel %vm1109_vm3, %v1062_v6, 0.0 }
 0x14a   : > { %v1783_v15 = vpop.f32.mrf.mxu0  ;;  %v1883_v16 = vpop.f32.mrf.mxu1  ;;  %v1238_v61 = vmul.f32 %v1062_v6, %v1062_v6  ;;  %v1244_v7 = vmul.f32 %v2401_v55, %v2401_v55  ;;  %v1297_v9 = vsel %vm1109_vm3, %v1242_v0, 0.0 }
 0x14b   : > { %v1065_v20 = vadd.f32 %v1782_v11, %v1064_v38  ;;  %1135 = vst.msk [vmem:[#allocation2 + $0xc8] sm:$0xff] %vm1109_vm3, %v2423_v12  ;;  %v2433_v41 = vadd.f32 %v1883_v16, %v1809_v29  ;;  %v1286_v27 = vadd.f32 %v1285_v18, %v1284_v19  ;;  %v1187_v38 = vadd.f32 %v1186_v57, %v1185_v25 }
 0x14c   : > { %v1784_v43 = vpop.f32.mrf.mxu0  ;;  %v1093_v22 = vpop.f32.mrf.mxu1  ;;  %v1289_v42 = vsel %vm1109_vm3, %v1238_v61, 0.0  ;;  %v1198_v10 = vsel %vm1109_vm3, %v2423_v12, 0.0  ;;  %v1245_v29 = vmul.f32 %v2414_v3, %v2414_v3  ;;  %v1202_v16 = vsel %vm1109_vm3, %v2414_v3, 0.0 }
 0x14d   : > { %1131 = vst.msk [vmem:[#allocation2 + $0xa8] sm:$0xff] %vm1109_vm3, %v1065_v20  ;;  %v1785_v26 = vadd.f32 %v1784_v43, %v1783_v15  ;;  %v1239_v32 = vmul.f32 %v1065_v20, %v1065_v20  ;;  %1140 = vst.msk [vmem:[#allocation2 + $0xf0] sm:$0xff] %vm1109_vm3, %v2433_v41  ;;  %v1094_v45 = vadd.f32 %v2329_v34, %v1093_v22  ;;  %v1190_v44 = vsel %vm1109_vm3, %v1065_v20, 0.0 }
 0x14e   : > { %v1786_v33 = vpop.f32.mrf.mxu0  ;;  %v1884_v36 = vpop.f32.mrf.mxu1  ;;  %v1288_v48 = vadd.f32 %v1287_v28, %v1286_v27  ;;  %v1189_v50 = vadd.f32 %v1188_v30, %v1187_v38  ;;  %v1301_v15 = vsel %vm1109_vm3, %v1244_v7, 0.0  ;;  %v1303_v20 = vsel %vm1109_vm3, %v1245_v29, 0.0 }
 0x14f   : > { %v1070_v40 = vadd.f32 %v2391_v21, %v1785_v26  ;;  %v2444_v47 = vadd.f32 %v1884_v36, %v1812_v23  ;;  %1138 = vst.msk [vmem:[#allocation2 + $0xe0] sm:$0xff] %vm1109_vm3, %v1094_v45  ;;  %v1291_v34 = vsel %vm1109_vm3, %v1239_v32, 0.0  ;;  %v1246_v17 = vmul.f32 %v1094_v45, %v1094_v45 }
 0x150   : > { %v1787_v46 = vpop.f32.mrf.mxu0  ;;  %v1096_v37 = vpop.f32.mrf.mxu1  ;;  %v1290_v56 = vadd.f32 %v1289_v42, %v1288_v48  ;;  %v1191_v35 = vadd.f32 %v1190_v44, %v1189_v50  ;;  %v1204_v19 = vsel %vm1109_vm3, %v1094_v45, 0.0  ;;  %v1248_v43 = vmul.f32 %v2433_v41, %v2433_v41 }
 0x151   : > { %1132 = vst.msk [vmem:[#allocation2 + $0xb0] sm:$0xff] %vm1109_vm3, %v1070_v40  ;;  %v1240_v51 = vmul.f32 %v1070_v40, %v1070_v40  ;;  %1141 = vst.msk [vmem:[#allocation2 + $0xf8] sm:$0xff] %vm1109_vm3, %v2444_v47  ;;  %v1192_v21 = vsel %vm1109_vm3, %v1070_v40, 0.0  ;;  %v1788_v54 = vadd.f32 %v1787_v46, %v1786_v33  ;;  %v1097_v58 = vadd.f32 %v2331_v39, %v1096_v37 }
 0x152   : > { %v1292_v62 = vadd.f32 %v1291_v34, %v1290_v56  ;;  %v1193_v63 = vadd.f32 %v1192_v21, %v1191_v35  ;;  %v1196_v39 = vsel %vm1109_vm3, %v2410_v24, 0.0  ;;  %v1200_v24 = vsel %vm1109_vm3, %v2401_v55, 0.0  ;;  %v1148_v56 = vld [vmem:[#allocation3] sm:$0x3] }
 0x153   : > { %v1293_v59 = vsel %vm1109_vm3, %v1240_v51, 0.0  ;;  %v1073_v60 = vadd.f32 %v2395_v31, %v1788_v54  ;;  %1139 = vst.msk [vmem:[#allocation2 + $0xe8] sm:$0xff] %vm1109_vm3, %v1097_v58  ;;  %v1243_v31 = vmul.f32 %v2423_v12, %v2423_v12  ;;  %v1247_v55 = vmul.f32 %v1097_v58, %v1097_v58 }
 0x154   : > { %v1294_v49 = vadd.f32 %v1293_v59, %v1292_v62  ;;  %v1305_v22 = vsel %vm1109_vm3, %v1246_v17, 0.0  ;;  %v1206_v23 = vsel %vm1109_vm3, %v1097_v58, 0.0  ;;  %v1208_v3 = vsel %vm1109_vm3, %v2433_v41, 0.0 }
 0x155   : > { %1133 = vst.msk [vmem:[#allocation2 + $0xb8] sm:$0xff] %vm1109_vm3, %v1073_v60  ;;  %v1194_v52 = vsel %vm1109_vm3, %v1073_v60, 0.0  ;;  %v1241_v53 = vmul.f32 %v1073_v60, %v1073_v60  ;;  %v1299_v8 = vsel %vm1109_vm3, %v1243_v31, 0.0  ;;  %v1249_v27 = vmul.f32 %v2444_v47, %v2444_v47 }
 0x156   : > { %v1195_v1 = vadd.f32 %v1194_v52, %v1193_v63  ;;  %v1307_v28 = vsel %vm1109_vm3, %v1247_v55, 0.0  ;;  %v1309_v33 = vsel %vm1109_vm3, %v1248_v43, 0.0  ;;  %v1210_v36 = vsel %vm1109_vm3, %v2444_v47, 0.0 }
 0x157   : > { %v1295_v2 = vsel %vm1109_vm3, %v1241_v53, 0.0  ;;  %v1311_v45 = vsel %vm1109_vm3, %v1249_v27, 0.0 }
 0x158   : > { %v1197_v4 = vadd.f32 %v1196_v39, %v1195_v1  ;;  %v1296_v6 = vadd.f32 %v1295_v2, %v1294_v49 }
 0x15a   : > { %v1199_v14 = vadd.f32 %v1198_v10, %v1197_v4  ;;  %v1298_v11 = vadd.f32 %v1297_v9, %v1296_v6 }
 0x15c   : > { %v1300_v5 = vadd.f32 %v1299_v8, %v1298_v11  ;;  %v1201_v13 = vadd.f32 %v1200_v24, %v1199_v14 }
 0x15e   : > { %v1203_v18 = vadd.f32 %v1202_v16, %v1201_v13  ;;  %v1302_v12 = vadd.f32 %v1301_v15, %v1300_v5 }
 0x160   : > { %v1205_v57 = vadd.f32 %v1204_v19, %v1203_v18  ;;  %v1304_v61 = vadd.f32 %v1303_v20, %v1302_v12 }
 0x162   : > { %v1207_v25 = vadd.f32 %v1206_v23, %v1205_v57  ;;  %v1306_v26 = vadd.f32 %v1305_v22, %v1304_v61 }
 0x164   : > { %v1209_v30 = vadd.f32 %v1208_v3, %v1207_v25  ;;  %v1308_v32 = vadd.f32 %v1307_v28, %v1306_v26 }
 0x166   : > { %v1211_v38 = vadd.f32 %v1210_v36, %v1209_v30  ;;  %v1310_v40 = vadd.f32 %v1309_v33, %v1308_v32 }
 0x168   : > { %v1212_v42 = vrot.slane %v1211_v38, 4  ;;  %v1312_v44 = vadd.f32 %v1311_v45, %v1310_v40 }
 0x16a   : > { %v1213_v46 = vadd.f32 %v1212_v42, %v1211_v38  ;;  %v1313_v41 = vrot.slane %v1312_v44, 4 }
 0x16c   : > { %v1214_v37 = vrot.slane %v1213_v46, 2  ;;  %v1314_v48 = vadd.f32 %v1313_v41, %v1312_v44 }
 0x16e   : > { %v1215_v50 = vadd.f32 %v1214_v37, %v1213_v46  ;;  %v1315_v51 = vrot.slane %v1314_v48, 2 }
 0x170   : > { %v1216_v34 = vrot.slane %v1215_v50, 1  ;;  %v1316_v21 = vadd.f32 %v1315_v51, %v1314_v48 }
 0x172   : > { %v1317_v54 = vrot.slane %v1316_v21, 1  ;;  %v1217_v35 = vadd.f32 %v1216_v34, %v1215_v50 }
 0x174   : > { %v1318_v58 = vadd.f32 %v1317_v54, %v1316_v21 }
 0x176   : > { %v1320_v47 = vsel %vm1319_vm4, %v1217_v35, %v1318_v58 }
 0x177   : > { %v1321_v59 = vadd.f32 %v1320_v47, %v1148_v56 }
 0x179   : > { %1323 = vst.msk [vmem:[#allocation3] sm:$0x3] %vm1146_vm2, %v1321_v59 }
 0x17a PF: > { %p1694_p5 = scmp.ne.s32.totalorder %s2031_s15, 1 }
 0x17c   : > { %1327 = sbr.rel (%p1694_p5) target bundleno = 456 (0x1c8), region = 48 }
 0x181   : > { %v1332_v60 = vld [vmem:[#allocation3] sm:$0x1]  ;;  %v1334_v62 = vld [vmem:[#allocation3 + $0x1] sm:$0x1]  ;;  %v1346_v1 = vlaneseq  ;;  %vm1351_vm5 = vcmask 1040384   ;;  %vm1353_vm6 = vcmask 254976  }
 0x182   : > { %v1333_v63 = vmul.f32 0.00390625, %v1332_v60  ;;  %v1335_v0 = vmul.f32 0.00390625, %v1334_v62  ;;  %v1338_v39 = vld [vmem:[%s2710_s2] sm:$0x1]  ;;  %v1357_v29 = vld [vmem:[#allocation2 + $0x8] sm:$0xff]  ;;  %v1358_v8 = vld [vmem:[#allocation2 + $0x10] sm:$0xff] }
 0x183   : > { %v1347_v31 = vshrl.u32 %v1346_v1, 7  ;;  %v1342_v6 = vld [vmem:[%s2711_s3] sm:$0x1]  ;;  %v1359_v5 = vld [vmem:[#allocation2 + $0x18] sm:$0xff]  ;;  %v1361_v15 = vld [vmem:[#allocation2 + $0x28] sm:$0xff]  ;;  %vm1494_vm7 = vcmask 261120  }
 0x184   : > { %v1336_v52 = vmul.f32 %v1333_v63, %v1333_v63  ;;  %v1356_v24 = vld [vmem:[#allocation2] sm:$0xff]  ;;  %v1362_v16 = vld [vmem:[#allocation2 + $0x30] sm:$0xff]  ;;  %v1363_v17 = vld [vmem:[#allocation2 + $0x38] sm:$0xff] }
 0x185   : > { %v1348_v9 = vsub.s32 0, %v1347_v31  ;;  %v1360_v13 = vld [vmem:[#allocation2 + $0x20] sm:$0xff]  ;;  %v1365_v30 = vld [vmem:[#allocation2 + $0x48] sm:$0xff]  ;;  %v1366_v32 = vld [vmem:[#allocation2 + $0x50] sm:$0xff] }
 0x186   : > { %v1337_v53 = vsub.f32 %v1335_v0, %v1336_v52  ;;  %v1364_v28 = vld [vmem:[#allocation2 + $0x40] sm:$0xff]  ;;  %v1367_v45 = vld [vmem:[#allocation2 + $0x58] sm:$0xff]  ;;  %v1369_v44 = vld [vmem:[#allocation2 + $0x68] sm:$0xff] }
 0x187   : > { %v1368_v42 = vld [vmem:[#allocation2 + $0x60] sm:$0xff]  ;;  %v1370_v50 = vld [vmem:[#allocation2 + $0x70] sm:$0xff]  ;;  %v1371_v51 = vld [vmem:[#allocation2 + $0x78] sm:$0xff] }
 0x188   : > { %v1339_v49 = vadd.f32 1e-05, %v1337_v53  ;;  %v1373_v31 = vld [vmem:[#allocation2 + $0x88] sm:$0xff] }
 0x18a   : > { %2015 = vrsqrt.f32 %v1339_v49 }
 0x197   : > { %v2016_v2 = vpop.eup %2015 }
 0x198   : > { %v1341_v4 = vmul.f32 %v2016_v2, %v1338_v39  ;;  %v1372_v39 = vld [vmem:[#allocation2 + $0x80] sm:$0xff]  ;;  %v1374_v2 = vld [vmem:[#allocation2 + $0x90] sm:$0xff] }
 0x19a   : > { %v1343_v7 = vmul.f32 %v1341_v4, %v1333_v63 }
 0x19c   : > { %v1344_v10 = vsub.f32 %v1342_v6, %v1343_v7 }
 0x19e   : > { %v1349_v14 = vrot.slane %v1344_v10, %v1348_v9  ;;  %v1375_v10 = vld [vmem:[#allocation2 + $0x98] sm:$0xff] }
 0x1a0   : > { %v1352_v11 = vsel %vm1351_vm5, %v1341_v4, %v1349_v14  ;;  %v1376_v14 = vld [vmem:[#allocation2 + $0xa0] sm:$0xff] }
 0x1a1   : > { %1354 = vst.msk [vmem:[#allocation3] sm:$0x3] %vm1353_vm6, %v1352_v11  ;;  %v1377_v11 = vld [vmem:[#allocation2 + $0xa8] sm:$0xff] }
 0x1a8   : > { %v2503_v18 = vld [vmem:[#allocation3] ss:$0 sm:$0xff]  ;;  %v2509_v57 = vld [vmem:[#allocation3 + $0x1] ss:$0 sm:$0xff] }
 0x1a9   : > { %v1393_v12 = vmul.f32 %v2503_v18, %v1356_v24  ;;  %v1394_v20 = vmul.f32 %v2503_v18, %v1357_v29  ;;  %v1395_v19 = vmul.f32 %v2503_v18, %v1358_v8  ;;  %v1396_v55 = vmul.f32 %v2503_v18, %v1359_v5 }
 0x1aa   : > { %v1397_v61 = vmul.f32 %v2503_v18, %v1360_v13  ;;  %v1398_v43 = vmul.f32 %v2503_v18, %v1361_v15  ;;  %v1399_v22 = vmul.f32 %v2503_v18, %v1362_v16  ;;  %v1400_v23 = vmul.f32 %v2503_v18, %v1363_v17  ;;  %v1378_v13 = vld [vmem:[#allocation2 + $0xb0] sm:$0xff]  ;;  %v1379_v15 = vld [vmem:[#allocation2 + $0xb8] sm:$0xff] }
 0x1ab   : > { %v1430_v25 = vadd.f32 %v2509_v57, %v1393_v12  ;;  %v1431_v26 = vadd.f32 %v2509_v57, %v1394_v20  ;;  %v1432_v3 = vadd.f32 %v2509_v57, %v1395_v19  ;;  %v1433_v27 = vadd.f32 %v2509_v57, %v1396_v55 }
 0x1ac   : > { %v1434_v33 = vadd.f32 %v2509_v57, %v1397_v61  ;;  %v1435_v36 = vadd.f32 %v2509_v57, %v1398_v43  ;;  %v1436_v38 = vadd.f32 %v2509_v57, %v1399_v22  ;;  %v1437_v40 = vadd.f32 %v2509_v57, %v1400_v23 }
 0x1ad   : > { %v1462_v46 = vmax.f32 %v1430_v25, 0.0  ;;  %v1463_v41 = vmax.f32 %v1431_v26, 0.0  ;;  %v1464_v37 = vmax.f32 %v1432_v3, 0.0  ;;  %v1465_v48 = vmax.f32 %v1433_v27, 0.0 }
 0x1ae   : > { %v1466_v34 = vmax.f32 %v1434_v33, 0.0  ;;  %v1467_v21 = vmax.f32 %v1435_v36, 0.0  ;;  %v1468_v54 = vmax.f32 %v1436_v38, 0.0  ;;  %v1469_v56 = vmax.f32 %v1437_v40, 0.0  ;;  %v1381_v33 = vld [vmem:[#allocation2 + $0xc8] sm:$0xff]  ;;  %v1382_v36 = vld [vmem:[#allocation2 + $0xd0] sm:$0xff] }
 0x1af   : > { %1495 = vst.msk [vmem:[%s2712_s4] sm:$0xff] %vm1494_vm7, %v1462_v46  ;;  %1496 = vst.msk [vmem:[%s2712_s4 + $0x8] sm:$0xff] %vm1494_vm7, %v1463_v41  ;;  %v1401_v35 = vmul.f32 %v2503_v18, %v1364_v28  ;;  %v1402_v58 = vmul.f32 %v2503_v18, %v1365_v30  ;;  %v1403_v47 = vmul.f32 %v2503_v18, %v1366_v32  ;;  %v1380_v32 = vld [vmem:[#allocation2 + $0xc0] sm:$0xff]  ;;  %v1385_v41 = vld [vmem:[#allocation2 + $0xe8] sm:$0xff] }
 0x1b0   : > { %1497 = vst.msk [vmem:[%s2712_s4 + $0x10] sm:$0xff] %vm1494_vm7, %v1464_v37  ;;  %1498 = vst.msk [vmem:[%s2712_s4 + $0x18] sm:$0xff] %vm1494_vm7, %v1465_v48  ;;  %v1404_v59 = vmul.f32 %v2503_v18, %v1367_v45  ;;  %v1405_v60 = vmul.f32 %v2503_v18, %v1368_v42  ;;  %v1406_v62 = vmul.f32 %v2503_v18, %v1369_v44  ;;  %v1383_v44 = vld [vmem:[#allocation2 + $0xd8] sm:$0xff]  ;;  %v1384_v46 = vld [vmem:[#allocation2 + $0xe0] sm:$0xff] }
 0x1b1   : > { %1499 = vst.msk [vmem:[%s2712_s4 + $0x20] sm:$0xff] %vm1494_vm7, %v1466_v34  ;;  %1500 = vst.msk [vmem:[%s2712_s4 + $0x28] sm:$0xff] %vm1494_vm7, %v1467_v21  ;;  %v1407_v63 = vmul.f32 %v2503_v18, %v1370_v50  ;;  %v1408_v0 = vmul.f32 %v2503_v18, %v1371_v51  ;;  %v1438_v52 = vadd.f32 %v2509_v57, %v1401_v35  ;;  %v1386_v34 = vld [vmem:[#allocation2 + $0xf0] sm:$0xff]  ;;  %v1387_v21 = vld [vmem:[#allocation2 + $0xf8] sm:$0xff] }
 0x1b2   : > { %1501 = vst.msk [vmem:[%s2712_s4 + $0x30] sm:$0xff] %vm1494_vm7, %v1468_v54  ;;  %1502 = vst.msk [vmem:[%s2712_s4 + $0x38] sm:$0xff] %vm1494_vm7, %v1469_v56  ;;  %v1439_v53 = vadd.f32 %v2509_v57, %v1402_v58  ;;  %v1440_v49 = vadd.f32 %v2509_v57, %v1403_v47  ;;  %v1441_v1 = vadd.f32 %v2509_v57, %v1404_v59 }
 0x1b3   : > { %v1442_v4 = vadd.f32 %v2509_v57, %v1405_v60  ;;  %v1443_v6 = vadd.f32 %v2509_v57, %v1406_v62  ;;  %v1444_v7 = vadd.f32 %v2509_v57, %v1407_v63  ;;  %v1445_v9 = vadd.f32 %v2509_v57, %v1408_v0 }
 0x1b4   : > { %v1470_v24 = vmax.f32 %v1438_v52, 0.0  ;;  %v1471_v29 = vmax.f32 %v1439_v53, 0.0  ;;  %v1472_v8 = vmax.f32 %v1440_v49, 0.0  ;;  %v1473_v5 = vmax.f32 %v1441_v1, 0.0 }
 0x1b5   : > { %v1474_v16 = vmax.f32 %v1442_v4, 0.0  ;;  %v1475_v17 = vmax.f32 %v1443_v6, 0.0  ;;  %v1476_v12 = vmax.f32 %v1444_v7, 0.0  ;;  %v1477_v20 = vmax.f32 %v1445_v9, 0.0 }
 0x1b6   : > { %1503 = vst.msk [vmem:[%s2712_s4 + $0x40] sm:$0xff] %vm1494_vm7, %v1470_v24  ;;  %1504 = vst.msk [vmem:[%s2712_s4 + $0x48] sm:$0xff] %vm1494_vm7, %v1471_v29  ;;  %v1409_v19 = vmul.f32 %v2503_v18, %v1372_v39  ;;  %v1410_v55 = vmul.f32 %v2503_v18, %v1373_v31  ;;  %v1411_v61 = vmul.f32 %v2503_v18, %v1374_v2 }
 0x1b7   : > { %1505 = vst.msk [vmem:[%s2712_s4 + $0x50] sm:$0xff] %vm1494_vm7, %v1472_v8  ;;  %1506 = vst.msk [vmem:[%s2712_s4 + $0x58] sm:$0xff] %vm1494_vm7, %v1473_v5  ;;  %v1412_v43 = vmul.f32 %v2503_v18, %v1375_v10  ;;  %v1413_v22 = vmul.f32 %v2503_v18, %v1376_v14  ;;  %v1414_v23 = vmul.f32 %v2503_v18, %v1377_v11 }
 0x1b8   : > { %1507 = vst.msk [vmem:[%s2712_s4 + $0x60] sm:$0xff] %vm1494_vm7, %v1474_v16  ;;  %1508 = vst.msk [vmem:[%s2712_s4 + $0x68] sm:$0xff] %vm1494_vm7, %v1475_v17  ;;  %v1415_v25 = vmul.f32 %v2503_v18, %v1378_v13  ;;  %v1416_v26 = vmul.f32 %v2503_v18, %v1379_v15  ;;  %v1446_v3 = vadd.f32 %v2509_v57, %v1409_v19 }
 0x1b9   : > { %1509 = vst.msk [vmem:[%s2712_s4 + $0x70] sm:$0xff] %vm1494_vm7, %v1476_v12  ;;  %1510 = vst.msk [vmem:[%s2712_s4 + $0x78] sm:$0xff] %vm1494_vm7, %v1477_v20  ;;  %v1447_v27 = vadd.f32 %v2509_v57, %v1410_v55  ;;  %v1448_v28 = vadd.f32 %v2509_v57, %v1411_v61  ;;  %v1449_v30 = vadd.f32 %v2509_v57, %v1412_v43 }
 0x1ba   : > { %v1450_v38 = vadd.f32 %v2509_v57, %v1413_v22  ;;  %v1451_v40 = vadd.f32 %v2509_v57, %v1414_v23  ;;  %v1452_v45 = vadd.f32 %v2509_v57, %v1415_v25  ;;  %v1453_v42 = vadd.f32 %v2509_v57, %v1416_v26 }
 0x1bb   : > { %v1478_v37 = vmax.f32 %v1446_v3, 0.0  ;;  %v1479_v48 = vmax.f32 %v1447_v27, 0.0  ;;  %v1480_v50 = vmax.f32 %v1448_v28, 0.0  ;;  %v1481_v51 = vmax.f32 %v1449_v30, 0.0 }
 0x1bc   : > { %v1482_v54 = vmax.f32 %v1450_v38, 0.0  ;;  %v1483_v56 = vmax.f32 %v1451_v40, 0.0  ;;  %v1484_v35 = vmax.f32 %v1452_v45, 0.0  ;;  %v1485_v58 = vmax.f32 %v1453_v42, 0.0 }
 0x1bd   : > { %1511 = vst.msk [vmem:[%s2712_s4 + $0x80] sm:$0xff] %vm1494_vm7, %v1478_v37  ;;  %1512 = vst.msk [vmem:[%s2712_s4 + $0x88] sm:$0xff] %vm1494_vm7, %v1479_v48  ;;  %v1417_v47 = vmul.f32 %v2503_v18, %v1380_v32  ;;  %v1418_v59 = vmul.f32 %v2503_v18, %v1381_v33  ;;  %v1419_v60 = vmul.f32 %v2503_v18, %v1382_v36 }
 0x1be   : > { %1513 = vst.msk [vmem:[%s2712_s4 + $0x90] sm:$0xff] %vm1494_vm7, %v1480_v50  ;;  %1514 = vst.msk [vmem:[%s2712_s4 + $0x98] sm:$0xff] %vm1494_vm7, %v1481_v51  ;;  %v1420_v62 = vmul.f32 %v2503_v18, %v1383_v44  ;;  %v1421_v63 = vmul.f32 %v2503_v18, %v1384_v46  ;;  %v1422_v0 = vmul.f32 %v2503_v18, %v1385_v41 }
 0x1bf   : > { %1515 = vst.msk [vmem:[%s2712_s4 + $0xa0] sm:$0xff] %vm1494_vm7, %v1482_v54  ;;  %1516 = vst.msk [vmem:[%s2712_s4 + $0xa8] sm:$0xff] %vm1494_vm7, %v1483_v56  ;;  %v1423_v52 = vmul.f32 %v2503_v18, %v1386_v34  ;;  %v1424_v53 = vmul.f32 %v2503_v18, %v1387_v21  ;;  %v1454_v49 = vadd.f32 %v2509_v57, %v1417_v47 }
 0x1c0   : > { %1517 = vst.msk [vmem:[%s2712_s4 + $0xb0] sm:$0xff] %vm1494_vm7, %v1484_v35  ;;  %1518 = vst.msk [vmem:[%s2712_s4 + $0xb8] sm:$0xff] %vm1494_vm7, %v1485_v58  ;;  %v1455_v1 = vadd.f32 %v2509_v57, %v1418_v59  ;;  %v1456_v39 = vadd.f32 %v2509_v57, %v1419_v60  ;;  %v1457_v31 = vadd.f32 %v2509_v57, %v1420_v62 }
 0x1c1   : > { %v1458_v2 = vadd.f32 %v2509_v57, %v1421_v63  ;;  %v1459_v4 = vadd.f32 %v2509_v57, %v1422_v0  ;;  %v1460_v6 = vadd.f32 %v2509_v57, %v1423_v52  ;;  %v1461_v7 = vadd.f32 %v2509_v57, %v1424_v53 }
 0x1c2   : > { %v1486_v9 = vmax.f32 %v1454_v49, 0.0  ;;  %v1487_v10 = vmax.f32 %v1455_v1, 0.0  ;;  %v1488_v14 = vmax.f32 %v1456_v39, 0.0  ;;  %v1489_v18 = vmax.f32 %v1457_v31, 0.0 }
 0x1c3   : > { %v1490_v11 = vmax.f32 %v1458_v2, 0.0  ;;  %v1491_v24 = vmax.f32 %v1459_v4, 0.0  ;;  %v1492_v29 = vmax.f32 %v1460_v6, 0.0  ;;  %v1493_v8 = vmax.f32 %v1461_v7, 0.0 }
 0x1c4   : > { %1519 = vst.msk [vmem:[%s2712_s4 + $0xc0] sm:$0xff] %vm1494_vm7, %v1486_v9  ;;  %1520 = vst.msk [vmem:[%s2712_s4 + $0xc8] sm:$0xff] %vm1494_vm7, %v1487_v10 }
 0x1c5   : > { %1521 = vst.msk [vmem:[%s2712_s4 + $0xd0] sm:$0xff] %vm1494_vm7, %v1488_v14  ;;  %1522 = vst.msk [vmem:[%s2712_s4 + $0xd8] sm:$0xff] %vm1494_vm7, %v1489_v18 }
 0x1c6   : > { %1523 = vst.msk [vmem:[%s2712_s4 + $0xe0] sm:$0xff] %vm1494_vm7, %v1490_v11  ;;  %1524 = vst.msk [vmem:[%s2712_s4 + $0xe8] sm:$0xff] %vm1494_vm7, %v1491_v24 }
 0x1c7   : > { %1525 = vst.msk [vmem:[%s2712_s4 + $0xf0] sm:$0xff] %vm1494_vm7, %v1492_v29  ;;  %1526 = vst.msk [vmem:[%s2712_s4 + $0xf8] sm:$0xff] %vm1494_vm7, %v1493_v8 }
 0x1c8 PF: > { %s14_s17 = sadd.s32 1, %s2039_s17   ;;  %s2713_s15 = smov %s2035_s16 }
 0x1c9   : > { %p11_p6 = scmp.ge.s32.totalorder %s14_s17, 4   ;;  %s2714_s16 = smov %s2716_s18 }
 0x1cb   :  { %13 = sbr.rel (!%p11_p6) target bundleno = 2 (0x2), region = 84 }

// kernel: _lambda_.13
= control target key start
LH: loop header
LB: loop body
LE: loop exit
PB: predicated region body
PF: predicated region fallthrough
CT: control target
= control target key end

     0   :  { %s1532_s15 = smov 0   ;;  %s1534_s16 = smov 0   ;;  %s2035_s0 = inlined_call_operand.vmem [shape: bf16[128,480], index: 0, kind: input, shape index: {}]   ;;  %s2036_s1 = inlined_call_operand.vmem [shape: bf16[480,64], index: 1, kind: input, shape index: {}]   ;;  %s2037_s2 = inlined_call_operand.vmem [shape: f32[1,64], index: 2, kind: input, shape index: {}]   ;;  %s2038_s3 = inlined_call_operand.vmem [shape: f32[1,64], index: 3, kind: input, shape index: {}]   ;;  %s2039_s4 = inlined_call_operand.vmem [shape: f32[128,64], index: 4, kind: output, shape index: {}]  }
   0x1   :  { %s1536_s17 = smov 0  }
   0x2 LB: > { %s26_s18 = sadd.s32 1, %s1499_s16  ;;  %p1204_p0 = scmp.ge.s32.totalorder %s1503_s17, 1  ;;  %s1503_s17 = sphi %s1536_s17, %s14_s17   ;;  %s1499_s16 = sphi %s1534_s16, %s2041_s16   ;;  %s1495_s15 = sphi %s1532_s15, %s2040_s15  }
   0x3   : > { %p28_p1 = scmp.ge.s32.totalorder %s26_s18, 2  ;;  %p186_p2 = scmp.lt.s32.totalorder %s1503_s17, 3 }
   0x5   : > { %s2043_s18 = smov (%p28_p1, %s26_s18), 0  ;;  %p187_p3 = pnand %p1204_p0, %p186_p2 }
   0x6   : > { %p1205_p4 = scmp.ne.s32.totalorder (!%p187_p3), %s1495_s15, 0 }
   0x7   : > { %190 = sbr.rel (%p187_p3) target bundleno = 427 (0x1ab), region = 36 }
   0xc   : > { %240 = sbr.rel (%p1205_p4) target bundleno = 363 (0x16b), region = 40 }
  0x11   : > { %v1401_v0 = vld [vmem:[%s2036_s1 + $0x78] sm:$0xff]   ;;  %v1505_v1 = vmov 0   ;;  %v1404_v4 = vld [vmem:[%s2036_s1 + $0x70] sm:$0xff]   ;;  %v1407_v7 = vld [vmem:[%s2036_s1 + $0x68] sm:$0xff]   ;;  %vm665_vm0 = vcmask 785408   ;;  %vm906_vm1 = vcmask 517120  }
  0x12   : > { %1347 = vmatprep.subr.bf16.mxu1 %v1505_v1  ;;  %v1560_v2 = vld [vmem:[%s2036_s1 + $0xb8] sm:$0xff]   ;;  %1283 = vmatprep.subr.bf16.mxu0 %v1401_v0  ;;  %v1573_v5 = vld [vmem:[%s2036_s1 + $0xb0] sm:$0xff]   ;;  %v1585_v8 = vld [vmem:[%s2036_s1 + $0xa8] sm:$0xff]   ;;  %v1506_v63 = vmov 0.0   ;;  %vm885_vm2 = vcmask 523264   ;;  %vm999_vm3 = vcmask 1040384  }
  0x13   : > { %v1403_v3 = vld [vmem:[%s2036_s1 + $0x38] sm:$0xff]   ;;  %1361 = vmatpush1.bf16.msra.mxu1 %v1560_v2  ;;  %v1406_v6 = vld [vmem:[%s2036_s1 + $0x30] sm:$0xff]   ;;  %v1409_v9 = vld [vmem:[%s2036_s1 + $0x28] sm:$0xff]   ;;  %907 = vst.msk [vmem:[#allocation3] sm:$0x3] %vm906_vm1, %v1506_v63 }
  0x14   : > { %1284 = vmatpush3.bf16.msra.mxu0 %v1403_v3  ;;  %1348 = vmatprep.subr.bf16.mxu1 %v1505_v1  ;;  %v1410_v10 = vld [vmem:[%s2036_s1 + $0x60] sm:$0xff]   ;;  %v1413_v13 = vld [vmem:[%s2036_s1 + $0x58] sm:$0xff]   ;;  %v1416_v16 = vld [vmem:[%s2036_s1 + $0x50] sm:$0xff]  }
  0x15   : > { %1285 = vmatprep.subr.bf16.mxu0 %v1404_v4  ;;  %v1598_v11 = vld [vmem:[%s2036_s1 + $0xa0] sm:$0xff]   ;;  %v1611_v14 = vld [vmem:[%s2036_s1 + $0x98] sm:$0xff]   ;;  %v1624_v17 = vld [vmem:[%s2036_s1 + $0x90] sm:$0xff]  }
  0x16   : > { %v1412_v12 = vld [vmem:[%s2036_s1 + $0x20] sm:$0xff]   ;;  %v1415_v15 = vld [vmem:[%s2036_s1 + $0x18] sm:$0xff]   ;;  %v1418_v18 = vld [vmem:[%s2036_s1 + $0x10] sm:$0xff]  }
  0x17   : > { %1362 = vmatpush1.bf16.msra.mxu1 %v1573_v5  ;;  %v1419_v19 = vld [vmem:[%s2036_s1 + $0x48] sm:$0xff]   ;;  %v1422_v22 = vld [vmem:[%s2036_s1 + $0x40] sm:$0xff]   ;;  %v1433_v32 = vld [vmem:[%s2036_s1 + $0xd8] sm:$0xff]  }
  0x18   : > { %1286 = vmatpush3.bf16.msra.mxu0 %v1406_v6  ;;  %1349 = vmatprep.subr.bf16.mxu1 %v1505_v1  ;;  %v1636_v20 = vld [vmem:[%s2036_s1 + $0x88] sm:$0xff]   ;;  %v1427_v23 = vld [vmem:[%s2035_s0 + $0x4] ss:$16 sps:$4 sm:$0xff]   ;;  %v1425_v26 = vld [vmem:[%s2035_s0] ss:$16 sps:$4 sm:$0xff]  }
  0x19   : > { %1287 = vmatprep.subr.bf16.mxu0 %v1407_v7  ;;  %v1421_v21 = vld [vmem:[%s2036_s1 + $0x8] sm:$0xff]   ;;  %v1653_v24 = vld [vmem:[%s2036_s1 + $0x80] sm:$0xff]   ;;  %722 = vmatprep.mubr.bf16.mxu0 %v1427_v23  ;;  %v1434_v34 = vld [vmem:[%s2036_s1 + $0xd0] sm:$0xff]  }
  0x1a   : > { %v1424_v25 = vld [vmem:[%s2036_s1] sm:$0xff]   ;;  %v1666_v27 = vld [vmem:[%s2036_s1 + $0xe8] sm:$0xff]  }
  0x1b   : > { %1363 = vmatpush1.bf16.msra.mxu1 %v1585_v8  ;;  %v1430_v28 = vld [vmem:[%s2035_s0 + $0x24] ss:$16 sps:$4 sm:$0xff]   ;;  %v1442_v30 = vld [vmem:[%s2035_s0 + $0x2c] ss:$16 sps:$4 sm:$0xff]   ;;  %v1432_v31 = vld [vmem:[%s2035_s0 + $0x20] ss:$16 sps:$4 sm:$0xff]  }
  0x1c   : > { %1288 = vmatpush3.bf16.msra.mxu0 %v1409_v9  ;;  %1350 = vmatprep.subr.bf16.mxu1 %v1505_v1  ;;  %v1676_v29 = vld [vmem:[%s2036_s1 + $0xe0] sm:$0xff]   ;;  %v1438_v36 = vld [vmem:[%s2036_s1 + $0xc8] sm:$0xff]  }
  0x1d   : > { %1289 = vmatprep.subr.bf16.mxu0 %v1410_v10  ;;  %1269 = vmatprep.mubr.msk.bf16.mxu1 %vm665_vm0, %v1442_v30  ;;  %v1435_v33 = vld [vmem:[%s2035_s0 + $0x44] ss:$16 sps:$4 sm:$0xff]   ;;  %v1437_v35 = vld [vmem:[%s2035_s0 + $0x40] ss:$16 sps:$4 sm:$0xff]   ;;  %v1440_v39 = vld [vmem:[%s2035_s0 + $0x28] ss:$16 sps:$4 sm:$0xff]  }
  0x1e   : > { %v1443_v37 = vld [vmem:[%s2035_s0 + $0x64] ss:$16 sps:$4 sm:$0xff]   ;;  %v1445_v40 = vld [vmem:[%s2035_s0 + $0x60] ss:$16 sps:$4 sm:$0xff]   ;;  %v1446_v41 = vld [vmem:[%s2035_s0 + $0x4c] ss:$16 sps:$4 sm:$0xff]  }
  0x1f   : > { %1364 = vmatpush1.bf16.msra.mxu1 %v1598_v11  ;;  %v1439_v38 = vld [vmem:[%s2036_s1 + $0xc0] sm:$0xff]   ;;  %v1450_v43 = vld [vmem:[%s2035_s0 + $0x48] ss:$16 sps:$4 sm:$0xff]   ;;  %v1452_v45 = vld [vmem:[%s2035_s0 + $0x6c] ss:$16 sps:$4 sm:$0xff]  }
  0x20   : > { %1290 = vmatpush3.bf16.msra.mxu0 %v1412_v12  ;;  %1351 = vmatprep.subr.bf16.mxu1 %v1505_v1  ;;  %v1448_v42 = vld [vmem:[%s2035_s0 + $0x84] ss:$16 sps:$4 sm:$0xff]   ;;  %v1451_v44 = vld [vmem:[%s2035_s0 + $0x80] ss:$16 sps:$4 sm:$0xff]   ;;  %v1456_v47 = vld [vmem:[%s2035_s0 + $0x68] ss:$16 sps:$4 sm:$0xff]  }
  0x21   : > { %1291 = vmatprep.subr.bf16.mxu0 %v1413_v13  ;;  %v1454_v46 = vld [vmem:[%s2035_s0 + $0xa4] ss:$16 sps:$4 sm:$0xff]   ;;  %v1457_v48 = vld [vmem:[%s2035_s0 + $0xa0] ss:$16 sps:$4 sm:$0xff]   ;;  %v1458_v49 = vld [vmem:[%s2035_s0 + $0x8c] ss:$16 sps:$4 sm:$0xff]  }
  0x22   : > { %v1460_v50 = vld [vmem:[%s2035_s0 + $0xc4] ss:$16 sps:$4 sm:$0xff]   ;;  %v1462_v51 = vld [vmem:[%s2035_s0 + $0x88] ss:$16 sps:$4 sm:$0xff]   ;;  %v1463_v52 = vld [vmem:[%s2035_s0 + $0xc0] ss:$16 sps:$4 sm:$0xff]  }
  0x23   : > { %1365 = vmatpush1.bf16.msra.mxu1 %v1611_v14  ;;  %v1464_v53 = vld [vmem:[%s2035_s0 + $0xac] ss:$16 sps:$4 sm:$0xff]   ;;  %v1466_v54 = vld [vmem:[%s2035_s0 + $0xe4] ss:$16 sps:$4 sm:$0xff]   ;;  %v1468_v55 = vld [vmem:[%s2035_s0 + $0xa8] ss:$16 sps:$4 sm:$0xff]  }
  0x24   : > { %1292 = vmatpush3.bf16.msra.mxu0 %v1415_v15  ;;  %1352 = vmatprep.subr.bf16.mxu1 %v1505_v1  ;;  %v1469_v56 = vld [vmem:[%s2035_s0 + $0xe0] ss:$16 sps:$4 sm:$0xff]   ;;  %v1470_v57 = vld [vmem:[%s2035_s0 + $0xcc] ss:$16 sps:$4 sm:$0xff]   ;;  %v1475_v59 = vld [vmem:[%s2035_s0 + $0xc8] ss:$16 sps:$4 sm:$0xff]  }
  0x25   : > { %1293 = vmatprep.subr.bf16.mxu0 %v1416_v16  ;;  %v1474_v58 = vld [vmem:[%s2035_s0 + $0xc] ss:$16 sps:$4 sm:$0xff]   ;;  %v1472_v60 = vld [vmem:[%s2035_s0 + $0x8] ss:$16 sps:$4 sm:$0xff]  }
  0x26   : > { %v1476_v61 = vld [vmem:[%s2035_s0 + $0xec] ss:$16 sps:$4 sm:$0xff]   ;;  %v1478_v62 = vld [vmem:[%s2035_s0 + $0xe8] ss:$16 sps:$4 sm:$0xff]  }
  0x27   : > { %1366 = vmatpush1.bf16.msra.mxu1 %v1624_v17 }
  0x28   : > { %1294 = vmatpush3.bf16.msra.mxu0 %v1418_v18  ;;  %1353 = vmatprep.subr.bf16.mxu1 %v1505_v1 }
  0x29   : > { %1295 = vmatprep.subr.bf16.mxu0 %v1419_v19 }
  0x2b   : > { %1367 = vmatpush1.bf16.msra.mxu1 %v1636_v20 }
  0x2c   : > { %1296 = vmatpush3.bf16.msra.mxu0 %v1421_v21  ;;  %1354 = vmatprep.subr.bf16.mxu1 %v1505_v1 }
  0x2d   : > { %1297 = vmatprep.subr.bf16.mxu0 %v1422_v22 }
  0x2f   : > { %1368 = vmatpush1.bf16.msra.mxu1 %v1653_v24 }
  0x30   : > { %1298 = vmatpush3.bf16.msra.mxu0 %v1424_v25  ;;  %1355 = vmatprep.subr.bf16.mxu1 %v1505_v1 }
  0x31   : > { %787 = vmatprep.subr.bf16.mxu0 %v1505_v1 }
  0x33   : > { %723 = vmatmul.mubr.bf16.vlgmr.msra.gmra.mxu0 %v1425_v26  ;;  %1369 = vmatpush2.bf16.msra.mxu1 %v1666_v27 }
  0x34   : > { %788 = vmatpush1.bf16.msra.mxu0 %v1560_v2  ;;  %1356 = vmatprep.subr.bf16.mxu1 %v1505_v1 }
  0x35   : > { %789 = vmatprep.subr.bf16.mxu0 %v1505_v1  ;;  %730 = vmatprep.mubr.bf16.mxu0 %v1430_v28 }
  0x37   : > { %1370 = vmatpush2.bf16.msra.mxu1 %v1676_v29 }
  0x38   : > { %790 = vmatpush1.bf16.msra.mxu0 %v1573_v5  ;;  %1357 = vmatprep.subr.bf16.mxu1 %v1505_v1 }
  0x39   : > { %791 = vmatprep.subr.bf16.mxu0 %v1505_v1 }
  0x3b   : > { %731 = vmatmul.mubr.bf16.gmra.mxu0 %v1432_v31  ;;  %1371 = vmatpush2.bf16.msra.mxu1 %v1433_v32 }
  0x3c   : > { %792 = vmatpush1.bf16.msra.mxu0 %v1585_v8  ;;  %1358 = vmatprep.subr.bf16.mxu1 %v1505_v1 }
  0x3d   : > { %793 = vmatprep.subr.bf16.mxu0 %v1505_v1  ;;  %738 = vmatprep.mubr.bf16.mxu0 %v1435_v33 }
  0x3f   : > { %1372 = vmatpush2.bf16.msra.mxu1 %v1434_v34 }
  0x40   : > { %794 = vmatpush1.bf16.msra.mxu0 %v1598_v11  ;;  %1359 = vmatprep.subr.bf16.mxu1 %v1505_v1 }
  0x41   : > { %795 = vmatprep.subr.bf16.mxu0 %v1505_v1 }
  0x43   : > { %739 = vmatmul.mubr.bf16.gmra.mxu0 %v1437_v35  ;;  %1373 = vmatpush2.bf16.msra.mxu1 %v1438_v36 }
  0x44   : > { %1360 = vmatprep.subr.bf16.mxu1 %v1505_v1  ;;  %796 = vmatpush1.bf16.msra.mxu0 %v1611_v14 }
  0x45   : > { %746 = vmatprep.mubr.bf16.mxu0 %v1443_v37  ;;  %797 = vmatprep.subr.bf16.mxu0 %v1505_v1 }
  0x47   : > { %1374 = vmatpush2.bf16.msra.mxu1 %v1439_v38 }
  0x48   : > { %798 = vmatpush1.bf16.msra.mxu0 %v1624_v17 }
  0x49   : > { %799 = vmatprep.subr.bf16.mxu0 %v1505_v1 }
  0x4a   : > { %828 = vmatmul.mubr.bf16.vlgmr.msra.gmra.mxu1 %v1440_v39 }
  0x4b   : > { %747 = vmatmul.mubr.bf16.gmra.mxu0 %v1445_v40  ;;  %1270 = vmatprep.mubr.msk.bf16.mxu1 %vm665_vm0, %v1446_v41 }
  0x4c   : > { %800 = vmatpush1.bf16.msra.mxu0 %v1636_v20  ;;  %754 = vmatprep.mubr.bf16.mxu0 %v1448_v42 }
  0x4d   : > { %801 = vmatprep.subr.bf16.mxu0 %v1505_v1 }
  0x50   : > { %802 = vmatpush1.bf16.msra.mxu0 %v1653_v24 }
  0x51   : > { %807 = vmatprep.subr.bf16.mxu0 %v1505_v1 }
  0x52   : > { %836 = vmatmul.mubr.bf16.gmra.mxu1 %v1450_v43 }
  0x53   : > { %755 = vmatmul.mubr.bf16.gmra.mxu0 %v1451_v44  ;;  %1271 = vmatprep.mubr.msk.bf16.mxu1 %vm665_vm0, %v1452_v45 }
  0x54   : > { %808 = vmatpush2.bf16.msra.mxu0 %v1666_v27  ;;  %762 = vmatprep.mubr.bf16.mxu0 %v1454_v46 }
  0x55   : > { %809 = vmatprep.subr.bf16.mxu0 %v1505_v1 }
  0x58   : > { %810 = vmatpush2.bf16.msra.mxu0 %v1676_v29 }
  0x59   : > { %811 = vmatprep.subr.bf16.mxu0 %v1505_v1 }
  0x5a   : > { %844 = vmatmul.mubr.bf16.gmra.mxu1 %v1456_v47 }
  0x5b   : > { %763 = vmatmul.mubr.bf16.gmra.mxu0 %v1457_v48  ;;  %1272 = vmatprep.mubr.msk.bf16.mxu1 %vm665_vm0, %v1458_v49 }
  0x5c   : > { %770 = vmatprep.mubr.bf16.mxu0 %v1460_v50  ;;  %812 = vmatpush2.bf16.msra.mxu0 %v1433_v32 }
  0x5d   : > { %813 = vmatprep.subr.bf16.mxu0 %v1505_v1 }
  0x60   : > { %814 = vmatpush2.bf16.msra.mxu0 %v1434_v34 }
  0x61   : > { %815 = vmatprep.subr.bf16.mxu0 %v1505_v1 }
  0x62   : > { %852 = vmatmul.mubr.bf16.gmra.mxu1 %v1462_v51 }
  0x63   : > { %771 = vmatmul.mubr.bf16.gmra.mxu0 %v1463_v52  ;;  %1273 = vmatprep.mubr.msk.bf16.mxu1 %vm665_vm0, %v1464_v53 }
  0x64   : > { %778 = vmatprep.mubr.bf16.mxu0 %v1466_v54  ;;  %816 = vmatpush2.bf16.msra.mxu0 %v1438_v36 }
  0x65   : > { %817 = vmatprep.subr.bf16.mxu0 %v1505_v1 }
  0x68   : > { %818 = vmatpush2.bf16.msra.mxu0 %v1439_v38 }
  0x6a   : > { %860 = vmatmul.mubr.bf16.gmra.mxu1 %v1468_v55 }
  0x6b   : > { %779 = vmatmul.mubr.bf16.gmra.mxu0 %v1469_v56  ;;  %1274 = vmatprep.mubr.msk.bf16.mxu1 %vm665_vm0, %v1470_v57 }
  0x6c   : > { %1268 = vmatprep.mubr.msk.bf16.mxu0 %vm665_vm0, %v1474_v58 }
  0x72   : > { %868 = vmatmul.mubr.bf16.gmra.mxu1 %v1475_v59 }
  0x73   : > { %820 = vmatmul.mubr.bf16.vlgmr.msra.gmra.mxu0 %v1472_v60  ;;  %1275 = vmatprep.mubr.msk.bf16.mxu1 %vm665_vm0, %v1476_v61 }
  0x7a   : > { %876 = vmatmul.mubr.bf16.gmra.mxu1 %v1478_v62 }
  0xf3   : > { %v1816_v0 = vpop.f32.mrf.mxu0 }
  0xf5   : > { %v1818_v1 = vpop.f32.mrf.mxu0 }
  0xf7   : > { %v1820_v2 = vpop.f32.mrf.mxu0 }
  0xf9   : > { %v1822_v3 = vpop.f32.mrf.mxu0 }
  0xfb   : > { %v1305_v4 = vpop.f32.mrf.mxu0 }
  0xfd   : > { %v1306_v5 = vpop.f32.mrf.mxu0 }
  0xfe   : > { %v1307_v11 = vadd.f32 %v1306_v5, %v1305_v4 }
  0xff   : > { %v1308_v6 = vpop.f32.mrf.mxu0 }
 0x101   : > { %v1309_v7 = vpop.f32.mrf.mxu0 }
 0x102   : > { %v1310_v17 = vadd.f32 %v1309_v7, %v1308_v6 }
 0x103   : > { %v1311_v8 = vpop.f32.mrf.mxu0 }
 0x105   : > { %v1312_v9 = vpop.f32.mrf.mxu0 }
 0x106   : > { %v1313_v23 = vadd.f32 %v1312_v9, %v1311_v8 }
 0x107   : > { %v1314_v10 = vpop.f32.mrf.mxu0 }
 0x109   : > { %v1315_v12 = vpop.f32.mrf.mxu0 }
 0x10a   : > { %v829_v13 = vpop.f32.mrf.mxu1  ;;  %v1316_v29 = vadd.f32 %v1315_v12, %v1314_v10 }
 0x10b   : > { %v1824_v14 = vadd.f32 %v1307_v11, %v829_v13  ;;  %v1317_v15 = vpop.f32.mrf.mxu0  ;;  %v1301_v13 = vadd.f32 %v1818_v1, %v1816_v0 }
 0x10c   : > { %v831_v16 = vpop.f32.mrf.mxu1 }
 0x10d   : > { %888 = vst.msk [vmem:[#allocation2 + $0x10] sm:$0xff] %vm885_vm2, %v1824_v14  ;;  %v1318_v18 = vpop.f32.mrf.mxu0 }
 0x10e   : > { %v832_v19 = vpop.f32.mrf.mxu1  ;;  %v1319_v35 = vadd.f32 %v1318_v18, %v1317_v15 }
 0x10f   : > { %v1828_v20 = vadd.f32 %v1310_v17, %v832_v19  ;;  %v1320_v21 = vpop.f32.mrf.mxu0 }
 0x110   : > { %v834_v22 = vpop.f32.mrf.mxu1 }
 0x111   : > { %889 = vst.msk [vmem:[#allocation2 + $0x18] sm:$0xff] %vm885_vm2, %v1828_v20  ;;  %v1321_v24 = vpop.f32.mrf.mxu0 }
 0x112   : > { %v837_v25 = vpop.f32.mrf.mxu1  ;;  %v1322_v41 = vadd.f32 %v1321_v24, %v1320_v21 }
 0x113   : > { %v1832_v26 = vadd.f32 %v1313_v23, %v837_v25  ;;  %v1323_v27 = vpop.f32.mrf.mxu0  ;;  %v1304_v23 = vadd.f32 %v1822_v3, %v1820_v2 }
 0x114   : > { %v839_v28 = vpop.f32.mrf.mxu1 }
 0x115   : > { %890 = vst.msk [vmem:[#allocation2 + $0x20] sm:$0xff] %vm885_vm2, %v1832_v26  ;;  %v1324_v30 = vpop.f32.mrf.mxu0 }
 0x116   : > { %v840_v31 = vpop.f32.mrf.mxu1  ;;  %v1325_v47 = vadd.f32 %v1324_v30, %v1323_v27 }
 0x117   : > { %v1836_v32 = vadd.f32 %v1316_v29, %v840_v31  ;;  %v1326_v33 = vpop.f32.mrf.mxu0  ;;  %v948_v31 = vmul.f32 %v1824_v14, %v1824_v14 }
 0x118   : > { %v842_v34 = vpop.f32.mrf.mxu1 }
 0x119   : > { %891 = vst.msk [vmem:[#allocation2 + $0x28] sm:$0xff] %vm885_vm2, %v1836_v32  ;;  %v1327_v36 = vpop.f32.mrf.mxu0 }
 0x11a   : > { %v845_v37 = vpop.f32.mrf.mxu1  ;;  %v1328_v53 = vadd.f32 %v1327_v36, %v1326_v33 }
 0x11b   : > { %v1840_v38 = vadd.f32 %v1319_v35, %v845_v37  ;;  %v1329_v39 = vpop.f32.mrf.mxu0  ;;  %v912_v37 = vsel %vm885_vm2, %v1824_v14, 0.0  ;;  %v950_v14 = vmul.f32 %v1832_v26, %v1832_v26 }
 0x11c   : > { %v847_v40 = vpop.f32.mrf.mxu1 }
 0x11d   : > { %892 = vst.msk [vmem:[#allocation2 + $0x30] sm:$0xff] %vm885_vm2, %v1840_v38  ;;  %v1330_v42 = vpop.f32.mrf.mxu0 }
 0x11e   : > { %v848_v43 = vpop.f32.mrf.mxu1  ;;  %v1331_v59 = vadd.f32 %v1330_v42, %v1329_v39  ;;  %v949_v39 = vmul.f32 %v1828_v20, %v1828_v20 }
 0x11f   : > { %v1844_v44 = vadd.f32 %v1322_v41, %v848_v43  ;;  %v1332_v45 = vpop.f32.mrf.mxu0 }
 0x120   : > { %v850_v46 = vpop.f32.mrf.mxu1 }
 0x121   : > { %893 = vst.msk [vmem:[#allocation2 + $0x38] sm:$0xff] %vm885_vm2, %v1844_v44  ;;  %v1333_v48 = vpop.f32.mrf.mxu0 }
 0x122   : > { %v853_v49 = vpop.f32.mrf.mxu1  ;;  %v1334_v5 = vadd.f32 %v1333_v48, %v1332_v45  ;;  %v914_v48 = vsel %vm885_vm2, %v1828_v20, 0.0  ;;  %v969_v20 = vsel %vm885_vm2, %v950_v14, 0.0 }
 0x123   : > { %v1848_v50 = vadd.f32 %v1325_v47, %v853_v49  ;;  %v1335_v51 = vpop.f32.mrf.mxu0  ;;  %v965_v47 = vsel %vm885_vm2, %v948_v31, 0.0 }
 0x124   : > { %v855_v52 = vpop.f32.mrf.mxu1 }
 0x125   : > { %894 = vst.msk [vmem:[#allocation2 + $0x40] sm:$0xff] %vm885_vm2, %v1848_v50  ;;  %v1336_v54 = vpop.f32.mrf.mxu0 }
 0x126   : > { %v856_v55 = vpop.f32.mrf.mxu1  ;;  %v1337_v11 = vadd.f32 %v1336_v54, %v1335_v51  ;;  %v967_v54 = vsel %vm885_vm2, %v949_v39, 0.0 }
 0x127   : > { %v1852_v56 = vadd.f32 %v1328_v53, %v856_v55  ;;  %v1338_v57 = vpop.f32.mrf.mxu0  ;;  %v916_v55 = vsel %vm885_vm2, %v1832_v26, 0.0 }
 0x128   : > { %v858_v58 = vpop.f32.mrf.mxu1 }
 0x129   : > { %895 = vst.msk [vmem:[#allocation2 + $0x48] sm:$0xff] %vm885_vm2, %v1852_v56  ;;  %v1339_v60 = vpop.f32.mrf.mxu0 }
 0x12a   : > { %v861_v61 = vpop.f32.mrf.mxu1  ;;  %v1340_v21 = vadd.f32 %v1339_v60, %v1338_v57  ;;  %v951_v57 = vmul.f32 %v1836_v32, %v1836_v32 }
 0x12b   : > { %v1856_v62 = vadd.f32 %v1331_v59, %v861_v61  ;;  %v1341_v63 = vpop.f32.mrf.mxu0  ;;  %v918_v61 = vsel %vm885_vm2, %v1836_v32, 0.0  ;;  %v922_v32 = vsel %vm885_vm2, %v1844_v44, 0.0 }
 0x12c   : > { %v863_v4 = vpop.f32.mrf.mxu1  ;;  %v971_v26 = vsel %vm885_vm2, %v951_v57, 0.0 }
 0x12d   : > { %896 = vst.msk [vmem:[#allocation2 + $0x50] sm:$0xff] %vm885_vm2, %v1856_v62  ;;  %v1342_v6 = vpop.f32.mrf.mxu0 }
 0x12e   : > { %v864_v7 = vpop.f32.mrf.mxu1  ;;  %v1343_v29 = vadd.f32 %v1342_v6, %v1341_v63  ;;  %v952_v63 = vmul.f32 %v1840_v38, %v1840_v38  ;;  %v920_v6 = vsel %vm885_vm2, %v1840_v38, 0.0  ;;  %v924_v38 = vsel %vm885_vm2, %v1848_v50, 0.0 }
 0x12f   : > { %v1860_v8 = vadd.f32 %v1334_v5, %v864_v7  ;;  %v1344_v9 = vpop.f32.mrf.mxu0  ;;  %v953_v7 = vmul.f32 %v1844_v44, %v1844_v44  ;;  %v926_v44 = vsel %vm885_vm2, %v1852_v56, 0.0 }
 0x130   : > { %v866_v10 = vpop.f32.mrf.mxu1 }
 0x131   : > { %897 = vst.msk [vmem:[#allocation2 + $0x58] sm:$0xff] %vm885_vm2, %v1860_v8  ;;  %v1345_v12 = vpop.f32.mrf.mxu0 }
 0x132   : > { %v869_v15 = vpop.f32.mrf.mxu1  ;;  %v1346_v43 = vadd.f32 %v1345_v12, %v1344_v9  ;;  %v954_v12 = vmul.f32 %v1848_v50, %v1848_v50  ;;  %v928_v50 = vsel %vm885_vm2, %v1856_v62, 0.0 }
 0x133   : > { %v1866_v16 = vadd.f32 %v1337_v11, %v869_v15  ;;  %v821_v17 = vpop.f32.mrf.mxu0  ;;  %v973_v11 = vsel %vm885_vm2, %v952_v63, 0.0 }
 0x134   : > { %v822_v18 = vadd.f32 %v1301_v13, %v821_v17  ;;  %v871_v19 = vpop.f32.mrf.mxu1  ;;  %v975_v17 = vsel %vm885_vm2, %v953_v7, 0.0 }
 0x135   : > { %898 = vst.msk [vmem:[#allocation2 + $0x60] sm:$0xff] %vm885_vm2, %v1866_v16  ;;  %v823_v22 = vpop.f32.mrf.mxu0  ;;  %v958_v31 = vmul.f32 %v1866_v16, %v1866_v16 }
 0x136   : > { %886 = vst.msk [vmem:[#allocation2] sm:$0xff] %vm885_vm2, %v822_v18  ;;  %v872_v24 = vpop.f32.mrf.mxu1  ;;  %v946_v1 = vmul.f32 %v822_v18, %v822_v18  ;;  %v909_v33 = vsel %vm885_vm2, %v822_v18, 0.0  ;;  %v955_v18 = vmul.f32 %v1852_v56, %v1852_v56  ;;  %v977_v22 = vsel %vm885_vm2, %v954_v12, 0.0 }
 0x137   : > { %v1873_v25 = vadd.f32 %v1340_v21, %v872_v24  ;;  %v824_v0 = vpop.f32.mrf.mxu0  ;;  %v930_v56 = vsel %vm885_vm2, %v1860_v8, 0.0  ;;  %v985_v39 = vsel %vm885_vm2, %v958_v31, 0.0 }
 0x138   : > { %v825_v27 = vadd.f32 %v1304_v23, %v824_v0  ;;  %v874_v28 = vpop.f32.mrf.mxu1  ;;  %v962_v40 = vsel %vm885_vm2, %v946_v1, 0.0  ;;  %v956_v23 = vmul.f32 %v1856_v62, %v1856_v62  ;;  %v979_v1 = vsel %vm885_vm2, %v955_v18, 0.0 }
 0x139   : > { %899 = vst.msk [vmem:[#allocation2 + $0x68] sm:$0xff] %vm885_vm2, %v1873_v25  ;;  %v826_v30 = vpop.f32.mrf.mxu0  ;;  %v932_v62 = vsel %vm885_vm2, %v1866_v16, 0.0 }
 0x13a   : > { %887 = vst.msk [vmem:[#allocation2 + $0x8] sm:$0xff] %vm885_vm2, %v825_v27  ;;  %v910_v2 = vsel %vm885_vm2, %v825_v27, 0.0  ;;  %v947_v3 = vmul.f32 %v825_v27, %v825_v27  ;;  %v877_v34 = vpop.f32.mrf.mxu1  ;;  %v957_v27 = vmul.f32 %v1860_v8, %v1860_v8  ;;  %v981_v30 = vsel %vm885_vm2, %v956_v23, 0.0 }
 0x13b   : > { %v911_v35 = vadd.f32 %v910_v2, %v909_v33  ;;  %v1882_v36 = vadd.f32 %v1343_v29, %v877_v34  ;;  %v959_v34 = vmul.f32 %v1873_v25, %v1873_v25  ;;  %v934_v8 = vsel %vm885_vm2, %v1873_v25, 0.0 }
 0x13c   : > { %v963_v41 = vsel %vm885_vm2, %v947_v3, 0.0  ;;  %v879_v42 = vpop.f32.mrf.mxu1  ;;  %v983_v3 = vsel %vm885_vm2, %v957_v27, 0.0 }
 0x13d   : > { %v913_v45 = vadd.f32 %v912_v37, %v911_v35  ;;  %v964_v46 = vadd.f32 %v963_v41, %v962_v40  ;;  %900 = vst.msk [vmem:[#allocation2 + $0x70] sm:$0xff] %vm885_vm2, %v1882_v36  ;;  %v960_v40 = vmul.f32 %v1882_v36, %v1882_v36  ;;  %v936_v16 = vsel %vm885_vm2, %v1882_v36, 0.0 }
 0x13e   : > { %v880_v49 = vpop.f32.mrf.mxu1 }
 0x13f   : > { %v915_v51 = vadd.f32 %v914_v48, %v913_v45  ;;  %v966_v52 = vadd.f32 %v965_v47, %v964_v46  ;;  %v881_v53 = vadd.f32 %v1346_v43, %v880_v49  ;;  %v987_v43 = vsel %vm885_vm2, %v959_v34, 0.0 }
 0x140   : > { %v882_v58 = vpop.f32.mrf.mxu1  ;;  %v989_v48 = vsel %vm885_vm2, %v960_v40, 0.0 }
 0x141   : > { %v917_v59 = vadd.f32 %v916_v55, %v915_v51  ;;  %v968_v60 = vadd.f32 %v967_v54, %v966_v52  ;;  %901 = vst.msk [vmem:[#allocation2 + $0x78] sm:$0xff] %vm885_vm2, %v881_v53  ;;  %v961_v45 = vmul.f32 %v881_v53, %v881_v53  ;;  %v938_v14 = vsel %vm885_vm2, %v881_v53, 0.0 }
 0x143   : > { %v919_v4 = vadd.f32 %v918_v61, %v917_v59  ;;  %v970_v5 = vadd.f32 %v969_v20, %v968_v60  ;;  %v991_v25 = vsel %vm885_vm2, %v961_v45, 0.0 }
 0x145   : > { %v921_v9 = vadd.f32 %v920_v6, %v919_v4  ;;  %v972_v10 = vadd.f32 %v971_v26, %v970_v5  ;;  %v908_v4 = vld [vmem:[#allocation3] sm:$0x3] }
 0x147   : > { %v923_v13 = vadd.f32 %v922_v32, %v921_v9  ;;  %v974_v15 = vadd.f32 %v973_v11, %v972_v10 }
 0x149   : > { %v976_v19 = vadd.f32 %v975_v17, %v974_v15  ;;  %v925_v21 = vadd.f32 %v924_v38, %v923_v13 }
 0x14b   : > { %v927_v24 = vadd.f32 %v926_v44, %v925_v21  ;;  %v978_v0 = vadd.f32 %v977_v22, %v976_v19 }
 0x14d   : > { %v929_v28 = vadd.f32 %v928_v50, %v927_v24  ;;  %v980_v29 = vadd.f32 %v979_v1, %v978_v0 }
 0x14f   : > { %v931_v33 = vadd.f32 %v930_v56, %v929_v28  ;;  %v982_v2 = vadd.f32 %v981_v30, %v980_v29 }
 0x151   : > { %v933_v35 = vadd.f32 %v932_v62, %v931_v33  ;;  %v984_v37 = vadd.f32 %v983_v3, %v982_v2 }
 0x153   : > { %v935_v41 = vadd.f32 %v934_v8, %v933_v35  ;;  %v986_v42 = vadd.f32 %v985_v39, %v984_v37 }
 0x155   : > { %v937_v46 = vadd.f32 %v936_v16, %v935_v41  ;;  %v988_v47 = vadd.f32 %v987_v43, %v986_v42 }
 0x157   : > { %v990_v49 = vadd.f32 %v989_v48, %v988_v47  ;;  %v939_v51 = vadd.f32 %v938_v14, %v937_v46 }
 0x159   : > { %v940_v52 = vrot.slane %v939_v51, 4  ;;  %v992_v54 = vadd.f32 %v991_v25, %v990_v49 }
 0x15b   : > { %v941_v55 = vadd.f32 %v940_v52, %v939_v51  ;;  %v993_v57 = vrot.slane %v992_v54, 4 }
 0x15d   : > { %v942_v58 = vrot.slane %v941_v55, 2  ;;  %v994_v59 = vadd.f32 %v993_v57, %v992_v54 }
 0x15f   : > { %v943_v60 = vadd.f32 %v942_v58, %v941_v55  ;;  %v995_v20 = vrot.slane %v994_v59, 2 }
 0x161   : > { %v944_v36 = vrot.slane %v943_v60, 1  ;;  %v996_v61 = vadd.f32 %v995_v20, %v994_v59 }
 0x163   : > { %v997_v63 = vrot.slane %v996_v61, 1  ;;  %v945_v5 = vadd.f32 %v944_v36, %v943_v60 }
 0x165   : > { %v998_v26 = vadd.f32 %v997_v63, %v996_v61 }
 0x167   : > { %v1000_v53 = vsel %vm999_vm3, %v945_v5, %v998_v26 }
 0x168   : > { %v1001_v6 = vadd.f32 %v1000_v53, %v908_v4 }
 0x16a   : > { %1003 = vst.msk [vmem:[#allocation3] sm:$0x3] %vm906_vm1, %v1001_v6 }
 0x16b PF: > { %p1276_p5 = scmp.ne.s32.totalorder %s1495_s15, 1 }
 0x16d   : > { %1007 = sbr.rel (%p1276_p5) target bundleno = 427 (0x1ab), region = 48 }
 0x172   : > { %v1012_v7 = vld [vmem:[#allocation3] sm:$0x1]  ;;  %v1014_v9 = vld [vmem:[#allocation3 + $0x1] sm:$0x1]  ;;  %v1026_v15 = vlaneseq  ;;  %vm1031_vm4 = vcmask 1040384   ;;  %vm1033_vm5 = vcmask 517120  }
 0x173   : > { %v1013_v10 = vmul.f32 0.0078125, %v1012_v7  ;;  %v1015_v11 = vmul.f32 0.0078125, %v1014_v9  ;;  %v1018_v17 = vld [vmem:[%s2037_s2] sm:$0x1]  ;;  %v1037_v50 = vld [vmem:[#allocation2 + $0x8] sm:$0xff]  ;;  %v1038_v27 = vld [vmem:[#allocation2 + $0x10] sm:$0xff] }
 0x174   : > { %v1027_v38 = vshrl.u32 %v1026_v15, 7  ;;  %v1022_v21 = vld [vmem:[%s2038_s3] sm:$0x1]  ;;  %v1039_v28 = vld [vmem:[#allocation2 + $0x18] sm:$0xff]  ;;  %v1041_v30 = vld [vmem:[#allocation2 + $0x28] sm:$0xff]  ;;  %vm1110_vm6 = vcmask 523264  }
 0x175   : > { %v1016_v32 = vmul.f32 %v1013_v10, %v1013_v10  ;;  %v1036_v1 = vld [vmem:[#allocation2] sm:$0xff]  ;;  %v1042_v56 = vld [vmem:[#allocation2 + $0x30] sm:$0xff]  ;;  %v1043_v31 = vld [vmem:[#allocation2 + $0x38] sm:$0xff] }
 0x176   : > { %v1028_v44 = vsub.s32 0, %v1027_v38  ;;  %v1040_v29 = vld [vmem:[#allocation2 + $0x20] sm:$0xff]  ;;  %v1045_v46 = vld [vmem:[#allocation2 + $0x48] sm:$0xff]  ;;  %v1046_v47 = vld [vmem:[#allocation2 + $0x50] sm:$0xff] }
 0x177   : > { %v1017_v12 = vsub.f32 %v1015_v11, %v1016_v32  ;;  %v1044_v45 = vld [vmem:[#allocation2 + $0x40] sm:$0xff]  ;;  %v1047_v25 = vld [vmem:[#allocation2 + $0x58] sm:$0xff]  ;;  %v1049_v54 = vld [vmem:[#allocation2 + $0x68] sm:$0xff] }
 0x178   : > { %v1048_v52 = vld [vmem:[#allocation2 + $0x60] sm:$0xff]  ;;  %v1050_v60 = vld [vmem:[#allocation2 + $0x70] sm:$0xff]  ;;  %v1051_v20 = vld [vmem:[#allocation2 + $0x78] sm:$0xff] }
 0x179   : > { %v1019_v13 = vadd.f32 1e-05, %v1017_v12 }
 0x17b   : > { %1479 = vrsqrt.f32 %v1019_v13 }
 0x188   : > { %v1480_v18 = vpop.eup %1479 }
 0x189   : > { %v1021_v19 = vmul.f32 %v1480_v18, %v1018_v17 }
 0x18b   : > { %v1023_v22 = vmul.f32 %v1021_v19, %v1013_v10 }
 0x18d   : > { %v1024_v23 = vsub.f32 %v1022_v21, %v1023_v22 }
 0x18f   : > { %v1029_v24 = vrot.slane %v1024_v23, %v1028_v44 }
 0x191   : > { %v1032_v0 = vsel %vm1031_vm4, %v1021_v19, %v1029_v24 }
 0x192   : > { %1034 = vst.msk [vmem:[#allocation3] sm:$0x3] %vm1033_vm5, %v1032_v0 }
 0x199   : > { %v1277_v33 = vld [vmem:[#allocation3] ss:$0 sm:$0xff]  ;;  %v1278_v35 = vld [vmem:[#allocation3 + $0x1] ss:$0 sm:$0xff] }
 0x19a   : > { %v1057_v2 = vmul.f32 %v1277_v33, %v1036_v1  ;;  %v1058_v3 = vmul.f32 %v1277_v33, %v1037_v50  ;;  %v1059_v62 = vmul.f32 %v1277_v33, %v1038_v27  ;;  %v1060_v34 = vmul.f32 %v1277_v33, %v1039_v28 }
 0x19b   : > { %v1061_v37 = vmul.f32 %v1277_v33, %v1040_v29  ;;  %v1062_v39 = vmul.f32 %v1277_v33, %v1041_v30  ;;  %v1063_v8 = vmul.f32 %v1277_v33, %v1042_v56  ;;  %v1064_v40 = vmul.f32 %v1277_v33, %v1043_v31 }
 0x19c   : > { %v1078_v41 = vadd.f32 %v1278_v35, %v1057_v2  ;;  %v1079_v42 = vadd.f32 %v1278_v35, %v1058_v3  ;;  %v1080_v43 = vadd.f32 %v1278_v35, %v1059_v62  ;;  %v1081_v16 = vadd.f32 %v1278_v35, %v1060_v34 }
 0x19d   : > { %v1082_v48 = vadd.f32 %v1278_v35, %v1061_v37  ;;  %v1083_v14 = vadd.f32 %v1278_v35, %v1062_v39  ;;  %v1084_v49 = vadd.f32 %v1278_v35, %v1063_v8  ;;  %v1085_v51 = vadd.f32 %v1278_v35, %v1064_v40 }
 0x19e   : > { %v1094_v55 = vmax.f32 %v1078_v41, 0.0  ;;  %v1095_v57 = vmax.f32 %v1079_v42, 0.0  ;;  %v1096_v58 = vmax.f32 %v1080_v43, 0.0  ;;  %v1097_v59 = vmax.f32 %v1081_v16, 0.0 }
 0x19f   : > { %v1098_v36 = vmax.f32 %v1082_v48, 0.0  ;;  %v1099_v61 = vmax.f32 %v1083_v14, 0.0  ;;  %v1100_v63 = vmax.f32 %v1084_v49, 0.0  ;;  %v1101_v4 = vmax.f32 %v1085_v51, 0.0 }
 0x1a0   : > { %1111 = vst.msk [vmem:[%s2039_s4] sm:$0xff] %vm1110_vm6, %v1094_v55  ;;  %1112 = vst.msk [vmem:[%s2039_s4 + $0x8] sm:$0xff] %vm1110_vm6, %v1095_v57  ;;  %v1065_v5 = vmul.f32 %v1277_v33, %v1044_v45  ;;  %v1066_v26 = vmul.f32 %v1277_v33, %v1045_v46  ;;  %v1067_v53 = vmul.f32 %v1277_v33, %v1046_v47 }
 0x1a1   : > { %1113 = vst.msk [vmem:[%s2039_s4 + $0x10] sm:$0xff] %vm1110_vm6, %v1096_v58  ;;  %1114 = vst.msk [vmem:[%s2039_s4 + $0x18] sm:$0xff] %vm1110_vm6, %v1097_v59  ;;  %v1068_v6 = vmul.f32 %v1277_v33, %v1047_v25  ;;  %v1069_v7 = vmul.f32 %v1277_v33, %v1048_v52  ;;  %v1070_v9 = vmul.f32 %v1277_v33, %v1049_v54 }
 0x1a2   : > { %1115 = vst.msk [vmem:[%s2039_s4 + $0x20] sm:$0xff] %vm1110_vm6, %v1098_v36  ;;  %1116 = vst.msk [vmem:[%s2039_s4 + $0x28] sm:$0xff] %vm1110_vm6, %v1099_v61  ;;  %v1071_v10 = vmul.f32 %v1277_v33, %v1050_v60  ;;  %v1072_v11 = vmul.f32 %v1277_v33, %v1051_v20  ;;  %v1086_v32 = vadd.f32 %v1278_v35, %v1065_v5 }
 0x1a3   : > { %1117 = vst.msk [vmem:[%s2039_s4 + $0x30] sm:$0xff] %vm1110_vm6, %v1100_v63  ;;  %1118 = vst.msk [vmem:[%s2039_s4 + $0x38] sm:$0xff] %vm1110_vm6, %v1101_v4  ;;  %v1087_v12 = vadd.f32 %v1278_v35, %v1066_v26  ;;  %v1088_v13 = vadd.f32 %v1278_v35, %v1067_v53  ;;  %v1089_v15 = vadd.f32 %v1278_v35, %v1068_v6 }
 0x1a4   : > { %v1090_v17 = vadd.f32 %v1278_v35, %v1069_v7  ;;  %v1091_v38 = vadd.f32 %v1278_v35, %v1070_v9  ;;  %v1092_v18 = vadd.f32 %v1278_v35, %v1071_v10  ;;  %v1093_v19 = vadd.f32 %v1278_v35, %v1072_v11 }
 0x1a5   : > { %v1102_v21 = vmax.f32 %v1086_v32, 0.0  ;;  %v1103_v22 = vmax.f32 %v1087_v12, 0.0  ;;  %v1104_v44 = vmax.f32 %v1088_v13, 0.0  ;;  %v1105_v23 = vmax.f32 %v1089_v15, 0.0 }
 0x1a6   : > { %v1106_v24 = vmax.f32 %v1090_v17, 0.0  ;;  %v1107_v0 = vmax.f32 %v1091_v38, 0.0  ;;  %v1108_v1 = vmax.f32 %v1092_v18, 0.0  ;;  %v1109_v50 = vmax.f32 %v1093_v19, 0.0 }
 0x1a7   : > { %1119 = vst.msk [vmem:[%s2039_s4 + $0x40] sm:$0xff] %vm1110_vm6, %v1102_v21  ;;  %1120 = vst.msk [vmem:[%s2039_s4 + $0x48] sm:$0xff] %vm1110_vm6, %v1103_v22 }
 0x1a8   : > { %1121 = vst.msk [vmem:[%s2039_s4 + $0x50] sm:$0xff] %vm1110_vm6, %v1104_v44  ;;  %1122 = vst.msk [vmem:[%s2039_s4 + $0x58] sm:$0xff] %vm1110_vm6, %v1105_v23 }
 0x1a9   : > { %1123 = vst.msk [vmem:[%s2039_s4 + $0x60] sm:$0xff] %vm1110_vm6, %v1106_v24  ;;  %1124 = vst.msk [vmem:[%s2039_s4 + $0x68] sm:$0xff] %vm1110_vm6, %v1107_v0 }
 0x1aa   : > { %1125 = vst.msk [vmem:[%s2039_s4 + $0x70] sm:$0xff] %vm1110_vm6, %v1108_v1  ;;  %1126 = vst.msk [vmem:[%s2039_s4 + $0x78] sm:$0xff] %vm1110_vm6, %v1109_v50 }
 0x1ab PF: > { %s14_s17 = sadd.s32 1, %s1503_s17   ;;  %s2040_s15 = smov %s1499_s16 }
 0x1ac   : > { %p11_p6 = scmp.ge.s32.totalorder %s14_s17, 4   ;;  %s2041_s16 = smov %s2043_s18 }
 0x1ae   :  { %13 = sbr.rel (!%p11_p6) target bundleno = 2 (0x2), region = 84 }

// kernel: _lambda_.14
= control target key start
LH: loop header
LB: loop body
LE: loop exit
PB: predicated region body
PF: predicated region fallthrough
CT: control target
= control target key end

     0   :  { %vm47_vm0 = vcmask 1046528   ;;  %vm82_vm1 = vcmask 523264   ;;  %s204_s0 = inlined_call_operand.vmem [shape: f32[2,33,64], index: 0, kind: input, shape index: {}]   ;;  %s205_s1 = inlined_call_operand.vmem [shape: f32[2,32,64], index: 1, kind: input, shape index: {}]   ;;  %s206_s2 = inlined_call_operand.vmem [shape: f32[2,32,64], index: 2, kind: output, shape index: {}]  }
   0x1   :  { %v11_v0 = vld [vmem:[%s204_s0] sm:$0xff]  ;;  %v12_v1 = vld [vmem:[%s204_s0 + $0x8] sm:$0xff]  ;;  %v13_v6 = vld [vmem:[%s204_s0 + $0x10] sm:$0xff] }
   0x2   :  { %v21_v2 = vld [vmem:[%s205_s1] sm:$0xff]  ;;  %v48_v4 = vrot.slane %v11_v0, 1  ;;  %v49_v5 = vrot.slane %v12_v1, 1  ;;  %v22_v7 = vld [vmem:[%s205_s1 + $0x8] sm:$0xff]  ;;  %v14_v8 = vld [vmem:[%s204_s0 + $0x18] sm:$0xff]  ;;  %v51_v10 = vrot.slane %v13_v6, 1 }
   0x3   :  { %v29_v3 = vmax.f32 %v11_v0, %v21_v2  ;;  %v30_v9 = vmax.f32 %v12_v1, %v22_v7  ;;  %v23_v11 = vld [vmem:[%s205_s1 + $0x10] sm:$0xff]  ;;  %v53_v12 = vrot.slane %v14_v8, 1  ;;  %v15_v13 = vld [vmem:[%s204_s0 + $0x20] sm:$0x1]  ;;  %v24_v14 = vld [vmem:[%s205_s1 + $0x18] sm:$0xff] }
   0x4   :  { %v50_v15 = vsel %vm47_vm0, %v48_v4, %v49_v5  ;;  %v31_v16 = vmax.f32 %v13_v6, %v23_v11  ;;  %v32_v17 = vmax.f32 %v14_v8, %v24_v14  ;;  %v55_v18 = vrot.slane %v15_v13, 1  ;;  %v16_v19 = vld [vmem:[%s204_s0 + $0x28] sm:$0xff]  ;;  %v17_v20 = vld [vmem:[%s204_s0 + $0x30] sm:$0xff]  ;;  %v25_v21 = vld [vmem:[%s205_s1 + $0x20] sm:$0xff] }
   0x5   :  { %v74_v22 = vmax.f32 %v29_v3, %v50_v15  ;;  %v52_v23 = vsel %vm47_vm0, %v49_v5, %v51_v10  ;;  %v54_v24 = vsel %vm47_vm0, %v51_v10, %v53_v12  ;;  %v33_v25 = vmax.f32 %v16_v19, %v25_v21  ;;  %v18_v26 = vld [vmem:[%s204_s0 + $0x38] sm:$0xff]  ;;  %v26_v27 = vld [vmem:[%s205_s1 + $0x28] sm:$0xff]  ;;  %v19_v28 = vld [vmem:[%s204_s0 + $0x40] sm:$0xff] }
   0x6   :  { %v75_v29 = vmax.f32 %v30_v9, %v52_v23  ;;  %v76_v30 = vmax.f32 %v31_v16, %v54_v24  ;;  %v56_v31 = vsel %vm47_vm0, %v53_v12, %v55_v18  ;;  %v57_v32 = vrot.slane %v16_v19, 1  ;;  %v27_v33 = vld [vmem:[%s205_s1 + $0x30] sm:$0xff]  ;;  %v20_v34 = vld [vmem:[%s204_s0 + $0x48] sm:$0x1]  ;;  %v28_v35 = vld [vmem:[%s205_s1 + $0x38] sm:$0xff] }
   0x7   :  { %83 = vst.msk [vmem:[%s206_s2] sm:$0xff] %vm82_vm1, %v74_v22  ;;  %v77_v36 = vmax.f32 %v32_v17, %v56_v31  ;;  %v58_v37 = vrot.slane %v17_v20, 1  ;;  %v34_v38 = vmax.f32 %v17_v20, %v26_v27  ;;  %v60_v39 = vrot.slane %v18_v26, 1 }
   0x8   :  { %84 = vst.msk [vmem:[%s206_s2 + $0x8] sm:$0xff] %vm82_vm1, %v75_v29  ;;  %85 = vst.msk [vmem:[%s206_s2 + $0x10] sm:$0xff] %vm82_vm1, %v76_v30  ;;  %v35_v40 = vmax.f32 %v18_v26, %v27_v33  ;;  %v62_v41 = vrot.slane %v19_v28, 1  ;;  %v36_v42 = vmax.f32 %v19_v28, %v28_v35  ;;  %v64_v43 = vrot.slane %v20_v34, 1 }
   0x9   :  { %86 = vst.msk [vmem:[%s206_s2 + $0x18] sm:$0xff] %vm82_vm1, %v77_v36  ;;  %v59_v44 = vsel %vm47_vm0, %v57_v32, %v58_v37  ;;  %v61_v45 = vsel %vm47_vm0, %v58_v37, %v60_v39 }
   0xa   :  { %v78_v46 = vmax.f32 %v33_v25, %v59_v44  ;;  %v79_v47 = vmax.f32 %v34_v38, %v61_v45  ;;  %v63_v48 = vsel %vm47_vm0, %v60_v39, %v62_v41  ;;  %v65_v49 = vsel %vm47_vm0, %v62_v41, %v64_v43 }
   0xb   :  { %v80_v50 = vmax.f32 %v35_v40, %v63_v48  ;;  %v81_v51 = vmax.f32 %v36_v42, %v65_v49 }
   0xc   :  { %87 = vst.msk [vmem:[%s206_s2 + $0x20] sm:$0xff] %vm82_vm1, %v78_v46  ;;  %88 = vst.msk [vmem:[%s206_s2 + $0x28] sm:$0xff] %vm82_vm1, %v79_v47 }
   0xd   :  { %89 = vst.msk [vmem:[%s206_s2 + $0x30] sm:$0xff] %vm82_vm1, %v80_v50  ;;  %90 = vst.msk [vmem:[%s206_s2 + $0x38] sm:$0xff] %vm82_vm1, %v81_v51 }

// kernel: _lambda_.15
= control target key start
LH: loop header
LB: loop body
LE: loop exit
PB: predicated region body
PF: predicated region fallthrough
CT: control target
= control target key end

     0   :  { %s850_s15 = smov 0   ;;  %s852_s16 = smov 0   ;;  %s1009_s0 = inlined_call_operand.vmem [shape: bf16[64,192], index: 0, kind: input, shape index: {}]   ;;  %s1010_s1 = inlined_call_operand.vmem [shape: bf16[192,64], index: 1, kind: input, shape index: {}]   ;;  %s1011_s2 = inlined_call_operand.vmem [shape: f32[1,64], index: 2, kind: input, shape index: {}]   ;;  %s1012_s3 = inlined_call_operand.vmem [shape: f32[1,64], index: 3, kind: input, shape index: {}]   ;;  %s1013_s4 = inlined_call_operand.vmem [shape: f32[64,64], index: 4, kind: output, shape index: {}]  }
   0x1   :  { %s854_s17 = smov 0  }
   0x2 LB: > { %s26_s18 = sadd.s32 1, %s817_s16  ;;  %p690_p0 = scmp.ge.s32.totalorder %s821_s17, 1  ;;  %s821_s17 = sphi %s854_s17, %s14_s17   ;;  %s817_s16 = sphi %s852_s16, %s1015_s16   ;;  %s813_s15 = sphi %s850_s15, %s1014_s15  }
   0x3   : > { %p28_p1 = scmp.ge.s32.totalorder %s26_s18, 2  ;;  %p186_p2 = scmp.lt.s32.totalorder %s821_s17, 3 }
   0x5   : > { %s1017_s18 = smov (%p28_p1, %s26_s18), 0  ;;  %p187_p3 = pnand %p690_p0, %p186_p2 }
   0x6   : > { %p691_p4 = scmp.ne.s32.totalorder (!%p187_p3), %s813_s15, 0 }
   0x7   : > { %190 = sbr.rel (%p187_p3) target bundleno = 357 (0x165), region = 36 }
   0xc   : > { %240 = sbr.rel (%p691_p4) target bundleno = 300 (0x12c), region = 40 }
  0x11   : > { %v773_v0 = vld [vmem:[%s1010_s1 + $0x38] sm:$0xff]   ;;  %v823_v1 = vmov 0   ;;  %v774_v2 = vld [vmem:[%s1010_s1 + $0x30] sm:$0xff]   ;;  %v775_v3 = vld [vmem:[%s1010_s1 + $0x28] sm:$0xff]   ;;  %vm381_vm0 = vcmask 523264   ;;  %vm472_vm1 = vcmask 517120  }
  0x12   : > { %394 = vmatprep.subr.bf16.mxu0 %v823_v1  ;;  %723 = vmatprep.subr.bf16.mxu1 %v823_v1  ;;  %v776_v4 = vld [vmem:[%s1010_s1 + $0x20] sm:$0xff]   ;;  %v777_v6 = vld [vmem:[%s1010_s1 + $0x18] sm:$0xff]   ;;  %v778_v8 = vld [vmem:[%s1010_s1 + $0x10] sm:$0xff]   ;;  %v824_v21 = vmov 0.0   ;;  %vm525_vm2 = vcmask 1040384  }
  0x13   : > { %395 = vmatpush1.bf16.msra.mxu0 %v773_v0  ;;  %735 = vmatpush1.bf16.msra.mxu1 %v773_v0  ;;  %v787_v5 = vld [vmem:[%s1009_s0 + $0x4] ss:$8 sps:$4 sm:$0xff]   ;;  %v781_v11 = vld [vmem:[%s1010_s1 + $0x58] sm:$0xff]   ;;  %v782_v12 = vld [vmem:[%s1010_s1 + $0x50] sm:$0xff]   ;;  %473 = vst.msk [vmem:[#allocation3] sm:$0x3] %vm472_vm1, %v824_v21 }
  0x14   : > { %396 = vmatprep.subr.bf16.mxu0 %v823_v1  ;;  %724 = vmatprep.subr.bf16.mxu1 %v823_v1  ;;  %v790_v7 = vld [vmem:[%s1009_s0 + $0x24] ss:$8 sps:$4 sm:$0xff]   ;;  %v785_v15 = vld [vmem:[%s1009_s0] ss:$8 sps:$4 sm:$0xff]   ;;  %v791_v17 = vld [vmem:[%s1009_s0 + $0x14] ss:$8 sps:$4 sm:$0xff]  }
  0x15   : > { %712 = vmatprep.mubr.msk.bf16.mxu0 %vm381_vm0, %v787_v5  ;;  %714 = vmatprep.mubr.msk.bf16.mxu1 %vm381_vm0, %v790_v7  ;;  %v779_v9 = vld [vmem:[%s1010_s1 + $0x8] sm:$0xff]   ;;  %v780_v10 = vld [vmem:[%s1010_s1] sm:$0xff]   ;;  %v794_v18 = vld [vmem:[%s1009_s0 + $0x34] ss:$8 sps:$4 sm:$0xff]  }
  0x16   : > { %v783_v13 = vld [vmem:[%s1010_s1 + $0x48] sm:$0xff]   ;;  %v784_v14 = vld [vmem:[%s1010_s1 + $0x40] sm:$0xff]   ;;  %v793_v19 = vld [vmem:[%s1009_s0 + $0x10] ss:$8 sps:$4 sm:$0xff]  }
  0x17   : > { %397 = vmatpush1.bf16.msra.mxu0 %v774_v2  ;;  %736 = vmatpush1.bf16.msra.mxu1 %v774_v2  ;;  %v788_v16 = vld [vmem:[%s1009_s0 + $0x20] ss:$8 sps:$4 sm:$0xff]   ;;  %v796_v20 = vld [vmem:[%s1009_s0 + $0x30] ss:$8 sps:$4 sm:$0xff]  }
  0x18   : > { %398 = vmatprep.subr.bf16.mxu0 %v823_v1  ;;  %725 = vmatprep.subr.bf16.mxu1 %v823_v1 }
  0x1b   : > { %399 = vmatpush1.bf16.msra.mxu0 %v775_v3  ;;  %737 = vmatpush1.bf16.msra.mxu1 %v775_v3 }
  0x1c   : > { %400 = vmatprep.subr.bf16.mxu0 %v823_v1  ;;  %726 = vmatprep.subr.bf16.mxu1 %v823_v1 }
  0x1f   : > { %401 = vmatpush1.bf16.msra.mxu0 %v776_v4  ;;  %738 = vmatpush1.bf16.msra.mxu1 %v776_v4 }
  0x20   : > { %402 = vmatprep.subr.bf16.mxu0 %v823_v1  ;;  %727 = vmatprep.subr.bf16.mxu1 %v823_v1 }
  0x23   : > { %403 = vmatpush1.bf16.msra.mxu0 %v777_v6  ;;  %739 = vmatpush1.bf16.msra.mxu1 %v777_v6 }
  0x24   : > { %404 = vmatprep.subr.bf16.mxu0 %v823_v1  ;;  %728 = vmatprep.subr.bf16.mxu1 %v823_v1 }
  0x27   : > { %405 = vmatpush1.bf16.msra.mxu0 %v778_v8  ;;  %740 = vmatpush1.bf16.msra.mxu1 %v778_v8 }
  0x28   : > { %406 = vmatprep.subr.bf16.mxu0 %v823_v1  ;;  %729 = vmatprep.subr.bf16.mxu1 %v823_v1 }
  0x2b   : > { %407 = vmatpush1.bf16.msra.mxu0 %v779_v9  ;;  %741 = vmatpush1.bf16.msra.mxu1 %v779_v9 }
  0x2c   : > { %408 = vmatprep.subr.bf16.mxu0 %v823_v1  ;;  %730 = vmatprep.subr.bf16.mxu1 %v823_v1 }
  0x2f   : > { %409 = vmatpush1.bf16.msra.mxu0 %v780_v10  ;;  %742 = vmatpush1.bf16.msra.mxu1 %v780_v10 }
  0x30   : > { %418 = vmatprep.subr.bf16.mxu0 %v823_v1  ;;  %731 = vmatprep.subr.bf16.mxu1 %v823_v1 }
  0x33   : > { %419 = vmatpush2.bf16.msra.mxu0 %v781_v11  ;;  %743 = vmatpush2.bf16.msra.mxu1 %v781_v11 }
  0x34   : > { %420 = vmatprep.subr.bf16.mxu0 %v823_v1  ;;  %732 = vmatprep.subr.bf16.mxu1 %v823_v1 }
  0x37   : > { %421 = vmatpush2.bf16.msra.mxu0 %v782_v12  ;;  %744 = vmatpush2.bf16.msra.mxu1 %v782_v12 }
  0x38   : > { %422 = vmatprep.subr.bf16.mxu0 %v823_v1  ;;  %733 = vmatprep.subr.bf16.mxu1 %v823_v1 }
  0x3b   : > { %423 = vmatpush2.bf16.msra.mxu0 %v783_v13  ;;  %745 = vmatpush2.bf16.msra.mxu1 %v783_v13 }
  0x3c   : > { %424 = vmatprep.subr.bf16.mxu0 %v823_v1  ;;  %734 = vmatprep.subr.bf16.mxu1 %v823_v1 }
  0x3f   : > { %425 = vmatpush2.bf16.msra.mxu0 %v784_v14  ;;  %746 = vmatpush2.bf16.msra.mxu1 %v784_v14 }
  0x42   : > { %427 = vmatmul.mubr.bf16.vlgmr.msra.gmra.mxu0 %v785_v15  ;;  %443 = vmatmul.mubr.bf16.vlgmr.msra.gmra.mxu1 %v788_v16 }
  0x43   : > { %713 = vmatprep.mubr.msk.bf16.mxu0 %vm381_vm0, %v791_v17  ;;  %715 = vmatprep.mubr.msk.bf16.mxu1 %vm381_vm0, %v794_v18 }
  0x4a   : > { %435 = vmatmul.mubr.bf16.gmra.mxu0 %v793_v19  ;;  %451 = vmatmul.mubr.bf16.gmra.mxu1 %v796_v20 }
 0x102   : > { %v428_v22 = vpop.f32.mrf.mxu0  ;;  %v444_v23 = vpop.f32.mrf.mxu1 }
 0x103   : > { %460 = vst.msk [vmem:[#allocation2] sm:$0xff] %vm381_vm0, %v428_v22  ;;  %464 = vst.msk [vmem:[#allocation2 + $0x20] sm:$0xff] %vm381_vm0, %v444_v23  ;;  %v496_v31 = vmul.f32 %v428_v22, %v428_v22  ;;  %v475_v35 = vsel %vm381_vm0, %v428_v22, 0.0  ;;  %v500_v48 = vmul.f32 %v444_v23, %v444_v23  ;;  %v482_v55 = vsel %vm381_vm0, %v444_v23, 0.0  ;;  %v474_v22 = vld [vmem:[#allocation3] sm:$0x3] }
 0x104   : > { %v430_v24 = vpop.f32.mrf.mxu0  ;;  %v446_v25 = vpop.f32.mrf.mxu1 }
 0x105   : > { %v504_v42 = vsel %vm381_vm0, %v496_v31, 0.0  ;;  %v511_v60 = vsel %vm381_vm0, %v500_v48, 0.0 }
 0x106   : > { %v431_v26 = vpop.f32.mrf.mxu0  ;;  %v447_v27 = vpop.f32.mrf.mxu1 }
 0x107   : > { %461 = vst.msk [vmem:[#allocation2 + $0x8] sm:$0xff] %vm381_vm0, %v431_v26  ;;  %v497_v28 = vmul.f32 %v431_v26, %v431_v26  ;;  %465 = vst.msk [vmem:[#allocation2 + $0x28] sm:$0xff] %vm381_vm0, %v447_v27  ;;  %v476_v32 = vsel %vm381_vm0, %v431_v26, 0.0  ;;  %v501_v56 = vmul.f32 %v447_v27, %v447_v27  ;;  %v484_v61 = vsel %vm381_vm0, %v447_v27, 0.0 }
 0x108   : > { %v433_v29 = vpop.f32.mrf.mxu0  ;;  %v449_v30 = vpop.f32.mrf.mxu1  ;;  %v477_v39 = vadd.f32 %v476_v32, %v475_v35 }
 0x109   : > { %v505_v36 = vsel %vm381_vm0, %v497_v28, 0.0  ;;  %v513_v1 = vsel %vm381_vm0, %v501_v56, 0.0 }
 0x10a   : > { %v436_v33 = vpop.f32.mrf.mxu0  ;;  %v452_v34 = vpop.f32.mrf.mxu1  ;;  %v506_v44 = vadd.f32 %v505_v36, %v504_v42 }
 0x10b   : > { %462 = vst.msk [vmem:[#allocation2 + $0x10] sm:$0xff] %vm381_vm0, %v436_v33  ;;  %v478_v37 = vsel %vm381_vm0, %v436_v33, 0.0  ;;  %v498_v38 = vmul.f32 %v436_v33, %v436_v33  ;;  %466 = vst.msk [vmem:[#allocation2 + $0x30] sm:$0xff] %vm381_vm0, %v452_v34  ;;  %v502_v62 = vmul.f32 %v452_v34, %v452_v34  ;;  %v486_v2 = vsel %vm381_vm0, %v452_v34, 0.0 }
 0x10c   : > { %v438_v40 = vpop.f32.mrf.mxu0  ;;  %v454_v41 = vpop.f32.mrf.mxu1  ;;  %v479_v45 = vadd.f32 %v478_v37, %v477_v39 }
 0x10d   : > { %v507_v43 = vsel %vm381_vm0, %v498_v38, 0.0  ;;  %v515_v6 = vsel %vm381_vm0, %v502_v62, 0.0 }
 0x10e   : > { %v439_v46 = vpop.f32.mrf.mxu0  ;;  %v455_v47 = vpop.f32.mrf.mxu1  ;;  %v508_v51 = vadd.f32 %v507_v43, %v506_v44 }
 0x10f   : > { %463 = vst.msk [vmem:[#allocation2 + $0x18] sm:$0xff] %vm381_vm0, %v439_v46  ;;  %v480_v49 = vsel %vm381_vm0, %v439_v46, 0.0  ;;  %v499_v50 = vmul.f32 %v439_v46, %v439_v46  ;;  %467 = vst.msk [vmem:[#allocation2 + $0x38] sm:$0xff] %vm381_vm0, %v455_v47  ;;  %v503_v3 = vmul.f32 %v455_v47, %v455_v47  ;;  %v488_v7 = vsel %vm381_vm0, %v455_v47, 0.0 }
 0x110   : > { %v481_v52 = vadd.f32 %v480_v49, %v479_v45  ;;  %v441_v53 = vpop.f32.mrf.mxu0  ;;  %v457_v54 = vpop.f32.mrf.mxu1 }
 0x111   : > { %v509_v57 = vsel %vm381_vm0, %v499_v50, 0.0  ;;  %v517_v10 = vsel %vm381_vm0, %v503_v3, 0.0 }
 0x112   : > { %v483_v58 = vadd.f32 %v482_v55, %v481_v52  ;;  %v510_v59 = vadd.f32 %v509_v57, %v508_v51 }
 0x114   : > { %v512_v63 = vadd.f32 %v511_v60, %v510_v59  ;;  %v485_v0 = vadd.f32 %v484_v61, %v483_v58 }
 0x116   : > { %v487_v4 = vadd.f32 %v486_v2, %v485_v0  ;;  %v514_v5 = vadd.f32 %v513_v1, %v512_v63 }
 0x118   : > { %v489_v8 = vadd.f32 %v488_v7, %v487_v4  ;;  %v516_v9 = vadd.f32 %v515_v6, %v514_v5 }
 0x11a   : > { %v490_v11 = vrot.slane %v489_v8, 4  ;;  %v518_v12 = vadd.f32 %v517_v10, %v516_v9 }
 0x11c   : > { %v491_v13 = vadd.f32 %v490_v11, %v489_v8  ;;  %v519_v14 = vrot.slane %v518_v12, 4 }
 0x11e   : > { %v492_v15 = vrot.slane %v491_v13, 2  ;;  %v520_v16 = vadd.f32 %v519_v14, %v518_v12 }
 0x120   : > { %v493_v17 = vadd.f32 %v492_v15, %v491_v13  ;;  %v521_v18 = vrot.slane %v520_v16, 2 }
 0x122   : > { %v494_v19 = vrot.slane %v493_v17, 1  ;;  %v522_v20 = vadd.f32 %v521_v18, %v520_v16 }
 0x124   : > { %v523_v21 = vrot.slane %v522_v20, 1  ;;  %v495_v23 = vadd.f32 %v494_v19, %v493_v17 }
 0x126   : > { %v524_v24 = vadd.f32 %v523_v21, %v522_v20 }
 0x128   : > { %v526_v25 = vsel %vm525_vm2, %v495_v23, %v524_v24 }
 0x129   : > { %v527_v26 = vadd.f32 %v526_v25, %v474_v22 }
 0x12b   : > { %529 = vst.msk [vmem:[#allocation3] sm:$0x3] %vm472_vm1, %v527_v26 }
 0x12c PF: > { %p716_p5 = scmp.ne.s32.totalorder %s813_s15, 1 }
 0x12e   : > { %533 = sbr.rel (%p716_p5) target bundleno = 357 (0x165), region = 48 }
 0x133   : > { %v538_v27 = vld [vmem:[#allocation3] sm:$0x1]  ;;  %v540_v28 = vld [vmem:[#allocation3 + $0x1] sm:$0x1]  ;;  %v552_v34 = vlaneseq  ;;  %vm557_vm3 = vcmask 1040384   ;;  %vm559_vm4 = vcmask 517120  }
 0x134   : > { %v539_v29 = vmul.f32 0.015625, %v538_v27  ;;  %v541_v30 = vmul.f32 0.015625, %v540_v28  ;;  %v544_v35 = vld [vmem:[%s1011_s2] sm:$0x1]  ;;  %v563_v46 = vld [vmem:[#allocation2 + $0x8] sm:$0xff]  ;;  %v564_v47 = vld [vmem:[#allocation2 + $0x10] sm:$0xff] }
 0x135   : > { %v553_v36 = vshrl.u32 %v552_v34, 7  ;;  %v548_v39 = vld [vmem:[%s1012_s3] sm:$0x1]  ;;  %v565_v48 = vld [vmem:[#allocation2 + $0x18] sm:$0xff]  ;;  %v567_v50 = vld [vmem:[#allocation2 + $0x28] sm:$0xff]  ;;  %vm604_vm5 = vcmask 523264  }
 0x136   : > { %v542_v31 = vmul.f32 %v539_v29, %v539_v29  ;;  %v562_v45 = vld [vmem:[#allocation2] sm:$0xff]  ;;  %v568_v51 = vld [vmem:[#allocation2 + $0x30] sm:$0xff]  ;;  %v569_v52 = vld [vmem:[#allocation2 + $0x38] sm:$0xff] }
 0x137   : > { %v554_v41 = vsub.s32 0, %v553_v36  ;;  %v566_v49 = vld [vmem:[#allocation2 + $0x20] sm:$0xff] }
 0x138   : > { %v543_v32 = vsub.f32 %v541_v30, %v542_v31 }
 0x13a   : > { %v545_v33 = vadd.f32 1e-05, %v543_v32 }
 0x13c   : > { %797 = vrsqrt.f32 %v545_v33 }
 0x149   : > { %v798_v37 = vpop.eup %797 }
 0x14a   : > { %v547_v38 = vmul.f32 %v798_v37, %v544_v35 }
 0x14c   : > { %v549_v40 = vmul.f32 %v547_v38, %v539_v29 }
 0x14e   : > { %v550_v42 = vsub.f32 %v548_v39, %v549_v40 }
 0x150   : > { %v555_v43 = vrot.slane %v550_v42, %v554_v41 }
 0x152   : > { %v558_v44 = vsel %vm557_vm3, %v547_v38, %v555_v43 }
 0x153   : > { %560 = vst.msk [vmem:[#allocation3] sm:$0x3] %vm559_vm4, %v558_v44 }
 0x15a   : > { %v717_v53 = vld [vmem:[#allocation3] ss:$0 sm:$0xff]  ;;  %v718_v58 = vld [vmem:[#allocation3 + $0x1] ss:$0 sm:$0xff] }
 0x15b   : > { %v575_v54 = vmul.f32 %v717_v53, %v562_v45  ;;  %v576_v55 = vmul.f32 %v717_v53, %v563_v46  ;;  %v577_v56 = vmul.f32 %v717_v53, %v564_v47  ;;  %v578_v57 = vmul.f32 %v717_v53, %v565_v48 }
 0x15c   : > { %v579_v59 = vmul.f32 %v717_v53, %v566_v49  ;;  %v580_v60 = vmul.f32 %v717_v53, %v567_v50  ;;  %v581_v61 = vmul.f32 %v717_v53, %v568_v51  ;;  %v582_v62 = vmul.f32 %v717_v53, %v569_v52 }
 0x15d   : > { %v588_v63 = vadd.f32 %v718_v58, %v575_v54  ;;  %v589_v0 = vadd.f32 %v718_v58, %v576_v55  ;;  %v590_v1 = vadd.f32 %v718_v58, %v577_v56  ;;  %v591_v2 = vadd.f32 %v718_v58, %v578_v57 }
 0x15e   : > { %v592_v3 = vadd.f32 %v718_v58, %v579_v59  ;;  %v593_v4 = vadd.f32 %v718_v58, %v580_v60  ;;  %v594_v5 = vadd.f32 %v718_v58, %v581_v61  ;;  %v595_v6 = vadd.f32 %v718_v58, %v582_v62 }
 0x15f   : > { %v596_v7 = vmax.f32 %v588_v63, 0.0  ;;  %v597_v8 = vmax.f32 %v589_v0, 0.0  ;;  %v598_v9 = vmax.f32 %v590_v1, 0.0  ;;  %v599_v10 = vmax.f32 %v591_v2, 0.0 }
 0x160   : > { %v600_v11 = vmax.f32 %v592_v3, 0.0  ;;  %v601_v12 = vmax.f32 %v593_v4, 0.0  ;;  %v602_v13 = vmax.f32 %v594_v5, 0.0  ;;  %v603_v14 = vmax.f32 %v595_v6, 0.0 }
 0x161   : > { %605 = vst.msk [vmem:[%s1013_s4] sm:$0xff] %vm604_vm5, %v596_v7  ;;  %606 = vst.msk [vmem:[%s1013_s4 + $0x8] sm:$0xff] %vm604_vm5, %v597_v8 }
 0x162   : > { %607 = vst.msk [vmem:[%s1013_s4 + $0x10] sm:$0xff] %vm604_vm5, %v598_v9  ;;  %608 = vst.msk [vmem:[%s1013_s4 + $0x18] sm:$0xff] %vm604_vm5, %v599_v10 }
 0x163   : > { %609 = vst.msk [vmem:[%s1013_s4 + $0x20] sm:$0xff] %vm604_vm5, %v600_v11  ;;  %610 = vst.msk [vmem:[%s1013_s4 + $0x28] sm:$0xff] %vm604_vm5, %v601_v12 }
 0x164   : > { %611 = vst.msk [vmem:[%s1013_s4 + $0x30] sm:$0xff] %vm604_vm5, %v602_v13  ;;  %612 = vst.msk [vmem:[%s1013_s4 + $0x38] sm:$0xff] %vm604_vm5, %v603_v14 }
 0x165 PF: > { %s14_s17 = sadd.s32 1, %s821_s17   ;;  %s1014_s15 = smov %s817_s16 }
 0x166   : > { %p11_p6 = scmp.ge.s32.totalorder %s14_s17, 4   ;;  %s1015_s16 = smov %s1017_s18 }
 0x168   :  { %13 = sbr.rel (!%p11_p6) target bundleno = 2 (0x2), region = 84 }

// kernel: _lambda_.16
= control target key start
LH: loop header
LB: loop body
LE: loop exit
PB: predicated region body
PF: predicated region fallthrough
CT: control target
= control target key end

     0   :  { %s940_s18 = smov 0   ;;  %s942_s19 = smov 0   ;;  %s1123_s0 = inlined_call_operand.vmem [shape: bf16[64,192], index: 0, kind: input, shape index: {}]   ;;  %s1124_s1 = inlined_call_operand.vmem [shape: bf16[192,64], index: 1, kind: input, shape index: {}]   ;;  %s1125_s2 = inlined_call_operand.vmem [shape: f32[1,64], index: 2, kind: input, shape index: {}]   ;;  %s1126_s3 = inlined_call_operand.vmem [shape: f32[1,64], index: 3, kind: input, shape index: {}]   ;;  %s1127_s4 = inlined_call_operand.vmem [shape: f32[64,64], index: 4, kind: input, shape index: {}]   ;;  %s1128_s5 = inlined_call_operand.vmem [shape: f32[64,64], index: 5, kind: output, shape index: {}]  }
   0x1   :  { %s944_s20 = smov 0  }
   0x2 LB: > { %s27_s21 = sadd.s32 1, %s902_s19  ;;  %p775_p0 = scmp.ge.s32.totalorder %s906_s20, 1  ;;  %s906_s20 = sphi %s944_s20, %s15_s20   ;;  %s902_s19 = sphi %s942_s19, %s1130_s19   ;;  %s898_s18 = sphi %s940_s18, %s1129_s18  }
   0x3   : > { %p29_p1 = scmp.ge.s32.totalorder %s27_s21, 2  ;;  %p226_p2 = scmp.lt.s32.totalorder %s906_s20, 3 }
   0x5   : > { %s1132_s21 = smov (%p29_p1, %s27_s21), 0  ;;  %p227_p3 = pnand %p775_p0, %p226_p2 }
   0x6   : > { %p776_p4 = scmp.ne.s32.totalorder (!%p227_p3), %s898_s18, 0 }
   0x7   : > { %230 = sbr.rel (%p227_p3) target bundleno = 359 (0x167), region = 40 }
   0xc   : > { %296 = sbr.rel (%p776_p4) target bundleno = 300 (0x12c), region = 44 }
  0x11   : > { %v858_v0 = vld [vmem:[%s1124_s1 + $0x38] sm:$0xff]   ;;  %v908_v1 = vmov 0   ;;  %v859_v2 = vld [vmem:[%s1124_s1 + $0x30] sm:$0xff]   ;;  %v860_v3 = vld [vmem:[%s1124_s1 + $0x28] sm:$0xff]   ;;  %vm437_vm0 = vcmask 523264   ;;  %vm528_vm1 = vcmask 517120  }
  0x12   : > { %450 = vmatprep.subr.bf16.mxu0 %v908_v1  ;;  %808 = vmatprep.subr.bf16.mxu1 %v908_v1  ;;  %v861_v4 = vld [vmem:[%s1124_s1 + $0x20] sm:$0xff]   ;;  %v862_v6 = vld [vmem:[%s1124_s1 + $0x18] sm:$0xff]   ;;  %v863_v8 = vld [vmem:[%s1124_s1 + $0x10] sm:$0xff]   ;;  %v909_v21 = vmov 0.0   ;;  %vm581_vm2 = vcmask 1040384  }
  0x13   : > { %451 = vmatpush1.bf16.msra.mxu0 %v858_v0  ;;  %820 = vmatpush1.bf16.msra.mxu1 %v858_v0  ;;  %v872_v5 = vld [vmem:[%s1123_s0 + $0x4] ss:$8 sps:$4 sm:$0xff]   ;;  %v866_v11 = vld [vmem:[%s1124_s1 + $0x58] sm:$0xff]   ;;  %v867_v12 = vld [vmem:[%s1124_s1 + $0x50] sm:$0xff]   ;;  %529 = vst.msk [vmem:[#allocation3] sm:$0x3] %vm528_vm1, %v909_v21 }
  0x14   : > { %452 = vmatprep.subr.bf16.mxu0 %v908_v1  ;;  %809 = vmatprep.subr.bf16.mxu1 %v908_v1  ;;  %v875_v7 = vld [vmem:[%s1123_s0 + $0x24] ss:$8 sps:$4 sm:$0xff]   ;;  %v870_v15 = vld [vmem:[%s1123_s0] ss:$8 sps:$4 sm:$0xff]   ;;  %v876_v17 = vld [vmem:[%s1123_s0 + $0x14] ss:$8 sps:$4 sm:$0xff]  }
  0x15   : > { %797 = vmatprep.mubr.msk.bf16.mxu0 %vm437_vm0, %v872_v5  ;;  %799 = vmatprep.mubr.msk.bf16.mxu1 %vm437_vm0, %v875_v7  ;;  %v864_v9 = vld [vmem:[%s1124_s1 + $0x8] sm:$0xff]   ;;  %v865_v10 = vld [vmem:[%s1124_s1] sm:$0xff]   ;;  %v879_v18 = vld [vmem:[%s1123_s0 + $0x34] ss:$8 sps:$4 sm:$0xff]  }
  0x16   : > { %v868_v13 = vld [vmem:[%s1124_s1 + $0x48] sm:$0xff]   ;;  %v869_v14 = vld [vmem:[%s1124_s1 + $0x40] sm:$0xff]   ;;  %v878_v19 = vld [vmem:[%s1123_s0 + $0x10] ss:$8 sps:$4 sm:$0xff]  }
  0x17   : > { %453 = vmatpush1.bf16.msra.mxu0 %v859_v2  ;;  %821 = vmatpush1.bf16.msra.mxu1 %v859_v2  ;;  %v873_v16 = vld [vmem:[%s1123_s0 + $0x20] ss:$8 sps:$4 sm:$0xff]   ;;  %v881_v20 = vld [vmem:[%s1123_s0 + $0x30] ss:$8 sps:$4 sm:$0xff]  }
  0x18   : > { %454 = vmatprep.subr.bf16.mxu0 %v908_v1  ;;  %810 = vmatprep.subr.bf16.mxu1 %v908_v1 }
  0x1b   : > { %455 = vmatpush1.bf16.msra.mxu0 %v860_v3  ;;  %822 = vmatpush1.bf16.msra.mxu1 %v860_v3 }
  0x1c   : > { %456 = vmatprep.subr.bf16.mxu0 %v908_v1  ;;  %811 = vmatprep.subr.bf16.mxu1 %v908_v1 }
  0x1f   : > { %457 = vmatpush1.bf16.msra.mxu0 %v861_v4  ;;  %823 = vmatpush1.bf16.msra.mxu1 %v861_v4 }
  0x20   : > { %458 = vmatprep.subr.bf16.mxu0 %v908_v1  ;;  %812 = vmatprep.subr.bf16.mxu1 %v908_v1 }
  0x23   : > { %459 = vmatpush1.bf16.msra.mxu0 %v862_v6  ;;  %824 = vmatpush1.bf16.msra.mxu1 %v862_v6 }
  0x24   : > { %460 = vmatprep.subr.bf16.mxu0 %v908_v1  ;;  %813 = vmatprep.subr.bf16.mxu1 %v908_v1 }
  0x27   : > { %461 = vmatpush1.bf16.msra.mxu0 %v863_v8  ;;  %825 = vmatpush1.bf16.msra.mxu1 %v863_v8 }
  0x28   : > { %462 = vmatprep.subr.bf16.mxu0 %v908_v1  ;;  %814 = vmatprep.subr.bf16.mxu1 %v908_v1 }
  0x2b   : > { %463 = vmatpush1.bf16.msra.mxu0 %v864_v9  ;;  %826 = vmatpush1.bf16.msra.mxu1 %v864_v9 }
  0x2c   : > { %464 = vmatprep.subr.bf16.mxu0 %v908_v1  ;;  %815 = vmatprep.subr.bf16.mxu1 %v908_v1 }
  0x2f   : > { %465 = vmatpush1.bf16.msra.mxu0 %v865_v10  ;;  %827 = vmatpush1.bf16.msra.mxu1 %v865_v10 }
  0x30   : > { %474 = vmatprep.subr.bf16.mxu0 %v908_v1  ;;  %816 = vmatprep.subr.bf16.mxu1 %v908_v1 }
  0x33   : > { %475 = vmatpush2.bf16.msra.mxu0 %v866_v11  ;;  %828 = vmatpush2.bf16.msra.mxu1 %v866_v11 }
  0x34   : > { %476 = vmatprep.subr.bf16.mxu0 %v908_v1  ;;  %817 = vmatprep.subr.bf16.mxu1 %v908_v1 }
  0x37   : > { %477 = vmatpush2.bf16.msra.mxu0 %v867_v12  ;;  %829 = vmatpush2.bf16.msra.mxu1 %v867_v12 }
  0x38   : > { %478 = vmatprep.subr.bf16.mxu0 %v908_v1  ;;  %818 = vmatprep.subr.bf16.mxu1 %v908_v1 }
  0x3b   : > { %479 = vmatpush2.bf16.msra.mxu0 %v868_v13  ;;  %830 = vmatpush2.bf16.msra.mxu1 %v868_v13 }
  0x3c   : > { %480 = vmatprep.subr.bf16.mxu0 %v908_v1  ;;  %819 = vmatprep.subr.bf16.mxu1 %v908_v1 }
  0x3f   : > { %481 = vmatpush2.bf16.msra.mxu0 %v869_v14  ;;  %831 = vmatpush2.bf16.msra.mxu1 %v869_v14 }
  0x42   : > { %483 = vmatmul.mubr.bf16.vlgmr.msra.gmra.mxu0 %v870_v15  ;;  %499 = vmatmul.mubr.bf16.vlgmr.msra.gmra.mxu1 %v873_v16 }
  0x43   : > { %798 = vmatprep.mubr.msk.bf16.mxu0 %vm437_vm0, %v876_v17  ;;  %800 = vmatprep.mubr.msk.bf16.mxu1 %vm437_vm0, %v879_v18 }
  0x4a   : > { %491 = vmatmul.mubr.bf16.gmra.mxu0 %v878_v19  ;;  %507 = vmatmul.mubr.bf16.gmra.mxu1 %v881_v20 }
 0x102   : > { %v484_v22 = vpop.f32.mrf.mxu0  ;;  %v500_v23 = vpop.f32.mrf.mxu1 }
 0x103   : > { %516 = vst.msk [vmem:[#allocation2] sm:$0xff] %vm437_vm0, %v484_v22  ;;  %520 = vst.msk [vmem:[#allocation2 + $0x20] sm:$0xff] %vm437_vm0, %v500_v23  ;;  %v552_v31 = vmul.f32 %v484_v22, %v484_v22  ;;  %v531_v35 = vsel %vm437_vm0, %v484_v22, 0.0  ;;  %v556_v48 = vmul.f32 %v500_v23, %v500_v23  ;;  %v538_v55 = vsel %vm437_vm0, %v500_v23, 0.0  ;;  %v530_v22 = vld [vmem:[#allocation3] sm:$0x3] }
 0x104   : > { %v486_v24 = vpop.f32.mrf.mxu0  ;;  %v502_v25 = vpop.f32.mrf.mxu1 }
 0x105   : > { %v560_v42 = vsel %vm437_vm0, %v552_v31, 0.0  ;;  %v567_v60 = vsel %vm437_vm0, %v556_v48, 0.0 }
 0x106   : > { %v487_v26 = vpop.f32.mrf.mxu0  ;;  %v503_v27 = vpop.f32.mrf.mxu1 }
 0x107   : > { %517 = vst.msk [vmem:[#allocation2 + $0x8] sm:$0xff] %vm437_vm0, %v487_v26  ;;  %v553_v28 = vmul.f32 %v487_v26, %v487_v26  ;;  %521 = vst.msk [vmem:[#allocation2 + $0x28] sm:$0xff] %vm437_vm0, %v503_v27  ;;  %v532_v32 = vsel %vm437_vm0, %v487_v26, 0.0  ;;  %v557_v56 = vmul.f32 %v503_v27, %v503_v27  ;;  %v540_v61 = vsel %vm437_vm0, %v503_v27, 0.0 }
 0x108   : > { %v489_v29 = vpop.f32.mrf.mxu0  ;;  %v505_v30 = vpop.f32.mrf.mxu1  ;;  %v533_v39 = vadd.f32 %v532_v32, %v531_v35 }
 0x109   : > { %v561_v36 = vsel %vm437_vm0, %v553_v28, 0.0  ;;  %v569_v1 = vsel %vm437_vm0, %v557_v56, 0.0 }
 0x10a   : > { %v492_v33 = vpop.f32.mrf.mxu0  ;;  %v508_v34 = vpop.f32.mrf.mxu1  ;;  %v562_v44 = vadd.f32 %v561_v36, %v560_v42 }
 0x10b   : > { %518 = vst.msk [vmem:[#allocation2 + $0x10] sm:$0xff] %vm437_vm0, %v492_v33  ;;  %v534_v37 = vsel %vm437_vm0, %v492_v33, 0.0  ;;  %v554_v38 = vmul.f32 %v492_v33, %v492_v33  ;;  %522 = vst.msk [vmem:[#allocation2 + $0x30] sm:$0xff] %vm437_vm0, %v508_v34  ;;  %v558_v62 = vmul.f32 %v508_v34, %v508_v34  ;;  %v542_v2 = vsel %vm437_vm0, %v508_v34, 0.0 }
 0x10c   : > { %v494_v40 = vpop.f32.mrf.mxu0  ;;  %v510_v41 = vpop.f32.mrf.mxu1  ;;  %v535_v45 = vadd.f32 %v534_v37, %v533_v39 }
 0x10d   : > { %v563_v43 = vsel %vm437_vm0, %v554_v38, 0.0  ;;  %v571_v6 = vsel %vm437_vm0, %v558_v62, 0.0 }
 0x10e   : > { %v495_v46 = vpop.f32.mrf.mxu0  ;;  %v511_v47 = vpop.f32.mrf.mxu1  ;;  %v564_v51 = vadd.f32 %v563_v43, %v562_v44 }
 0x10f   : > { %519 = vst.msk [vmem:[#allocation2 + $0x18] sm:$0xff] %vm437_vm0, %v495_v46  ;;  %v536_v49 = vsel %vm437_vm0, %v495_v46, 0.0  ;;  %v555_v50 = vmul.f32 %v495_v46, %v495_v46  ;;  %523 = vst.msk [vmem:[#allocation2 + $0x38] sm:$0xff] %vm437_vm0, %v511_v47  ;;  %v559_v3 = vmul.f32 %v511_v47, %v511_v47  ;;  %v544_v7 = vsel %vm437_vm0, %v511_v47, 0.0 }
 0x110   : > { %v537_v52 = vadd.f32 %v536_v49, %v535_v45  ;;  %v497_v53 = vpop.f32.mrf.mxu0  ;;  %v513_v54 = vpop.f32.mrf.mxu1 }
 0x111   : > { %v565_v57 = vsel %vm437_vm0, %v555_v50, 0.0  ;;  %v573_v10 = vsel %vm437_vm0, %v559_v3, 0.0 }
 0x112   : > { %v539_v58 = vadd.f32 %v538_v55, %v537_v52  ;;  %v566_v59 = vadd.f32 %v565_v57, %v564_v51 }
 0x114   : > { %v568_v63 = vadd.f32 %v567_v60, %v566_v59  ;;  %v541_v0 = vadd.f32 %v540_v61, %v539_v58 }
 0x116   : > { %v543_v4 = vadd.f32 %v542_v2, %v541_v0  ;;  %v570_v5 = vadd.f32 %v569_v1, %v568_v63 }
 0x118   : > { %v545_v8 = vadd.f32 %v544_v7, %v543_v4  ;;  %v572_v9 = vadd.f32 %v571_v6, %v570_v5 }
 0x11a   : > { %v546_v11 = vrot.slane %v545_v8, 4  ;;  %v574_v12 = vadd.f32 %v573_v10, %v572_v9 }
 0x11c   : > { %v547_v13 = vadd.f32 %v546_v11, %v545_v8  ;;  %v575_v14 = vrot.slane %v574_v12, 4 }
 0x11e   : > { %v548_v15 = vrot.slane %v547_v13, 2  ;;  %v576_v16 = vadd.f32 %v575_v14, %v574_v12 }
 0x120   : > { %v549_v17 = vadd.f32 %v548_v15, %v547_v13  ;;  %v577_v18 = vrot.slane %v576_v16, 2 }
 0x122   : > { %v550_v19 = vrot.slane %v549_v17, 1  ;;  %v578_v20 = vadd.f32 %v577_v18, %v576_v16 }
 0x124   : > { %v579_v21 = vrot.slane %v578_v20, 1  ;;  %v551_v23 = vadd.f32 %v550_v19, %v549_v17 }
 0x126   : > { %v580_v24 = vadd.f32 %v579_v21, %v578_v20 }
 0x128   : > { %v582_v25 = vsel %vm581_vm2, %v551_v23, %v580_v24 }
 0x129   : > { %v583_v26 = vadd.f32 %v582_v25, %v530_v22 }
 0x12b   : > { %585 = vst.msk [vmem:[#allocation3] sm:$0x3] %vm528_vm1, %v583_v26 }
 0x12c PF: > { %p801_p5 = scmp.ne.s32.totalorder %s898_s18, 1 }
 0x12e   : > { %589 = sbr.rel (%p801_p5) target bundleno = 359 (0x167), region = 52 }
 0x133   : > { %v594_v27 = vld [vmem:[#allocation3] sm:$0x1]  ;;  %v596_v28 = vld [vmem:[#allocation3 + $0x1] sm:$0x1]  ;;  %v608_v34 = vlaneseq  ;;  %vm613_vm3 = vcmask 1040384   ;;  %vm615_vm4 = vcmask 517120  }
 0x134   : > { %v595_v29 = vmul.f32 0.015625, %v594_v27  ;;  %v597_v30 = vmul.f32 0.015625, %v596_v28  ;;  %v600_v35 = vld [vmem:[%s1125_s2] sm:$0x1]  ;;  %v619_v46 = vld [vmem:[#allocation2 + $0x8] sm:$0xff]  ;;  %v620_v47 = vld [vmem:[#allocation2 + $0x10] sm:$0xff] }
 0x135   : > { %v609_v36 = vshrl.u32 %v608_v34, 7  ;;  %v604_v39 = vld [vmem:[%s1126_s3] sm:$0x1]  ;;  %v621_v48 = vld [vmem:[#allocation2 + $0x18] sm:$0xff]  ;;  %v623_v50 = vld [vmem:[#allocation2 + $0x28] sm:$0xff]  ;;  %vm676_vm5 = vcmask 523264  }
 0x136   : > { %v598_v31 = vmul.f32 %v595_v29, %v595_v29  ;;  %v618_v45 = vld [vmem:[#allocation2] sm:$0xff]  ;;  %v624_v51 = vld [vmem:[#allocation2 + $0x30] sm:$0xff]  ;;  %v625_v52 = vld [vmem:[#allocation2 + $0x38] sm:$0xff] }
 0x137   : > { %v610_v41 = vsub.s32 0, %v609_v36  ;;  %v622_v49 = vld [vmem:[#allocation2 + $0x20] sm:$0xff]  ;;  %v653_v57 = vld [vmem:[%s1127_s4 + $0x8] sm:$0xff]  ;;  %v654_v59 = vld [vmem:[%s1127_s4 + $0x10] sm:$0xff] }
 0x138   : > { %v599_v32 = vsub.f32 %v597_v30, %v598_v31  ;;  %v652_v55 = vld [vmem:[%s1127_s4] sm:$0xff]  ;;  %v655_v62 = vld [vmem:[%s1127_s4 + $0x18] sm:$0xff]  ;;  %v657_v8 = vld [vmem:[%s1127_s4 + $0x28] sm:$0xff] }
 0x139   : > { %v656_v0 = vld [vmem:[%s1127_s4 + $0x20] sm:$0xff]  ;;  %v658_v9 = vld [vmem:[%s1127_s4 + $0x30] sm:$0xff]  ;;  %v659_v10 = vld [vmem:[%s1127_s4 + $0x38] sm:$0xff] }
 0x13a   : > { %v601_v33 = vadd.f32 1e-05, %v599_v32 }
 0x13c   : > { %882 = vrsqrt.f32 %v601_v33 }
 0x149   : > { %v883_v37 = vpop.eup %882 }
 0x14a   : > { %v603_v38 = vmul.f32 %v883_v37, %v600_v35 }
 0x14c   : > { %v605_v40 = vmul.f32 %v603_v38, %v595_v29 }
 0x14e   : > { %v606_v42 = vsub.f32 %v604_v39, %v605_v40 }
 0x150   : > { %v611_v43 = vrot.slane %v606_v42, %v610_v41 }
 0x152   : > { %v614_v44 = vsel %vm613_vm3, %v603_v38, %v611_v43 }
 0x153   : > { %616 = vst.msk [vmem:[#allocation3] sm:$0x3] %vm615_vm4, %v614_v44 }
 0x15a   : > { %v802_v53 = vld [vmem:[#allocation3] ss:$0 sm:$0xff]  ;;  %v803_v61 = vld [vmem:[#allocation3 + $0x1] ss:$0 sm:$0xff] }
 0x15b   : > { %v631_v54 = vmul.f32 %v802_v53, %v618_v45  ;;  %v632_v56 = vmul.f32 %v802_v53, %v619_v46  ;;  %v633_v58 = vmul.f32 %v802_v53, %v620_v47  ;;  %v634_v60 = vmul.f32 %v802_v53, %v621_v48 }
 0x15c   : > { %v635_v63 = vmul.f32 %v802_v53, %v622_v49  ;;  %v636_v1 = vmul.f32 %v802_v53, %v623_v50  ;;  %v637_v2 = vmul.f32 %v802_v53, %v624_v51  ;;  %v638_v3 = vmul.f32 %v802_v53, %v625_v52 }
 0x15d   : > { %v644_v4 = vadd.f32 %v803_v61, %v631_v54  ;;  %v645_v5 = vadd.f32 %v803_v61, %v632_v56  ;;  %v646_v6 = vadd.f32 %v803_v61, %v633_v58  ;;  %v647_v7 = vadd.f32 %v803_v61, %v634_v60 }
 0x15e   : > { %v648_v11 = vadd.f32 %v803_v61, %v635_v63  ;;  %v649_v12 = vadd.f32 %v803_v61, %v636_v1  ;;  %v650_v13 = vadd.f32 %v803_v61, %v637_v2  ;;  %v651_v14 = vadd.f32 %v803_v61, %v638_v3 }
 0x15f   : > { %v660_v15 = vadd.f32 %v652_v55, %v644_v4  ;;  %v661_v16 = vadd.f32 %v653_v57, %v645_v5  ;;  %v662_v17 = vadd.f32 %v654_v59, %v646_v6  ;;  %v663_v18 = vadd.f32 %v655_v62, %v647_v7 }
 0x160   : > { %v664_v19 = vadd.f32 %v656_v0, %v648_v11  ;;  %v665_v20 = vadd.f32 %v657_v8, %v649_v12  ;;  %v666_v21 = vadd.f32 %v658_v9, %v650_v13  ;;  %v667_v22 = vadd.f32 %v659_v10, %v651_v14 }
 0x161   : > { %v668_v23 = vmax.f32 %v660_v15, 0.0  ;;  %v669_v24 = vmax.f32 %v661_v16, 0.0  ;;  %v670_v25 = vmax.f32 %v662_v17, 0.0  ;;  %v671_v26 = vmax.f32 %v663_v18, 0.0 }
 0x162   : > { %v672_v27 = vmax.f32 %v664_v19, 0.0  ;;  %v673_v28 = vmax.f32 %v665_v20, 0.0  ;;  %v674_v29 = vmax.f32 %v666_v21, 0.0  ;;  %v675_v30 = vmax.f32 %v667_v22, 0.0 }
 0x163   : > { %677 = vst.msk [vmem:[%s1128_s5] sm:$0xff] %vm676_vm5, %v668_v23  ;;  %678 = vst.msk [vmem:[%s1128_s5 + $0x8] sm:$0xff] %vm676_vm5, %v669_v24 }
 0x164   : > { %679 = vst.msk [vmem:[%s1128_s5 + $0x10] sm:$0xff] %vm676_vm5, %v670_v25  ;;  %680 = vst.msk [vmem:[%s1128_s5 + $0x18] sm:$0xff] %vm676_vm5, %v671_v26 }
 0x165   : > { %681 = vst.msk [vmem:[%s1128_s5 + $0x20] sm:$0xff] %vm676_vm5, %v672_v27  ;;  %682 = vst.msk [vmem:[%s1128_s5 + $0x28] sm:$0xff] %vm676_vm5, %v673_v28 }
 0x166   : > { %683 = vst.msk [vmem:[%s1128_s5 + $0x30] sm:$0xff] %vm676_vm5, %v674_v29  ;;  %684 = vst.msk [vmem:[%s1128_s5 + $0x38] sm:$0xff] %vm676_vm5, %v675_v30 }
 0x167 PF: > { %s15_s20 = sadd.s32 1, %s906_s20   ;;  %s1129_s18 = smov %s902_s19 }
 0x168   : > { %p12_p6 = scmp.ge.s32.totalorder %s15_s20, 4   ;;  %s1130_s19 = smov %s1132_s21 }
 0x16a   :  { %14 = sbr.rel (!%p12_p6) target bundleno = 2 (0x2), region = 91 }

// kernel: _lambda_.18
= control target key start
LH: loop header
LB: loop body
LE: loop exit
PB: predicated region body
PF: predicated region fallthrough
CT: control target
= control target key end

     0   :  { %s1034_s18 = smov 0   ;;  %s1036_s19 = smov 0   ;;  %s1185_s0 = inlined_call_operand.vmem [shape: bf16[32,384], index: 0, kind: input, shape index: {}]   ;;  %s1186_s1 = inlined_call_operand.vmem [shape: bf16[384,128], index: 1, kind: input, shape index: {}]   ;;  %s1187_s2 = inlined_call_operand.vmem [shape: f32[1,128], index: 2, kind: input, shape index: {}]   ;;  %s1188_s3 = inlined_call_operand.vmem [shape: f32[1,128], index: 3, kind: input, shape index: {}]   ;;  %s1189_s4 = inlined_call_operand.vmem [shape: f32[32,128], index: 4, kind: input, shape index: {}]   ;;  %s1190_s5 = inlined_call_operand.vmem [shape: f32[32,128], index: 5, kind: output, shape index: {}]  }
   0x1   :  { %s1038_s20 = smov 0  }
   0x2 LB: > { %s27_s21 = sadd.s32 1, %s997_s19  ;;  %p823_p0 = scmp.ge.s32.totalorder %s1001_s20, 1  ;;  %s1001_s20 = sphi %s1038_s20, %s15_s20   ;;  %s997_s19 = sphi %s1036_s19, %s1192_s19   ;;  %s993_s18 = sphi %s1034_s18, %s1191_s18  }
   0x3   : > { %p29_p1 = scmp.ge.s32.totalorder %s27_s21, 2  ;;  %p226_p2 = scmp.lt.s32.totalorder %s1001_s20, 3 }
   0x5   : > { %s1194_s21 = smov (%p29_p1, %s27_s21), 0  ;;  %p227_p3 = pnand %p823_p0, %p226_p2 }
   0x6   : > { %p824_p4 = scmp.ne.s32.totalorder (!%p227_p3), %s993_s18, 0 }
   0x7   : > { %230 = sbr.rel (%p227_p3) target bundleno = 339 (0x153), region = 40 }
   0xc   : > { %296 = sbr.rel (%p824_p4) target bundleno = 282 (0x11a), region = 44 }
  0x11   : > { %v945_v0 = vld [vmem:[%s1186_s1 + $0x78] sm:$0xff]   ;;  %v948_v3 = vld [vmem:[%s1186_s1 + $0x70] sm:$0xff]   ;;  %v951_v6 = vld [vmem:[%s1186_s1 + $0x68] sm:$0xff]   ;;  %v1003_v30 = vmov 0.0   ;;  %vm660_vm0 = vcmask 1040384  }
  0x12   : > { %v946_v1 = vld [vmem:[%s1186_s1 + $0xb8] sm:$0xff]   ;;  %862 = vmatprep.subr.bf16.mxu0 %v945_v0  ;;  %v949_v4 = vld [vmem:[%s1186_s1 + $0xb0] sm:$0xff]   ;;  %v952_v7 = vld [vmem:[%s1186_s1 + $0xa8] sm:$0xff]   ;;  %636 = vst [vmem:[#allocation3] sm:$0x3] %v1003_v30 }
  0x13   : > { %v947_v2 = vld [vmem:[%s1186_s1 + $0x38] sm:$0xff]   ;;  %900 = vmatprep.subr.bf16.mxu1 %v946_v1  ;;  %v950_v5 = vld [vmem:[%s1186_s1 + $0x30] sm:$0xff]   ;;  %v953_v8 = vld [vmem:[%s1186_s1 + $0x28] sm:$0xff]  }
  0x14   : > { %863 = vmatpush3.bf16.msra.mxu0 %v947_v2  ;;  %901 = vmatpush3.bf16.msra.mxu1 %v946_v1  ;;  %v954_v9 = vld [vmem:[%s1186_s1 + $0x60] sm:$0xff]   ;;  %v957_v12 = vld [vmem:[%s1186_s1 + $0x58] sm:$0xff]   ;;  %v960_v15 = vld [vmem:[%s1186_s1 + $0x50] sm:$0xff]  }
  0x15   : > { %864 = vmatprep.subr.bf16.mxu0 %v948_v3  ;;  %902 = vmatprep.subr.bf16.mxu1 %v949_v4  ;;  %v955_v10 = vld [vmem:[%s1186_s1 + $0xa0] sm:$0xff]   ;;  %v958_v13 = vld [vmem:[%s1186_s1 + $0x98] sm:$0xff]   ;;  %v961_v16 = vld [vmem:[%s1186_s1 + $0x90] sm:$0xff]  }
  0x16   : > { %v956_v11 = vld [vmem:[%s1186_s1 + $0x20] sm:$0xff]   ;;  %v959_v14 = vld [vmem:[%s1186_s1 + $0x18] sm:$0xff]   ;;  %v962_v17 = vld [vmem:[%s1186_s1 + $0x10] sm:$0xff]  }
  0x17   : > { %v963_v18 = vld [vmem:[%s1186_s1 + $0x48] sm:$0xff]   ;;  %v966_v21 = vld [vmem:[%s1186_s1 + $0x40] sm:$0xff]  }
  0x18   : > { %865 = vmatpush3.bf16.msra.mxu0 %v950_v5  ;;  %903 = vmatpush3.bf16.msra.mxu1 %v949_v4  ;;  %v964_v19 = vld [vmem:[%s1186_s1 + $0x88] sm:$0xff]   ;;  %v967_v22 = vld [vmem:[%s1186_s1 + $0x80] sm:$0xff]  }
  0x19   : > { %866 = vmatprep.subr.bf16.mxu0 %v951_v6  ;;  %904 = vmatprep.subr.bf16.mxu1 %v952_v7  ;;  %v965_v20 = vld [vmem:[%s1186_s1 + $0x8] sm:$0xff]   ;;  %v971_v23 = vld [vmem:[%s1185_s0 + $0x4] ss:$12 sps:$4 sm:$0xff]  }
  0x1a   : > { %v972_v24 = vld [vmem:[%s1185_s0 + $0x8] ss:$12 sps:$4 sm:$0xff]   ;;  %561 = vmatprep.mubr.bf16.mxu0 %v971_v23  ;;  %v968_v25 = vld [vmem:[%s1186_s1] sm:$0xff]  }
  0x1b   : > { %916 = vmatprep.mubr.bf16.mxu1 %v972_v24  ;;  %v969_v26 = vld [vmem:[%s1185_s0] ss:$12 sps:$4 sm:$0xff]   ;;  %v974_v28 = vld [vmem:[%s1185_s0 + $0x1c] ss:$12 sps:$4 sm:$0xff]   ;;  %v976_v29 = vld [vmem:[%s1185_s0 + $0x18] ss:$12 sps:$4 sm:$0xff]  }
  0x1c   : > { %867 = vmatpush3.bf16.msra.mxu0 %v953_v8  ;;  %905 = vmatpush3.bf16.msra.mxu1 %v952_v7  ;;  %v973_v27 = vld [vmem:[%s1185_s0 + $0x20] ss:$12 sps:$4 sm:$0xff]  }
  0x1d   : > { %868 = vmatprep.subr.bf16.mxu0 %v954_v9  ;;  %906 = vmatprep.subr.bf16.mxu1 %v955_v10  ;;  %v637_v7 = vld [vmem:[#allocation3] sm:$0x3] }
  0x20   : > { %869 = vmatpush3.bf16.msra.mxu0 %v956_v11  ;;  %907 = vmatpush3.bf16.msra.mxu1 %v955_v10 }
  0x21   : > { %870 = vmatprep.subr.bf16.mxu0 %v957_v12  ;;  %908 = vmatprep.subr.bf16.mxu1 %v958_v13 }
  0x24   : > { %871 = vmatpush3.bf16.msra.mxu0 %v959_v14  ;;  %909 = vmatpush3.bf16.msra.mxu1 %v958_v13 }
  0x25   : > { %872 = vmatprep.subr.bf16.mxu0 %v960_v15  ;;  %910 = vmatprep.subr.bf16.mxu1 %v961_v16 }
  0x28   : > { %873 = vmatpush3.bf16.msra.mxu0 %v962_v17  ;;  %911 = vmatpush3.bf16.msra.mxu1 %v961_v16 }
  0x29   : > { %874 = vmatprep.subr.bf16.mxu0 %v963_v18  ;;  %912 = vmatprep.subr.bf16.mxu1 %v964_v19 }
  0x2c   : > { %875 = vmatpush3.bf16.msra.mxu0 %v965_v20  ;;  %913 = vmatpush3.bf16.msra.mxu1 %v964_v19 }
  0x2d   : > { %876 = vmatprep.subr.bf16.mxu0 %v966_v21  ;;  %914 = vmatprep.subr.bf16.mxu1 %v967_v22 }
  0x30   : > { %877 = vmatpush3.bf16.msra.mxu0 %v968_v25  ;;  %915 = vmatpush3.bf16.msra.mxu1 %v967_v22 }
  0x33   : > { %562 = vmatmul.mubr.bf16.vlgmr.msra.gmra.mxu0 %v969_v26  ;;  %917 = vmatmul.mubr.bf16.vlgmr.msra.gmra.mxu1 %v973_v27 }
  0x34   : > { %569 = vmatprep.mubr.bf16.mxu0 %v974_v28 }
  0x3b   : > { %570 = vmatmul.mubr.bf16.gmra.mxu0 %v976_v29 }
  0xf3   : > { %v878_v31 = vpop.f32.mrf.mxu0  ;;  %v918_v32 = vpop.f32.mrf.mxu1 }
  0xf5   : > { %v879_v33 = vpop.f32.mrf.mxu0  ;;  %v612_v34 = vpop.f32.mrf.mxu1 }
  0xf6   : > { %v880_v35 = vadd.f32 %v879_v33, %v878_v31 }
  0xf7   : > { %v881_v36 = vpop.f32.mrf.mxu0  ;;  %v919_v37 = vpop.f32.mrf.mxu1 }
  0xf8   : > { %v613_v38 = vadd.f32 %v880_v35, %v612_v34 }
  0xf9   : > { %v882_v39 = vpop.f32.mrf.mxu0  ;;  %v615_v41 = vpop.f32.mrf.mxu1 }
  0xfa   : > { %628 = vst [vmem:[#allocation2 + $0x10] sm:$0xff] %v613_v38  ;;  %v883_v40 = vadd.f32 %v882_v39, %v881_v36  ;;  %v647_v50 = vmul.f32 %v613_v38, %v613_v38 }
  0xfb   : > { %v884_v42 = vpop.f32.mrf.mxu0 }
  0xfc   : > { %v616_v43 = vadd.f32 %v883_v40, %v615_v41 }
  0xfd   : > { %v885_v44 = vpop.f32.mrf.mxu0 }
  0xfe   : > { %629 = vst [vmem:[#allocation2] sm:$0xff] %v616_v43  ;;  %v886_v45 = vadd.f32 %v885_v44, %v884_v42  ;;  %v648_v47 = vmul.f32 %v616_v43, %v616_v43  ;;  %v638_v51 = vadd.f32 %v616_v43, %v613_v38 }
  0xff   : > { %v887_v46 = vpop.f32.mrf.mxu0 }
 0x100   : > { %v621_v48 = vadd.f32 %v918_v32, %v886_v45  ;;  %v651_v54 = vadd.f32 %v648_v47, %v647_v50 }
 0x101   : > { %v888_v49 = vpop.f32.mrf.mxu0 }
 0x102   : > { %630 = vst [vmem:[#allocation2 + $0x18] sm:$0xff] %v621_v48  ;;  %v649_v52 = vmul.f32 %v621_v48, %v621_v48  ;;  %v889_v53 = vadd.f32 %v888_v49, %v887_v46  ;;  %v639_v55 = vadd.f32 %v638_v51, %v621_v48 }
 0x104   : > { %v624_v56 = vadd.f32 %v919_v37, %v889_v53  ;;  %v652_v57 = vadd.f32 %v651_v54, %v649_v52 }
 0x106   : > { %631 = vst [vmem:[#allocation2 + $0x8] sm:$0xff] %v624_v56  ;;  %v640_v58 = vadd.f32 %v639_v55, %v624_v56  ;;  %v650_v59 = vmul.f32 %v624_v56, %v624_v56 }
 0x108   : > { %v641_v60 = vrot.slane %v640_v58, 4  ;;  %v653_v61 = vadd.f32 %v652_v57, %v650_v59 }
 0x10a   : > { %v642_v62 = vadd.f32 %v641_v60, %v640_v58  ;;  %v654_v63 = vrot.slane %v653_v61, 4 }
 0x10c   : > { %v643_v0 = vrot.slane %v642_v62, 2  ;;  %v655_v1 = vadd.f32 %v654_v63, %v653_v61 }
 0x10e   : > { %v644_v2 = vadd.f32 %v643_v0, %v642_v62  ;;  %v656_v3 = vrot.slane %v655_v1, 2 }
 0x110   : > { %v645_v4 = vrot.slane %v644_v2, 1  ;;  %v657_v5 = vadd.f32 %v656_v3, %v655_v1 }
 0x112   : > { %v658_v6 = vrot.slane %v657_v5, 1  ;;  %v646_v8 = vadd.f32 %v645_v4, %v644_v2 }
 0x114   : > { %v659_v9 = vadd.f32 %v658_v6, %v657_v5 }
 0x116   : > { %v661_v10 = vsel %vm660_vm0, %v646_v8, %v659_v9 }
 0x117   : > { %v662_v11 = vadd.f32 %v661_v10, %v637_v7 }
 0x119   : > { %663 = vst [vmem:[#allocation3] sm:$0x3] %v662_v11 }
 0x11a PF: > { %p855_p5 = scmp.ne.s32.totalorder %s993_s18, 1 }
 0x11c   : > { %667 = sbr.rel (%p855_p5) target bundleno = 339 (0x153), region = 52 }
 0x121   : > { %v672_v12 = vld [vmem:[#allocation3] sm:$0x1]  ;;  %v674_v13 = vld [vmem:[#allocation3 + $0x1] sm:$0x1]  ;;  %v686_v19 = vlaneseq  ;;  %vm691_vm1 = vcmask 1040384   ;;  %v695_v30 = vld [vmem:[#allocation2 + $0x10] sm:$0xff] }
 0x122   : > { %v673_v14 = vmul.f32 0.03125, %v672_v12  ;;  %v675_v15 = vmul.f32 0.03125, %v674_v13  ;;  %v678_v20 = vld [vmem:[%s1187_s2] sm:$0x1]  ;;  %v697_v32 = vld [vmem:[#allocation2 + $0x18] sm:$0xff]  ;;  %v698_v33 = vld [vmem:[#allocation2 + $0x8] sm:$0xff] }
 0x123   : > { %v687_v21 = vshrl.u32 %v686_v19, 7  ;;  %v682_v24 = vld [vmem:[%s1188_s3] sm:$0x1]  ;;  %v718_v38 = vld [vmem:[%s1189_s4 + $0x8] sm:$0xff]  ;;  %v719_v42 = vld [vmem:[%s1189_s4 + $0x10] sm:$0xff] }
 0x124   : > { %v676_v16 = vmul.f32 %v673_v14, %v673_v14  ;;  %v696_v31 = vld [vmem:[#allocation2] sm:$0xff]  ;;  %v720_v43 = vld [vmem:[%s1189_s4 + $0x18] sm:$0xff] }
 0x125   : > { %v688_v26 = vsub.s32 0, %v687_v21  ;;  %v717_v36 = vld [vmem:[%s1189_s4] sm:$0xff] }
 0x126   : > { %v677_v17 = vsub.f32 %v675_v15, %v676_v16 }
 0x128   : > { %v679_v18 = vadd.f32 1e-05, %v677_v17 }
 0x12a   : > { %977 = vrsqrt.f32 %v679_v18 }
 0x137   : > { %v978_v22 = vpop.eup %977 }
 0x138   : > { %v681_v23 = vmul.f32 %v978_v22, %v678_v20 }
 0x13a   : > { %v683_v25 = vmul.f32 %v681_v23, %v673_v14 }
 0x13c   : > { %v684_v27 = vsub.f32 %v682_v24, %v683_v25 }
 0x13e   : > { %v689_v28 = vrot.slane %v684_v27, %v688_v26 }
 0x140   : > { %v692_v29 = vsel %vm691_vm1, %v681_v23, %v689_v28 }
 0x141   : > { %693 = vst [vmem:[#allocation3] sm:$0x3] %v692_v29 }
 0x148   : > { %v856_v34 = vld [vmem:[#allocation3] ss:$0 sm:$0xff]  ;;  %v857_v41 = vld [vmem:[#allocation3 + $0x1] ss:$0 sm:$0xff] }
 0x149   : > { %v704_v35 = vmul.f32 %v856_v34, %v695_v30  ;;  %v705_v37 = vmul.f32 %v856_v34, %v696_v31  ;;  %v706_v39 = vmul.f32 %v856_v34, %v697_v32  ;;  %v707_v40 = vmul.f32 %v856_v34, %v698_v33 }
 0x14b   : > { %v713_v44 = vadd.f32 %v857_v41, %v704_v35  ;;  %v714_v45 = vadd.f32 %v857_v41, %v705_v37  ;;  %v715_v46 = vadd.f32 %v857_v41, %v706_v39  ;;  %v716_v47 = vadd.f32 %v857_v41, %v707_v40 }
 0x14d   : > { %v721_v48 = vadd.f32 %v717_v36, %v713_v44  ;;  %v722_v49 = vadd.f32 %v718_v38, %v714_v45  ;;  %v723_v50 = vadd.f32 %v719_v42, %v715_v46  ;;  %v724_v51 = vadd.f32 %v720_v43, %v716_v47 }
 0x14f   : > { %v725_v52 = vmax.f32 %v721_v48, 0.0  ;;  %v726_v53 = vmax.f32 %v722_v49, 0.0  ;;  %v727_v54 = vmax.f32 %v723_v50, 0.0  ;;  %v728_v55 = vmax.f32 %v724_v51, 0.0 }
 0x151   : > { %729 = vst [vmem:[%s1190_s5] sm:$0xff] %v725_v52  ;;  %730 = vst [vmem:[%s1190_s5 + $0x8] sm:$0xff] %v726_v53 }
 0x152   : > { %731 = vst [vmem:[%s1190_s5 + $0x10] sm:$0xff] %v727_v54  ;;  %732 = vst [vmem:[%s1190_s5 + $0x18] sm:$0xff] %v728_v55 }
 0x153 PF: > { %s15_s20 = sadd.s32 1, %s1001_s20   ;;  %s1191_s18 = smov %s997_s19 }
 0x154   : > { %p12_p6 = scmp.ge.s32.totalorder %s15_s20, 4   ;;  %s1192_s19 = smov %s1194_s21 }
 0x156   :  { %14 = sbr.rel (!%p12_p6) target bundleno = 2 (0x2), region = 91 }

// kernel: _lambda_.19
= control target key start
LH: loop header
LB: loop body
LE: loop exit
PB: predicated region body
PF: predicated region fallthrough
CT: control target
= control target key end

     0   :  { %s1537_s21 = smov 0   ;;  %s1539_s22 = smov 0   ;;  %s1808_s0 = inlined_call_operand.vmem [shape: bf16[16,384], index: 0, kind: input, shape index: {}]   ;;  %s1809_s1 = inlined_call_operand.vmem [shape: bf16[384,256], index: 1, kind: input, shape index: {}]   ;;  %s1810_s2 = inlined_call_operand.vmem [shape: bf16[128,256], index: 2, kind: input, shape index: {}]   ;;  %s1811_s3 = inlined_call_operand.vmem [shape: f32[1,512], index: 3, kind: input, shape index: {}]   ;;  %s1812_s4 = inlined_call_operand.vmem [shape: f32[1,512], index: 4, kind: input, shape index: {}]   ;;  %s1813_s5 = inlined_call_operand.vmem [shape: f32[16,256], index: 5, kind: output, shape index: {0}]   ;;  %s1814_s6 = inlined_call_operand.vmem [shape: f32[16,256], index: 6, kind: output, shape index: {1}]  }
   0x1   :  { %s1541_s23 = smov 0  }
   0x2 LB: > { %s29_s24 = sadd.s32 1, %s1493_s22  ;;  %p1267_p0 = scmp.ge.s32.totalorder %s1497_s23, 1  ;;  %s1497_s23 = sphi %s1541_s23, %s17_s23   ;;  %s1493_s22 = sphi %s1539_s22, %s1816_s22   ;;  %s1489_s21 = sphi %s1537_s21, %s1815_s21  }
   0x3   : > { %p31_p1 = scmp.ge.s32.totalorder %s29_s24, 2  ;;  %p241_p2 = scmp.lt.s32.totalorder %s1497_s23, 3 }
   0x5   : > { %s1818_s24 = smov (%p31_p1, %s29_s24), 0  ;;  %p242_p3 = pnand %p1267_p0, %p241_p2 }
   0x6   : > { %p1268_p4 = scmp.ne.s32.totalorder (!%p242_p3), %s1489_s21, 0 }
   0x7   : > { %245 = sbr.rel (%p242_p3) target bundleno = 371 (0x173), region = 40 }
   0xc   : > { %317 = sbr.rel (%p1268_p4) target bundleno = 307 (0x133), region = 44 }
  0x11   : > { %v1372_v0 = vld [vmem:[%s1809_s1 + $0x74] ss:$8 sps:$4 sm:$0xff]   ;;  %v1499_v2 = vmov 0   ;;  %v1376_v3 = vld [vmem:[%s1809_s1 + $0x70] ss:$8 sps:$4 sm:$0xff]   ;;  %vm942_vm0 = vcmask 1040384  }
  0x12   : > { %v1374_v1 = vld [vmem:[%s1809_s1 + $0x174] ss:$8 sps:$4 sm:$0xff]   ;;  %701 = vmatprep.mubr.bf16.mxu1 %v1499_v2  ;;  %626 = vmatprep.subr.bf16.mxu0 %v1372_v0  ;;  %v1377_v4 = vld [vmem:[%s1809_s1 + $0x170] ss:$8 sps:$4 sm:$0xff]   ;;  %v1378_v5 = vld [vmem:[%s1809_s1 + $0x64] ss:$8 sps:$4 sm:$0xff]  }
  0x13   : > { %669 = vmatprep.subr.bf16.mxu1 %v1374_v1  ;;  %627 = vmatpush1.bf16.msra.mxu0 %v1376_v3  ;;  %v1380_v6 = vld [vmem:[%s1809_s1 + $0x164] ss:$8 sps:$4 sm:$0xff]   ;;  %v1382_v7 = vld [vmem:[%s1809_s1 + $0x60] ss:$8 sps:$4 sm:$0xff]   ;;  %v1384_v9 = vld [vmem:[%s1809_s1 + $0x54] ss:$8 sps:$4 sm:$0xff]  }
  0x14   : > { %670 = vmatpush1.bf16.msra.mxu1 %v1377_v4  ;;  %628 = vmatprep.subr.bf16.mxu0 %v1378_v5  ;;  %v1383_v8 = vld [vmem:[%s1809_s1 + $0x160] ss:$8 sps:$4 sm:$0xff]   ;;  %v1386_v10 = vld [vmem:[%s1809_s1 + $0x154] ss:$8 sps:$4 sm:$0xff]   ;;  %v1388_v11 = vld [vmem:[%s1809_s1 + $0x50] ss:$8 sps:$4 sm:$0xff]  }
  0x15   : > { %671 = vmatprep.subr.bf16.mxu1 %v1380_v6  ;;  %v1389_v12 = vld [vmem:[%s1809_s1 + $0x150] ss:$8 sps:$4 sm:$0xff]   ;;  %v1390_v13 = vld [vmem:[%s1809_s1 + $0x44] ss:$8 sps:$4 sm:$0xff]   ;;  %v1394_v15 = vld [vmem:[%s1809_s1 + $0x40] ss:$8 sps:$4 sm:$0xff]  }
  0x16   : > { %v1392_v14 = vld [vmem:[%s1809_s1 + $0x144] ss:$8 sps:$4 sm:$0xff]   ;;  %v1395_v16 = vld [vmem:[%s1809_s1 + $0x140] ss:$8 sps:$4 sm:$0xff]   ;;  %v1396_v17 = vld [vmem:[%s1809_s1 + $0x34] ss:$8 sps:$4 sm:$0xff]  }
  0x17   : > { %629 = vmatpush1.bf16.msra.mxu0 %v1382_v7  ;;  %v1398_v18 = vld [vmem:[%s1809_s1 + $0x134] ss:$8 sps:$4 sm:$0xff]   ;;  %v1400_v19 = vld [vmem:[%s1809_s1 + $0x30] ss:$8 sps:$4 sm:$0xff]   ;;  %v1402_v21 = vld [vmem:[%s1809_s1 + $0x24] ss:$8 sps:$4 sm:$0xff]  }
  0x18   : > { %672 = vmatpush1.bf16.msra.mxu1 %v1383_v8  ;;  %630 = vmatprep.subr.bf16.mxu0 %v1384_v9  ;;  %v1401_v20 = vld [vmem:[%s1809_s1 + $0x130] ss:$8 sps:$4 sm:$0xff]   ;;  %v1404_v22 = vld [vmem:[%s1809_s1 + $0x124] ss:$8 sps:$4 sm:$0xff]   ;;  %v1406_v23 = vld [vmem:[%s1809_s1 + $0x20] ss:$8 sps:$4 sm:$0xff]  }
  0x19   : > { %673 = vmatprep.subr.bf16.mxu1 %v1386_v10  ;;  %v1407_v24 = vld [vmem:[%s1809_s1 + $0x120] ss:$8 sps:$4 sm:$0xff]   ;;  %v1408_v25 = vld [vmem:[%s1809_s1 + $0x14] ss:$8 sps:$4 sm:$0xff]   ;;  %v1412_v27 = vld [vmem:[%s1809_s1 + $0x10] ss:$8 sps:$4 sm:$0xff]  }
  0x1a   : > { %v1410_v26 = vld [vmem:[%s1809_s1 + $0x114] ss:$8 sps:$4 sm:$0xff]   ;;  %v1413_v28 = vld [vmem:[%s1809_s1 + $0x110] ss:$8 sps:$4 sm:$0xff]   ;;  %v1414_v29 = vld [vmem:[%s1809_s1 + $0x4] ss:$8 sps:$4 sm:$0xff]  }
  0x1b   : > { %631 = vmatpush1.bf16.msra.mxu0 %v1388_v11  ;;  %v1416_v30 = vld [vmem:[%s1809_s1 + $0x104] ss:$8 sps:$4 sm:$0xff]   ;;  %v1418_v31 = vld [vmem:[%s1809_s1] ss:$8 sps:$4 sm:$0xff]   ;;  %v1420_v33 = vld [vmem:[%s1809_s1 + $0xf4] ss:$8 sps:$4 sm:$0xff]  }
  0x1c   : > { %674 = vmatpush1.bf16.msra.mxu1 %v1389_v12  ;;  %632 = vmatprep.subr.bf16.mxu0 %v1390_v13  ;;  %v1419_v32 = vld [vmem:[%s1809_s1 + $0x100] ss:$8 sps:$4 sm:$0xff]   ;;  %v1425_v34 = vld [vmem:[%s1810_s2 + $0x74] ss:$8 sps:$4 sm:$0xff]   ;;  %v1423_v36 = vld [vmem:[%s1810_s2 + $0x70] ss:$8 sps:$4 sm:$0xff]  }
  0x1d   : > { %675 = vmatprep.subr.bf16.mxu1 %v1392_v14  ;;  %v1422_v35 = vld [vmem:[%s1808_s0 + $0x8] ss:$12 sps:$4 sm:$0xff]   ;;  %v1426_v37 = vld [vmem:[%s1809_s1 + $0xf0] ss:$8 sps:$4 sm:$0xff]   ;;  %v1427_v38 = vld [vmem:[%s1809_s1 + $0xe4] ss:$8 sps:$4 sm:$0xff]  }
  0x1e   : > { %v1431_v39 = vld [vmem:[%s1810_s2 + $0x64] ss:$8 sps:$4 sm:$0xff]   ;;  %v1429_v40 = vld [vmem:[%s1810_s2 + $0x60] ss:$8 sps:$4 sm:$0xff]   ;;  %v1433_v42 = vld [vmem:[%s1809_s1 + $0xd4] ss:$8 sps:$4 sm:$0xff]  }
  0x1f   : > { %633 = vmatpush1.bf16.msra.mxu0 %v1394_v15  ;;  %v1432_v41 = vld [vmem:[%s1809_s1 + $0xe0] ss:$8 sps:$4 sm:$0xff]   ;;  %v1437_v43 = vld [vmem:[%s1810_s2 + $0x54] ss:$8 sps:$4 sm:$0xff]   ;;  %v1435_v44 = vld [vmem:[%s1810_s2 + $0x50] ss:$8 sps:$4 sm:$0xff]  }
  0x20   : > { %676 = vmatpush1.bf16.msra.mxu1 %v1395_v16  ;;  %634 = vmatprep.subr.bf16.mxu0 %v1396_v17  ;;  %v1438_v45 = vld [vmem:[%s1809_s1 + $0xd0] ss:$8 sps:$4 sm:$0xff]   ;;  %v1439_v46 = vld [vmem:[%s1809_s1 + $0xc4] ss:$8 sps:$4 sm:$0xff]   ;;  %v1441_v48 = vld [vmem:[%s1810_s2 + $0x40] ss:$8 sps:$4 sm:$0xff]  }
  0x21   : > { %677 = vmatprep.subr.bf16.mxu1 %v1398_v18  ;;  %v1443_v47 = vld [vmem:[%s1810_s2 + $0x44] ss:$8 sps:$4 sm:$0xff]   ;;  %v1444_v49 = vld [vmem:[%s1809_s1 + $0xc0] ss:$8 sps:$4 sm:$0xff]   ;;  %v1445_v50 = vld [vmem:[%s1809_s1 + $0xb4] ss:$8 sps:$4 sm:$0xff]  }
  0x22   : > { %v1471_v51 = vld [vmem:[%s1808_s0 + $0x4] ss:$12 sps:$4 sm:$0xff]   ;;  %v1449_v52 = vld [vmem:[%s1810_s2 + $0x34] ss:$8 sps:$4 sm:$0xff]   ;;  %v1453_v57 = vld [vmem:[%s1810_s2 + $0x20] ss:$8 sps:$4 sm:$0xff]  }
  0x23   : > { %635 = vmatpush1.bf16.msra.mxu0 %v1400_v19  ;;  %658 = vmatprep.mubr.bf16.mxu0 %v1471_v51  ;;  %v1447_v53 = vld [vmem:[%s1810_s2 + $0x30] ss:$8 sps:$4 sm:$0xff]   ;;  %v1451_v55 = vld [vmem:[%s1809_s1 + $0xa4] ss:$8 sps:$4 sm:$0xff]   ;;  %v1456_v58 = vld [vmem:[%s1809_s1 + $0xa0] ss:$8 sps:$4 sm:$0xff]  }
  0x24   : > { %678 = vmatpush1.bf16.msra.mxu1 %v1401_v20  ;;  %636 = vmatprep.subr.bf16.mxu0 %v1402_v21  ;;  %v1450_v54 = vld [vmem:[%s1809_s1 + $0xb0] ss:$8 sps:$4 sm:$0xff]   ;;  %v1455_v56 = vld [vmem:[%s1810_s2 + $0x24] ss:$8 sps:$4 sm:$0xff]   ;;  %v1457_v59 = vld [vmem:[%s1809_s1 + $0x94] ss:$8 sps:$4 sm:$0xff]  }
  0x25   : > { %679 = vmatprep.subr.bf16.mxu1 %v1404_v22  ;;  %v1461_v60 = vld [vmem:[%s1810_s2 + $0x14] ss:$8 sps:$4 sm:$0xff]   ;;  %v1459_v61 = vld [vmem:[%s1810_s2 + $0x10] ss:$8 sps:$4 sm:$0xff]   ;;  %v1463_v63 = vld [vmem:[%s1809_s1 + $0x84] ss:$8 sps:$4 sm:$0xff]  }
  0x26   : > { %v1462_v62 = vld [vmem:[%s1809_s1 + $0x90] ss:$8 sps:$4 sm:$0xff]   ;;  %v1467_v0 = vld [vmem:[%s1810_s2 + $0x4] ss:$8 sps:$4 sm:$0xff]   ;;  %v1465_v1 = vld [vmem:[%s1810_s2] ss:$8 sps:$4 sm:$0xff]  }
  0x27   : > { %637 = vmatpush1.bf16.msra.mxu0 %v1406_v23  ;;  %v1469_v3 = vld [vmem:[%s1808_s0] ss:$12 sps:$4 sm:$0xff]  }
  0x28   : > { %680 = vmatpush1.bf16.msra.mxu1 %v1407_v24  ;;  %638 = vmatprep.subr.bf16.mxu0 %v1408_v25  ;;  %v1472_v4 = vld [vmem:[%s1808_s0] ss:$12 sps:$4 sm:$0xff]  }
  0x29   : > { %681 = vmatprep.subr.bf16.mxu1 %v1410_v26 }
  0x2b   : > { %639 = vmatpush1.bf16.msra.mxu0 %v1412_v27 }
  0x2c   : > { %682 = vmatpush1.bf16.msra.mxu1 %v1413_v28  ;;  %640 = vmatprep.subr.bf16.mxu0 %v1414_v29 }
  0x2d   : > { %683 = vmatprep.subr.bf16.mxu1 %v1416_v30 }
  0x2f   : > { %641 = vmatpush1.bf16.msra.mxu0 %v1418_v31 }
  0x30   : > { %684 = vmatpush1.bf16.msra.mxu1 %v1419_v32  ;;  %642 = vmatprep.subr.bf16.mxu0 %v1420_v33 }
  0x31   : > { %816 = vmatprep.subr.bf16.mxu1 %v1425_v34 }
  0x33   : > { %702 = vmatmul.mubr.bf16.vlgmr.msra.gmra.mxu1 %v1422_v35  ;;  %643 = vmatpush2.bf16.msra.mxu0 %v1426_v37 }
  0x34   : > { %817 = vmatpush1.bf16.msra.mxu1 %v1423_v36  ;;  %644 = vmatprep.subr.bf16.mxu0 %v1427_v38 }
  0x35   : > { %818 = vmatprep.subr.bf16.mxu1 %v1431_v39  ;;  %848 = vmatprep.mubr.bf16.mxu1 %v1499_v2  ;;  %v1468_v2 = vld [vmem:[%s1809_s1 + $0x80] ss:$8 sps:$4 sm:$0xff]  }
  0x37   : > { %645 = vmatpush2.bf16.msra.mxu0 %v1432_v41 }
  0x38   : > { %819 = vmatpush1.bf16.msra.mxu1 %v1429_v40  ;;  %646 = vmatprep.subr.bf16.mxu0 %v1433_v42 }
  0x39   : > { %820 = vmatprep.subr.bf16.mxu1 %v1437_v43 }
  0x3b   : > { %647 = vmatpush2.bf16.msra.mxu0 %v1438_v45 }
  0x3c   : > { %821 = vmatpush1.bf16.msra.mxu1 %v1435_v44  ;;  %648 = vmatprep.subr.bf16.mxu0 %v1439_v46 }
  0x3d   : > { %822 = vmatprep.subr.bf16.mxu1 %v1443_v47 }
  0x3f   : > { %649 = vmatpush2.bf16.msra.mxu0 %v1444_v49 }
  0x40   : > { %823 = vmatpush1.bf16.msra.mxu1 %v1441_v48  ;;  %650 = vmatprep.subr.bf16.mxu0 %v1445_v50 }
  0x41   : > { %824 = vmatprep.subr.bf16.mxu1 %v1449_v52 }
  0x43   : > { %651 = vmatpush2.bf16.msra.mxu0 %v1450_v54 }
  0x44   : > { %825 = vmatpush1.bf16.msra.mxu1 %v1447_v53  ;;  %652 = vmatprep.subr.bf16.mxu0 %v1451_v55 }
  0x45   : > { %826 = vmatprep.subr.bf16.mxu1 %v1455_v56 }
  0x47   : > { %653 = vmatpush2.bf16.msra.mxu0 %v1456_v58 }
  0x48   : > { %827 = vmatpush1.bf16.msra.mxu1 %v1453_v57  ;;  %654 = vmatprep.subr.bf16.mxu0 %v1457_v59 }
  0x49   : > { %828 = vmatprep.subr.bf16.mxu1 %v1461_v60  ;;  %v1500_v60 = vmov 1983009808  }
  0x4b   : > { %655 = vmatpush2.bf16.msra.mxu0 %v1462_v62 }
  0x4c   : > { %829 = vmatpush1.bf16.msra.mxu1 %v1459_v61  ;;  %656 = vmatprep.subr.bf16.mxu0 %v1463_v63  ;;  %v954_v61 = vunpack.c.l.s4 %v1500_v60 }
  0x4d   : > { %830 = vmatprep.subr.bf16.mxu1 %v1467_v0 }
  0x4f   : > { %657 = vmatpush2.bf16.msra.mxu0 %v1468_v2 }
  0x50   : > { %831 = vmatpush1.bf16.msra.mxu1 %v1465_v1 }
  0x52   : > { %659 = vmatmul.mubr.bf16.vlgmr.msra.gmra.mxu0 %v1469_v3 }
  0x53   : > { %849 = vmatmul.mubr.bf16.vlgmr.msra.gmra.mxu1 %v1472_v4 }
  0xf3   : > { %v703_v5 = vpop.f32.mrf.mxu1 }
  0xf5   : > { %v705_v6 = vpop.f32.mrf.mxu1 }
  0xf7   : > { %v707_v7 = vpop.f32.mrf.mxu1 }
  0xf9   : > { %v709_v8 = vpop.f32.mrf.mxu1 }
 0x112   : > { %v660_v9 = vpop.f32.mrf.mxu0 }
 0x113   : > { %v850_v10 = vpop.f32.mrf.mxu1  ;;  %v704_v11 = vadd.f32 %v703_v5, %v660_v9  ;;  %v956_v5 = vlaneseq }
 0x114   : > { %866 = vst [vmem:[#allocation2 + $0x18] sm:$0xff] %v850_v10  ;;  %v662_v12 = vpop.f32.mrf.mxu0  ;;  %v908_v17 = vmul.f32 %v850_v10, %v850_v10 }
 0x115   : > { %v852_v13 = vpop.f32.mrf.mxu1  ;;  %864 = vst [vmem:[#allocation2 + $0x30] sm:$0xff] %v704_v11  ;;  %v706_v14 = vadd.f32 %v705_v6, %v662_v12  ;;  %v906_v21 = vmul.f32 %v704_v11, %v704_v11 }
 0x116   : > { %867 = vst [vmem:[#allocation2 + $0x10] sm:$0xff] %v852_v13  ;;  %v664_v15 = vpop.f32.mrf.mxu0  ;;  %v909_v22 = vmul.f32 %v852_v13, %v852_v13 }
 0x117   : > { %v854_v16 = vpop.f32.mrf.mxu1  ;;  %865 = vst [vmem:[#allocation2] sm:$0xff] %v706_v14  ;;  %v708_v18 = vadd.f32 %v707_v7, %v664_v15  ;;  %v907_v29 = vmul.f32 %v706_v14, %v706_v14 }
 0x118   : > { %870 = vst [vmem:[#allocation2 + $0x28] sm:$0xff] %v854_v16  ;;  %v892_v19 = vadd.f32 %v854_v16, %v850_v10  ;;  %v912_v20 = vmul.f32 %v854_v16, %v854_v16  ;;  %v666_v23 = vpop.f32.mrf.mxu0 }
 0x119   : > { %v856_v24 = vpop.f32.mrf.mxu1  ;;  %868 = vst [vmem:[#allocation2 + $0x8] sm:$0xff] %v708_v18  ;;  %v878_v25 = vadd.f32 %v708_v18, %v704_v11  ;;  %v910_v26 = vmul.f32 %v708_v18, %v708_v18  ;;  %v710_v30 = vadd.f32 %v709_v8, %v666_v23  ;;  %v957_v18 = vshrl.u32 %v956_v5, 7 }
 0x11a   : > { %v893_v27 = vrot.slane %v892_v19, 4  ;;  %v928_v28 = vadd.f32 %v912_v20, %v908_v17  ;;  %871 = vst [vmem:[#allocation2 + $0x38] sm:$0xff] %v856_v24  ;;  %v899_v31 = vadd.f32 %v856_v24, %v852_v13  ;;  %v913_v32 = vmul.f32 %v856_v24, %v856_v24 }
 0x11b   : > { %v879_v33 = vrot.slane %v878_v25, 4  ;;  %v914_v34 = vadd.f32 %v910_v26, %v906_v21  ;;  %869 = vst [vmem:[#allocation2 + $0x20] sm:$0xff] %v710_v30  ;;  %v885_v37 = vadd.f32 %v710_v30, %v706_v14  ;;  %v911_v38 = vmul.f32 %v710_v30, %v710_v30 }
 0x11c   : > { %v894_v35 = vadd.f32 %v893_v27, %v892_v19  ;;  %v929_v36 = vrot.slane %v928_v28, 4  ;;  %v900_v39 = vrot.slane %v899_v31, 4  ;;  %v935_v40 = vadd.f32 %v913_v32, %v909_v22 }
 0x11d   : > { %v880_v41 = vadd.f32 %v879_v33, %v878_v25  ;;  %v915_v42 = vrot.slane %v914_v34, 4  ;;  %v886_v45 = vrot.slane %v885_v37, 4  ;;  %v921_v46 = vadd.f32 %v911_v38, %v907_v29 }
 0x11e   : > { %v895_v43 = vrot.slane %v894_v35, 2  ;;  %v930_v44 = vadd.f32 %v929_v36, %v928_v28  ;;  %v901_v47 = vadd.f32 %v900_v39, %v899_v31  ;;  %v936_v48 = vrot.slane %v935_v40, 4 }
 0x11f   : > { %v881_v49 = vrot.slane %v880_v41, 2  ;;  %v916_v50 = vadd.f32 %v915_v42, %v914_v34  ;;  %v887_v53 = vadd.f32 %v886_v45, %v885_v37  ;;  %v922_v54 = vrot.slane %v921_v46, 4 }
 0x120   : > { %v896_v51 = vadd.f32 %v895_v43, %v894_v35  ;;  %v931_v52 = vrot.slane %v930_v44, 2  ;;  %v902_v55 = vrot.slane %v901_v47, 2  ;;  %v937_v56 = vadd.f32 %v936_v48, %v935_v40 }
 0x121   : > { %v882_v57 = vadd.f32 %v881_v49, %v880_v41  ;;  %v917_v58 = vrot.slane %v916_v50, 2  ;;  %v888_v62 = vrot.slane %v887_v53, 2  ;;  %v923_v63 = vadd.f32 %v922_v54, %v921_v46 }
 0x122   : > { %v932_v59 = vadd.f32 %v931_v52, %v930_v44  ;;  %v903_v0 = vadd.f32 %v902_v55, %v901_v47  ;;  %v938_v1 = vrot.slane %v937_v56, 2  ;;  %v897_v3 = vrot.slane %v896_v51, 1 }
 0x123   : > { %v918_v2 = vadd.f32 %v917_v58, %v916_v50  ;;  %v889_v6 = vadd.f32 %v888_v62, %v887_v53  ;;  %v924_v7 = vrot.slane %v923_v63, 2  ;;  %v883_v10 = vrot.slane %v882_v57, 1 }
 0x124   : > { %v933_v4 = vrot.slane %v932_v59, 1  ;;  %v904_v8 = vrot.slane %v903_v0, 1  ;;  %v939_v9 = vadd.f32 %v938_v1, %v937_v56  ;;  %v898_v16 = vadd.f32 %v897_v3, %v896_v51 }
 0x125   : > { %v919_v11 = vrot.slane %v918_v2, 1  ;;  %v890_v13 = vrot.slane %v889_v6, 1  ;;  %v925_v14 = vadd.f32 %v924_v7, %v923_v63  ;;  %v955_v17 = vunpack.c.0.s8 %v954_v61 }
 0x126   : > { %v934_v12 = vadd.f32 %v933_v4, %v932_v59  ;;  %v940_v15 = vrot.slane %v939_v9, 1  ;;  %v905_v21 = vadd.f32 %v904_v8, %v903_v0  ;;  %v884_v23 = vadd.f32 %v883_v10, %v882_v57 }
 0x127   : > { %v920_v19 = vadd.f32 %v919_v11, %v918_v2  ;;  %v926_v20 = vrot.slane %v925_v14, 1  ;;  %v891_v25 = vadd.f32 %v890_v13, %v889_v6  ;;  %v958_v29 = vsub.s32 %v955_v17, %v957_v18 }
 0x128   : > { %v941_v22 = vadd.f32 %v940_v15, %v939_v9  ;;  %v945_v24 = vsel %vm942_vm0, %v898_v16, %v934_v12 }
 0x129   : > { %v927_v26 = vadd.f32 %v926_v20, %v925_v14  ;;  %v943_v30 = vsel %vm942_vm0, %v884_v23, %v920_v19 }
 0x12a   : > { %v946_v27 = vsel %vm942_vm0, %v905_v21, %v941_v22 }
 0x12b   : > { %v952_v28 = vcombine.low %v945_v24, %v946_v27  ;;  %v944_v31 = vsel %vm942_vm0, %v891_v25, %v927_v26 }
 0x12c   : > { %v951_v32 = vcombine.low %v943_v30, %v944_v31 }
 0x12d   : > { %v966_v34 = vrot.slane %v952_v28, %v958_v29 }
 0x12e   : > { %v959_v33 = vrot.slane %v951_v32, %v958_v29 }
 0x130   : > { %v967_v35 = vcombine.low %v959_v33, %v966_v34 }
 0x132   : > { %970 = vst [vmem:[#allocation3] sm:$0xff] %v967_v35 }
 0x133 PF: > { %p1337_p5 = scmp.ne.s32.totalorder %s1489_s21, 1 }
 0x135   : > { %974 = sbr.rel (%p1337_p5) target bundleno = 371 (0x173), region = 52 }
 0x13a   : > { %v979_v36 = vld [vmem:[#allocation3] ss:$2 sm:$0xf]  ;;  %v982_v37 = vld [vmem:[#allocation3 + $0x1] ss:$2 sm:$0xf]  ;;  %v994_v43 = vlaneseq }
 0x13b   : > { %v980_v38 = vmul.f32 0.0625, %v979_v36  ;;  %v983_v39 = vmul.f32 0.0625, %v982_v37  ;;  %v986_v45 = vld [vmem:[%s1811_s3] sm:$0xf]  ;;  %v1501_v48 = vmov 1983009808  }
 0x13c   : > { %v995_v44 = vshrl.u32 %v994_v43, 7  ;;  %v1047_v49 = vunpack.c.l.s4 %v1501_v48  ;;  %v990_v54 = vld [vmem:[%s1812_s4] sm:$0xf]  ;;  %vm1035_vm1 = vcmask 1040384   ;;  %v1070_v12 = vld [vmem:[#allocation2 + $0x18] sm:$0xff]  ;;  %v1071_v13 = vld [vmem:[#allocation2 + $0x10] sm:$0xff] }
 0x13d   : > { %v984_v40 = vmul.f32 %v980_v38, %v980_v38  ;;  %v1074_v14 = vld [vmem:[#allocation2 + $0x28] sm:$0xff]  ;;  %v1075_v15 = vld [vmem:[#allocation2 + $0x38] sm:$0xff]  ;;  %v1068_v16 = vld [vmem:[#allocation2 + $0x30] sm:$0xff] }
 0x13e   : > { %v996_v47 = vsub.s32 0, %v995_v44  ;;  %v1000_v51 = vsub.s32 1, %v995_v44  ;;  %v1004_v52 = vsub.s32 2, %v995_v44  ;;  %v1008_v53 = vsub.s32 3, %v995_v44  ;;  %v1069_v23 = vld [vmem:[#allocation2] sm:$0xff]  ;;  %v1072_v24 = vld [vmem:[#allocation2 + $0x8] sm:$0xff] }
 0x13f   : > { %v985_v41 = vsub.f32 %v983_v39, %v984_v40  ;;  %v1048_v57 = vunpack.c.0.s8 %v1047_v49  ;;  %v1073_v25 = vld [vmem:[#allocation2 + $0x20] sm:$0xff] }
 0x141   : > { %v987_v42 = vadd.f32 1e-05, %v985_v41  ;;  %v1051_v2 = vsub.s32 %v1048_v57, %v995_v44 }
 0x143   : > { %1473 = vrsqrt.f32 %v987_v42 }
 0x150   : > { %v1474_v46 = vpop.eup %1473 }
 0x151   : > { %v989_v50 = vmul.f32 %v1474_v46, %v986_v45 }
 0x153   : > { %v991_v55 = vmul.f32 %v989_v50, %v980_v38  ;;  %v997_v56 = vrot.slane %v989_v50, %v996_v47  ;;  %v1001_v59 = vrot.slane %v989_v50, %v1000_v51  ;;  %v1005_v60 = vrot.slane %v989_v50, %v1004_v52 }
 0x154   : > { %v1009_v61 = vrot.slane %v989_v50, %v1008_v53 }
 0x155   : > { %v992_v58 = vsub.f32 %v990_v54, %v991_v55 }
 0x157   : > { %v1018_v62 = vrot.slane %v992_v58, %v996_v47  ;;  %v1022_v63 = vrot.slane %v992_v58, %v1000_v51  ;;  %v1026_v0 = vrot.slane %v992_v58, %v1004_v52  ;;  %v1030_v1 = vrot.slane %v992_v58, %v1008_v53 }
 0x159   : > { %v1036_v3 = vsel %vm1035_vm1, %v997_v56, %v1018_v62  ;;  %v1037_v4 = vsel %vm1035_vm1, %v1001_v59, %v1022_v63  ;;  %v1038_v5 = vsel %vm1035_vm1, %v1005_v60, %v1026_v0  ;;  %v1039_v6 = vsel %vm1035_vm1, %v1009_v61, %v1030_v1 }
 0x15a   : > { %v1044_v7 = vcombine.low %v1036_v3, %v1037_v4  ;;  %v1045_v8 = vcombine.low %v1038_v5, %v1039_v6 }
 0x15c   : > { %v1052_v9 = vrot.slane %v1044_v7, %v1051_v2  ;;  %v1059_v10 = vrot.slane %v1045_v8, %v1051_v2 }
 0x15e   : > { %v1060_v11 = vcombine.low %v1052_v9, %v1059_v10 }
 0x160   : > { %1062 = vst [vmem:[#allocation3] sm:$0xff] %v1060_v11 }
 0x167   : > { %v1076_v17 = vld [vmem:[#allocation3] ss:$2 sm:$0xf]  ;;  %v1107_v18 = vld [vmem:[#allocation3 + $0x1] ss:$2 sm:$0xf] }
 0x168   : > { %v1089_v19 = vrot.slane %v1076_v17, %v1004_v52  ;;  %v1120_v20 = vrot.slane %v1107_v18, %v1004_v52  ;;  %v1093_v21 = vrot.slane %v1076_v17, %v1008_v53  ;;  %v1124_v22 = vrot.slane %v1107_v18, %v1008_v53 }
 0x169   : > { %v1081_v26 = vrot.slane %v1076_v17, %v996_v47  ;;  %v1112_v27 = vrot.slane %v1107_v18, %v996_v47  ;;  %v1085_v28 = vrot.slane %v1076_v17, %v1000_v51  ;;  %v1116_v29 = vrot.slane %v1107_v18, %v1000_v51 }
 0x16a   : > { %v1100_v30 = vmul.f32 %v1089_v19, %v1070_v12  ;;  %v1101_v31 = vmul.f32 %v1093_v21, %v1071_v13  ;;  %v1104_v32 = vmul.f32 %v1089_v19, %v1074_v14  ;;  %v1105_v33 = vmul.f32 %v1093_v21, %v1075_v15 }
 0x16b   : > { %v1098_v34 = vmul.f32 %v1081_v26, %v1068_v16  ;;  %v1099_v35 = vmul.f32 %v1085_v28, %v1069_v23  ;;  %v1102_v36 = vmul.f32 %v1081_v26, %v1072_v24  ;;  %v1103_v37 = vmul.f32 %v1085_v28, %v1073_v25 }
 0x16c   : > { %v1131_v38 = vadd.f32 %v1120_v20, %v1100_v30  ;;  %v1132_v39 = vadd.f32 %v1124_v22, %v1101_v31  ;;  %v1135_v40 = vadd.f32 %v1120_v20, %v1104_v32  ;;  %v1136_v41 = vadd.f32 %v1124_v22, %v1105_v33 }
 0x16d   : > { %v1129_v42 = vadd.f32 %v1112_v27, %v1098_v34  ;;  %v1130_v43 = vadd.f32 %v1116_v29, %v1099_v35  ;;  %v1133_v44 = vadd.f32 %v1112_v27, %v1102_v36  ;;  %v1134_v45 = vadd.f32 %v1116_v29, %v1103_v37 }
 0x16e   : > { %1145 = vst [vmem:[%s1814_s6] sm:$0xff] %v1131_v38  ;;  %1146 = vst [vmem:[%s1814_s6 + $0x8] sm:$0xff] %v1132_v39 }
 0x16f   : > { %1147 = vst [vmem:[%s1814_s6 + $0x10] sm:$0xff] %v1135_v40  ;;  %1148 = vst [vmem:[%s1814_s6 + $0x18] sm:$0xff] %v1136_v41  ;;  %v1137_v46 = vmax.f32 %v1129_v42, 0.0  ;;  %v1138_v47 = vmax.f32 %v1130_v43, 0.0  ;;  %v1139_v48 = vmax.f32 %v1133_v44, 0.0  ;;  %v1140_v49 = vmax.f32 %v1134_v45, 0.0 }
 0x171   : > { %1141 = vst [vmem:[%s1813_s5] sm:$0xff] %v1137_v46  ;;  %1142 = vst [vmem:[%s1813_s5 + $0x8] sm:$0xff] %v1138_v47 }
 0x172   : > { %1143 = vst [vmem:[%s1813_s5 + $0x10] sm:$0xff] %v1139_v48  ;;  %1144 = vst [vmem:[%s1813_s5 + $0x18] sm:$0xff] %v1140_v49 }
 0x173 PF: > { %s17_s23 = sadd.s32 1, %s1497_s23   ;;  %s1815_s21 = smov %s1493_s22 }
 0x174   : > { %p14_p6 = scmp.ge.s32.totalorder %s17_s23, 4   ;;  %s1816_s22 = smov %s1818_s24 }
 0x176   :  { %16 = sbr.rel (!%p14_p6) target bundleno = 2 (0x2), region = 102 }

// kernel: _lambda_.17
= control target key start
LH: loop header
LB: loop body
LE: loop exit
PB: predicated region body
PF: predicated region fallthrough
CT: control target
= control target key end

     0   :  { %s1076_s21 = smov 0   ;;  %s1078_s22 = smov 0   ;;  %s1207_s0 = inlined_call_operand.vmem [shape: bf16[32,192], index: 0, kind: input, shape index: {}]   ;;  %s1208_s1 = inlined_call_operand.vmem [shape: bf16[192,128], index: 1, kind: input, shape index: {}]   ;;  %s1209_s2 = inlined_call_operand.vmem [shape: bf16[64,128], index: 2, kind: input, shape index: {}]   ;;  %s1210_s3 = inlined_call_operand.vmem [shape: f32[1,256], index: 3, kind: input, shape index: {}]   ;;  %s1211_s4 = inlined_call_operand.vmem [shape: f32[1,256], index: 4, kind: input, shape index: {}]   ;;  %s1212_s5 = inlined_call_operand.vmem [shape: f32[32,128], index: 5, kind: output, shape index: {0}]   ;;  %s1213_s6 = inlined_call_operand.vmem [shape: f32[32,128], index: 6, kind: output, shape index: {1}]  }
   0x1   :  { %s1080_s23 = smov 0  }
   0x2 LB: > { %s29_s24 = sadd.s32 1, %s1032_s22  ;;  %p907_p0 = scmp.ge.s32.totalorder %s1036_s23, 1  ;;  %s1036_s23 = sphi %s1080_s23, %s17_s23   ;;  %s1032_s22 = sphi %s1078_s22, %s1215_s22   ;;  %s1028_s21 = sphi %s1076_s21, %s1214_s21  }
   0x3   : > { %p31_p1 = scmp.ge.s32.totalorder %s29_s24, 2  ;;  %p241_p2 = scmp.lt.s32.totalorder %s1036_s23, 3 }
   0x5   : > { %s1217_s24 = smov (%p31_p1, %s29_s24), 0  ;;  %p242_p3 = pnand %p907_p0, %p241_p2 }
   0x6   : > { %p908_p4 = scmp.ne.s32.totalorder (!%p242_p3), %s1028_s21, 0 }
   0x7   : > { %245 = sbr.rel (%p242_p3) target bundleno = 355 (0x163), region = 40 }
   0xc   : > { %313 = sbr.rel (%p908_p4) target bundleno = 295 (0x127), region = 44 }
  0x11   : > { %v988_v0 = vld [vmem:[%s1208_s1 + $0x38] sm:$0xff]   ;;  %v1038_v1 = vmov 0   ;;  %v989_v2 = vld [vmem:[%s1208_s1 + $0x30] sm:$0xff]   ;;  %v990_v4 = vld [vmem:[%s1208_s1 + $0x28] sm:$0xff]   ;;  %vm432_vm0 = vcmask 523264   ;;  %v1039_v23 = vmov 0.0  }
  0x12   : > { %439 = vmatprep.subr.bf16.mxu0 %v1038_v1  ;;  %v992_v3 = vld [vmem:[%s1209_s2 + $0x18] sm:$0xff]   ;;  %v994_v5 = vld [vmem:[%s1209_s2 + $0x10] sm:$0xff]   ;;  %v996_v6 = vld [vmem:[%s1209_s2 + $0x8] sm:$0xff]   ;;  %606 = vst [vmem:[#allocation3] sm:$0xf] %v1039_v23  ;;  %vm652_vm1 = vcmask 1040384  }
  0x13   : > { %440 = vmatpush1.bf16.msra.mxu0 %v988_v0  ;;  %949 = vmatprep.subr.bf16.mxu1 %v992_v3  ;;  %v991_v7 = vld [vmem:[%s1208_s1 + $0x20] sm:$0xff]   ;;  %v993_v10 = vld [vmem:[%s1208_s1 + $0x18] sm:$0xff]   ;;  %v995_v11 = vld [vmem:[%s1208_s1 + $0x10] sm:$0xff]  }
  0x14   : > { %441 = vmatprep.subr.bf16.mxu0 %v1038_v1  ;;  %950 = vmatpush3.bf16.msra.mxu1 %v992_v3  ;;  %v998_v8 = vld [vmem:[%s1209_s2] sm:$0xff]   ;;  %v1001_v12 = vld [vmem:[%s1207_s0 + $0x10] ss:$8 sps:$4 sm:$0xff]   ;;  %v997_v14 = vld [vmem:[%s1208_s1 + $0x8] sm:$0xff]  }
  0x15   : > { %951 = vmatprep.subr.bf16.mxu1 %v994_v5  ;;  %v1000_v9 = vld [vmem:[%s1207_s0] ss:$8 sps:$4 sm:$0xff]   ;;  %v1008_v13 = vld [vmem:[%s1207_s0 + $0x4] ss:$8 sps:$4 sm:$0xff]   ;;  %v1002_v16 = vld [vmem:[%s1208_s1 + $0x58] sm:$0xff]  }
  0x16   : > { %957 = vmatprep.mubr.msk.bf16.mxu1 %vm432_vm0, %v1000_v9  ;;  %925 = vmatprep.mubr.msk.bf16.mxu0 %vm432_vm0, %v1008_v13  ;;  %v999_v15 = vld [vmem:[%s1208_s1] sm:$0xff]   ;;  %v1003_v17 = vld [vmem:[%s1208_s1 + $0x50] sm:$0xff]   ;;  %v1004_v18 = vld [vmem:[%s1208_s1 + $0x48] sm:$0xff]  }
  0x17   : > { %442 = vmatpush1.bf16.msra.mxu0 %v989_v2  ;;  %v1005_v19 = vld [vmem:[%s1208_s1 + $0x40] sm:$0xff]   ;;  %v1009_v21 = vld [vmem:[%s1207_s0 + $0x14] ss:$8 sps:$4 sm:$0xff]   ;;  %v1011_v22 = vld [vmem:[%s1207_s0 + $0x10] ss:$8 sps:$4 sm:$0xff]  }
  0x18   : > { %443 = vmatprep.subr.bf16.mxu0 %v1038_v1  ;;  %952 = vmatpush3.bf16.msra.mxu1 %v994_v5  ;;  %v1006_v20 = vld [vmem:[%s1207_s0] ss:$8 sps:$4 sm:$0xff]   ;;  %v1040_v5 = vmov 1983009808  }
  0x19   : > { %953 = vmatprep.subr.bf16.mxu1 %v996_v6 }
  0x1b   : > { %444 = vmatpush1.bf16.msra.mxu0 %v990_v4 }
  0x1c   : > { %445 = vmatprep.subr.bf16.mxu0 %v1038_v1  ;;  %954 = vmatpush3.bf16.msra.mxu1 %v996_v6  ;;  %v659_v6 = vunpack.c.l.s4 %v1040_v5 }
  0x1d   : > { %955 = vmatprep.subr.bf16.mxu1 %v998_v8 }
  0x1f   : > { %446 = vmatpush1.bf16.msra.mxu0 %v991_v7  ;;  %v661_v7 = vlaneseq }
  0x20   : > { %447 = vmatprep.subr.bf16.mxu0 %v1038_v1  ;;  %956 = vmatpush3.bf16.msra.mxu1 %v998_v8 }
  0x23   : > { %448 = vmatpush1.bf16.msra.mxu0 %v993_v10  ;;  %958 = vmatmul.mubr.msk.bf16.vlgmr.msra.gmra.mxu1 %vm432_vm0, %v1001_v12 }
  0x24   : > { %449 = vmatprep.subr.bf16.mxu0 %v1038_v1 }
  0x27   : > { %450 = vmatpush1.bf16.msra.mxu0 %v995_v11 }
  0x28   : > { %451 = vmatprep.subr.bf16.mxu0 %v1038_v1 }
  0x2b   : > { %452 = vmatpush1.bf16.msra.mxu0 %v997_v14  ;;  %v660_v14 = vunpack.c.0.s8 %v659_v6 }
  0x2c   : > { %453 = vmatprep.subr.bf16.mxu0 %v1038_v1 }
  0x2f   : > { %454 = vmatpush1.bf16.msra.mxu0 %v999_v15  ;;  %v662_v15 = vshrl.u32 %v661_v7, 7 }
  0x30   : > { %463 = vmatprep.subr.bf16.mxu0 %v1038_v1 }
  0x33   : > { %464 = vmatpush2.bf16.msra.mxu0 %v1002_v16 }
  0x34   : > { %465 = vmatprep.subr.bf16.mxu0 %v1038_v1 }
  0x37   : > { %466 = vmatpush2.bf16.msra.mxu0 %v1003_v17 }
  0x38   : > { %467 = vmatprep.subr.bf16.mxu0 %v1038_v1 }
  0x3b   : > { %468 = vmatpush2.bf16.msra.mxu0 %v1004_v18 }
  0x3c   : > { %469 = vmatprep.subr.bf16.mxu0 %v1038_v1 }
  0x3f   : > { %470 = vmatpush2.bf16.msra.mxu0 %v1005_v19 }
  0x42   : > { %472 = vmatmul.mubr.bf16.vlgmr.msra.gmra.mxu0 %v1006_v20 }
  0x43   : > { %926 = vmatprep.mubr.msk.bf16.mxu0 %vm432_vm0, %v1009_v21  ;;  %v663_v21 = vsub.s32 %v660_v14, %v662_v15 }
  0x4a   : > { %480 = vmatmul.mubr.bf16.gmra.mxu0 %v1011_v22 }
  0xe3   : > { %v959_v24 = vpop.f32.mrf.mxu1 }
  0xe4   : > { %599 = vst [vmem:[#allocation2 + $0x20] sm:$0xff] %v959_v24  ;;  %v631_v31 = vmul.f32 %v959_v24, %v959_v24 }
  0xe5   : > { %v574_v25 = vpop.f32.mrf.mxu1 }
  0xe6   : > { %595 = vst [vmem:[#allocation2] sm:$0xff] %v574_v25  ;;  %v627_v28 = vmul.f32 %v574_v25, %v574_v25 }
  0xe7   : > { %v960_v26 = vpop.f32.mrf.mxu1 }
  0xe8   : > { %601 = vst [vmem:[#allocation2 + $0x38] sm:$0xff] %v960_v26  ;;  %v633_v34 = vmul.f32 %v960_v26, %v960_v26 }
  0xe9   : > { %v577_v27 = vpop.f32.mrf.mxu1 }
  0xea   : > { %597 = vst [vmem:[#allocation2 + $0x10] sm:$0xff] %v577_v27  ;;  %v629_v29 = vmul.f32 %v577_v27, %v577_v27  ;;  %v617_v30 = vadd.f32 %v577_v27, %v574_v25  ;;  %v607_v25 = vld [vmem:[#allocation3] sm:$0xf] }
  0xec   : > { %v643_v32 = vadd.f32 %v629_v29, %v627_v28  ;;  %v618_v33 = vadd.f32 %v959_v24, %v617_v30 }
  0xee   : > { %v644_v35 = vadd.f32 %v643_v32, %v631_v31  ;;  %v619_v36 = vadd.f32 %v960_v26, %v618_v33 }
  0xf0   : > { %v645_v38 = vadd.f32 %v644_v35, %v633_v34  ;;  %v620_v40 = vrot.slane %v619_v36, 4 }
  0xf2   : > { %v646_v42 = vrot.slane %v645_v38, 4  ;;  %v621_v45 = vadd.f32 %v620_v40, %v619_v36 }
  0xf4   : > { %v647_v47 = vadd.f32 %v646_v42, %v645_v38  ;;  %v622_v54 = vrot.slane %v621_v45, 2 }
  0xf6   : > { %v648_v56 = vrot.slane %v647_v47, 2  ;;  %v623_v63 = vadd.f32 %v622_v54, %v621_v45 }
  0xf8   : > { %v649_v0 = vadd.f32 %v648_v56, %v647_v47  ;;  %v624_v8 = vrot.slane %v623_v63, 1 }
  0xfa   : > { %v650_v9 = vrot.slane %v649_v0, 1  ;;  %v625_v16 = vadd.f32 %v624_v8, %v623_v63 }
  0xfc   : > { %v651_v17 = vadd.f32 %v650_v9, %v649_v0 }
  0xfe   : > { %v654_v23 = vsel %vm652_vm1, %v625_v16, %v651_v17 }
 0x102   : > { %v473_v37 = vpop.f32.mrf.mxu0 }
 0x103   : > { %594 = vst [vmem:[#allocation2 + $0x30] sm:$0xff] %v473_v37  ;;  %v626_v48 = vmul.f32 %v473_v37, %v473_v37 }
 0x104   : > { %v475_v39 = vpop.f32.mrf.mxu0 }
 0x106   : > { %v476_v41 = vpop.f32.mrf.mxu0 }
 0x107   : > { %596 = vst [vmem:[#allocation2 + $0x18] sm:$0xff] %v476_v41  ;;  %v628_v44 = vmul.f32 %v476_v41, %v476_v41  ;;  %v608_v49 = vadd.f32 %v476_v41, %v473_v37 }
 0x108   : > { %v478_v43 = vpop.f32.mrf.mxu0 }
 0x109   : > { %v634_v52 = vadd.f32 %v628_v44, %v626_v48 }
 0x10a   : > { %v481_v46 = vpop.f32.mrf.mxu0 }
 0x10b   : > { %598 = vst [vmem:[#allocation2 + $0x8] sm:$0xff] %v481_v46  ;;  %v630_v50 = vmul.f32 %v481_v46, %v481_v46  ;;  %v609_v53 = vadd.f32 %v608_v49, %v481_v46 }
 0x10c   : > { %v483_v51 = vpop.f32.mrf.mxu0 }
 0x10d   : > { %v635_v57 = vadd.f32 %v634_v52, %v630_v50 }
 0x10e   : > { %v484_v55 = vpop.f32.mrf.mxu0 }
 0x10f   : > { %600 = vst [vmem:[#allocation2 + $0x28] sm:$0xff] %v484_v55  ;;  %v610_v58 = vadd.f32 %v609_v53, %v484_v55  ;;  %v632_v59 = vmul.f32 %v484_v55, %v484_v55 }
 0x110   : > { %v486_v60 = vpop.f32.mrf.mxu0 }
 0x111   : > { %v611_v61 = vrot.slane %v610_v58, 4  ;;  %v636_v62 = vadd.f32 %v635_v57, %v632_v59 }
 0x113   : > { %v612_v1 = vadd.f32 %v611_v61, %v610_v58  ;;  %v637_v2 = vrot.slane %v636_v62, 4 }
 0x115   : > { %v613_v3 = vrot.slane %v612_v1, 2  ;;  %v638_v4 = vadd.f32 %v637_v2, %v636_v62 }
 0x117   : > { %v614_v10 = vadd.f32 %v613_v3, %v612_v1  ;;  %v639_v11 = vrot.slane %v638_v4, 2 }
 0x119   : > { %v615_v12 = vrot.slane %v614_v10, 1  ;;  %v640_v13 = vadd.f32 %v639_v11, %v638_v4 }
 0x11b   : > { %v641_v18 = vrot.slane %v640_v13, 1  ;;  %v616_v19 = vadd.f32 %v615_v12, %v614_v10 }
 0x11d   : > { %v642_v20 = vadd.f32 %v641_v18, %v640_v13 }
 0x11f   : > { %v653_v22 = vsel %vm652_vm1, %v616_v19, %v642_v20 }
 0x120   : > { %v657_v24 = vcombine.low %v653_v22, %v654_v23 }
 0x122   : > { %v664_v26 = vrot.slane %v657_v24, %v663_v21 }
 0x124   : > { %v666_v27 = vadd.f32 %v664_v26, %v607_v25 }
 0x126   : > { %667 = vst [vmem:[#allocation3] sm:$0xf] %v666_v27 }
 0x127 PF: > { %p935_p5 = scmp.ne.s32.totalorder %s1028_s21, 1 }
 0x129   : > { %671 = sbr.rel (%p935_p5) target bundleno = 355 (0x163), region = 52 }
 0x12e   : > { %v676_v28 = vld [vmem:[#allocation3] ss:$2 sm:$0x3]  ;;  %v679_v29 = vld [vmem:[#allocation3 + $0x1] ss:$2 sm:$0x3]  ;;  %v691_v35 = vlaneseq }
 0x12f   : > { %v677_v30 = vmul.f32 0.03125, %v676_v28  ;;  %v680_v31 = vmul.f32 0.03125, %v679_v29  ;;  %v683_v37 = vld [vmem:[%s1210_s3] sm:$0x3]  ;;  %vm712_vm2 = vcmask 1040384   ;;  %v735_v53 = vld [vmem:[#allocation2 + $0x10] sm:$0xff] }
 0x130   : > { %v692_v36 = vshrl.u32 %v691_v35, 7  ;;  %v687_v42 = vld [vmem:[%s1211_s4] sm:$0x3]  ;;  %v739_v55 = vld [vmem:[#allocation2 + $0x38] sm:$0xff]  ;;  %v732_v56 = vld [vmem:[#allocation2 + $0x30] sm:$0xff] }
 0x131   : > { %v681_v32 = vmul.f32 %v677_v30, %v677_v30  ;;  %v733_v52 = vld [vmem:[#allocation2] sm:$0xff]  ;;  %v734_v61 = vld [vmem:[#allocation2 + $0x18] sm:$0xff]  ;;  %v736_v62 = vld [vmem:[#allocation2 + $0x8] sm:$0xff] }
 0x132   : > { %v693_v40 = vsub.s32 0, %v692_v36  ;;  %v697_v41 = vsub.s32 1, %v692_v36  ;;  %v737_v54 = vld [vmem:[#allocation2 + $0x20] sm:$0xff]  ;;  %v738_v63 = vld [vmem:[#allocation2 + $0x28] sm:$0xff] }
 0x133   : > { %v682_v33 = vsub.f32 %v680_v31, %v681_v32 }
 0x135   : > { %v684_v34 = vadd.f32 1e-05, %v682_v33 }
 0x137   : > { %1012 = vrsqrt.f32 %v684_v34 }
 0x144   : > { %v1013_v38 = vpop.eup %1012 }
 0x145   : > { %v686_v39 = vmul.f32 %v1013_v38, %v683_v37 }
 0x147   : > { %v688_v43 = vmul.f32 %v686_v39, %v677_v30  ;;  %v694_v45 = vrot.slane %v686_v39, %v693_v40  ;;  %v698_v46 = vrot.slane %v686_v39, %v697_v41 }
 0x149   : > { %v689_v44 = vsub.f32 %v687_v42, %v688_v43 }
 0x14b   : > { %v705_v47 = vrot.slane %v689_v44, %v693_v40  ;;  %v709_v48 = vrot.slane %v689_v44, %v697_v41 }
 0x14d   : > { %v713_v49 = vsel %vm712_vm2, %v694_v45, %v705_v47  ;;  %v714_v50 = vsel %vm712_vm2, %v698_v46, %v709_v48 }
 0x14e   : > { %v717_v51 = vcombine.low %v713_v49, %v714_v50 }
 0x150   : > { %936 = vst.sshfl [vmem:[#allocation3] sm:$0x33 pattern:$0x76325410] %v717_v51 }
 0x157   : > { %v740_v57 = vld [vmem:[#allocation3] ss:$2 sm:$0x3]  ;;  %v761_v58 = vld [vmem:[#allocation3 + $0x1] ss:$2 sm:$0x3] }
 0x158   : > { %v749_v59 = vrot.slane %v740_v57, %v697_v41  ;;  %v745_v60 = vrot.slane %v740_v57, %v693_v40  ;;  %v770_v0 = vrot.slane %v761_v58, %v697_v41  ;;  %v766_v1 = vrot.slane %v761_v58, %v693_v40 }
 0x15a   : > { %v753_v2 = vmul.f32 %v749_v59, %v733_v52  ;;  %v755_v3 = vmul.f32 %v749_v59, %v735_v53  ;;  %v757_v4 = vmul.f32 %v749_v59, %v737_v54  ;;  %v759_v5 = vmul.f32 %v749_v59, %v739_v55 }
 0x15b   : > { %v752_v6 = vmul.f32 %v745_v60, %v732_v56  ;;  %v754_v7 = vmul.f32 %v745_v60, %v734_v61  ;;  %v756_v8 = vmul.f32 %v745_v60, %v736_v62  ;;  %v758_v9 = vmul.f32 %v745_v60, %v738_v63 }
 0x15c   : > { %v774_v10 = vadd.f32 %v770_v0, %v753_v2  ;;  %v776_v11 = vadd.f32 %v770_v0, %v755_v3  ;;  %v778_v12 = vadd.f32 %v770_v0, %v757_v4  ;;  %v780_v13 = vadd.f32 %v770_v0, %v759_v5 }
 0x15d   : > { %v773_v14 = vadd.f32 %v766_v1, %v752_v6  ;;  %v775_v15 = vadd.f32 %v766_v1, %v754_v7  ;;  %v777_v16 = vadd.f32 %v766_v1, %v756_v8  ;;  %v779_v17 = vadd.f32 %v766_v1, %v758_v9 }
 0x15e   : > { %789 = vst [vmem:[%s1213_s6] sm:$0xff] %v774_v10  ;;  %790 = vst [vmem:[%s1213_s6 + $0x8] sm:$0xff] %v776_v11 }
 0x15f   : > { %791 = vst [vmem:[%s1213_s6 + $0x10] sm:$0xff] %v778_v12  ;;  %792 = vst [vmem:[%s1213_s6 + $0x18] sm:$0xff] %v780_v13  ;;  %v781_v18 = vmax.f32 %v773_v14, 0.0  ;;  %v782_v19 = vmax.f32 %v775_v15, 0.0  ;;  %v783_v20 = vmax.f32 %v777_v16, 0.0  ;;  %v784_v21 = vmax.f32 %v779_v17, 0.0 }
 0x161   : > { %785 = vst [vmem:[%s1212_s5] sm:$0xff] %v781_v18  ;;  %786 = vst [vmem:[%s1212_s5 + $0x8] sm:$0xff] %v782_v19 }
 0x162   : > { %787 = vst [vmem:[%s1212_s5 + $0x10] sm:$0xff] %v783_v20  ;;  %788 = vst [vmem:[%s1212_s5 + $0x18] sm:$0xff] %v784_v21 }
 0x163 PF: > { %s17_s23 = sadd.s32 1, %s1036_s23   ;;  %s1214_s21 = smov %s1032_s22 }
 0x164   : > { %p14_p6 = scmp.ge.s32.totalorder %s17_s23, 4   ;;  %s1215_s22 = smov %s1217_s24 }
 0x166   :  { %16 = sbr.rel (!%p14_p6) target bundleno = 2 (0x2), region = 102 }

// kernel: _lambda_.20
= control target key start
LH: loop header
LB: loop body
LE: loop exit
PB: predicated region body
PF: predicated region fallthrough
CT: control target
= control target key end

     0   :  { %s1661_s18 = smov 0   ;;  %s1663_s19 = smov 0   ;;  %s2028_s0 = inlined_call_operand.vmem [shape: bf16[16,768], index: 0, kind: input, shape index: {}]   ;;  %s2029_s1 = inlined_call_operand.vmem [shape: bf16[768,256], index: 1, kind: input, shape index: {}]   ;;  %s2030_s2 = inlined_call_operand.vmem [shape: f32[1,256], index: 2, kind: input, shape index: {}]   ;;  %s2031_s3 = inlined_call_operand.vmem [shape: f32[1,256], index: 3, kind: input, shape index: {}]   ;;  %s2032_s4 = inlined_call_operand.vmem [shape: f32[16,256], index: 4, kind: input, shape index: {}]   ;;  %s2033_s5 = inlined_call_operand.vmem [shape: f32[16,256], index: 5, kind: output, shape index: {}]  }
   0x1   :  { %s1665_s20 = smov 0  }
   0x2 LB: > { %s27_s21 = sadd.s32 1, %s1623_s19  ;;  %p1314_p0 = scmp.ge.s32.totalorder %s1627_s20, 1  ;;  %s1627_s20 = sphi %s1665_s20, %s15_s20   ;;  %s1623_s19 = sphi %s1663_s19, %s2035_s19   ;;  %s1619_s18 = sphi %s1661_s18, %s2034_s18  }
   0x3   : > { %p29_p1 = scmp.ge.s32.totalorder %s27_s21, 2  ;;  %p227_p2 = scmp.lt.s32.totalorder %s1627_s20, 3 }
   0x5   : > { %s2037_s21 = smov (%p29_p1, %s27_s21), 0  ;;  %p228_p3 = pnand %p1314_p0, %p227_p2 }
   0x6   : > { %p1315_p4 = scmp.ne.s32.totalorder (!%p228_p3), %s1619_s18, 0 }
   0x7   : > { %231 = sbr.rel (%p228_p3) target bundleno = 432 (0x1b0), region = 40 }
   0xc   : > { %300 = sbr.rel (%p1315_p4) target bundleno = 371 (0x173), region = 44 }
  0x11   : > { %v1450_v0 = vld [vmem:[%s2029_s1 + $0x74] ss:$8 sps:$4 sm:$0xff]   ;;  %v1454_v2 = vld [vmem:[%s2029_s1 + $0x70] ss:$8 sps:$4 sm:$0xff]   ;;  %v1456_v4 = vld [vmem:[%s2029_s1 + $0x64] ss:$8 sps:$4 sm:$0xff]  }
  0x12   : > { %v1452_v1 = vld [vmem:[%s2029_s1 + $0x174] ss:$8 sps:$4 sm:$0xff]   ;;  %913 = vmatprep.subr.bf16.mxu0 %v1450_v0  ;;  %v1455_v3 = vld [vmem:[%s2029_s1 + $0x170] ss:$8 sps:$4 sm:$0xff]   ;;  %v1458_v5 = vld [vmem:[%s2029_s1 + $0x164] ss:$8 sps:$4 sm:$0xff]  }
  0x13   : > { %956 = vmatprep.subr.bf16.mxu1 %v1452_v1  ;;  %914 = vmatpush1.bf16.msra.mxu0 %v1454_v2  ;;  %v1460_v6 = vld [vmem:[%s2029_s1 + $0x60] ss:$8 sps:$4 sm:$0xff]   ;;  %v1462_v8 = vld [vmem:[%s2029_s1 + $0x54] ss:$8 sps:$4 sm:$0xff]   ;;  %v1466_v10 = vld [vmem:[%s2029_s1 + $0x50] ss:$8 sps:$4 sm:$0xff]  }
  0x14   : > { %957 = vmatpush1.bf16.msra.mxu1 %v1455_v3  ;;  %915 = vmatprep.subr.bf16.mxu0 %v1456_v4  ;;  %v1461_v7 = vld [vmem:[%s2029_s1 + $0x160] ss:$8 sps:$4 sm:$0xff]   ;;  %v1464_v9 = vld [vmem:[%s2029_s1 + $0x154] ss:$8 sps:$4 sm:$0xff]   ;;  %v1467_v11 = vld [vmem:[%s2029_s1 + $0x150] ss:$8 sps:$4 sm:$0xff]  }
  0x15   : > { %958 = vmatprep.subr.bf16.mxu1 %v1458_v5  ;;  %v1468_v12 = vld [vmem:[%s2029_s1 + $0x44] ss:$8 sps:$4 sm:$0xff]   ;;  %v1472_v14 = vld [vmem:[%s2029_s1 + $0x40] ss:$8 sps:$4 sm:$0xff]   ;;  %v1474_v16 = vld [vmem:[%s2029_s1 + $0x34] ss:$8 sps:$4 sm:$0xff]  }
  0x16   : > { %v1470_v13 = vld [vmem:[%s2029_s1 + $0x144] ss:$8 sps:$4 sm:$0xff]   ;;  %v1473_v15 = vld [vmem:[%s2029_s1 + $0x140] ss:$8 sps:$4 sm:$0xff]   ;;  %v1476_v17 = vld [vmem:[%s2029_s1 + $0x134] ss:$8 sps:$4 sm:$0xff]  }
  0x17   : > { %916 = vmatpush1.bf16.msra.mxu0 %v1460_v6  ;;  %v1478_v18 = vld [vmem:[%s2029_s1 + $0x30] ss:$8 sps:$4 sm:$0xff]   ;;  %v1480_v20 = vld [vmem:[%s2029_s1 + $0x24] ss:$8 sps:$4 sm:$0xff]   ;;  %v1484_v22 = vld [vmem:[%s2029_s1 + $0x20] ss:$8 sps:$4 sm:$0xff]  }
  0x18   : > { %959 = vmatpush1.bf16.msra.mxu1 %v1461_v7  ;;  %917 = vmatprep.subr.bf16.mxu0 %v1462_v8  ;;  %v1479_v19 = vld [vmem:[%s2029_s1 + $0x130] ss:$8 sps:$4 sm:$0xff]   ;;  %v1482_v21 = vld [vmem:[%s2029_s1 + $0x124] ss:$8 sps:$4 sm:$0xff]   ;;  %v1485_v23 = vld [vmem:[%s2029_s1 + $0x120] ss:$8 sps:$4 sm:$0xff]  }
  0x19   : > { %960 = vmatprep.subr.bf16.mxu1 %v1464_v9  ;;  %v1486_v24 = vld [vmem:[%s2029_s1 + $0x14] ss:$8 sps:$4 sm:$0xff]   ;;  %v1490_v26 = vld [vmem:[%s2029_s1 + $0x10] ss:$8 sps:$4 sm:$0xff]   ;;  %v1492_v28 = vld [vmem:[%s2029_s1 + $0x4] ss:$8 sps:$4 sm:$0xff]  }
  0x1a   : > { %v1488_v25 = vld [vmem:[%s2029_s1 + $0x114] ss:$8 sps:$4 sm:$0xff]   ;;  %v1491_v27 = vld [vmem:[%s2029_s1 + $0x110] ss:$8 sps:$4 sm:$0xff]   ;;  %v1494_v29 = vld [vmem:[%s2029_s1 + $0x104] ss:$8 sps:$4 sm:$0xff]  }
  0x1b   : > { %918 = vmatpush1.bf16.msra.mxu0 %v1466_v10  ;;  %v1496_v30 = vld [vmem:[%s2029_s1] ss:$8 sps:$4 sm:$0xff]   ;;  %v1498_v32 = vld [vmem:[%s2029_s1 + $0xf4] ss:$8 sps:$4 sm:$0xff]   ;;  %v1502_v34 = vld [vmem:[%s2029_s1 + $0xf0] ss:$8 sps:$4 sm:$0xff]  }
  0x1c   : > { %961 = vmatpush1.bf16.msra.mxu1 %v1467_v11  ;;  %919 = vmatprep.subr.bf16.mxu0 %v1468_v12  ;;  %v1497_v31 = vld [vmem:[%s2029_s1 + $0x100] ss:$8 sps:$4 sm:$0xff]   ;;  %v1500_v33 = vld [vmem:[%s2029_s1 + $0x1f4] ss:$8 sps:$4 sm:$0xff]   ;;  %v1503_v35 = vld [vmem:[%s2029_s1 + $0x1f0] ss:$8 sps:$4 sm:$0xff]  }
  0x1d   : > { %962 = vmatprep.subr.bf16.mxu1 %v1470_v13  ;;  %v1504_v36 = vld [vmem:[%s2029_s1 + $0xe4] ss:$8 sps:$4 sm:$0xff]   ;;  %v1508_v38 = vld [vmem:[%s2029_s1 + $0xe0] ss:$8 sps:$4 sm:$0xff]   ;;  %v1510_v40 = vld [vmem:[%s2029_s1 + $0xd4] ss:$8 sps:$4 sm:$0xff]  }
  0x1e   : > { %v1506_v37 = vld [vmem:[%s2029_s1 + $0x1e4] ss:$8 sps:$4 sm:$0xff]   ;;  %v1509_v39 = vld [vmem:[%s2029_s1 + $0x1e0] ss:$8 sps:$4 sm:$0xff]   ;;  %v1512_v41 = vld [vmem:[%s2029_s1 + $0x1d4] ss:$8 sps:$4 sm:$0xff]  }
  0x1f   : > { %920 = vmatpush1.bf16.msra.mxu0 %v1472_v14  ;;  %v1514_v42 = vld [vmem:[%s2029_s1 + $0xd0] ss:$8 sps:$4 sm:$0xff]   ;;  %v1516_v44 = vld [vmem:[%s2029_s1 + $0xc4] ss:$8 sps:$4 sm:$0xff]   ;;  %v1520_v46 = vld [vmem:[%s2029_s1 + $0xc0] ss:$8 sps:$4 sm:$0xff]  }
  0x20   : > { %963 = vmatpush1.bf16.msra.mxu1 %v1473_v15  ;;  %921 = vmatprep.subr.bf16.mxu0 %v1474_v16  ;;  %v1515_v43 = vld [vmem:[%s2029_s1 + $0x1d0] ss:$8 sps:$4 sm:$0xff]   ;;  %v1518_v45 = vld [vmem:[%s2029_s1 + $0x1c4] ss:$8 sps:$4 sm:$0xff]   ;;  %v1521_v47 = vld [vmem:[%s2029_s1 + $0x1c0] ss:$8 sps:$4 sm:$0xff]  }
  0x21   : > { %964 = vmatprep.subr.bf16.mxu1 %v1476_v17  ;;  %v1522_v48 = vld [vmem:[%s2029_s1 + $0xb4] ss:$8 sps:$4 sm:$0xff]   ;;  %v1551_v51 = vld [vmem:[%s2028_s0 + $0xc] ss:$24 sps:$4 sm:$0xff]   ;;  %v1526_v52 = vld [vmem:[%s2029_s1 + $0xb0] ss:$8 sps:$4 sm:$0xff]  }
  0x22   : > { %v1548_v49 = vld [vmem:[%s2028_s0 + $0x4] ss:$24 sps:$4 sm:$0xff]   ;;  %v1527_v53 = vld [vmem:[%s2029_s1 + $0x1b0] ss:$8 sps:$4 sm:$0xff]   ;;  %988 = vmatprep.mubr.bf16.mxu1 %v1551_v51  ;;  %v1532_v56 = vld [vmem:[%s2029_s1 + $0xa0] ss:$8 sps:$4 sm:$0xff]  }
  0x23   : > { %922 = vmatpush1.bf16.msra.mxu0 %v1478_v18  ;;  %v1524_v50 = vld [vmem:[%s2029_s1 + $0x1b4] ss:$8 sps:$4 sm:$0xff]   ;;  %945 = vmatprep.mubr.bf16.mxu0 %v1548_v49  ;;  %v1528_v54 = vld [vmem:[%s2029_s1 + $0xa4] ss:$8 sps:$4 sm:$0xff]   ;;  %v1533_v57 = vld [vmem:[%s2029_s1 + $0x1a0] ss:$8 sps:$4 sm:$0xff]  }
  0x24   : > { %965 = vmatpush1.bf16.msra.mxu1 %v1479_v19  ;;  %923 = vmatprep.subr.bf16.mxu0 %v1480_v20  ;;  %v1530_v55 = vld [vmem:[%s2029_s1 + $0x1a4] ss:$8 sps:$4 sm:$0xff]   ;;  %v1534_v58 = vld [vmem:[%s2029_s1 + $0x94] ss:$8 sps:$4 sm:$0xff]   ;;  %v1538_v60 = vld [vmem:[%s2029_s1 + $0x90] ss:$8 sps:$4 sm:$0xff]  }
  0x25   : > { %966 = vmatprep.subr.bf16.mxu1 %v1482_v21  ;;  %v1536_v59 = vld [vmem:[%s2029_s1 + $0x194] ss:$8 sps:$4 sm:$0xff]   ;;  %v1539_v61 = vld [vmem:[%s2029_s1 + $0x190] ss:$8 sps:$4 sm:$0xff]   ;;  %v1540_v62 = vld [vmem:[%s2029_s1 + $0x84] ss:$8 sps:$4 sm:$0xff]  }
  0x26   : > { %v1542_v63 = vld [vmem:[%s2029_s1 + $0x184] ss:$8 sps:$4 sm:$0xff]   ;;  %v1544_v0 = vld [vmem:[%s2029_s1 + $0x80] ss:$8 sps:$4 sm:$0xff]   ;;  %v1554_v2 = vld [vmem:[%s2029_s1 + $0x274] ss:$8 sps:$4 sm:$0xff]  }
  0x27   : > { %924 = vmatpush1.bf16.msra.mxu0 %v1484_v22  ;;  %v1545_v1 = vld [vmem:[%s2029_s1 + $0x180] ss:$8 sps:$4 sm:$0xff]   ;;  %v1552_v5 = vld [vmem:[%s2029_s1 + $0x270] ss:$8 sps:$4 sm:$0xff]   ;;  %v1557_v6 = vld [vmem:[%s2029_s1 + $0x264] ss:$8 sps:$4 sm:$0xff]  }
  0x28   : > { %967 = vmatpush1.bf16.msra.mxu1 %v1485_v23  ;;  %925 = vmatprep.subr.bf16.mxu0 %v1486_v24  ;;  %v1546_v3 = vld [vmem:[%s2028_s0] ss:$24 sps:$4 sm:$0xff]   ;;  %v1602_v7 = vld [vmem:[%s2028_s0 + $0x14] ss:$24 sps:$4 sm:$0xff]   ;;  %vm1089_vm0 = vcmask 1040384  }
  0x29   : > { %968 = vmatprep.subr.bf16.mxu1 %v1488_v25  ;;  %v1549_v4 = vld [vmem:[%s2028_s0 + $0x8] ss:$24 sps:$4 sm:$0xff]   ;;  %v1560_v9 = vld [vmem:[%s2029_s1 + $0x254] ss:$8 sps:$4 sm:$0xff]   ;;  %v1558_v10 = vld [vmem:[%s2029_s1 + $0x250] ss:$8 sps:$4 sm:$0xff]  }
  0x2a   : > { %v1555_v8 = vld [vmem:[%s2029_s1 + $0x260] ss:$8 sps:$4 sm:$0xff]   ;;  %v1563_v11 = vld [vmem:[%s2029_s1 + $0x244] ss:$8 sps:$4 sm:$0xff]   ;;  %v1566_v13 = vld [vmem:[%s2029_s1 + $0x234] ss:$8 sps:$4 sm:$0xff]  }
  0x2b   : > { %926 = vmatpush1.bf16.msra.mxu0 %v1490_v26  ;;  %v1561_v12 = vld [vmem:[%s2029_s1 + $0x240] ss:$8 sps:$4 sm:$0xff]   ;;  %v1564_v14 = vld [vmem:[%s2029_s1 + $0x230] ss:$8 sps:$4 sm:$0xff]   ;;  %v1569_v15 = vld [vmem:[%s2029_s1 + $0x224] ss:$8 sps:$4 sm:$0xff]  }
  0x2c   : > { %969 = vmatpush1.bf16.msra.mxu1 %v1491_v27  ;;  %927 = vmatprep.subr.bf16.mxu0 %v1492_v28  ;;  %v1567_v16 = vld [vmem:[%s2029_s1 + $0x220] ss:$8 sps:$4 sm:$0xff]   ;;  %v1572_v17 = vld [vmem:[%s2029_s1 + $0x214] ss:$8 sps:$4 sm:$0xff]   ;;  %v1570_v18 = vld [vmem:[%s2029_s1 + $0x210] ss:$8 sps:$4 sm:$0xff]  }
  0x2d   : > { %970 = vmatprep.subr.bf16.mxu1 %v1494_v29  ;;  %v1575_v19 = vld [vmem:[%s2029_s1 + $0x204] ss:$8 sps:$4 sm:$0xff]   ;;  %v1573_v20 = vld [vmem:[%s2029_s1 + $0x200] ss:$8 sps:$4 sm:$0xff]   ;;  %v1578_v21 = vld [vmem:[%s2029_s1 + $0x2f4] ss:$8 sps:$4 sm:$0xff]  }
  0x2e   : > { %v1576_v22 = vld [vmem:[%s2029_s1 + $0x2f0] ss:$8 sps:$4 sm:$0xff]   ;;  %v1581_v23 = vld [vmem:[%s2029_s1 + $0x2e4] ss:$8 sps:$4 sm:$0xff]   ;;  %v1579_v24 = vld [vmem:[%s2029_s1 + $0x2e0] ss:$8 sps:$4 sm:$0xff]  }
  0x2f   : > { %928 = vmatpush1.bf16.msra.mxu0 %v1496_v30  ;;  %v1584_v25 = vld [vmem:[%s2029_s1 + $0x2d4] ss:$8 sps:$4 sm:$0xff]   ;;  %v1582_v26 = vld [vmem:[%s2029_s1 + $0x2d0] ss:$8 sps:$4 sm:$0xff]   ;;  %v1587_v27 = vld [vmem:[%s2029_s1 + $0x2c4] ss:$8 sps:$4 sm:$0xff]  }
  0x30   : > { %971 = vmatpush1.bf16.msra.mxu1 %v1497_v31  ;;  %929 = vmatprep.subr.bf16.mxu0 %v1498_v32  ;;  %v1585_v28 = vld [vmem:[%s2029_s1 + $0x2c0] ss:$8 sps:$4 sm:$0xff]   ;;  %v1590_v29 = vld [vmem:[%s2029_s1 + $0x2b4] ss:$8 sps:$4 sm:$0xff]   ;;  %v1588_v30 = vld [vmem:[%s2029_s1 + $0x2b0] ss:$8 sps:$4 sm:$0xff]  }
  0x31   : > { %972 = vmatprep.subr.bf16.mxu1 %v1500_v33  ;;  %v1593_v31 = vld [vmem:[%s2029_s1 + $0x2a4] ss:$8 sps:$4 sm:$0xff]   ;;  %v1591_v32 = vld [vmem:[%s2029_s1 + $0x2a0] ss:$8 sps:$4 sm:$0xff]   ;;  %v1596_v33 = vld [vmem:[%s2029_s1 + $0x294] ss:$8 sps:$4 sm:$0xff]  }
  0x33   : > { %930 = vmatpush2.bf16.msra.mxu0 %v1502_v34  ;;  %v1594_v34 = vld [vmem:[%s2029_s1 + $0x290] ss:$8 sps:$4 sm:$0xff]  }
  0x34   : > { %973 = vmatpush2.bf16.msra.mxu1 %v1503_v35  ;;  %931 = vmatprep.subr.bf16.mxu0 %v1504_v36  ;;  %v1599_v35 = vld [vmem:[%s2029_s1 + $0x284] ss:$8 sps:$4 sm:$0xff]   ;;  %v1597_v36 = vld [vmem:[%s2029_s1 + $0x280] ss:$8 sps:$4 sm:$0xff]  }
  0x35   : > { %974 = vmatprep.subr.bf16.mxu1 %v1506_v37  ;;  %v1600_v37 = vld [vmem:[%s2028_s0 + $0x10] ss:$24 sps:$4 sm:$0xff]  }
  0x37   : > { %932 = vmatpush2.bf16.msra.mxu0 %v1508_v38  ;;  %v1629_v38 = vmov 0.0  }
  0x38   : > { %975 = vmatpush2.bf16.msra.mxu1 %v1509_v39  ;;  %933 = vmatprep.subr.bf16.mxu0 %v1510_v40  ;;  %1055 = vst [vmem:[#allocation3] sm:$0xf] %v1629_v38 }
  0x39   : > { %976 = vmatprep.subr.bf16.mxu1 %v1512_v41 }
  0x3b   : > { %934 = vmatpush2.bf16.msra.mxu0 %v1514_v42 }
  0x3c   : > { %977 = vmatpush2.bf16.msra.mxu1 %v1515_v43  ;;  %935 = vmatprep.subr.bf16.mxu0 %v1516_v44 }
  0x3d   : > { %978 = vmatprep.subr.bf16.mxu1 %v1518_v45 }
  0x3f   : > { %936 = vmatpush2.bf16.msra.mxu0 %v1520_v46 }
  0x40   : > { %979 = vmatpush2.bf16.msra.mxu1 %v1521_v47  ;;  %937 = vmatprep.subr.bf16.mxu0 %v1522_v48 }
  0x41   : > { %980 = vmatprep.subr.bf16.mxu1 %v1524_v50 }
  0x43   : > { %938 = vmatpush2.bf16.msra.mxu0 %v1526_v52 }
  0x44   : > { %981 = vmatpush2.bf16.msra.mxu1 %v1527_v53  ;;  %939 = vmatprep.subr.bf16.mxu0 %v1528_v54 }
  0x45   : > { %982 = vmatprep.subr.bf16.mxu1 %v1530_v55 }
  0x47   : > { %940 = vmatpush2.bf16.msra.mxu0 %v1532_v56 }
  0x48   : > { %983 = vmatpush2.bf16.msra.mxu1 %v1533_v57  ;;  %941 = vmatprep.subr.bf16.mxu0 %v1534_v58 }
  0x49   : > { %984 = vmatprep.subr.bf16.mxu1 %v1536_v59 }
  0x4b   : > { %942 = vmatpush2.bf16.msra.mxu0 %v1538_v60 }
  0x4c   : > { %985 = vmatpush2.bf16.msra.mxu1 %v1539_v61  ;;  %943 = vmatprep.subr.bf16.mxu0 %v1540_v62 }
  0x4d   : > { %986 = vmatprep.subr.bf16.mxu1 %v1542_v63 }
  0x4f   : > { %944 = vmatpush2.bf16.msra.mxu0 %v1544_v0 }
  0x50   : > { %987 = vmatpush2.bf16.msra.mxu1 %v1545_v1  ;;  %999 = vmatprep.subr.bf16.mxu0 %v1554_v2 }
  0x52   : > { %946 = vmatmul.mubr.bf16.vlgmr.msra.gmra.mxu0 %v1546_v3 }
  0x53   : > { %989 = vmatmul.mubr.bf16.vlgmr.msra.gmra.mxu1 %v1549_v4  ;;  %1000 = vmatpush1.bf16.msra.mxu0 %v1552_v5 }
  0x54   : > { %1001 = vmatprep.subr.bf16.mxu0 %v1557_v6  ;;  %1031 = vmatprep.mubr.bf16.mxu0 %v1602_v7 }
  0x57   : > { %1002 = vmatpush1.bf16.msra.mxu0 %v1555_v8 }
  0x58   : > { %1003 = vmatprep.subr.bf16.mxu0 %v1560_v9 }
  0x5b   : > { %1004 = vmatpush1.bf16.msra.mxu0 %v1558_v10 }
  0x5c   : > { %1005 = vmatprep.subr.bf16.mxu0 %v1563_v11 }
  0x5f   : > { %1006 = vmatpush1.bf16.msra.mxu0 %v1561_v12 }
  0x60   : > { %1007 = vmatprep.subr.bf16.mxu0 %v1566_v13 }
  0x63   : > { %1008 = vmatpush1.bf16.msra.mxu0 %v1564_v14 }
  0x64   : > { %1009 = vmatprep.subr.bf16.mxu0 %v1569_v15  ;;  %v1630_v15 = vmov 1983009808  }
  0x67   : > { %1010 = vmatpush1.bf16.msra.mxu0 %v1567_v16  ;;  %v1096_v16 = vunpack.c.l.s4 %v1630_v15 }
  0x68   : > { %1011 = vmatprep.subr.bf16.mxu0 %v1572_v17  ;;  %v1098_v17 = vlaneseq }
  0x6b   : > { %1012 = vmatpush1.bf16.msra.mxu0 %v1570_v18 }
  0x6c   : > { %1013 = vmatprep.subr.bf16.mxu0 %v1575_v19 }
  0x6f   : > { %1014 = vmatpush1.bf16.msra.mxu0 %v1573_v20 }
  0x70   : > { %1015 = vmatprep.subr.bf16.mxu0 %v1578_v21 }
  0x73   : > { %1016 = vmatpush2.bf16.msra.mxu0 %v1576_v22 }
  0x74   : > { %1017 = vmatprep.subr.bf16.mxu0 %v1581_v23 }
  0x77   : > { %1018 = vmatpush2.bf16.msra.mxu0 %v1579_v24 }
  0x78   : > { %1019 = vmatprep.subr.bf16.mxu0 %v1584_v25  ;;  %v1097_v25 = vunpack.c.0.s8 %v1096_v16 }
  0x7b   : > { %1020 = vmatpush2.bf16.msra.mxu0 %v1582_v26  ;;  %v1099_v26 = vshrl.u32 %v1098_v17, 7 }
  0x7c   : > { %1021 = vmatprep.subr.bf16.mxu0 %v1587_v27 }
  0x7f   : > { %1022 = vmatpush2.bf16.msra.mxu0 %v1585_v28 }
  0x80   : > { %1023 = vmatprep.subr.bf16.mxu0 %v1590_v29 }
  0x83   : > { %1024 = vmatpush2.bf16.msra.mxu0 %v1588_v30 }
  0x84   : > { %1025 = vmatprep.subr.bf16.mxu0 %v1593_v31 }
  0x87   : > { %1026 = vmatpush2.bf16.msra.mxu0 %v1591_v32  ;;  %v1100_v32 = vsub.s32 %v1097_v25, %v1099_v26 }
  0x88   : > { %1027 = vmatprep.subr.bf16.mxu0 %v1596_v33 }
  0x8b   : > { %1028 = vmatpush2.bf16.msra.mxu0 %v1594_v34 }
  0x8c   : > { %1029 = vmatprep.subr.bf16.mxu0 %v1599_v35 }
  0x8f   : > { %1030 = vmatpush2.bf16.msra.mxu0 %v1597_v36  ;;  %v1056_v36 = vld [vmem:[#allocation3] sm:$0xf] }
  0x92   : > { %1032 = vmatmul.mubr.bf16.vlgmr.msra.gmra.mxu0 %v1600_v37 }
 0x112   : > { %v947_v39 = vpop.f32.mrf.mxu0 }
 0x113   : > { %v990_v40 = vpop.f32.mrf.mxu1 }
 0x114   : > { %v949_v41 = vpop.f32.mrf.mxu0  ;;  %v991_v46 = vadd.f32 %v990_v40, %v947_v39 }
 0x115   : > { %v992_v42 = vpop.f32.mrf.mxu1 }
 0x116   : > { %v951_v43 = vpop.f32.mrf.mxu0  ;;  %v993_v48 = vadd.f32 %v992_v42, %v949_v41 }
 0x117   : > { %v994_v44 = vpop.f32.mrf.mxu1 }
 0x118   : > { %v953_v45 = vpop.f32.mrf.mxu0  ;;  %v995_v52 = vadd.f32 %v994_v44, %v951_v43 }
 0x119   : > { %v996_v50 = vpop.f32.mrf.mxu1 }
 0x11a   : > { %v997_v55 = vadd.f32 %v996_v50, %v953_v45 }
 0x152   : > { %v1033_v47 = vpop.f32.mrf.mxu0 }
 0x153   : > { %v1034_v49 = vadd.f32 %v1033_v47, %v991_v46 }
 0x154   : > { %v1035_v51 = vpop.f32.mrf.mxu0 }
 0x155   : > { %1047 = vst [vmem:[#allocation2 + $0x10] sm:$0xff] %v1034_v49  ;;  %v1036_v53 = vadd.f32 %v1035_v51, %v993_v48  ;;  %v1071_v58 = vmul.f32 %v1034_v49, %v1034_v49 }
 0x156   : > { %v1037_v54 = vpop.f32.mrf.mxu0 }
 0x157   : > { %1048 = vst [vmem:[#allocation2] sm:$0xff] %v1036_v53  ;;  %v1038_v56 = vadd.f32 %v1037_v54, %v995_v52  ;;  %v1072_v62 = vmul.f32 %v1036_v53, %v1036_v53 }
 0x158   : > { %v1039_v57 = vpop.f32.mrf.mxu0 }
 0x159   : > { %1049 = vst [vmem:[#allocation2 + $0x18] sm:$0xff] %v1038_v56  ;;  %v1057_v59 = vadd.f32 %v1038_v56, %v1034_v49  ;;  %v1073_v60 = vmul.f32 %v1038_v56, %v1038_v56  ;;  %v1040_v61 = vadd.f32 %v1039_v57, %v997_v55 }
 0x15b   : > { %v1058_v63 = vrot.slane %v1057_v59, 4  ;;  %v1075_v0 = vadd.f32 %v1073_v60, %v1071_v58  ;;  %1050 = vst [vmem:[#allocation2 + $0x8] sm:$0xff] %v1040_v61  ;;  %v1064_v1 = vadd.f32 %v1040_v61, %v1036_v53  ;;  %v1074_v2 = vmul.f32 %v1040_v61, %v1040_v61 }
 0x15d   : > { %v1059_v3 = vadd.f32 %v1058_v63, %v1057_v59  ;;  %v1076_v4 = vrot.slane %v1075_v0, 4  ;;  %v1065_v5 = vrot.slane %v1064_v1, 4  ;;  %v1082_v6 = vadd.f32 %v1074_v2, %v1072_v62 }
 0x15f   : > { %v1060_v7 = vrot.slane %v1059_v3, 2  ;;  %v1077_v8 = vadd.f32 %v1076_v4, %v1075_v0  ;;  %v1066_v9 = vadd.f32 %v1065_v5, %v1064_v1  ;;  %v1083_v10 = vrot.slane %v1082_v6, 4 }
 0x161   : > { %v1061_v11 = vadd.f32 %v1060_v7, %v1059_v3  ;;  %v1078_v12 = vrot.slane %v1077_v8, 2  ;;  %v1067_v13 = vrot.slane %v1066_v9, 2  ;;  %v1084_v14 = vadd.f32 %v1083_v10, %v1082_v6 }
 0x163   : > { %v1079_v18 = vadd.f32 %v1078_v12, %v1077_v8  ;;  %v1068_v19 = vadd.f32 %v1067_v13, %v1066_v9  ;;  %v1085_v20 = vrot.slane %v1084_v14, 2  ;;  %v1062_v21 = vrot.slane %v1061_v11, 1 }
 0x165   : > { %v1080_v22 = vrot.slane %v1079_v18, 1  ;;  %v1069_v23 = vrot.slane %v1068_v19, 1  ;;  %v1086_v24 = vadd.f32 %v1085_v20, %v1084_v14  ;;  %v1063_v29 = vadd.f32 %v1062_v21, %v1061_v11 }
 0x167   : > { %v1081_v27 = vadd.f32 %v1080_v22, %v1079_v18  ;;  %v1087_v28 = vrot.slane %v1086_v24, 1  ;;  %v1070_v30 = vadd.f32 %v1069_v23, %v1068_v19 }
 0x169   : > { %v1088_v31 = vadd.f32 %v1087_v28, %v1086_v24  ;;  %v1090_v33 = vsel %vm1089_vm0, %v1063_v29, %v1081_v27 }
 0x16b   : > { %v1091_v34 = vsel %vm1089_vm0, %v1070_v30, %v1088_v31 }
 0x16c   : > { %v1094_v35 = vcombine.low %v1090_v33, %v1091_v34 }
 0x16e   : > { %v1101_v37 = vrot.slane %v1094_v35, %v1100_v32 }
 0x170   : > { %v1103_v38 = vadd.f32 %v1101_v37, %v1056_v36 }
 0x172   : > { %1104 = vst [vmem:[#allocation3] sm:$0xf] %v1103_v38 }
 0x173 PF: > { %p1418_p5 = scmp.ne.s32.totalorder %s1619_s18, 1 }
 0x175   : > { %1108 = sbr.rel (%p1418_p5) target bundleno = 432 (0x1b0), region = 52 }
 0x17a   : > { %v1113_v39 = vld [vmem:[#allocation3] ss:$2 sm:$0x3]  ;;  %v1116_v40 = vld [vmem:[#allocation3 + $0x1] ss:$2 sm:$0x3]  ;;  %v1128_v46 = vlaneseq }
 0x17b   : > { %v1114_v41 = vmul.f32 0.0625, %v1113_v39  ;;  %v1117_v42 = vmul.f32 0.0625, %v1116_v40  ;;  %v1120_v48 = vld [vmem:[%s2030_s2] sm:$0x3]  ;;  %vm1149_vm1 = vcmask 1040384   ;;  %v1169_v63 = vld [vmem:[#allocation2 + $0x10] sm:$0xff] }
 0x17c   : > { %v1129_v47 = vshrl.u32 %v1128_v46, 7  ;;  %v1124_v53 = vld [vmem:[%s2031_s3] sm:$0x3]  ;;  %v1171_v1 = vld [vmem:[#allocation2 + $0x18] sm:$0xff]  ;;  %v1172_v2 = vld [vmem:[#allocation2 + $0x8] sm:$0xff] }
 0x17d   : > { %v1118_v43 = vmul.f32 %v1114_v41, %v1114_v41  ;;  %v1170_v0 = vld [vmem:[#allocation2] sm:$0xff]  ;;  %v1207_v14 = vld [vmem:[%s2032_s4 + $0x8] sm:$0xff]  ;;  %v1208_v15 = vld [vmem:[%s2032_s4 + $0x10] sm:$0xff] }
 0x17e   : > { %v1130_v51 = vsub.s32 0, %v1129_v47  ;;  %v1134_v52 = vsub.s32 1, %v1129_v47  ;;  %v1206_v10 = vld [vmem:[%s2032_s4] sm:$0xff]  ;;  %v1209_v16 = vld [vmem:[%s2032_s4 + $0x18] sm:$0xff] }
 0x17f   : > { %v1119_v44 = vsub.f32 %v1117_v42, %v1118_v43 }
 0x181   : > { %v1121_v45 = vadd.f32 1e-05, %v1119_v44 }
 0x183   : > { %1603 = vrsqrt.f32 %v1121_v45 }
 0x190   : > { %v1604_v49 = vpop.eup %1603 }
 0x191   : > { %v1123_v50 = vmul.f32 %v1604_v49, %v1120_v48 }
 0x193   : > { %v1125_v54 = vmul.f32 %v1123_v50, %v1114_v41  ;;  %v1131_v56 = vrot.slane %v1123_v50, %v1130_v51  ;;  %v1135_v57 = vrot.slane %v1123_v50, %v1134_v52 }
 0x195   : > { %v1126_v55 = vsub.f32 %v1124_v53, %v1125_v54 }
 0x197   : > { %v1142_v58 = vrot.slane %v1126_v55, %v1130_v51  ;;  %v1146_v59 = vrot.slane %v1126_v55, %v1134_v52 }
 0x199   : > { %v1150_v60 = vsel %vm1149_vm1, %v1131_v56, %v1142_v58  ;;  %v1151_v61 = vsel %vm1149_vm1, %v1135_v57, %v1146_v59 }
 0x19a   : > { %v1154_v62 = vcombine.low %v1150_v60, %v1151_v61 }
 0x19c   : > { %1419 = vst.sshfl [vmem:[#allocation3] sm:$0x33 pattern:$0x76325410] %v1154_v62 }
 0x1a3   : > { %v1173_v3 = vld [vmem:[#allocation3] ss:$2 sm:$0x3]  ;;  %v1190_v4 = vld [vmem:[#allocation3 + $0x1] ss:$2 sm:$0x3] }
 0x1a4   : > { %v1178_v5 = vrot.slane %v1173_v3, %v1130_v51  ;;  %v1182_v6 = vrot.slane %v1173_v3, %v1134_v52  ;;  %v1195_v7 = vrot.slane %v1190_v4, %v1130_v51  ;;  %v1199_v8 = vrot.slane %v1190_v4, %v1134_v52 }
 0x1a6   : > { %v1185_v9 = vmul.f32 %v1178_v5, %v1169_v63  ;;  %v1186_v11 = vmul.f32 %v1182_v6, %v1170_v0  ;;  %v1187_v12 = vmul.f32 %v1178_v5, %v1171_v1  ;;  %v1188_v13 = vmul.f32 %v1182_v6, %v1172_v2 }
 0x1a8   : > { %v1202_v17 = vadd.f32 %v1195_v7, %v1185_v9  ;;  %v1203_v18 = vadd.f32 %v1199_v8, %v1186_v11  ;;  %v1204_v19 = vadd.f32 %v1195_v7, %v1187_v12  ;;  %v1205_v20 = vadd.f32 %v1199_v8, %v1188_v13 }
 0x1aa   : > { %v1210_v21 = vadd.f32 %v1206_v10, %v1202_v17  ;;  %v1211_v22 = vadd.f32 %v1207_v14, %v1203_v18  ;;  %v1212_v23 = vadd.f32 %v1208_v15, %v1204_v19  ;;  %v1213_v24 = vadd.f32 %v1209_v16, %v1205_v20 }
 0x1ac   : > { %v1214_v25 = vmax.f32 %v1210_v21, 0.0  ;;  %v1215_v26 = vmax.f32 %v1211_v22, 0.0  ;;  %v1216_v27 = vmax.f32 %v1212_v23, 0.0  ;;  %v1217_v28 = vmax.f32 %v1213_v24, 0.0 }
 0x1ae   : > { %1218 = vst [vmem:[%s2033_s5] sm:$0xff] %v1214_v25  ;;  %1219 = vst [vmem:[%s2033_s5 + $0x8] sm:$0xff] %v1215_v26 }
 0x1af   : > { %1220 = vst [vmem:[%s2033_s5 + $0x10] sm:$0xff] %v1216_v27  ;;  %1221 = vst [vmem:[%s2033_s5 + $0x18] sm:$0xff] %v1217_v28 }
 0x1b0 PF: > { %s15_s20 = sadd.s32 1, %s1627_s20   ;;  %s2034_s18 = smov %s1623_s19 }
 0x1b1   : > { %p12_p6 = scmp.ge.s32.totalorder %s15_s20, 4   ;;  %s2035_s19 = smov %s2037_s21 }
 0x1b3   :  { %14 = sbr.rel (!%p12_p6) target bundleno = 2 (0x2), region = 93 }

// kernel: _lambda_.23
= control target key start
LH: loop header
LB: loop body
LE: loop exit
PB: predicated region body
PF: predicated region fallthrough
CT: control target
= control target key end

     0   :  { %v108_v28 = vlaneseq  ;;  %vm38_vm0 = vcmask 1043456   ;;  %s827_s0 = inlined_call_operand.vmem [shape: f32[2,4,512], index: 0, kind: input, shape index: {}]   ;;  %s828_s1 = inlined_call_operand.vmem [shape: bf16[512,18], index: 1, kind: input, shape index: {}]   ;;  %s829_s2 = inlined_call_operand.vmem [shape: f32[1,18], index: 2, kind: input, shape index: {}]   ;;  %s830_s3 = inlined_call_operand.hbm [shape: f32[2,18], index: 3, kind: output, shape index: {}]  }
   0x1   :  { %v622_v0 = vld [vmem:[%s828_s1 + $0x78] sm:$0xff]   ;;  %v626_v4 = vld [vmem:[%s828_s1 + $0x70] sm:$0xff]   ;;  %v630_v8 = vld [vmem:[%s828_s1 + $0x68] sm:$0xff]  }
   0x2   :  { %v623_v1 = vld [vmem:[%s828_s1 + $0x38] sm:$0xff]   ;;  %576 = vmatprep.subr.bf16.mxu0 %v622_v0  ;;  %v627_v5 = vld [vmem:[%s828_s1 + $0x30] sm:$0xff]   ;;  %v631_v9 = vld [vmem:[%s828_s1 + $0x28] sm:$0xff]   ;;  %v804_v35 = vshrl.u32 %v108_v28, 7 }
   0x3   :  { %v624_v2 = vld [vmem:[%s828_s1 + $0xf8] sm:$0xff]   ;;  %577 = vmatpush3.bf16.msra.mxu0 %v623_v1  ;;  %v628_v6 = vld [vmem:[%s828_s1 + $0xf0] sm:$0xff]   ;;  %v632_v10 = vld [vmem:[%s828_s1 + $0xe8] sm:$0xff]  }
   0x4   :  { %v625_v3 = vld [vmem:[%s828_s1 + $0xb8] sm:$0xff]   ;;  %598 = vmatprep.subr.bf16.mxu1 %v624_v2  ;;  %578 = vmatprep.subr.bf16.mxu0 %v626_v4  ;;  %v629_v7 = vld [vmem:[%s828_s1 + $0xb0] sm:$0xff]   ;;  %v633_v11 = vld [vmem:[%s828_s1 + $0xa8] sm:$0xff]  }
   0x5   :  { %599 = vmatpush3.bf16.msra.mxu1 %v625_v3  ;;  %v634_v12 = vld [vmem:[%s828_s1 + $0x60] sm:$0xff]   ;;  %v638_v16 = vld [vmem:[%s828_s1 + $0x58] sm:$0xff]   ;;  %v642_v20 = vld [vmem:[%s828_s1 + $0x50] sm:$0xff]  }
   0x6   :  { %600 = vmatprep.subr.bf16.mxu1 %v628_v6  ;;  %v635_v13 = vld [vmem:[%s828_s1 + $0x20] sm:$0xff]   ;;  %v639_v17 = vld [vmem:[%s828_s1 + $0x18] sm:$0xff]   ;;  %v643_v21 = vld [vmem:[%s828_s1 + $0x10] sm:$0xff]  }
   0x7   :  { %579 = vmatpush3.bf16.msra.mxu0 %v627_v5  ;;  %v636_v14 = vld [vmem:[%s828_s1 + $0xe0] sm:$0xff]   ;;  %v640_v18 = vld [vmem:[%s828_s1 + $0xd8] sm:$0xff]   ;;  %v644_v22 = vld [vmem:[%s828_s1 + $0xd0] sm:$0xff]  }
   0x8   :  { %580 = vmatprep.subr.bf16.mxu0 %v630_v8  ;;  %v637_v15 = vld [vmem:[%s828_s1 + $0xa0] sm:$0xff]   ;;  %v641_v19 = vld [vmem:[%s828_s1 + $0x98] sm:$0xff]   ;;  %v645_v23 = vld [vmem:[%s828_s1 + $0x90] sm:$0xff]  }
   0x9   :  { %601 = vmatpush3.bf16.msra.mxu1 %v629_v7  ;;  %v646_v24 = vld [vmem:[%s828_s1 + $0x48] sm:$0xff]   ;;  %v650_v29 = vld [vmem:[%s828_s1 + $0x40] sm:$0xff]   ;;  %v24_v34 = vld [vmem:[%s827_s0 + $0x10] sm:$0xff] }
   0xa   :  { %602 = vmatprep.subr.bf16.mxu1 %v632_v10  ;;  %v647_v25 = vld [vmem:[%s828_s1 + $0x8] sm:$0xff]   ;;  %v651_v30 = vld [vmem:[%s828_s1] sm:$0xff]   ;;  %v25_v36 = vld [vmem:[%s827_s0 + $0x18] sm:$0xff]  ;;  %v32_v39 = vcombine.high %v24_v34, %v24_v34  ;;  %v67_v44 = vsel %vm38_vm0, %v24_v34, 0.0 }
   0xb   :  { %581 = vmatpush3.bf16.msra.mxu0 %v631_v9  ;;  %v648_v26 = vld [vmem:[%s828_s1 + $0xc8] sm:$0xff]   ;;  %v652_v31 = vld [vmem:[%s828_s1 + $0xc0] sm:$0xff]   ;;  %v33_v41 = vcombine.high %v25_v36, %v25_v36 }
   0xc   :  { %582 = vmatprep.subr.bf16.mxu0 %v634_v12  ;;  %v649_v27 = vld [vmem:[%s828_s1 + $0x88] sm:$0xff]   ;;  %v22_v32 = vld [vmem:[%s827_s0] sm:$0xff] }
   0xd   :  { %603 = vmatpush3.bf16.msra.mxu1 %v633_v11  ;;  %v23_v33 = vld [vmem:[%s827_s0 + $0x8] sm:$0xff]  ;;  %v30_v37 = vcombine.high %v22_v32, %v22_v32  ;;  %v39_v40 = vsel %vm38_vm0, %v22_v32, 0.0  ;;  %v657_v45 = vld [vmem:[%s828_s1 + $0x80] sm:$0xff]  }
   0xe   :  { %604 = vmatprep.subr.bf16.mxu1 %v636_v14  ;;  %v31_v38 = vcombine.high %v23_v33, %v23_v33  ;;  %v40_v42 = vrot.slane %v39_v40, 4  ;;  %v53_v43 = vsel %vm38_vm0, %v23_v33, 0.0 }
   0xf   :  { %583 = vmatpush3.bf16.msra.mxu0 %v635_v13 }
  0x10   :  { %584 = vmatprep.subr.bf16.mxu0 %v638_v16 }
  0x11   :  { %605 = vmatpush3.bf16.msra.mxu1 %v637_v15 }
  0x12   :  { %606 = vmatprep.subr.bf16.mxu1 %v640_v18 }
  0x13   :  { %585 = vmatpush3.bf16.msra.mxu0 %v639_v17 }
  0x14   :  { %586 = vmatprep.subr.bf16.mxu0 %v642_v20 }
  0x15   :  { %607 = vmatpush3.bf16.msra.mxu1 %v641_v19 }
  0x16   :  { %608 = vmatprep.subr.bf16.mxu1 %v644_v22 }
  0x17   :  { %587 = vmatpush3.bf16.msra.mxu0 %v643_v21 }
  0x18   :  { %588 = vmatprep.subr.bf16.mxu0 %v646_v24 }
  0x19   :  { %609 = vmatpush3.bf16.msra.mxu1 %v645_v23 }
  0x1a   :  { %610 = vmatprep.subr.bf16.mxu1 %v648_v26 }
  0x1b   :  { %589 = vmatpush3.bf16.msra.mxu0 %v647_v25 }
  0x1c   :  { %590 = vmatprep.subr.bf16.mxu0 %v650_v29 }
  0x1d   :  { %611 = vmatpush3.bf16.msra.mxu1 %v649_v27 }
  0x1e   :  { %612 = vmatprep.subr.bf16.mxu1 %v652_v31 }
  0x1f   :  { %591 = vmatpush3.bf16.msra.mxu0 %v651_v30 }
  0x20   :  { %8 = vsyncpa [#allocation4], 0  ;;  %v46_v46 = vsel %vm38_vm0, %v30_v37, 0.0  ;;  %v54_v47 = vrot.slane %v53_v43, 4  ;;  %v60_v48 = vsel %vm38_vm0, %v31_v38, 0.0  ;;  %v68_v49 = vrot.slane %v67_v44, 4 }
  0x21   :  { %v41_v50 = vadd.f32 %v40_v42, %v39_v40  ;;  %v47_v51 = vrot.slane %v46_v46, 4  ;;  %v61_v52 = vrot.slane %v60_v48, 4  ;;  %v74_v53 = vsel %vm38_vm0, %v32_v39, 0.0  ;;  %613 = vmatpush3.bf16.msra.mxu1 %v657_v45  ;;  %s681_s30 = smov [#allocation3]  }
  0x22   :  { %v55_v54 = vadd.f32 %v54_v47, %v53_v43  ;;  %v69_v55 = vadd.f32 %v68_v49, %v67_v44  ;;  %v75_v56 = vrot.slane %v74_v53, 4  ;;  %v81_v57 = vsel %vm38_vm0, %v25_v36, 0.0  ;;  %s535_s4 = sshll.u32 %s681_s30, 4  ;;  %s536_s4 = int_to_ptr.vmem [resolvable:$true] %s535_s4 }
  0x23   :  { %v42_v58 = vrot.slane %v41_v50, 2  ;;  %v48_v59 = vadd.f32 %v47_v51, %v46_v46  ;;  %v62_v60 = vadd.f32 %v61_v52, %v60_v48  ;;  %v82_v61 = vrot.slane %v81_v57, 4  ;;  %s658_s5 = scalar_lea.vmem %s536_s4, 32  ;;  %p663_p1 = scmp.lt.s32.totalorder %s536_s4, %s536_s4 }
  0x24   :  { %v56_v62 = vrot.slane %v55_v54, 2  ;;  %v70_v63 = vrot.slane %v69_v55, 2  ;;  %v76_v0 = vadd.f32 %v75_v56, %v74_v53  ;;  %v88_v1 = vsel %vm38_vm0, %v33_v41, 0.0  ;;  %p659_p0 = scmp.ne.s32.totalorder %s536_s4, %s658_s5  ;;  %p664_p2 = scmp.lt.s32.totalorder %s658_s5, %s658_s5 }
  0x25   :  { %v43_v2 = vadd.f32 %v42_v58, %v41_v50  ;;  %v49_v3 = vrot.slane %v48_v59, 2  ;;  %v63_v4 = vrot.slane %v62_v60, 2  ;;  %v83_v5 = vadd.f32 %v82_v61, %v81_v57 }
  0x26   :  { %v57_v6 = vadd.f32 %v56_v62, %v55_v54  ;;  %v71_v7 = vadd.f32 %v70_v63, %v69_v55  ;;  %v77_v8 = vrot.slane %v76_v0, 2  ;;  %v89_v9 = vrot.slane %v88_v1, 4  ;;  %p665_p3 = por %p664_p2, %p663_p1 }
  0x27   :  { %v44_v10 = vrot.slane %v43_v2, 1  ;;  %v50_v11 = vadd.f32 %v49_v3, %v48_v59  ;;  %v64_v12 = vadd.f32 %v63_v4, %v62_v60  ;;  %v84_v13 = vrot.slane %v83_v5, 2 }
  0x28   :  { %v58_v14 = vrot.slane %v57_v6, 1  ;;  %v72_v15 = vrot.slane %v71_v7, 1  ;;  %v78_v16 = vadd.f32 %v77_v8, %v76_v0  ;;  %v90_v17 = vadd.f32 %v89_v9, %v88_v1  ;;  %v543_v0 = vld [vmem:[%s829_s2] ss:$0 sm:$0xff]  ;;  %p666_p4 = pnand %p665_p3, %p659_p0 }
  0x29   :  { %v45_v18 = vadd.f32 %v44_v10, %v43_v2  ;;  %v51_v19 = vrot.slane %v50_v11, 1  ;;  %v65_v20 = vrot.slane %v64_v12, 1  ;;  %v85_v21 = vadd.f32 %v84_v13, %v83_v5 }
  0x2a   :  { %v59_v22 = vadd.f32 %v58_v14, %v57_v6  ;;  %v73_v23 = vadd.f32 %v72_v15, %v71_v7  ;;  %v79_v24 = vrot.slane %v78_v16, 1  ;;  %v91_v25 = vrot.slane %v90_v17, 2 }
  0x2b   :  { %v52_v26 = vadd.f32 %v51_v19, %v50_v11  ;;  %v66_v27 = vadd.f32 %v65_v20, %v64_v12  ;;  %v86_v28 = vrot.slane %v85_v21, 1  ;;  %v680_v29 = vmov 1983009808  }
  0x2c   :  { %v106_v30 = vunpack.c.l.s4 %v680_v29  ;;  %v80_v31 = vadd.f32 %v79_v24, %v78_v16  ;;  %v92_v32 = vadd.f32 %v91_v25, %v90_v17  ;;  %vm142_vm1 = vcmask 1041409  }
  0x2d   :  { %v87_v33 = vadd.f32 %v86_v28, %v85_v21  ;;  %v103_v37 = vcombine.low %v45_v18, %v52_v26  ;;  %v104_v38 = vcombine.low %v59_v22, %v66_v27  ;;  %vm144_vm2 = vcmask 1043459  }
  0x2e   :  { %v107_v34 = vunpack.c.0.s8 %v106_v30  ;;  %v93_v36 = vrot.slane %v92_v32, 1  ;;  %v120_v39 = vcombine.low %v73_v23, %v80_v31  ;;  %vm146_vm3 = vcmask 1045509  }
  0x2f   :  { %vm148_vm4 = vcmask 1047559   ;;  %vm527_vm5 = vcmask 140288  }
  0x30   :  { %v110_v40 = vsub.s32 %v107_v34, %v804_v35  ;;  %v94_v41 = vadd.f32 %v93_v36, %v92_v32 }
  0x32   :  { %v111_v42 = vrot.slane %v103_v37, %v110_v40  ;;  %v118_v43 = vrot.slane %v104_v38, %v110_v40  ;;  %v121_v44 = vcombine.low %v87_v33, %v94_v41  ;;  %v128_v45 = vrot.slane %v120_v39, %v110_v40 }
  0x34   :  { %v135_v46 = vrot.slane %v121_v44, %v110_v40  ;;  %v119_v47 = vcombine.low %v111_v42, %v118_v43 }
  0x36   :  { %v136_v48 = vcombine.low %v128_v45, %v135_v46 }
  0x38   :  { %v141_v49 = vrot.slane %v136_v48, 7 }
  0x3a   :  { %v143_v50 = vsel %vm142_vm1, %v141_v49, %v119_v47 }
  0x3b   :  { %v145_v51 = vsel %vm144_vm2, %v141_v49, %v143_v50 }
  0x3c   :  { %v147_v52 = vsel %vm146_vm3, %v141_v49, %v145_v51 }
  0x3d   :  { %v149_v53 = vsel %vm148_vm4, %v141_v49, %v147_v52 }
  0x3e   :  { %v157_v54 = vmul.f32 0.25, %v149_v53 }
  0x40   :  { %v166_v55 = vrot.slane %v157_v54, %v110_v40  ;;  %v159_v35 = vcombine.high %v157_v54, %v157_v54 }
  0x42   :  { %v174_v56 = vcombine.high %v166_v55, %v166_v55  ;;  %v173_v57 = vrot.slane %v159_v35, %v110_v40  ;;  %v180_v58 = vpack.c.bf16 %v166_v55, %v166_v55 }
  0x44   :  { %v181_v59 = vpack.c.bf16 %v174_v56, %v174_v56  ;;  %v175_v60 = vcombine.high %v173_v57, %v173_v57  ;;  %v182_v61 = vpack.c.bf16 %v173_v57, %v173_v57 }
  0x46   :  { %479 = vmatprep.mubr.bf16.mxu0 %v181_v59  ;;  %v183_v62 = vpack.c.bf16 %v175_v60, %v175_v60 }
  0x47   :  { %480 = vmatmul.mubr.bf16.vlgmr.msra.gmra.mxu0 %v180_v58 }
  0x48   :  { %519 = vmatprep.mubr.bf16.mxu1 %v183_v62 }
  0x49   :  { %520 = vmatmul.mubr.bf16.vlgmr.msra.gmra.mxu1 %v182_v61 }
 0x107   :  { %v592_v63 = vpop.f32.mrf.mxu0 }
 0x109   :  { %v593_v1 = vpop.f32.mrf.mxu0  ;;  %v614_v2 = vpop.f32.mrf.mxu1 }
 0x10a   :  { %v594_v3 = vadd.f32 %v593_v1, %v592_v63 }
 0x10b   :  { %v595_v4 = vpop.f32.mrf.mxu0  ;;  %v615_v5 = vpop.f32.mrf.mxu1 }
 0x10c   :  { %v482_v6 = vadd.f32 %v594_v3, %v543_v0  ;;  %v616_v7 = vadd.f32 %v615_v5, %v614_v2 }
 0x10d   :  { %v596_v8 = vpop.f32.mrf.mxu0  ;;  %v617_v9 = vpop.f32.mrf.mxu1 }
 0x10e   :  { %v522_v10 = vadd.f32 %v616_v7, %v482_v6 }
 0x10f   :  { %v618_v11 = vpop.f32.mrf.mxu1 }
 0x110   :  { %528 = vst.msk [vmem:[#allocation3] sm:$0x3] %vm527_vm5, %v522_v10 }
 0x111   :  { %669 = shalt.err (!%p666_p4)
}
 0x112   :  { %538 = dma.vmem_to_hbm [thread:$0]  %s536_s4, 32, %s830_s3, [#allocation4]  }
 0x113   :  { %678 = dma.done.wait [#allocation4], 32  }
 0x114   :  { %679 = vsyncadd [#allocation4], 4294967264 }
 0x115   :  { %542 = vsyncpa [#allocation4], 1 }

// kernel: _lambda_.21
= control target key start
LH: loop header
LB: loop body
LE: loop exit
PB: predicated region body
PF: predicated region fallthrough
CT: control target
= control target key end

     0   :  { %s3536_s21 = smov 0   ;;  %s3538_s22 = smov 0   ;;  %s4483_s0 = inlined_call_operand.vmem [shape: bf16[8,768], index: 0, kind: input, shape index: {}]   ;;  %s4484_s1 = inlined_call_operand.vmem [shape: bf16[768,512], index: 1, kind: input, shape index: {}]   ;;  %s4485_s2 = inlined_call_operand.vmem [shape: bf16[256,512], index: 2, kind: input, shape index: {}]   ;;  %s4486_s3 = inlined_call_operand.vmem [shape: f32[1,1024], index: 3, kind: input, shape index: {}]   ;;  %s4487_s4 = inlined_call_operand.vmem [shape: f32[1,1024], index: 4, kind: input, shape index: {}]   ;;  %s4488_s5 = inlined_call_operand.vmem [shape: f32[8,512], index: 5, kind: output, shape index: {0}]   ;;  %s4489_s6 = inlined_call_operand.vmem [shape: f32[8,512], index: 6, kind: output, shape index: {1}]  }
   0x1   :  { %s3540_s23 = smov 0  }
   0x2 LB: > { %s29_s24 = sadd.s32 1, %s3493_s22  ;;  %p2781_p0 = scmp.ge.s32.totalorder %s3497_s23, 1  ;;  %s3497_s23 = sphi %s3540_s23, %s17_s23   ;;  %s3493_s22 = sphi %s3538_s22, %s4491_s22   ;;  %s3489_s21 = sphi %s3536_s21, %s4490_s21  }
   0x3   : > { %p31_p1 = scmp.ge.s32.totalorder %s29_s24, 2  ;;  %p239_p2 = scmp.lt.s32.totalorder %s3497_s23, 3 }
   0x5   : > { %s4493_s24 = smov (%p31_p1, %s29_s24), 0  ;;  %p240_p3 = pnand %p2781_p0, %p239_p2 }
   0x6   : > { %p2782_p4 = scmp.ne.s32.totalorder (!%p240_p3), %s3489_s21, 0 }
   0x7   : > { %243 = sbr.rel (%p240_p3) target bundleno = 562 (0x232), region = 40 }
   0xc   : > { %305 = sbr.rel (%p2782_p4) target bundleno = 492 (0x1ec), region = 44 }
  0x11   : > { %v3081_v0 = vld [vmem:[%s4484_s1 + $0xe4] ss:$16 sps:$4 sm:$0xff]   ;;  %v3085_v2 = vld [vmem:[%s4484_s1 + $0xe0] ss:$16 sps:$4 sm:$0xff]   ;;  %v307_v48 = vld [vmem:[%s4483_s0 + $0x8] sm:$0xff]  ;;  %vm2327_vm0 = vcmask 1040384  }
  0x12   : > { %v3083_v1 = vld [vmem:[%s4484_s1 + $0x2e4] ss:$16 sps:$4 sm:$0xff]   ;;  %1482 = vmatprep.subr.bf16.mxu0 %v3081_v0  ;;  %v3086_v3 = vld [vmem:[%s4484_s1 + $0x2e0] ss:$16 sps:$4 sm:$0xff]   ;;  %v3709_v51 = vcombine.high %v307_v48, %v307_v48 }
  0x13   : > { %1523 = vmatprep.subr.bf16.mxu1 %v3083_v1  ;;  %v3087_v4 = vld [vmem:[%s4484_s1 + $0xc4] ss:$16 sps:$4 sm:$0xff]   ;;  %1483 = vmatpush1.bf16.msra.mxu0 %v3085_v2  ;;  %v3091_v6 = vld [vmem:[%s4484_s1 + $0xc0] ss:$16 sps:$4 sm:$0xff]  }
  0x14   : > { %1524 = vmatpush1.bf16.msra.mxu1 %v3086_v3  ;;  %v3089_v5 = vld [vmem:[%s4484_s1 + $0x2c4] ss:$16 sps:$4 sm:$0xff]   ;;  %1484 = vmatprep.subr.bf16.mxu0 %v3087_v4  ;;  %v3092_v7 = vld [vmem:[%s4484_s1 + $0x2c0] ss:$16 sps:$4 sm:$0xff]  }
  0x15   : > { %1525 = vmatprep.subr.bf16.mxu1 %v3089_v5  ;;  %v3093_v8 = vld [vmem:[%s4484_s1 + $0xa4] ss:$16 sps:$4 sm:$0xff]   ;;  %v3097_v10 = vld [vmem:[%s4484_s1 + $0xa0] ss:$16 sps:$4 sm:$0xff]   ;;  %1555 = vmatprep.mubr.bf16.mxu1 %v3709_v51  ;;  %v3186_v5 = vld [vmem:[%s4484_s1 + $0xec] ss:$16 sps:$4 sm:$0xff]  }
  0x16   : > { %v3095_v9 = vld [vmem:[%s4484_s1 + $0x2a4] ss:$16 sps:$4 sm:$0xff]   ;;  %v3098_v11 = vld [vmem:[%s4484_s1 + $0x2a0] ss:$16 sps:$4 sm:$0xff]  }
  0x17   : > { %1485 = vmatpush1.bf16.msra.mxu0 %v3091_v6  ;;  %v3099_v12 = vld [vmem:[%s4484_s1 + $0x84] ss:$16 sps:$4 sm:$0xff]   ;;  %v3103_v14 = vld [vmem:[%s4484_s1 + $0x80] ss:$16 sps:$4 sm:$0xff]  }
  0x18   : > { %1526 = vmatpush1.bf16.msra.mxu1 %v3092_v7  ;;  %1486 = vmatprep.subr.bf16.mxu0 %v3093_v8  ;;  %v3101_v13 = vld [vmem:[%s4484_s1 + $0x284] ss:$16 sps:$4 sm:$0xff]   ;;  %v3104_v15 = vld [vmem:[%s4484_s1 + $0x280] ss:$16 sps:$4 sm:$0xff]   ;;  %v3769_v7 = vcombine.low %v307_v48, %v307_v48 }
  0x19   : > { %1527 = vmatprep.subr.bf16.mxu1 %v3095_v9  ;;  %v3105_v16 = vld [vmem:[%s4484_s1 + $0x64] ss:$16 sps:$4 sm:$0xff]   ;;  %v3109_v18 = vld [vmem:[%s4484_s1 + $0x60] ss:$16 sps:$4 sm:$0xff]   ;;  %v3184_v9 = vld [vmem:[%s4484_s1 + $0xe8] ss:$16 sps:$4 sm:$0xff]  }
  0x1a   : > { %v3107_v17 = vld [vmem:[%s4484_s1 + $0x264] ss:$16 sps:$4 sm:$0xff]   ;;  %v3110_v19 = vld [vmem:[%s4484_s1 + $0x260] ss:$16 sps:$4 sm:$0xff]  }
  0x1b   : > { %1487 = vmatpush1.bf16.msra.mxu0 %v3097_v10  ;;  %v3111_v20 = vld [vmem:[%s4484_s1 + $0x44] ss:$16 sps:$4 sm:$0xff]   ;;  %v3115_v22 = vld [vmem:[%s4484_s1 + $0x40] ss:$16 sps:$4 sm:$0xff]  }
  0x1c   : > { %1528 = vmatpush1.bf16.msra.mxu1 %v3098_v11  ;;  %1488 = vmatprep.subr.bf16.mxu0 %v3099_v12  ;;  %v3113_v21 = vld [vmem:[%s4484_s1 + $0x244] ss:$16 sps:$4 sm:$0xff]   ;;  %v3116_v23 = vld [vmem:[%s4484_s1 + $0x240] ss:$16 sps:$4 sm:$0xff]   ;;  %v3192_v11 = vld [vmem:[%s4484_s1 + $0xcc] ss:$16 sps:$4 sm:$0xff]  }
  0x1d   : > { %1529 = vmatprep.subr.bf16.mxu1 %v3101_v13  ;;  %v3117_v24 = vld [vmem:[%s4484_s1 + $0x24] ss:$16 sps:$4 sm:$0xff]   ;;  %v3121_v26 = vld [vmem:[%s4484_s1 + $0x20] ss:$16 sps:$4 sm:$0xff]   ;;  %v3190_v13 = vld [vmem:[%s4484_s1 + $0xc8] ss:$16 sps:$4 sm:$0xff]  }
  0x1e   : > { %v3119_v25 = vld [vmem:[%s4484_s1 + $0x224] ss:$16 sps:$4 sm:$0xff]   ;;  %v3122_v27 = vld [vmem:[%s4484_s1 + $0x220] ss:$16 sps:$4 sm:$0xff]  }
  0x1f   : > { %1489 = vmatpush1.bf16.msra.mxu0 %v3103_v14  ;;  %v3123_v28 = vld [vmem:[%s4484_s1 + $0x4] ss:$16 sps:$4 sm:$0xff]   ;;  %v3127_v30 = vld [vmem:[%s4484_s1] ss:$16 sps:$4 sm:$0xff]  }
  0x20   : > { %1530 = vmatpush1.bf16.msra.mxu1 %v3104_v15  ;;  %1490 = vmatprep.subr.bf16.mxu0 %v3105_v16  ;;  %v3125_v29 = vld [vmem:[%s4484_s1 + $0x204] ss:$16 sps:$4 sm:$0xff]   ;;  %v3128_v31 = vld [vmem:[%s4484_s1 + $0x200] ss:$16 sps:$4 sm:$0xff]   ;;  %v3198_v15 = vld [vmem:[%s4484_s1 + $0xac] ss:$16 sps:$4 sm:$0xff]  }
  0x21   : > { %1531 = vmatprep.subr.bf16.mxu1 %v3107_v17  ;;  %v3129_v32 = vld [vmem:[%s4484_s1 + $0x1e4] ss:$16 sps:$4 sm:$0xff]   ;;  %v3133_v34 = vld [vmem:[%s4484_s1 + $0x1e0] ss:$16 sps:$4 sm:$0xff]   ;;  %v3196_v17 = vld [vmem:[%s4484_s1 + $0xa8] ss:$16 sps:$4 sm:$0xff]  }
  0x22   : > { %v3131_v33 = vld [vmem:[%s4484_s1 + $0x3e4] ss:$16 sps:$4 sm:$0xff]   ;;  %v3134_v35 = vld [vmem:[%s4484_s1 + $0x3e0] ss:$16 sps:$4 sm:$0xff]  }
  0x23   : > { %1491 = vmatpush1.bf16.msra.mxu0 %v3109_v18  ;;  %v3135_v36 = vld [vmem:[%s4484_s1 + $0x1c4] ss:$16 sps:$4 sm:$0xff]   ;;  %v3139_v38 = vld [vmem:[%s4484_s1 + $0x1c0] ss:$16 sps:$4 sm:$0xff]  }
  0x24   : > { %1532 = vmatpush1.bf16.msra.mxu1 %v3110_v19  ;;  %1492 = vmatprep.subr.bf16.mxu0 %v3111_v20  ;;  %v3137_v37 = vld [vmem:[%s4484_s1 + $0x3c4] ss:$16 sps:$4 sm:$0xff]   ;;  %v3140_v39 = vld [vmem:[%s4484_s1 + $0x3c0] ss:$16 sps:$4 sm:$0xff]   ;;  %v3204_v19 = vld [vmem:[%s4484_s1 + $0x8c] ss:$16 sps:$4 sm:$0xff]  }
  0x25   : > { %1533 = vmatprep.subr.bf16.mxu1 %v3113_v21  ;;  %v3141_v40 = vld [vmem:[%s4484_s1 + $0x1a4] ss:$16 sps:$4 sm:$0xff]   ;;  %v3145_v42 = vld [vmem:[%s4484_s1 + $0x1a0] ss:$16 sps:$4 sm:$0xff]   ;;  %v3202_v21 = vld [vmem:[%s4484_s1 + $0x88] ss:$16 sps:$4 sm:$0xff]  }
  0x26   : > { %v3143_v41 = vld [vmem:[%s4484_s1 + $0x3a4] ss:$16 sps:$4 sm:$0xff]   ;;  %v3146_v43 = vld [vmem:[%s4484_s1 + $0x3a0] ss:$16 sps:$4 sm:$0xff]  }
  0x27   : > { %1493 = vmatpush1.bf16.msra.mxu0 %v3115_v22  ;;  %v3147_v44 = vld [vmem:[%s4484_s1 + $0x184] ss:$16 sps:$4 sm:$0xff]   ;;  %v3151_v49 = vld [vmem:[%s4484_s1 + $0x180] ss:$16 sps:$4 sm:$0xff]  }
  0x28   : > { %1534 = vmatpush1.bf16.msra.mxu1 %v3116_v23  ;;  %1494 = vmatprep.subr.bf16.mxu0 %v3117_v24  ;;  %v3149_v45 = vld [vmem:[%s4484_s1 + $0x384] ss:$16 sps:$4 sm:$0xff]   ;;  %v3152_v50 = vld [vmem:[%s4484_s1 + $0x380] ss:$16 sps:$4 sm:$0xff]   ;;  %v3210_v23 = vld [vmem:[%s4484_s1 + $0x6c] ss:$16 sps:$4 sm:$0xff]  }
  0x29   : > { %1535 = vmatprep.subr.bf16.mxu1 %v3119_v25  ;;  %v306_v46 = vld [vmem:[%s4483_s0] sm:$0xff]  ;;  %v3208_v25 = vld [vmem:[%s4484_s1 + $0x68] ss:$16 sps:$4 sm:$0xff]  }
  0x2a   : > { %v3698_v47 = vcombine.high %v306_v46, %v306_v46  ;;  %v3153_v52 = vld [vmem:[%s4484_s1 + $0x164] ss:$16 sps:$4 sm:$0xff]   ;;  %v3157_v54 = vld [vmem:[%s4484_s1 + $0x160] ss:$16 sps:$4 sm:$0xff]   ;;  %v3767_v6 = vcombine.low %v306_v46, %v306_v46 }
  0x2b   : > { %1495 = vmatpush1.bf16.msra.mxu0 %v3121_v26  ;;  %v3155_v53 = vld [vmem:[%s4484_s1 + $0x364] ss:$16 sps:$4 sm:$0xff]   ;;  %v3158_v55 = vld [vmem:[%s4484_s1 + $0x360] ss:$16 sps:$4 sm:$0xff]  }
  0x2c   : > { %1536 = vmatpush1.bf16.msra.mxu1 %v3122_v27  ;;  %1496 = vmatprep.subr.bf16.mxu0 %v3123_v28  ;;  %v3159_v56 = vld [vmem:[%s4484_s1 + $0x144] ss:$16 sps:$4 sm:$0xff]   ;;  %v3163_v58 = vld [vmem:[%s4484_s1 + $0x140] ss:$16 sps:$4 sm:$0xff]   ;;  %v3216_v27 = vld [vmem:[%s4484_s1 + $0x4c] ss:$16 sps:$4 sm:$0xff]  }
  0x2d   : > { %1537 = vmatprep.subr.bf16.mxu1 %v3125_v29  ;;  %1514 = vmatprep.mubr.bf16.mxu0 %v3698_v47  ;;  %v3161_v57 = vld [vmem:[%s4484_s1 + $0x344] ss:$16 sps:$4 sm:$0xff]   ;;  %v3164_v59 = vld [vmem:[%s4484_s1 + $0x340] ss:$16 sps:$4 sm:$0xff]   ;;  %v3214_v29 = vld [vmem:[%s4484_s1 + $0x48] ss:$16 sps:$4 sm:$0xff]  }
  0x2e   : > { %v3165_v60 = vld [vmem:[%s4484_s1 + $0x124] ss:$16 sps:$4 sm:$0xff]   ;;  %v3169_v62 = vld [vmem:[%s4484_s1 + $0x120] ss:$16 sps:$4 sm:$0xff]  }
  0x2f   : > { %1497 = vmatpush1.bf16.msra.mxu0 %v3127_v30  ;;  %v3167_v61 = vld [vmem:[%s4484_s1 + $0x324] ss:$16 sps:$4 sm:$0xff]   ;;  %v3170_v63 = vld [vmem:[%s4484_s1 + $0x320] ss:$16 sps:$4 sm:$0xff]  }
  0x30   : > { %1538 = vmatpush1.bf16.msra.mxu1 %v3128_v31  ;;  %1498 = vmatprep.subr.bf16.mxu0 %v3129_v32  ;;  %v3171_v0 = vld [vmem:[%s4484_s1 + $0x104] ss:$16 sps:$4 sm:$0xff]   ;;  %v3175_v2 = vld [vmem:[%s4484_s1 + $0x100] ss:$16 sps:$4 sm:$0xff]   ;;  %v3222_v31 = vld [vmem:[%s4484_s1 + $0x2c] ss:$16 sps:$4 sm:$0xff]  }
  0x31   : > { %1539 = vmatprep.subr.bf16.mxu1 %v3131_v33  ;;  %v3173_v1 = vld [vmem:[%s4484_s1 + $0x304] ss:$16 sps:$4 sm:$0xff]   ;;  %v3176_v3 = vld [vmem:[%s4484_s1 + $0x300] ss:$16 sps:$4 sm:$0xff]  }
  0x32   : > { %v3183_v4 = vld [vmem:[%s4484_s1 + $0x4e4] ss:$16 sps:$4 sm:$0xff]   ;;  %v3181_v8 = vld [vmem:[%s4484_s1 + $0x4e0] ss:$16 sps:$4 sm:$0xff]  }
  0x33   : > { %1499 = vmatpush2.bf16.msra.mxu0 %v3133_v34  ;;  %v3189_v10 = vld [vmem:[%s4484_s1 + $0x4c4] ss:$16 sps:$4 sm:$0xff]   ;;  %v3187_v12 = vld [vmem:[%s4484_s1 + $0x4c0] ss:$16 sps:$4 sm:$0xff]  }
  0x34   : > { %1540 = vmatpush2.bf16.msra.mxu1 %v3134_v35  ;;  %1500 = vmatprep.subr.bf16.mxu0 %v3135_v36  ;;  %v3195_v14 = vld [vmem:[%s4484_s1 + $0x4a4] ss:$16 sps:$4 sm:$0xff]   ;;  %v3193_v16 = vld [vmem:[%s4484_s1 + $0x4a0] ss:$16 sps:$4 sm:$0xff]   ;;  %v3220_v35 = vld [vmem:[%s4484_s1 + $0x28] ss:$16 sps:$4 sm:$0xff]  }
  0x35   : > { %1541 = vmatprep.subr.bf16.mxu1 %v3137_v37  ;;  %v3201_v18 = vld [vmem:[%s4484_s1 + $0x484] ss:$16 sps:$4 sm:$0xff]   ;;  %v3199_v20 = vld [vmem:[%s4484_s1 + $0x480] ss:$16 sps:$4 sm:$0xff]   ;;  %v3228_v37 = vld [vmem:[%s4484_s1 + $0xc] ss:$16 sps:$4 sm:$0xff]  }
  0x36   : > { %v3207_v22 = vld [vmem:[%s4484_s1 + $0x464] ss:$16 sps:$4 sm:$0xff]   ;;  %v3205_v24 = vld [vmem:[%s4484_s1 + $0x460] ss:$16 sps:$4 sm:$0xff]  }
  0x37   : > { %1501 = vmatpush2.bf16.msra.mxu0 %v3139_v38  ;;  %v3213_v26 = vld [vmem:[%s4484_s1 + $0x444] ss:$16 sps:$4 sm:$0xff]   ;;  %v3211_v28 = vld [vmem:[%s4484_s1 + $0x440] ss:$16 sps:$4 sm:$0xff]  }
  0x38   : > { %1542 = vmatpush2.bf16.msra.mxu1 %v3140_v39  ;;  %1502 = vmatprep.subr.bf16.mxu0 %v3141_v40  ;;  %v3219_v30 = vld [vmem:[%s4484_s1 + $0x424] ss:$16 sps:$4 sm:$0xff]   ;;  %v3217_v33 = vld [vmem:[%s4484_s1 + $0x420] ss:$16 sps:$4 sm:$0xff]   ;;  %v3226_v39 = vld [vmem:[%s4484_s1 + $0x8] ss:$16 sps:$4 sm:$0xff]  }
  0x39   : > { %1543 = vmatprep.subr.bf16.mxu1 %v3143_v41  ;;  %v3849_v32 = vld [vmem:[%s4483_s0 + $0x10] sm:$0xff]  ;;  %v3234_v41 = vld [vmem:[%s4484_s1 + $0x1ec] ss:$16 sps:$4 sm:$0xff]  }
  0x3a   : > { %v3856_v34 = vcombine.high %v3849_v32, %v3849_v32  ;;  %v3225_v36 = vld [vmem:[%s4484_s1 + $0x404] ss:$16 sps:$4 sm:$0xff]   ;;  %v3223_v38 = vld [vmem:[%s4484_s1 + $0x400] ss:$16 sps:$4 sm:$0xff]  }
  0x3b   : > { %1503 = vmatpush2.bf16.msra.mxu0 %v3145_v42  ;;  %v3231_v40 = vld [vmem:[%s4484_s1 + $0x5e4] ss:$16 sps:$4 sm:$0xff]   ;;  %v3229_v42 = vld [vmem:[%s4484_s1 + $0x5e0] ss:$16 sps:$4 sm:$0xff]  }
  0x3c   : > { %1544 = vmatpush2.bf16.msra.mxu1 %v3146_v43  ;;  %1504 = vmatprep.subr.bf16.mxu0 %v3147_v44  ;;  %v3232_v43 = vld [vmem:[%s4484_s1 + $0x1e8] ss:$16 sps:$4 sm:$0xff]   ;;  %v3237_v44 = vld [vmem:[%s4484_s1 + $0x5c4] ss:$16 sps:$4 sm:$0xff]   ;;  %v3235_v46 = vld [vmem:[%s4484_s1 + $0x5c0] ss:$16 sps:$4 sm:$0xff]  }
  0x3d   : > { %1545 = vmatprep.subr.bf16.mxu1 %v3149_v45  ;;  %v3240_v45 = vld [vmem:[%s4484_s1 + $0x1cc] ss:$16 sps:$4 sm:$0xff]   ;;  %v3243_v48 = vld [vmem:[%s4484_s1 + $0x5a4] ss:$16 sps:$4 sm:$0xff]  }
  0x3f   : > { %1505 = vmatpush2.bf16.msra.mxu0 %v3151_v49  ;;  %v3246_v49 = vld [vmem:[%s4484_s1 + $0x1ac] ss:$16 sps:$4 sm:$0xff]  }
  0x40   : > { %1546 = vmatpush2.bf16.msra.mxu1 %v3152_v50  ;;  %1506 = vmatprep.subr.bf16.mxu0 %v3153_v52  ;;  %v3241_v50 = vld [vmem:[%s4484_s1 + $0x5a0] ss:$16 sps:$4 sm:$0xff]   ;;  %v3244_v52 = vld [vmem:[%s4484_s1 + $0x1a8] ss:$16 sps:$4 sm:$0xff]  }
  0x41   : > { %1547 = vmatprep.subr.bf16.mxu1 %v3155_v53  ;;  %v3249_v53 = vld [vmem:[%s4484_s1 + $0x584] ss:$16 sps:$4 sm:$0xff]  }
  0x43   : > { %1507 = vmatpush2.bf16.msra.mxu0 %v3157_v54  ;;  %v3252_v54 = vld [vmem:[%s4484_s1 + $0x18c] ss:$16 sps:$4 sm:$0xff]  }
  0x44   : > { %1548 = vmatpush2.bf16.msra.mxu1 %v3158_v55  ;;  %1508 = vmatprep.subr.bf16.mxu0 %v3159_v56  ;;  %v3247_v55 = vld [vmem:[%s4484_s1 + $0x580] ss:$16 sps:$4 sm:$0xff]   ;;  %v3250_v56 = vld [vmem:[%s4484_s1 + $0x188] ss:$16 sps:$4 sm:$0xff]  }
  0x45   : > { %1549 = vmatprep.subr.bf16.mxu1 %v3161_v57  ;;  %v3255_v57 = vld [vmem:[%s4484_s1 + $0x564] ss:$16 sps:$4 sm:$0xff]  }
  0x47   : > { %1509 = vmatpush2.bf16.msra.mxu0 %v3163_v58  ;;  %v3258_v58 = vld [vmem:[%s4484_s1 + $0x16c] ss:$16 sps:$4 sm:$0xff]  }
  0x48   : > { %1550 = vmatpush2.bf16.msra.mxu1 %v3164_v59  ;;  %1510 = vmatprep.subr.bf16.mxu0 %v3165_v60  ;;  %v3253_v59 = vld [vmem:[%s4484_s1 + $0x560] ss:$16 sps:$4 sm:$0xff]   ;;  %v3256_v60 = vld [vmem:[%s4484_s1 + $0x168] ss:$16 sps:$4 sm:$0xff]  }
  0x49   : > { %1551 = vmatprep.subr.bf16.mxu1 %v3167_v61  ;;  %v3261_v61 = vld [vmem:[%s4484_s1 + $0x544] ss:$16 sps:$4 sm:$0xff]  }
  0x4b   : > { %1511 = vmatpush2.bf16.msra.mxu0 %v3169_v62  ;;  %v3264_v62 = vld [vmem:[%s4484_s1 + $0x14c] ss:$16 sps:$4 sm:$0xff]  }
  0x4c   : > { %1552 = vmatpush2.bf16.msra.mxu1 %v3170_v63  ;;  %1512 = vmatprep.subr.bf16.mxu0 %v3171_v0  ;;  %v3259_v63 = vld [vmem:[%s4484_s1 + $0x540] ss:$16 sps:$4 sm:$0xff]   ;;  %v3262_v0 = vld [vmem:[%s4484_s1 + $0x148] ss:$16 sps:$4 sm:$0xff]  }
  0x4d   : > { %1553 = vmatprep.subr.bf16.mxu1 %v3173_v1  ;;  %v3267_v1 = vld [vmem:[%s4484_s1 + $0x524] ss:$16 sps:$4 sm:$0xff]  }
  0x4f   : > { %1513 = vmatpush2.bf16.msra.mxu0 %v3175_v2  ;;  %v3270_v2 = vld [vmem:[%s4484_s1 + $0x12c] ss:$16 sps:$4 sm:$0xff]  }
  0x50   : > { %1554 = vmatpush2.bf16.msra.mxu1 %v3176_v3  ;;  %1564 = vmatprep.subr.bf16.mxu0 %v3183_v4  ;;  %v3265_v3 = vld [vmem:[%s4484_s1 + $0x520] ss:$16 sps:$4 sm:$0xff]   ;;  %v3268_v4 = vld [vmem:[%s4484_s1 + $0x128] ss:$16 sps:$4 sm:$0xff]  }
  0x51   : > { %1605 = vmatprep.subr.bf16.mxu1 %v3186_v5  ;;  %v3273_v5 = vld [vmem:[%s4484_s1 + $0x504] ss:$16 sps:$4 sm:$0xff]  }
  0x52   : > { %1515 = vmatmul.mubr.bf16.vlgmr.msra.gmra.mxu0 %v3767_v6 }
  0x53   : > { %1556 = vmatmul.mubr.bf16.vlgmr.msra.gmra.mxu1 %v3769_v7  ;;  %1565 = vmatpush1.bf16.msra.mxu0 %v3181_v8  ;;  %v3276_v8 = vld [vmem:[%s4484_s1 + $0x10c] ss:$16 sps:$4 sm:$0xff]  }
  0x54   : > { %1606 = vmatpush1.bf16.msra.mxu1 %v3184_v9  ;;  %1566 = vmatprep.subr.bf16.mxu0 %v3189_v10  ;;  %v3271_v9 = vld [vmem:[%s4484_s1 + $0x500] ss:$16 sps:$4 sm:$0xff]   ;;  %v3274_v10 = vld [vmem:[%s4484_s1 + $0x108] ss:$16 sps:$4 sm:$0xff]  }
  0x55   : > { %1607 = vmatprep.subr.bf16.mxu1 %v3192_v11  ;;  %1637 = vmatprep.mubr.bf16.mxu1 %v3698_v47  ;;  %v3238_v47 = vld [vmem:[%s4484_s1 + $0x1c8] ss:$16 sps:$4 sm:$0xff]   ;;  %v3281_v11 = vld [vmem:[%s4484_s1 + $0x2ec] ss:$16 sps:$4 sm:$0xff]  }
  0x56   : > { %1596 = vmatprep.mubr.bf16.mxu0 %v3856_v34 }
  0x57   : > { %1567 = vmatpush1.bf16.msra.mxu0 %v3187_v12  ;;  %v3284_v12 = vld [vmem:[%s4484_s1 + $0x4ec] ss:$16 sps:$4 sm:$0xff]  }
  0x58   : > { %1608 = vmatpush1.bf16.msra.mxu1 %v3190_v13  ;;  %1568 = vmatprep.subr.bf16.mxu0 %v3195_v14  ;;  %v3978_v13 = vcombine.low %v3849_v32, %v3849_v32  ;;  %v3279_v14 = vld [vmem:[%s4484_s1 + $0x2e8] ss:$16 sps:$4 sm:$0xff]  }
  0x59   : > { %1609 = vmatprep.subr.bf16.mxu1 %v3198_v15  ;;  %v3282_v15 = vld [vmem:[%s4484_s1 + $0x4e8] ss:$16 sps:$4 sm:$0xff]  }
  0x5a   : > { %v3309_v32 = vld [vmem:[%s4484_s1 + $0x248] ss:$16 sps:$4 sm:$0xff]  }
  0x5b   : > { %1569 = vmatpush1.bf16.msra.mxu0 %v3193_v16  ;;  %v3287_v16 = vld [vmem:[%s4484_s1 + $0x2cc] ss:$16 sps:$4 sm:$0xff]  }
  0x5c   : > { %1610 = vmatpush1.bf16.msra.mxu1 %v3196_v17  ;;  %1570 = vmatprep.subr.bf16.mxu0 %v3201_v18  ;;  %v3290_v17 = vld [vmem:[%s4484_s1 + $0x4cc] ss:$16 sps:$4 sm:$0xff]   ;;  %v3285_v18 = vld [vmem:[%s4484_s1 + $0x2c8] ss:$16 sps:$4 sm:$0xff]  }
  0x5d   : > { %1611 = vmatprep.subr.bf16.mxu1 %v3204_v19  ;;  %v3288_v19 = vld [vmem:[%s4484_s1 + $0x4c8] ss:$16 sps:$4 sm:$0xff]  }
  0x5f   : > { %1571 = vmatpush1.bf16.msra.mxu0 %v3199_v20  ;;  %v3293_v20 = vld [vmem:[%s4484_s1 + $0x2ac] ss:$16 sps:$4 sm:$0xff]  }
  0x60   : > { %1612 = vmatpush1.bf16.msra.mxu1 %v3202_v21  ;;  %1572 = vmatprep.subr.bf16.mxu0 %v3207_v22  ;;  %v3291_v21 = vld [vmem:[%s4484_s1 + $0x2a8] ss:$16 sps:$4 sm:$0xff]  }
  0x61   : > { %1613 = vmatprep.subr.bf16.mxu1 %v3210_v23  ;;  %v3294_v22 = vld [vmem:[%s4484_s1 + $0x4a8] ss:$16 sps:$4 sm:$0xff]   ;;  %v3299_v23 = vld [vmem:[%s4484_s1 + $0x28c] ss:$16 sps:$4 sm:$0xff]  }
  0x63   : > { %1573 = vmatpush1.bf16.msra.mxu0 %v3205_v24  ;;  %v3297_v24 = vld [vmem:[%s4484_s1 + $0x288] ss:$16 sps:$4 sm:$0xff]  }
  0x64   : > { %1614 = vmatpush1.bf16.msra.mxu1 %v3208_v25  ;;  %1574 = vmatprep.subr.bf16.mxu0 %v3213_v26  ;;  %v3300_v25 = vld [vmem:[%s4484_s1 + $0x488] ss:$16 sps:$4 sm:$0xff]   ;;  %v3305_v26 = vld [vmem:[%s4484_s1 + $0x26c] ss:$16 sps:$4 sm:$0xff]  }
  0x65   : > { %1615 = vmatprep.subr.bf16.mxu1 %v3216_v27  ;;  %v3308_v27 = vld [vmem:[%s4484_s1 + $0x46c] ss:$16 sps:$4 sm:$0xff]  }
  0x67   : > { %1575 = vmatpush1.bf16.msra.mxu0 %v3211_v28  ;;  %v3303_v28 = vld [vmem:[%s4484_s1 + $0x268] ss:$16 sps:$4 sm:$0xff]  }
  0x68   : > { %1616 = vmatpush1.bf16.msra.mxu1 %v3214_v29  ;;  %1576 = vmatprep.subr.bf16.mxu0 %v3219_v30  ;;  %v3306_v29 = vld [vmem:[%s4484_s1 + $0x468] ss:$16 sps:$4 sm:$0xff]   ;;  %v3311_v30 = vld [vmem:[%s4484_s1 + $0x24c] ss:$16 sps:$4 sm:$0xff]  }
  0x69   : > { %1617 = vmatprep.subr.bf16.mxu1 %v3222_v31  ;;  %v3314_v31 = vld [vmem:[%s4484_s1 + $0x44c] ss:$16 sps:$4 sm:$0xff]  }
  0x6b   : > { %1577 = vmatpush1.bf16.msra.mxu0 %v3217_v33  ;;  %v3312_v33 = vld [vmem:[%s4484_s1 + $0x448] ss:$16 sps:$4 sm:$0xff]  }
  0x6c   : > { %1618 = vmatpush1.bf16.msra.mxu1 %v3220_v35  ;;  %1578 = vmatprep.subr.bf16.mxu0 %v3225_v36  ;;  %v3320_v35 = vld [vmem:[%s4484_s1 + $0x42c] ss:$16 sps:$4 sm:$0xff]   ;;  %v3315_v36 = vld [vmem:[%s4484_s1 + $0x228] ss:$16 sps:$4 sm:$0xff]  }
  0x6d   : > { %1619 = vmatprep.subr.bf16.mxu1 %v3228_v37  ;;  %v3318_v37 = vld [vmem:[%s4484_s1 + $0x428] ss:$16 sps:$4 sm:$0xff]  }
  0x6f   : > { %1579 = vmatpush1.bf16.msra.mxu0 %v3223_v38  ;;  %v3323_v38 = vld [vmem:[%s4484_s1 + $0x20c] ss:$16 sps:$4 sm:$0xff]  }
  0x70   : > { %1620 = vmatpush1.bf16.msra.mxu1 %v3226_v39  ;;  %1580 = vmatprep.subr.bf16.mxu0 %v3231_v40  ;;  %v3326_v39 = vld [vmem:[%s4484_s1 + $0x40c] ss:$16 sps:$4 sm:$0xff]   ;;  %v3321_v40 = vld [vmem:[%s4484_s1 + $0x208] ss:$16 sps:$4 sm:$0xff]  }
  0x71   : > { %1621 = vmatprep.subr.bf16.mxu1 %v3234_v41  ;;  %v3324_v41 = vld [vmem:[%s4484_s1 + $0x408] ss:$16 sps:$4 sm:$0xff]  }
  0x73   : > { %1581 = vmatpush2.bf16.msra.mxu0 %v3229_v42  ;;  %v3329_v42 = vld [vmem:[%s4484_s1 + $0x3ec] ss:$16 sps:$4 sm:$0xff]  }
  0x74   : > { %1622 = vmatpush2.bf16.msra.mxu1 %v3232_v43  ;;  %1582 = vmatprep.subr.bf16.mxu0 %v3237_v44  ;;  %v3332_v43 = vld [vmem:[%s4484_s1 + $0x5ec] ss:$16 sps:$4 sm:$0xff]   ;;  %v3327_v44 = vld [vmem:[%s4484_s1 + $0x3e8] ss:$16 sps:$4 sm:$0xff]  }
  0x75   : > { %1623 = vmatprep.subr.bf16.mxu1 %v3240_v45  ;;  %v3330_v45 = vld [vmem:[%s4484_s1 + $0x5e8] ss:$16 sps:$4 sm:$0xff]  }
  0x77   : > { %1583 = vmatpush2.bf16.msra.mxu0 %v3235_v46  ;;  %v3335_v46 = vld [vmem:[%s4484_s1 + $0x3cc] ss:$16 sps:$4 sm:$0xff]  }
  0x78   : > { %1624 = vmatpush2.bf16.msra.mxu1 %v3238_v47  ;;  %1584 = vmatprep.subr.bf16.mxu0 %v3243_v48  ;;  %v3338_v47 = vld [vmem:[%s4484_s1 + $0x5cc] ss:$16 sps:$4 sm:$0xff]   ;;  %v3333_v48 = vld [vmem:[%s4484_s1 + $0x3c8] ss:$16 sps:$4 sm:$0xff]  }
  0x79   : > { %1625 = vmatprep.subr.bf16.mxu1 %v3246_v49  ;;  %v3336_v49 = vld [vmem:[%s4484_s1 + $0x5c8] ss:$16 sps:$4 sm:$0xff]  }
  0x7b   : > { %1585 = vmatpush2.bf16.msra.mxu0 %v3241_v50  ;;  %v3341_v50 = vld [vmem:[%s4484_s1 + $0x3ac] ss:$16 sps:$4 sm:$0xff]  }
  0x7c   : > { %1626 = vmatpush2.bf16.msra.mxu1 %v3244_v52  ;;  %1586 = vmatprep.subr.bf16.mxu0 %v3249_v53  ;;  %v3344_v52 = vld [vmem:[%s4484_s1 + $0x5ac] ss:$16 sps:$4 sm:$0xff]   ;;  %v3339_v53 = vld [vmem:[%s4484_s1 + $0x3a8] ss:$16 sps:$4 sm:$0xff]  }
  0x7d   : > { %1627 = vmatprep.subr.bf16.mxu1 %v3252_v54  ;;  %v3342_v54 = vld [vmem:[%s4484_s1 + $0x5a8] ss:$16 sps:$4 sm:$0xff]  }
  0x7f   : > { %1587 = vmatpush2.bf16.msra.mxu0 %v3247_v55  ;;  %v3347_v55 = vld [vmem:[%s4484_s1 + $0x38c] ss:$16 sps:$4 sm:$0xff]  }
  0x80   : > { %1628 = vmatpush2.bf16.msra.mxu1 %v3250_v56  ;;  %1588 = vmatprep.subr.bf16.mxu0 %v3255_v57  ;;  %v3350_v56 = vld [vmem:[%s4484_s1 + $0x58c] ss:$16 sps:$4 sm:$0xff]   ;;  %v3345_v57 = vld [vmem:[%s4484_s1 + $0x388] ss:$16 sps:$4 sm:$0xff]  }
  0x81   : > { %1629 = vmatprep.subr.bf16.mxu1 %v3258_v58  ;;  %v3348_v58 = vld [vmem:[%s4484_s1 + $0x588] ss:$16 sps:$4 sm:$0xff]  }
  0x83   : > { %1589 = vmatpush2.bf16.msra.mxu0 %v3253_v59  ;;  %v3353_v59 = vld [vmem:[%s4484_s1 + $0x36c] ss:$16 sps:$4 sm:$0xff]  }
  0x84   : > { %1630 = vmatpush2.bf16.msra.mxu1 %v3256_v60  ;;  %1590 = vmatprep.subr.bf16.mxu0 %v3261_v61  ;;  %v3356_v60 = vld [vmem:[%s4484_s1 + $0x56c] ss:$16 sps:$4 sm:$0xff]   ;;  %v3351_v61 = vld [vmem:[%s4484_s1 + $0x368] ss:$16 sps:$4 sm:$0xff]  }
  0x85   : > { %1631 = vmatprep.subr.bf16.mxu1 %v3264_v62  ;;  %v3354_v62 = vld [vmem:[%s4484_s1 + $0x568] ss:$16 sps:$4 sm:$0xff]  }
  0x87   : > { %1591 = vmatpush2.bf16.msra.mxu0 %v3259_v63  ;;  %v3359_v63 = vld [vmem:[%s4484_s1 + $0x34c] ss:$16 sps:$4 sm:$0xff]  }
  0x88   : > { %1632 = vmatpush2.bf16.msra.mxu1 %v3262_v0  ;;  %1592 = vmatprep.subr.bf16.mxu0 %v3267_v1  ;;  %v3362_v0 = vld [vmem:[%s4484_s1 + $0x54c] ss:$16 sps:$4 sm:$0xff]   ;;  %v3357_v1 = vld [vmem:[%s4484_s1 + $0x348] ss:$16 sps:$4 sm:$0xff]  }
  0x89   : > { %1633 = vmatprep.subr.bf16.mxu1 %v3270_v2  ;;  %v3360_v2 = vld [vmem:[%s4484_s1 + $0x548] ss:$16 sps:$4 sm:$0xff]  }
  0x8b   : > { %1593 = vmatpush2.bf16.msra.mxu0 %v3265_v3  ;;  %v3365_v3 = vld [vmem:[%s4484_s1 + $0x32c] ss:$16 sps:$4 sm:$0xff]  }
  0x8c   : > { %1634 = vmatpush2.bf16.msra.mxu1 %v3268_v4  ;;  %1594 = vmatprep.subr.bf16.mxu0 %v3273_v5  ;;  %v3368_v4 = vld [vmem:[%s4484_s1 + $0x52c] ss:$16 sps:$4 sm:$0xff]   ;;  %v3363_v5 = vld [vmem:[%s4484_s1 + $0x328] ss:$16 sps:$4 sm:$0xff]  }
  0x8d   : > { %1635 = vmatprep.subr.bf16.mxu1 %v3276_v8  ;;  %v3366_v8 = vld [vmem:[%s4484_s1 + $0x528] ss:$16 sps:$4 sm:$0xff]  }
  0x8f   : > { %1595 = vmatpush2.bf16.msra.mxu0 %v3271_v9  ;;  %v3371_v9 = vld [vmem:[%s4484_s1 + $0x30c] ss:$16 sps:$4 sm:$0xff]  }
  0x90   : > { %1636 = vmatpush2.bf16.msra.mxu1 %v3274_v10  ;;  %1646 = vmatprep.subr.bf16.mxu0 %v3281_v11  ;;  %v3374_v10 = vld [vmem:[%s4484_s1 + $0x50c] ss:$16 sps:$4 sm:$0xff]   ;;  %v3369_v11 = vld [vmem:[%s4484_s1 + $0x308] ss:$16 sps:$4 sm:$0xff]  }
  0x91   : > { %1687 = vmatprep.subr.bf16.mxu1 %v3284_v12  ;;  %v3372_v12 = vld [vmem:[%s4484_s1 + $0x508] ss:$16 sps:$4 sm:$0xff]  }
  0x92   : > { %1597 = vmatmul.mubr.bf16.vlgmr.msra.gmra.mxu0 %v3978_v13 }
  0x93   : > { %1638 = vmatmul.mubr.bf16.vlgmr.msra.gmra.mxu1 %v3767_v6  ;;  %1647 = vmatpush1.bf16.msra.mxu0 %v3279_v14  ;;  %v3296_v6 = vld [vmem:[%s4484_s1 + $0x4ac] ss:$16 sps:$4 sm:$0xff]   ;;  %v3377_v14 = vld [vmem:[%s4485_s2 + $0xe4] ss:$16 sps:$4 sm:$0xff]  }
  0x94   : > { %1688 = vmatpush1.bf16.msra.mxu1 %v3282_v15  ;;  %1648 = vmatprep.subr.bf16.mxu0 %v3287_v16  ;;  %v3380_v15 = vld [vmem:[%s4485_s2 + $0xec] ss:$16 sps:$4 sm:$0xff]   ;;  %v4179_v16 = vld [vmem:[%s4483_s0] sm:$0xff] }
  0x95   : > { %1689 = vmatprep.subr.bf16.mxu1 %v3290_v17  ;;  %1678 = vmatprep.mubr.bf16.mxu0 %v3709_v51  ;;  %v3302_v51 = vld [vmem:[%s4484_s1 + $0x48c] ss:$16 sps:$4 sm:$0xff]   ;;  %v3375_v17 = vld [vmem:[%s4485_s2 + $0xe0] ss:$16 sps:$4 sm:$0xff]  }
  0x96   : > { %1719 = vmatprep.mubr.bf16.mxu1 %v3856_v34  ;;  %v3317_v34 = vld [vmem:[%s4484_s1 + $0x22c] ss:$16 sps:$4 sm:$0xff]  }
  0x97   : > { %1649 = vmatpush1.bf16.msra.mxu0 %v3285_v18  ;;  %v3378_v18 = vld [vmem:[%s4485_s2 + $0xe8] ss:$16 sps:$4 sm:$0xff]  }
  0x98   : > { %1690 = vmatpush1.bf16.msra.mxu1 %v3288_v19  ;;  %1650 = vmatprep.subr.bf16.mxu0 %v3293_v20  ;;  %v3383_v19 = vld [vmem:[%s4485_s2 + $0xc4] ss:$16 sps:$4 sm:$0xff]   ;;  %v3386_v20 = vld [vmem:[%s4485_s2 + $0xcc] ss:$16 sps:$4 sm:$0xff]  }
  0x99   : > { %1691 = vmatprep.subr.bf16.mxu1 %v3296_v6  ;;  %v2982_v6 = vcombine.high %v4179_v16, %v4179_v16 }
  0x9b   : > { %1651 = vmatpush1.bf16.msra.mxu0 %v3291_v21  ;;  %v3381_v21 = vld [vmem:[%s4485_s2 + $0xc0] ss:$16 sps:$4 sm:$0xff]  }
  0x9c   : > { %1692 = vmatpush1.bf16.msra.mxu1 %v3294_v22  ;;  %1652 = vmatprep.subr.bf16.mxu0 %v3299_v23  ;;  %v3384_v22 = vld [vmem:[%s4485_s2 + $0xc8] ss:$16 sps:$4 sm:$0xff]   ;;  %v3389_v23 = vld [vmem:[%s4485_s2 + $0xa4] ss:$16 sps:$4 sm:$0xff]  }
  0x9d   : > { %1693 = vmatprep.subr.bf16.mxu1 %v3302_v51  ;;  %v3390_v51 = vld [vmem:[%s4485_s2 + $0xa8] ss:$16 sps:$4 sm:$0xff]  }
  0x9f   : > { %1653 = vmatpush1.bf16.msra.mxu0 %v3297_v24  ;;  %v3395_v24 = vld [vmem:[%s4485_s2 + $0x84] ss:$16 sps:$4 sm:$0xff]  }
  0xa0   : > { %1694 = vmatpush1.bf16.msra.mxu1 %v3300_v25  ;;  %1654 = vmatprep.subr.bf16.mxu0 %v3305_v26  ;;  %v3398_v25 = vld [vmem:[%s4485_s2 + $0x8c] ss:$16 sps:$4 sm:$0xff]   ;;  %v3393_v26 = vld [vmem:[%s4485_s2 + $0x80] ss:$16 sps:$4 sm:$0xff]  }
  0xa1   : > { %1695 = vmatprep.subr.bf16.mxu1 %v3308_v27  ;;  %v3396_v27 = vld [vmem:[%s4485_s2 + $0x88] ss:$16 sps:$4 sm:$0xff]  }
  0xa3   : > { %1655 = vmatpush1.bf16.msra.mxu0 %v3303_v28  ;;  %v3401_v28 = vld [vmem:[%s4485_s2 + $0x64] ss:$16 sps:$4 sm:$0xff]  }
  0xa4   : > { %1696 = vmatpush1.bf16.msra.mxu1 %v3306_v29  ;;  %1656 = vmatprep.subr.bf16.mxu0 %v3311_v30  ;;  %v3404_v29 = vld [vmem:[%s4485_s2 + $0x6c] ss:$16 sps:$4 sm:$0xff]   ;;  %v3399_v30 = vld [vmem:[%s4485_s2 + $0x60] ss:$16 sps:$4 sm:$0xff]  }
  0xa5   : > { %1697 = vmatprep.subr.bf16.mxu1 %v3314_v31  ;;  %v3402_v31 = vld [vmem:[%s4485_s2 + $0x68] ss:$16 sps:$4 sm:$0xff]  }
  0xa7   : > { %1657 = vmatpush1.bf16.msra.mxu0 %v3309_v32  ;;  %v3407_v32 = vld [vmem:[%s4485_s2 + $0x44] ss:$16 sps:$4 sm:$0xff]  }
  0xa8   : > { %1698 = vmatpush1.bf16.msra.mxu1 %v3312_v33  ;;  %1658 = vmatprep.subr.bf16.mxu0 %v3317_v34  ;;  %v3410_v33 = vld [vmem:[%s4485_s2 + $0x4c] ss:$16 sps:$4 sm:$0xff]   ;;  %v3405_v34 = vld [vmem:[%s4485_s2 + $0x40] ss:$16 sps:$4 sm:$0xff]  }
  0xa9   : > { %1699 = vmatprep.subr.bf16.mxu1 %v3320_v35  ;;  %v3408_v35 = vld [vmem:[%s4485_s2 + $0x48] ss:$16 sps:$4 sm:$0xff]  }
  0xab   : > { %1659 = vmatpush1.bf16.msra.mxu0 %v3315_v36  ;;  %v3413_v36 = vld [vmem:[%s4485_s2 + $0x24] ss:$16 sps:$4 sm:$0xff]  }
  0xac   : > { %1700 = vmatpush1.bf16.msra.mxu1 %v3318_v37  ;;  %1660 = vmatprep.subr.bf16.mxu0 %v3323_v38  ;;  %v3416_v37 = vld [vmem:[%s4485_s2 + $0x2c] ss:$16 sps:$4 sm:$0xff]   ;;  %v3411_v38 = vld [vmem:[%s4485_s2 + $0x20] ss:$16 sps:$4 sm:$0xff]  }
  0xad   : > { %1701 = vmatprep.subr.bf16.mxu1 %v3326_v39  ;;  %v3414_v39 = vld [vmem:[%s4485_s2 + $0x28] ss:$16 sps:$4 sm:$0xff]  }
  0xaf   : > { %1661 = vmatpush1.bf16.msra.mxu0 %v3321_v40  ;;  %v3419_v40 = vld [vmem:[%s4485_s2 + $0x4] ss:$16 sps:$4 sm:$0xff]  }
  0xb0   : > { %1702 = vmatpush1.bf16.msra.mxu1 %v3324_v41  ;;  %1662 = vmatprep.subr.bf16.mxu0 %v3329_v42  ;;  %v3422_v41 = vld [vmem:[%s4485_s2 + $0xc] ss:$16 sps:$4 sm:$0xff]   ;;  %v3417_v42 = vld [vmem:[%s4485_s2] ss:$16 sps:$4 sm:$0xff]  }
  0xb1   : > { %1703 = vmatprep.subr.bf16.mxu1 %v3332_v43  ;;  %v3420_v43 = vld [vmem:[%s4485_s2 + $0x8] ss:$16 sps:$4 sm:$0xff]  }
  0xb3   : > { %1663 = vmatpush2.bf16.msra.mxu0 %v3327_v44  ;;  %v3425_v44 = vld [vmem:[%s4485_s2 + $0x1e4] ss:$16 sps:$4 sm:$0xff]  }
  0xb4   : > { %1704 = vmatpush2.bf16.msra.mxu1 %v3330_v45  ;;  %1664 = vmatprep.subr.bf16.mxu0 %v3335_v46  ;;  %v3428_v45 = vld [vmem:[%s4485_s2 + $0x1ec] ss:$16 sps:$4 sm:$0xff]   ;;  %v3423_v46 = vld [vmem:[%s4485_s2 + $0x1e0] ss:$16 sps:$4 sm:$0xff]  }
  0xb5   : > { %1705 = vmatprep.subr.bf16.mxu1 %v3338_v47  ;;  %v3426_v47 = vld [vmem:[%s4485_s2 + $0x1e8] ss:$16 sps:$4 sm:$0xff]  }
  0xb7   : > { %1665 = vmatpush2.bf16.msra.mxu0 %v3333_v48  ;;  %v3431_v48 = vld [vmem:[%s4485_s2 + $0x1c4] ss:$16 sps:$4 sm:$0xff]  }
  0xb8   : > { %1706 = vmatpush2.bf16.msra.mxu1 %v3336_v49  ;;  %1666 = vmatprep.subr.bf16.mxu0 %v3341_v50  ;;  %v3434_v49 = vld [vmem:[%s4485_s2 + $0x1cc] ss:$16 sps:$4 sm:$0xff]   ;;  %v3429_v50 = vld [vmem:[%s4485_s2 + $0x1c0] ss:$16 sps:$4 sm:$0xff]  }
  0xb9   : > { %1707 = vmatprep.subr.bf16.mxu1 %v3344_v52  ;;  %v3432_v52 = vld [vmem:[%s4485_s2 + $0x1c8] ss:$16 sps:$4 sm:$0xff]  }
  0xbb   : > { %1667 = vmatpush2.bf16.msra.mxu0 %v3339_v53  ;;  %v3437_v53 = vld [vmem:[%s4485_s2 + $0x1a4] ss:$16 sps:$4 sm:$0xff]  }
  0xbc   : > { %1708 = vmatpush2.bf16.msra.mxu1 %v3342_v54  ;;  %1668 = vmatprep.subr.bf16.mxu0 %v3347_v55  ;;  %v3440_v54 = vld [vmem:[%s4485_s2 + $0x1ac] ss:$16 sps:$4 sm:$0xff]   ;;  %v3435_v55 = vld [vmem:[%s4485_s2 + $0x1a0] ss:$16 sps:$4 sm:$0xff]  }
  0xbd   : > { %1709 = vmatprep.subr.bf16.mxu1 %v3350_v56  ;;  %v3438_v56 = vld [vmem:[%s4485_s2 + $0x1a8] ss:$16 sps:$4 sm:$0xff]  }
  0xbf   : > { %1669 = vmatpush2.bf16.msra.mxu0 %v3345_v57  ;;  %v3443_v57 = vld [vmem:[%s4485_s2 + $0x184] ss:$16 sps:$4 sm:$0xff]  }
  0xc0   : > { %1710 = vmatpush2.bf16.msra.mxu1 %v3348_v58  ;;  %1670 = vmatprep.subr.bf16.mxu0 %v3353_v59  ;;  %v3446_v58 = vld [vmem:[%s4485_s2 + $0x18c] ss:$16 sps:$4 sm:$0xff]   ;;  %v3441_v59 = vld [vmem:[%s4485_s2 + $0x180] ss:$16 sps:$4 sm:$0xff]  }
  0xc1   : > { %1711 = vmatprep.subr.bf16.mxu1 %v3356_v60  ;;  %v3444_v60 = vld [vmem:[%s4485_s2 + $0x188] ss:$16 sps:$4 sm:$0xff]  }
  0xc3   : > { %1671 = vmatpush2.bf16.msra.mxu0 %v3351_v61  ;;  %v3449_v61 = vld [vmem:[%s4485_s2 + $0x164] ss:$16 sps:$4 sm:$0xff]  }
  0xc4   : > { %1712 = vmatpush2.bf16.msra.mxu1 %v3354_v62  ;;  %1672 = vmatprep.subr.bf16.mxu0 %v3359_v63  ;;  %v3452_v62 = vld [vmem:[%s4485_s2 + $0x16c] ss:$16 sps:$4 sm:$0xff]   ;;  %v3447_v63 = vld [vmem:[%s4485_s2 + $0x160] ss:$16 sps:$4 sm:$0xff]  }
  0xc5   : > { %1713 = vmatprep.subr.bf16.mxu1 %v3362_v0  ;;  %v3450_v0 = vld [vmem:[%s4485_s2 + $0x168] ss:$16 sps:$4 sm:$0xff]  }
  0xc7   : > { %1673 = vmatpush2.bf16.msra.mxu0 %v3357_v1  ;;  %v3455_v1 = vld [vmem:[%s4485_s2 + $0x144] ss:$16 sps:$4 sm:$0xff]  }
  0xc8   : > { %1714 = vmatpush2.bf16.msra.mxu1 %v3360_v2  ;;  %1674 = vmatprep.subr.bf16.mxu0 %v3365_v3  ;;  %v3458_v2 = vld [vmem:[%s4485_s2 + $0x14c] ss:$16 sps:$4 sm:$0xff]   ;;  %v3453_v3 = vld [vmem:[%s4485_s2 + $0x140] ss:$16 sps:$4 sm:$0xff]  }
  0xc9   : > { %1715 = vmatprep.subr.bf16.mxu1 %v3368_v4  ;;  %v3456_v4 = vld [vmem:[%s4485_s2 + $0x148] ss:$16 sps:$4 sm:$0xff]  }
  0xcb   : > { %1675 = vmatpush2.bf16.msra.mxu0 %v3363_v5  ;;  %v3461_v5 = vld [vmem:[%s4485_s2 + $0x124] ss:$16 sps:$4 sm:$0xff]  }
  0xcc   : > { %1716 = vmatpush2.bf16.msra.mxu1 %v3366_v8  ;;  %1676 = vmatprep.subr.bf16.mxu0 %v3371_v9  ;;  %v3464_v8 = vld [vmem:[%s4485_s2 + $0x12c] ss:$16 sps:$4 sm:$0xff]   ;;  %v3459_v9 = vld [vmem:[%s4485_s2 + $0x120] ss:$16 sps:$4 sm:$0xff]  }
  0xcd   : > { %1717 = vmatprep.subr.bf16.mxu1 %v3374_v10  ;;  %v3462_v10 = vld [vmem:[%s4485_s2 + $0x128] ss:$16 sps:$4 sm:$0xff]  }
  0xcf   : > { %1677 = vmatpush2.bf16.msra.mxu0 %v3369_v11  ;;  %v3467_v11 = vld [vmem:[%s4485_s2 + $0x104] ss:$16 sps:$4 sm:$0xff]  }
  0xd0   : > { %1718 = vmatpush2.bf16.msra.mxu1 %v3372_v12  ;;  %2120 = vmatprep.subr.bf16.mxu0 %v3377_v14  ;;  %v3470_v12 = vld [vmem:[%s4485_s2 + $0x10c] ss:$16 sps:$4 sm:$0xff]   ;;  %v3465_v14 = vld [vmem:[%s4485_s2 + $0x100] ss:$16 sps:$4 sm:$0xff]  }
  0xd1   : > { %2161 = vmatprep.subr.bf16.mxu1 %v3380_v15  ;;  %v3468_v15 = vld [vmem:[%s4485_s2 + $0x108] ss:$16 sps:$4 sm:$0xff]  }
  0xd2   : > { %1679 = vmatmul.mubr.bf16.vlgmr.msra.gmra.mxu0 %v3769_v7  ;;  %v3392_v7 = vld [vmem:[%s4485_s2 + $0xac] ss:$16 sps:$4 sm:$0xff]  }
  0xd3   : > { %1720 = vmatmul.mubr.bf16.vlgmr.msra.gmra.mxu1 %v3978_v13  ;;  %2121 = vmatpush1.bf16.msra.mxu0 %v3375_v17  ;;  %v3387_v13 = vld [vmem:[%s4485_s2 + $0xa0] ss:$16 sps:$4 sm:$0xff]   ;;  %v2981_v17 = vcombine.low %v4179_v16, %v4179_v16 }
  0xd4   : > { %2162 = vmatpush1.bf16.msra.mxu1 %v3378_v18  ;;  %2122 = vmatprep.subr.bf16.mxu0 %v3383_v19 }
  0xd5   : > { %2163 = vmatprep.subr.bf16.mxu1 %v3386_v20  ;;  %2152 = vmatprep.mubr.bf16.mxu0 %v2982_v6 }
  0xd6   : > { %2193 = vmatprep.mubr.bf16.mxu1 %v2982_v6 }
  0xd7   : > { %2123 = vmatpush1.bf16.msra.mxu0 %v3381_v21 }
  0xd8   : > { %2164 = vmatpush1.bf16.msra.mxu1 %v3384_v22  ;;  %2124 = vmatprep.subr.bf16.mxu0 %v3389_v23 }
  0xd9   : > { %2165 = vmatprep.subr.bf16.mxu1 %v3392_v7 }
  0xdb   : > { %2125 = vmatpush1.bf16.msra.mxu0 %v3387_v13 }
  0xdc   : > { %2166 = vmatpush1.bf16.msra.mxu1 %v3390_v51  ;;  %2126 = vmatprep.subr.bf16.mxu0 %v3395_v24 }
  0xdd   : > { %2167 = vmatprep.subr.bf16.mxu1 %v3398_v25 }
  0xdf   : > { %2127 = vmatpush1.bf16.msra.mxu0 %v3393_v26 }
  0xe0   : > { %2168 = vmatpush1.bf16.msra.mxu1 %v3396_v27  ;;  %2128 = vmatprep.subr.bf16.mxu0 %v3401_v28 }
  0xe1   : > { %2169 = vmatprep.subr.bf16.mxu1 %v3404_v29 }
  0xe3   : > { %2129 = vmatpush1.bf16.msra.mxu0 %v3399_v30 }
  0xe4   : > { %2170 = vmatpush1.bf16.msra.mxu1 %v3402_v31  ;;  %2130 = vmatprep.subr.bf16.mxu0 %v3407_v32 }
  0xe5   : > { %2171 = vmatprep.subr.bf16.mxu1 %v3410_v33 }
  0xe7   : > { %2131 = vmatpush1.bf16.msra.mxu0 %v3405_v34 }
  0xe8   : > { %2172 = vmatpush1.bf16.msra.mxu1 %v3408_v35  ;;  %2132 = vmatprep.subr.bf16.mxu0 %v3413_v36 }
  0xe9   : > { %2173 = vmatprep.subr.bf16.mxu1 %v3416_v37 }
  0xeb   : > { %2133 = vmatpush1.bf16.msra.mxu0 %v3411_v38 }
  0xec   : > { %2174 = vmatpush1.bf16.msra.mxu1 %v3414_v39  ;;  %2134 = vmatprep.subr.bf16.mxu0 %v3419_v40 }
  0xed   : > { %2175 = vmatprep.subr.bf16.mxu1 %v3422_v41 }
  0xef   : > { %2135 = vmatpush1.bf16.msra.mxu0 %v3417_v42 }
  0xf0   : > { %2176 = vmatpush1.bf16.msra.mxu1 %v3420_v43  ;;  %2136 = vmatprep.subr.bf16.mxu0 %v3425_v44 }
  0xf1   : > { %2177 = vmatprep.subr.bf16.mxu1 %v3428_v45 }
  0xf3   : > { %2137 = vmatpush2.bf16.msra.mxu0 %v3423_v46 }
  0xf4   : > { %2178 = vmatpush2.bf16.msra.mxu1 %v3426_v47  ;;  %2138 = vmatprep.subr.bf16.mxu0 %v3431_v48 }
  0xf5   : > { %2179 = vmatprep.subr.bf16.mxu1 %v3434_v49 }
  0xf7   : > { %2139 = vmatpush2.bf16.msra.mxu0 %v3429_v50 }
  0xf8   : > { %2180 = vmatpush2.bf16.msra.mxu1 %v3432_v52  ;;  %2140 = vmatprep.subr.bf16.mxu0 %v3437_v53 }
  0xf9   : > { %2181 = vmatprep.subr.bf16.mxu1 %v3440_v54 }
  0xfb   : > { %2141 = vmatpush2.bf16.msra.mxu0 %v3435_v55 }
  0xfc   : > { %2182 = vmatpush2.bf16.msra.mxu1 %v3438_v56  ;;  %2142 = vmatprep.subr.bf16.mxu0 %v3443_v57 }
  0xfd   : > { %2183 = vmatprep.subr.bf16.mxu1 %v3446_v58 }
  0xff   : > { %2143 = vmatpush2.bf16.msra.mxu0 %v3441_v59 }
 0x100   : > { %2184 = vmatpush2.bf16.msra.mxu1 %v3444_v60  ;;  %2144 = vmatprep.subr.bf16.mxu0 %v3449_v61 }
 0x101   : > { %2185 = vmatprep.subr.bf16.mxu1 %v3452_v62 }
 0x103   : > { %2145 = vmatpush2.bf16.msra.mxu0 %v3447_v63 }
 0x104   : > { %2186 = vmatpush2.bf16.msra.mxu1 %v3450_v0  ;;  %2146 = vmatprep.subr.bf16.mxu0 %v3455_v1 }
 0x105   : > { %2187 = vmatprep.subr.bf16.mxu1 %v3458_v2 }
 0x107   : > { %2147 = vmatpush2.bf16.msra.mxu0 %v3453_v3 }
 0x108   : > { %2188 = vmatpush2.bf16.msra.mxu1 %v3456_v4  ;;  %2148 = vmatprep.subr.bf16.mxu0 %v3461_v5 }
 0x109   : > { %2189 = vmatprep.subr.bf16.mxu1 %v3464_v8 }
 0x10b   : > { %2149 = vmatpush2.bf16.msra.mxu0 %v3459_v9 }
 0x10c   : > { %2190 = vmatpush2.bf16.msra.mxu1 %v3462_v10  ;;  %2150 = vmatprep.subr.bf16.mxu0 %v3467_v11 }
 0x10d   : > { %2191 = vmatprep.subr.bf16.mxu1 %v3470_v12 }
 0x10f   : > { %2151 = vmatpush2.bf16.msra.mxu0 %v3465_v14 }
 0x110   : > { %2192 = vmatpush2.bf16.msra.mxu1 %v3468_v15 }
 0x112   : > { %v1516_v18 = vpop.f32.mrf.mxu0  ;;  %2153 = vmatmul.mubr.bf16.vlgmr.msra.gmra.mxu0 %v2981_v17 }
 0x113   : > { %v1557_v19 = vpop.f32.mrf.mxu1  ;;  %2194 = vmatmul.mubr.bf16.vlgmr.msra.gmra.mxu1 %v2981_v17 }
 0x114   : > { %v1518_v20 = vpop.f32.mrf.mxu0  ;;  %v1558_v13 = vadd.f32 %v1557_v19, %v1516_v18 }
 0x115   : > { %v1559_v6 = vpop.f32.mrf.mxu1 }
 0x116   : > { %v1520_v21 = vpop.f32.mrf.mxu0  ;;  %v1560_v25 = vadd.f32 %v1559_v6, %v1518_v20 }
 0x117   : > { %v1561_v22 = vpop.f32.mrf.mxu1 }
 0x118   : > { %v1521_v23 = vpop.f32.mrf.mxu0 }
 0x119   : > { %v1562_v7 = vpop.f32.mrf.mxu1 }
 0x152   : > { %v1598_v51 = vpop.f32.mrf.mxu0 }
 0x153   : > { %v1639_v24 = vpop.f32.mrf.mxu1  ;;  %v1599_v26 = vadd.f32 %v1598_v51, %v1558_v13 }
 0x154   : > { %v1600_v27 = vpop.f32.mrf.mxu0 }
 0x155   : > { %v1641_v28 = vpop.f32.mrf.mxu1  ;;  %2207 = vst [vmem:[#allocation2 + $0x30] sm:$0xff] %v1599_v26  ;;  %v2223_v16 = vrot.slane %v1599_v26, 4  ;;  %v2271_v29 = vmul.f32 %v1599_v26, %v1599_v26  ;;  %v1601_v30 = vadd.f32 %v1600_v27, %v1560_v25  ;;  %v3499_v25 = vmov 1983009808  }
 0x156   : > { %v1602_v31 = vpop.f32.mrf.mxu0  ;;  %v2349_v27 = vlaneseq }
 0x157   : > { %v1643_v32 = vpop.f32.mrf.mxu1  ;;  %v2224_v33 = vadd.f32 %v2223_v16, %v1599_v26  ;;  %v2279_v34 = vrot.slane %v2271_v29, 4  ;;  %2208 = vst [vmem:[#allocation2] sm:$0xff] %v1601_v30  ;;  %v2229_v35 = vrot.slane %v1601_v30, 4  ;;  %v2272_v36 = vmul.f32 %v1601_v30, %v1601_v30 }
 0x158   : > { %v1603_v37 = vpop.f32.mrf.mxu0  ;;  %v2347_v26 = vunpack.c.l.s4 %v3499_v25 }
 0x159   : > { %v1644_v38 = vpop.f32.mrf.mxu1  ;;  %v2225_v39 = vrot.slane %v2224_v33, 2  ;;  %v2280_v40 = vadd.f32 %v2279_v34, %v2271_v29  ;;  %v2230_v41 = vadd.f32 %v2229_v35, %v1601_v30  ;;  %v2285_v42 = vrot.slane %v2272_v36, 4 }
 0x15a   : > { %v2348_v34 = vunpack.c.0.s8 %v2347_v26  ;;  %v2350_v35 = vshrl.u32 %v2349_v27, 7 }
 0x15b   : > { %v2226_v43 = vadd.f32 %v2225_v39, %v2224_v33  ;;  %v2281_v44 = vrot.slane %v2280_v40, 2  ;;  %v2231_v45 = vrot.slane %v2230_v41, 2  ;;  %v2286_v46 = vadd.f32 %v2285_v42, %v2272_v36 }
 0x15d   : > { %v2282_v47 = vadd.f32 %v2281_v44, %v2280_v40  ;;  %v2232_v48 = vadd.f32 %v2231_v45, %v2230_v41  ;;  %v2287_v49 = vrot.slane %v2286_v46, 2  ;;  %v2227_v50 = vrot.slane %v2226_v43, 1 }
 0x15e   : > { %v4375_v41 = vsub.s32 %v2348_v34, %v2350_v35 }
 0x15f   : > { %v2283_v52 = vrot.slane %v2282_v47, 1  ;;  %v2233_v53 = vrot.slane %v2232_v48, 1  ;;  %v2288_v54 = vadd.f32 %v2287_v49, %v2286_v46  ;;  %v2228_v57 = vadd.f32 %v2227_v50, %v2226_v43 }
 0x161   : > { %v2284_v55 = vadd.f32 %v2283_v52, %v2282_v47  ;;  %v2289_v56 = vrot.slane %v2288_v54, 1  ;;  %v2234_v58 = vadd.f32 %v2233_v53, %v2232_v48 }
 0x163   : > { %v2290_v59 = vadd.f32 %v2289_v56, %v2288_v54  ;;  %v2328_v60 = vsel %vm2327_vm0, %v2228_v57, %v2284_v55 }
 0x165   : > { %v2329_v61 = vsel %vm2327_vm0, %v2234_v58, %v2290_v59 }
 0x166   : > { %v2344_v62 = vcombine.low %v2328_v60, %v2329_v61 }
 0x168   : > { %v2352_v45 = vrot.slane %v2344_v62, %v4375_v41 }
 0x192   : > { %v1680_v63 = vpop.f32.mrf.mxu0 }
 0x193   : > { %v1721_v0 = vpop.f32.mrf.mxu1  ;;  %v1681_v1 = vadd.f32 %v1680_v63, %v1639_v24 }
 0x194   : > { %v1682_v2 = vpop.f32.mrf.mxu0 }
 0x195   : > { %v1723_v3 = vpop.f32.mrf.mxu1  ;;  %v1722_v4 = vadd.f32 %v1721_v0, %v1681_v1  ;;  %v1683_v5 = vadd.f32 %v1682_v2, %v1641_v28 }
 0x196   : > { %v1684_v8 = vpop.f32.mrf.mxu0 }
 0x197   : > { %v1725_v9 = vpop.f32.mrf.mxu1  ;;  %2209 = vst [vmem:[#allocation2 + $0x18] sm:$0xff] %v1722_v4  ;;  %v2235_v10 = vrot.slane %v1722_v4, 4  ;;  %v2273_v11 = vmul.f32 %v1722_v4, %v1722_v4  ;;  %v1724_v12 = vadd.f32 %v1723_v3, %v1683_v5 }
 0x198   : > { %v1685_v14 = vpop.f32.mrf.mxu0 }
 0x199   : > { %v1726_v15 = vpop.f32.mrf.mxu1  ;;  %v2236_v17 = vadd.f32 %v2235_v10, %v1722_v4  ;;  %v2291_v18 = vrot.slane %v2273_v11, 4  ;;  %2210 = vst [vmem:[#allocation2 + $0x10] sm:$0xff] %v1724_v12  ;;  %v2241_v19 = vrot.slane %v1724_v12, 4  ;;  %v2274_v20 = vmul.f32 %v1724_v12, %v1724_v12 }
 0x19b   : > { %v2237_v6 = vrot.slane %v2236_v17, 2  ;;  %v2292_v21 = vadd.f32 %v2291_v18, %v2273_v11  ;;  %v2242_v22 = vadd.f32 %v2241_v19, %v1724_v12  ;;  %v2297_v23 = vrot.slane %v2274_v20, 4 }
 0x19d   : > { %v2238_v7 = vadd.f32 %v2237_v6, %v2236_v17  ;;  %v2293_v13 = vrot.slane %v2292_v21, 2  ;;  %v2243_v51 = vrot.slane %v2242_v22, 2  ;;  %v2298_v24 = vadd.f32 %v2297_v23, %v2274_v20 }
 0x19f   : > { %v2294_v28 = vadd.f32 %v2293_v13, %v2292_v21  ;;  %v2244_v16 = vadd.f32 %v2243_v51, %v2242_v22  ;;  %v2299_v29 = vrot.slane %v2298_v24, 2  ;;  %v2239_v30 = vrot.slane %v2238_v7, 1 }
 0x1a1   : > { %v2295_v31 = vrot.slane %v2294_v28, 1  ;;  %v2245_v32 = vrot.slane %v2244_v16, 1  ;;  %v2300_v33 = vadd.f32 %v2299_v29, %v2298_v24  ;;  %v2240_v38 = vadd.f32 %v2239_v30, %v2238_v7 }
 0x1a3   : > { %v2296_v36 = vadd.f32 %v2295_v31, %v2294_v28  ;;  %v2301_v37 = vrot.slane %v2300_v33, 1  ;;  %v2246_v39 = vadd.f32 %v2245_v32, %v2244_v16 }
 0x1a5   : > { %v2302_v40 = vadd.f32 %v2301_v37, %v2300_v33  ;;  %v2330_v42 = vsel %vm2327_vm0, %v2240_v38, %v2296_v36 }
 0x1a7   : > { %v2331_v43 = vsel %vm2327_vm0, %v2246_v39, %v2302_v40 }
 0x1a8   : > { %v2345_v44 = vcombine.low %v2330_v42, %v2331_v43 }
 0x1aa   : > { %v2359_v46 = vrot.slane %v2345_v44, %v4375_v41 }
 0x1ac   : > { %v2360_v47 = vcombine.low %v2352_v45, %v2359_v46 }
 0x1ae   : > { %2382 = vst [vmem:[#allocation3] sm:$0xff] %v2360_v47 }
 0x1d2   : > { %v2154_v48 = vpop.f32.mrf.mxu0 }
 0x1d3   : > { %v2195_v49 = vpop.f32.mrf.mxu1  ;;  %2211 = vst [vmem:[#allocation2 + $0x8] sm:$0xff] %v2154_v48  ;;  %v2247_v50 = vrot.slane %v2154_v48, 4  ;;  %v2275_v52 = vmul.f32 %v2154_v48, %v2154_v48 }
 0x1d4   : > { %2213 = vst [vmem:[#allocation2 + $0x28] sm:$0xff] %v2195_v49  ;;  %v2259_v53 = vrot.slane %v2195_v49, 4  ;;  %v2277_v54 = vmul.f32 %v2195_v49, %v2195_v49  ;;  %v2156_v55 = vpop.f32.mrf.mxu0 }
 0x1d5   : > { %v2197_v56 = vpop.f32.mrf.mxu1  ;;  %v2248_v57 = vadd.f32 %v2247_v50, %v2154_v48  ;;  %v2303_v58 = vrot.slane %v2275_v52, 4  ;;  %2212 = vst [vmem:[#allocation2 + $0x20] sm:$0xff] %v2156_v55  ;;  %v2253_v61 = vrot.slane %v2156_v55, 4  ;;  %v2276_v62 = vmul.f32 %v2156_v55, %v2156_v55 }
 0x1d6   : > { %v2260_v59 = vadd.f32 %v2259_v53, %v2195_v49  ;;  %v2315_v60 = vrot.slane %v2277_v54, 4  ;;  %2214 = vst [vmem:[#allocation2 + $0x38] sm:$0xff] %v2197_v56  ;;  %v2265_v63 = vrot.slane %v2197_v56, 4  ;;  %v2278_v0 = vmul.f32 %v2197_v56, %v2197_v56  ;;  %v2158_v1 = vpop.f32.mrf.mxu0 }
 0x1d7   : > { %v2199_v2 = vpop.f32.mrf.mxu1  ;;  %v2249_v3 = vrot.slane %v2248_v57, 2  ;;  %v2304_v4 = vadd.f32 %v2303_v58, %v2275_v52  ;;  %v2254_v9 = vadd.f32 %v2253_v61, %v2156_v55  ;;  %v2309_v10 = vrot.slane %v2276_v62, 4 }
 0x1d8   : > { %v2261_v5 = vrot.slane %v2260_v59, 2  ;;  %v2316_v8 = vadd.f32 %v2315_v60, %v2277_v54  ;;  %v2266_v11 = vadd.f32 %v2265_v63, %v2197_v56  ;;  %v2321_v12 = vrot.slane %v2278_v0, 4  ;;  %v2159_v14 = vpop.f32.mrf.mxu0 }
 0x1d9   : > { %v2200_v15 = vpop.f32.mrf.mxu1  ;;  %v2250_v17 = vadd.f32 %v2249_v3, %v2248_v57  ;;  %v2305_v18 = vrot.slane %v2304_v4, 2  ;;  %v2255_v6 = vrot.slane %v2254_v9, 2  ;;  %v2310_v21 = vadd.f32 %v2309_v10, %v2276_v62 }
 0x1da   : > { %v2262_v19 = vadd.f32 %v2261_v5, %v2260_v59  ;;  %v2317_v20 = vrot.slane %v2316_v8, 2  ;;  %v2267_v22 = vrot.slane %v2266_v11, 2  ;;  %v2322_v23 = vadd.f32 %v2321_v12, %v2278_v0 }
 0x1db   : > { %v2306_v7 = vadd.f32 %v2305_v18, %v2304_v4  ;;  %v2256_v51 = vadd.f32 %v2255_v6, %v2254_v9  ;;  %v2311_v24 = vrot.slane %v2310_v21, 2  ;;  %v2251_v27 = vrot.slane %v2250_v17, 1 }
 0x1dc   : > { %v2318_v13 = vadd.f32 %v2317_v20, %v2316_v8  ;;  %v2268_v25 = vadd.f32 %v2267_v22, %v2266_v11  ;;  %v2323_v26 = vrot.slane %v2322_v23, 2  ;;  %v2263_v16 = vrot.slane %v2262_v19, 1 }
 0x1dd   : > { %v2307_v28 = vrot.slane %v2306_v7, 1  ;;  %v2257_v30 = vrot.slane %v2256_v51, 1  ;;  %v2312_v31 = vadd.f32 %v2311_v24, %v2310_v21  ;;  %v2252_v38 = vadd.f32 %v2251_v27, %v2250_v17 }
 0x1de   : > { %v2319_v29 = vrot.slane %v2318_v13, 1  ;;  %v2269_v32 = vrot.slane %v2268_v25, 1  ;;  %v2324_v33 = vadd.f32 %v2323_v26, %v2322_v23  ;;  %v2264_v39 = vadd.f32 %v2263_v16, %v2262_v19 }
 0x1df   : > { %v2308_v34 = vadd.f32 %v2307_v28, %v2306_v7  ;;  %v2313_v36 = vrot.slane %v2312_v31, 1  ;;  %v2258_v40 = vadd.f32 %v2257_v30, %v2256_v51 }
 0x1e0   : > { %v2320_v35 = vadd.f32 %v2319_v29, %v2318_v13  ;;  %v2325_v37 = vrot.slane %v2324_v33, 1  ;;  %v2270_v43 = vadd.f32 %v2269_v32, %v2268_v25 }
 0x1e1   : > { %v2314_v42 = vadd.f32 %v2313_v36, %v2312_v31  ;;  %v2332_v45 = vsel %vm2327_vm0, %v2252_v38, %v2308_v34 }
 0x1e2   : > { %v2326_v44 = vadd.f32 %v2325_v37, %v2324_v33  ;;  %v2334_v46 = vsel %vm2327_vm0, %v2264_v39, %v2320_v35 }
 0x1e3   : > { %v2333_v47 = vsel %vm2327_vm0, %v2258_v40, %v2314_v42 }
 0x1e4   : > { %v2335_v48 = vsel %vm2327_vm0, %v2270_v43, %v2326_v44  ;;  %v2361_v49 = vcombine.low %v2332_v45, %v2333_v47 }
 0x1e5   : > { %v2362_v50 = vcombine.low %v2334_v46, %v2335_v48 }
 0x1e6   : > { %v2369_v52 = vrot.slane %v2361_v49, %v4375_v41 }
 0x1e7   : > { %v2376_v53 = vrot.slane %v2362_v50, %v4375_v41 }
 0x1e9   : > { %v2377_v54 = vcombine.low %v2369_v52, %v2376_v53 }
 0x1eb   : > { %2383 = vst [vmem:[#allocation3 + $0x8] sm:$0xff] %v2377_v54 }
 0x1ec PF: > { %p3047_p5 = scmp.ne.s32.totalorder %s3489_s21, 1 }
 0x1ee   : > { %2387 = sbr.rel (%p3047_p5) target bundleno = 562 (0x232), region = 52 }
 0x1f3   : > { %v2392_v55 = vld [vmem:[#allocation3] ss:$2 sm:$0xff]  ;;  %v2395_v56 = vld [vmem:[#allocation3 + $0x1] ss:$2 sm:$0xff]  ;;  %v2407_v62 = vlaneseq  ;;  %v3500_v0 = vmov 1983009808  }
 0x1f4   : > { %v2393_v57 = vmul.f32 0.125, %v2392_v55  ;;  %v2396_v58 = vmul.f32 0.125, %v2395_v56  ;;  %v2508_v1 = vunpack.c.l.s4 %v3500_v0  ;;  %v2399_v41 = vld [vmem:[%s4486_s3] sm:$0xff]  ;;  %vm2488_vm1 = vcmask 1040384   ;;  %v2552_v52 = vld [vmem:[#allocation2 + $0x8] sm:$0xff] }
 0x1f5   : > { %v2408_v63 = vshrl.u32 %v2407_v62, 7  ;;  %v2403_v11 = vld [vmem:[%s4487_s4] sm:$0xff] }
 0x1f6   : > { %v2397_v59 = vmul.f32 %v2393_v57, %v2393_v57  ;;  %v2509_v4 = vunpack.c.0.s8 %v2508_v1  ;;  %v2553_v55 = vld [vmem:[#allocation2 + $0x20] sm:$0xff]  ;;  %v2548_v1 = vld [vmem:[#allocation2 + $0x30] sm:$0xff] }
 0x1f7   : > { %v4391_v3 = vsub.s32 0, %v2408_v63  ;;  %v4393_v8 = vsub.s32 1, %v2408_v63  ;;  %v4395_v9 = vsub.s32 2, %v2408_v63  ;;  %v4397_v10 = vsub.s32 3, %v2408_v63 }
 0x1f8   : > { %v2398_v60 = vsub.f32 %v2396_v58, %v2397_v59  ;;  %v4402_v12 = vsub.s32 4, %v2408_v63  ;;  %v4404_v14 = vsub.s32 5, %v2408_v63  ;;  %v4406_v15 = vsub.s32 6, %v2408_v63  ;;  %v2554_v59 = vld [vmem:[#allocation2 + $0x28] sm:$0xff] }
 0x1f9   : > { %v4408_v17 = vsub.s32 7, %v2408_v63  ;;  %v2512_v20 = vsub.s32 %v2509_v4, %v2408_v63 }
 0x1fa   : > { %v2400_v61 = vadd.f32 1e-05, %v2398_v60  ;;  %v2555_v60 = vld [vmem:[#allocation2 + $0x38] sm:$0xff] }
 0x1fc   : > { %3473 = vrsqrt.f32 %v2400_v61 }
 0x209   : > { %v3474_v2 = vpop.eup %3473 }
 0x20a   : > { %v2402_v5 = vmul.f32 %v3474_v2, %v2399_v41 }
 0x20c   : > { %v2404_v18 = vmul.f32 %v2402_v5, %v2393_v57  ;;  %v2410_v19 = vrot.slane %v2402_v5, %v4391_v3  ;;  %v2414_v21 = vrot.slane %v2402_v5, %v4393_v8  ;;  %v2418_v22 = vrot.slane %v2402_v5, %v4395_v9 }
 0x20d   : > { %v2422_v23 = vrot.slane %v2402_v5, %v4397_v10  ;;  %v2426_v7 = vrot.slane %v2402_v5, %v4402_v12  ;;  %v2430_v13 = vrot.slane %v2402_v5, %v4404_v14  ;;  %v2434_v51 = vrot.slane %v2402_v5, %v4406_v15 }
 0x20e   : > { %v2405_v6 = vsub.f32 %v2403_v11, %v2404_v18  ;;  %v2438_v24 = vrot.slane %v2402_v5, %v4408_v17  ;;  %v2549_v11 = vld [vmem:[#allocation2] sm:$0xff] }
 0x210   : > { %v2451_v25 = vrot.slane %v2405_v6, %v4391_v3  ;;  %v2455_v26 = vrot.slane %v2405_v6, %v4393_v8  ;;  %v2459_v27 = vrot.slane %v2405_v6, %v4395_v9  ;;  %v2463_v28 = vrot.slane %v2405_v6, %v4397_v10 }
 0x211   : > { %v2467_v16 = vrot.slane %v2405_v6, %v4402_v12  ;;  %v2471_v29 = vrot.slane %v2405_v6, %v4404_v14  ;;  %v2475_v30 = vrot.slane %v2405_v6, %v4406_v15  ;;  %v2479_v31 = vrot.slane %v2405_v6, %v4408_v17 }
 0x212   : > { %v2489_v32 = vsel %vm2488_vm1, %v2410_v19, %v2451_v25  ;;  %v2490_v33 = vsel %vm2488_vm1, %v2414_v21, %v2455_v26  ;;  %v2491_v34 = vsel %vm2488_vm1, %v2418_v22, %v2459_v27  ;;  %v2492_v35 = vsel %vm2488_vm1, %v2422_v23, %v2463_v28 }
 0x213   : > { %v2505_v36 = vcombine.low %v2489_v32, %v2490_v33  ;;  %v2506_v37 = vcombine.low %v2491_v34, %v2492_v35  ;;  %v2493_v38 = vsel %vm2488_vm1, %v2426_v7, %v2467_v16  ;;  %v2494_v39 = vsel %vm2488_vm1, %v2430_v13, %v2471_v29 }
 0x214   : > { %v2495_v40 = vsel %vm2488_vm1, %v2434_v51, %v2475_v30  ;;  %v2496_v42 = vsel %vm2488_vm1, %v2438_v24, %v2479_v31  ;;  %v2522_v43 = vcombine.low %v2493_v38, %v2494_v39  ;;  %v2551_v51 = vld [vmem:[#allocation2 + $0x10] sm:$0xff] }
 0x215   : > { %v2513_v44 = vrot.slane %v2505_v36, %v2512_v20  ;;  %v2520_v45 = vrot.slane %v2506_v37, %v2512_v20  ;;  %v2523_v46 = vcombine.low %v2495_v40, %v2496_v42 }
 0x216   : > { %v2530_v47 = vrot.slane %v2522_v43, %v2512_v20 }
 0x217   : > { %v2521_v48 = vcombine.low %v2513_v44, %v2520_v45  ;;  %v2537_v49 = vrot.slane %v2523_v46, %v2512_v20  ;;  %v2550_v20 = vld [vmem:[#allocation2 + $0x18] sm:$0xff] }
 0x219   : > { %2541 = vst [vmem:[#allocation3] sm:$0xff] %v2521_v48  ;;  %v2538_v50 = vcombine.low %v2530_v47, %v2537_v49 }
 0x21b   : > { %2542 = vst [vmem:[#allocation3 + $0x8] sm:$0xff] %v2538_v50 }
 0x222   : > { %v2556_v53 = vld [vmem:[#allocation3] ss:$2 sm:$0xff]  ;;  %v2607_v54 = vld [vmem:[#allocation3 + $0x1] ss:$2 sm:$0xff] }
 0x223   : > { %v2577_v56 = vrot.slane %v2556_v53, %v4402_v12  ;;  %v2628_v57 = vrot.slane %v2607_v54, %v4402_v12  ;;  %v2581_v58 = vrot.slane %v2556_v53, %v4404_v14  ;;  %v2632_v61 = vrot.slane %v2607_v54, %v4404_v14 }
 0x224   : > { %v2585_v62 = vrot.slane %v2556_v53, %v4406_v15  ;;  %v2636_v63 = vrot.slane %v2607_v54, %v4406_v15  ;;  %v2589_v0 = vrot.slane %v2556_v53, %v4408_v17  ;;  %v2640_v4 = vrot.slane %v2607_v54, %v4408_v17 }
 0x225   : > { %v2602_v41 = vmul.f32 %v2577_v56, %v2552_v52  ;;  %v2603_v2 = vmul.f32 %v2581_v58, %v2553_v55  ;;  %v2561_v5 = vrot.slane %v2556_v53, %v4391_v3  ;;  %v2612_v19 = vrot.slane %v2607_v54, %v4391_v3 }
 0x226   : > { %v2604_v12 = vmul.f32 %v2585_v62, %v2554_v59  ;;  %v2605_v18 = vmul.f32 %v2589_v0, %v2555_v60  ;;  %v2565_v14 = vrot.slane %v2556_v53, %v4393_v8  ;;  %v2569_v22 = vrot.slane %v2556_v53, %v4395_v9 }
 0x227   : > { %v2653_v6 = vadd.f32 %v2628_v57, %v2602_v41  ;;  %v2654_v21 = vadd.f32 %v2632_v61, %v2603_v2  ;;  %v2598_v15 = vmul.f32 %v2561_v5, %v2548_v1  ;;  %v2616_v17 = vrot.slane %v2607_v54, %v4393_v8 }
 0x228   : > { %v2655_v23 = vadd.f32 %v2636_v63, %v2604_v12  ;;  %v2656_v7 = vadd.f32 %v2640_v4, %v2605_v18  ;;  %v2599_v13 = vmul.f32 %v2565_v14, %v2549_v11  ;;  %v2600_v24 = vmul.f32 %v2569_v22, %v2550_v20 }
 0x229   : > { %2665 = vst [vmem:[%s4489_s6] sm:$0xff] %v2653_v6  ;;  %2666 = vst [vmem:[%s4489_s6 + $0x8] sm:$0xff] %v2654_v21  ;;  %v2649_v3 = vadd.f32 %v2612_v19, %v2598_v15  ;;  %v2620_v25 = vrot.slane %v2607_v54, %v4395_v9  ;;  %v2573_v26 = vrot.slane %v2556_v53, %v4397_v10 }
 0x22a   : > { %2667 = vst [vmem:[%s4489_s6 + $0x10] sm:$0xff] %v2655_v23  ;;  %2668 = vst [vmem:[%s4489_s6 + $0x18] sm:$0xff] %v2656_v7  ;;  %v2650_v8 = vadd.f32 %v2616_v17, %v2599_v13  ;;  %v2624_v29 = vrot.slane %v2607_v54, %v4397_v10 }
 0x22b   : > { %v2657_v27 = vmax.f32 %v2649_v3, 0.0  ;;  %v2651_v28 = vadd.f32 %v2620_v25, %v2600_v24  ;;  %v2601_v16 = vmul.f32 %v2573_v26, %v2551_v51 }
 0x22c   : > { %v2658_v30 = vmax.f32 %v2650_v8, 0.0 }
 0x22d   : > { %2661 = vst [vmem:[%s4488_s5] sm:$0xff] %v2657_v27  ;;  %v2659_v9 = vmax.f32 %v2651_v28, 0.0  ;;  %v2652_v31 = vadd.f32 %v2624_v29, %v2601_v16 }
 0x22e   : > { %2662 = vst [vmem:[%s4488_s5 + $0x8] sm:$0xff] %v2658_v30 }
 0x22f   : > { %2663 = vst [vmem:[%s4488_s5 + $0x10] sm:$0xff] %v2659_v9  ;;  %v2660_v32 = vmax.f32 %v2652_v31, 0.0 }
 0x231   : > { %2664 = vst [vmem:[%s4488_s5 + $0x18] sm:$0xff] %v2660_v32 }
 0x232 PF: > { %s17_s23 = sadd.s32 1, %s3497_s23   ;;  %s4490_s21 = smov %s3493_s22 }
 0x233   : > { %p14_p6 = scmp.ge.s32.totalorder %s17_s23, 4   ;;  %s4491_s22 = smov %s4493_s24 }
 0x235   :  { %16 = sbr.rel (!%p14_p6) target bundleno = 2 (0x2), region = 102 }

// kernel: _lambda_.22
= control target key start
LH: loop header
LB: loop body
LE: loop exit
PB: predicated region body
PF: predicated region fallthrough
CT: control target
= control target key end

     0   :  { %s4563_s18 = smov 0   ;;  %s4565_s19 = smov 0   ;;  %s5897_s0 = inlined_call_operand.vmem [shape: bf16[8,1536], index: 0, kind: input, shape index: {}]   ;;  %s5898_s1 = inlined_call_operand.vmem [shape: bf16[1536,512], index: 1, kind: input, shape index: {}]   ;;  %s5899_s2 = inlined_call_operand.vmem [shape: f32[1,512], index: 2, kind: input, shape index: {}]   ;;  %s5900_s3 = inlined_call_operand.vmem [shape: f32[1,512], index: 3, kind: input, shape index: {}]   ;;  %s5901_s4 = inlined_call_operand.vmem [shape: f32[8,512], index: 4, kind: input, shape index: {}]   ;;  %s5902_s5 = inlined_call_operand.vmem [shape: f32[8,512], index: 5, kind: output, shape index: {}]  }
   0x1   :  { %s4567_s20 = smov 0  }
   0x2 LB: > { %s27_s21 = sadd.s32 1, %s4525_s19  ;;  %p3487_p0 = scmp.ge.s32.totalorder %s4529_s20, 1  ;;  %s4529_s20 = sphi %s4567_s20, %s15_s20   ;;  %s4525_s19 = sphi %s4565_s19, %s5904_s19   ;;  %s4521_s18 = sphi %s4563_s18, %s5903_s18  }
   0x3   : > { %p29_p1 = scmp.ge.s32.totalorder %s27_s21, 2  ;;  %p223_p2 = scmp.lt.s32.totalorder %s4529_s20, 3 }
   0x5   : > { %s5906_s21 = smov (%p29_p1, %s27_s21), 0  ;;  %p224_p3 = pnand %p3487_p0, %p223_p2 }
   0x6   : > { %p3488_p4 = scmp.ne.s32.totalorder (!%p224_p3), %s4521_s18, 0 }
   0x7   : > { %227 = sbr.rel (%p224_p3) target bundleno = 688 (0x2b0), region = 40 }
   0xc   : > { %287 = sbr.rel (%p3488_p4) target bundleno = 623 (0x26f), region = 44 }
  0x11   : > { %v3917_v0 = vld [vmem:[%s5898_s1 + $0xe4] ss:$16 sps:$4 sm:$0xff]   ;;  %v3921_v2 = vld [vmem:[%s5898_s1 + $0xe0] ss:$16 sps:$4 sm:$0xff]   ;;  %v289_v48 = vld [vmem:[%s5897_s0 + $0x8] sm:$0xff]  ;;  %vm3199_vm0 = vcmask 1040384  }
  0x12   : > { %v3919_v1 = vld [vmem:[%s5898_s1 + $0x2e4] ss:$16 sps:$4 sm:$0xff]   ;;  %2640 = vmatprep.subr.bf16.mxu0 %v3917_v0  ;;  %v3922_v3 = vld [vmem:[%s5898_s1 + $0x2e0] ss:$16 sps:$4 sm:$0xff]   ;;  %v4736_v51 = vcombine.high %v289_v48, %v289_v48 }
  0x13   : > { %2681 = vmatprep.subr.bf16.mxu1 %v3919_v1  ;;  %v3923_v4 = vld [vmem:[%s5898_s1 + $0xc4] ss:$16 sps:$4 sm:$0xff]   ;;  %2641 = vmatpush1.bf16.msra.mxu0 %v3921_v2  ;;  %v3927_v6 = vld [vmem:[%s5898_s1 + $0xc0] ss:$16 sps:$4 sm:$0xff]  }
  0x14   : > { %2682 = vmatpush1.bf16.msra.mxu1 %v3922_v3  ;;  %v3925_v5 = vld [vmem:[%s5898_s1 + $0x2c4] ss:$16 sps:$4 sm:$0xff]   ;;  %2642 = vmatprep.subr.bf16.mxu0 %v3923_v4  ;;  %v3928_v7 = vld [vmem:[%s5898_s1 + $0x2c0] ss:$16 sps:$4 sm:$0xff]  }
  0x15   : > { %2683 = vmatprep.subr.bf16.mxu1 %v3925_v5  ;;  %v3929_v8 = vld [vmem:[%s5898_s1 + $0xa4] ss:$16 sps:$4 sm:$0xff]   ;;  %v3933_v10 = vld [vmem:[%s5898_s1 + $0xa0] ss:$16 sps:$4 sm:$0xff]   ;;  %2713 = vmatprep.mubr.bf16.mxu1 %v4736_v51 }
  0x16   : > { %v3931_v9 = vld [vmem:[%s5898_s1 + $0x2a4] ss:$16 sps:$4 sm:$0xff]   ;;  %v3934_v11 = vld [vmem:[%s5898_s1 + $0x2a0] ss:$16 sps:$4 sm:$0xff]  }
  0x17   : > { %2643 = vmatpush1.bf16.msra.mxu0 %v3927_v6  ;;  %v3935_v12 = vld [vmem:[%s5898_s1 + $0x84] ss:$16 sps:$4 sm:$0xff]   ;;  %v3939_v14 = vld [vmem:[%s5898_s1 + $0x80] ss:$16 sps:$4 sm:$0xff]  }
  0x18   : > { %2684 = vmatpush1.bf16.msra.mxu1 %v3928_v7  ;;  %2644 = vmatprep.subr.bf16.mxu0 %v3929_v8  ;;  %v3937_v13 = vld [vmem:[%s5898_s1 + $0x284] ss:$16 sps:$4 sm:$0xff]   ;;  %v3940_v15 = vld [vmem:[%s5898_s1 + $0x280] ss:$16 sps:$4 sm:$0xff]   ;;  %v4796_v7 = vcombine.low %v289_v48, %v289_v48 }
  0x19   : > { %2685 = vmatprep.subr.bf16.mxu1 %v3931_v9  ;;  %v3941_v16 = vld [vmem:[%s5898_s1 + $0x64] ss:$16 sps:$4 sm:$0xff]   ;;  %v3945_v18 = vld [vmem:[%s5898_s1 + $0x60] ss:$16 sps:$4 sm:$0xff]  }
  0x1a   : > { %v3943_v17 = vld [vmem:[%s5898_s1 + $0x264] ss:$16 sps:$4 sm:$0xff]   ;;  %v3946_v19 = vld [vmem:[%s5898_s1 + $0x260] ss:$16 sps:$4 sm:$0xff]  }
  0x1b   : > { %2645 = vmatpush1.bf16.msra.mxu0 %v3933_v10  ;;  %v3947_v20 = vld [vmem:[%s5898_s1 + $0x44] ss:$16 sps:$4 sm:$0xff]   ;;  %v3951_v22 = vld [vmem:[%s5898_s1 + $0x40] ss:$16 sps:$4 sm:$0xff]  }
  0x1c   : > { %2686 = vmatpush1.bf16.msra.mxu1 %v3934_v11  ;;  %2646 = vmatprep.subr.bf16.mxu0 %v3935_v12  ;;  %v3949_v21 = vld [vmem:[%s5898_s1 + $0x244] ss:$16 sps:$4 sm:$0xff]   ;;  %v3952_v23 = vld [vmem:[%s5898_s1 + $0x240] ss:$16 sps:$4 sm:$0xff]  }
  0x1d   : > { %2687 = vmatprep.subr.bf16.mxu1 %v3937_v13  ;;  %v3953_v24 = vld [vmem:[%s5898_s1 + $0x24] ss:$16 sps:$4 sm:$0xff]   ;;  %v3957_v26 = vld [vmem:[%s5898_s1 + $0x20] ss:$16 sps:$4 sm:$0xff]  }
  0x1e   : > { %v3955_v25 = vld [vmem:[%s5898_s1 + $0x224] ss:$16 sps:$4 sm:$0xff]   ;;  %v3958_v27 = vld [vmem:[%s5898_s1 + $0x220] ss:$16 sps:$4 sm:$0xff]  }
  0x1f   : > { %2647 = vmatpush1.bf16.msra.mxu0 %v3939_v14  ;;  %v3959_v28 = vld [vmem:[%s5898_s1 + $0x4] ss:$16 sps:$4 sm:$0xff]   ;;  %v3963_v30 = vld [vmem:[%s5898_s1] ss:$16 sps:$4 sm:$0xff]  }
  0x20   : > { %2688 = vmatpush1.bf16.msra.mxu1 %v3940_v15  ;;  %2648 = vmatprep.subr.bf16.mxu0 %v3941_v16  ;;  %v3961_v29 = vld [vmem:[%s5898_s1 + $0x204] ss:$16 sps:$4 sm:$0xff]   ;;  %v3964_v31 = vld [vmem:[%s5898_s1 + $0x200] ss:$16 sps:$4 sm:$0xff]  }
  0x21   : > { %2689 = vmatprep.subr.bf16.mxu1 %v3943_v17  ;;  %v3965_v32 = vld [vmem:[%s5898_s1 + $0x1e4] ss:$16 sps:$4 sm:$0xff]   ;;  %v3969_v34 = vld [vmem:[%s5898_s1 + $0x1e0] ss:$16 sps:$4 sm:$0xff]  }
  0x22   : > { %v3967_v33 = vld [vmem:[%s5898_s1 + $0x3e4] ss:$16 sps:$4 sm:$0xff]   ;;  %v3970_v35 = vld [vmem:[%s5898_s1 + $0x3e0] ss:$16 sps:$4 sm:$0xff]  }
  0x23   : > { %2649 = vmatpush1.bf16.msra.mxu0 %v3945_v18  ;;  %v3971_v36 = vld [vmem:[%s5898_s1 + $0x1c4] ss:$16 sps:$4 sm:$0xff]   ;;  %v3975_v38 = vld [vmem:[%s5898_s1 + $0x1c0] ss:$16 sps:$4 sm:$0xff]  }
  0x24   : > { %2690 = vmatpush1.bf16.msra.mxu1 %v3946_v19  ;;  %2650 = vmatprep.subr.bf16.mxu0 %v3947_v20  ;;  %v3973_v37 = vld [vmem:[%s5898_s1 + $0x3c4] ss:$16 sps:$4 sm:$0xff]   ;;  %v3976_v39 = vld [vmem:[%s5898_s1 + $0x3c0] ss:$16 sps:$4 sm:$0xff]  }
  0x25   : > { %2691 = vmatprep.subr.bf16.mxu1 %v3949_v21  ;;  %v3977_v40 = vld [vmem:[%s5898_s1 + $0x1a4] ss:$16 sps:$4 sm:$0xff]   ;;  %v3981_v42 = vld [vmem:[%s5898_s1 + $0x1a0] ss:$16 sps:$4 sm:$0xff]  }
  0x26   : > { %v3979_v41 = vld [vmem:[%s5898_s1 + $0x3a4] ss:$16 sps:$4 sm:$0xff]   ;;  %v3982_v43 = vld [vmem:[%s5898_s1 + $0x3a0] ss:$16 sps:$4 sm:$0xff]  }
  0x27   : > { %2651 = vmatpush1.bf16.msra.mxu0 %v3951_v22  ;;  %v3983_v44 = vld [vmem:[%s5898_s1 + $0x184] ss:$16 sps:$4 sm:$0xff]   ;;  %v3987_v49 = vld [vmem:[%s5898_s1 + $0x180] ss:$16 sps:$4 sm:$0xff]  }
  0x28   : > { %2692 = vmatpush1.bf16.msra.mxu1 %v3952_v23  ;;  %2652 = vmatprep.subr.bf16.mxu0 %v3953_v24  ;;  %v3985_v45 = vld [vmem:[%s5898_s1 + $0x384] ss:$16 sps:$4 sm:$0xff]   ;;  %v3988_v50 = vld [vmem:[%s5898_s1 + $0x380] ss:$16 sps:$4 sm:$0xff]  }
  0x29   : > { %2693 = vmatprep.subr.bf16.mxu1 %v3955_v25  ;;  %v288_v46 = vld [vmem:[%s5897_s0] sm:$0xff] }
  0x2a   : > { %v4725_v47 = vcombine.high %v288_v46, %v288_v46  ;;  %v3989_v52 = vld [vmem:[%s5898_s1 + $0x164] ss:$16 sps:$4 sm:$0xff]   ;;  %v3993_v54 = vld [vmem:[%s5898_s1 + $0x160] ss:$16 sps:$4 sm:$0xff]   ;;  %v4794_v6 = vcombine.low %v288_v46, %v288_v46 }
  0x2b   : > { %2653 = vmatpush1.bf16.msra.mxu0 %v3957_v26  ;;  %v3991_v53 = vld [vmem:[%s5898_s1 + $0x364] ss:$16 sps:$4 sm:$0xff]   ;;  %v3994_v55 = vld [vmem:[%s5898_s1 + $0x360] ss:$16 sps:$4 sm:$0xff]  }
  0x2c   : > { %2694 = vmatpush1.bf16.msra.mxu1 %v3958_v27  ;;  %2654 = vmatprep.subr.bf16.mxu0 %v3959_v28  ;;  %v3995_v56 = vld [vmem:[%s5898_s1 + $0x144] ss:$16 sps:$4 sm:$0xff]   ;;  %v3999_v58 = vld [vmem:[%s5898_s1 + $0x140] ss:$16 sps:$4 sm:$0xff]  }
  0x2d   : > { %2695 = vmatprep.subr.bf16.mxu1 %v3961_v29  ;;  %2672 = vmatprep.mubr.bf16.mxu0 %v4725_v47  ;;  %v3997_v57 = vld [vmem:[%s5898_s1 + $0x344] ss:$16 sps:$4 sm:$0xff]   ;;  %v4000_v59 = vld [vmem:[%s5898_s1 + $0x340] ss:$16 sps:$4 sm:$0xff]  }
  0x2e   : > { %v4001_v60 = vld [vmem:[%s5898_s1 + $0x124] ss:$16 sps:$4 sm:$0xff]   ;;  %v4005_v62 = vld [vmem:[%s5898_s1 + $0x120] ss:$16 sps:$4 sm:$0xff]  }
  0x2f   : > { %2655 = vmatpush1.bf16.msra.mxu0 %v3963_v30  ;;  %v4003_v61 = vld [vmem:[%s5898_s1 + $0x324] ss:$16 sps:$4 sm:$0xff]   ;;  %v4006_v63 = vld [vmem:[%s5898_s1 + $0x320] ss:$16 sps:$4 sm:$0xff]  }
  0x30   : > { %2696 = vmatpush1.bf16.msra.mxu1 %v3964_v31  ;;  %2656 = vmatprep.subr.bf16.mxu0 %v3965_v32  ;;  %v4007_v0 = vld [vmem:[%s5898_s1 + $0x104] ss:$16 sps:$4 sm:$0xff]   ;;  %v4011_v2 = vld [vmem:[%s5898_s1 + $0x100] ss:$16 sps:$4 sm:$0xff]  }
  0x31   : > { %2697 = vmatprep.subr.bf16.mxu1 %v3967_v33  ;;  %v4009_v1 = vld [vmem:[%s5898_s1 + $0x304] ss:$16 sps:$4 sm:$0xff]   ;;  %v4012_v3 = vld [vmem:[%s5898_s1 + $0x300] ss:$16 sps:$4 sm:$0xff]   ;;  %v4880_v33 = vld [vmem:[%s5897_s0 + $0x18] sm:$0xff] }
  0x32   : > { %v4019_v4 = vld [vmem:[%s5898_s1 + $0x4e4] ss:$16 sps:$4 sm:$0xff]   ;;  %v4017_v8 = vld [vmem:[%s5898_s1 + $0x4e0] ss:$16 sps:$4 sm:$0xff]  }
  0x33   : > { %2657 = vmatpush2.bf16.msra.mxu0 %v3969_v34  ;;  %v4022_v5 = vld [vmem:[%s5898_s1 + $0x6e4] ss:$16 sps:$4 sm:$0xff]   ;;  %v4020_v9 = vld [vmem:[%s5898_s1 + $0x6e0] ss:$16 sps:$4 sm:$0xff]  }
  0x34   : > { %2698 = vmatpush2.bf16.msra.mxu1 %v3970_v35  ;;  %2658 = vmatprep.subr.bf16.mxu0 %v3971_v36  ;;  %v4025_v10 = vld [vmem:[%s5898_s1 + $0x4c4] ss:$16 sps:$4 sm:$0xff]   ;;  %v4023_v12 = vld [vmem:[%s5898_s1 + $0x4c0] ss:$16 sps:$4 sm:$0xff]  }
  0x35   : > { %2699 = vmatprep.subr.bf16.mxu1 %v3973_v37  ;;  %v4028_v11 = vld [vmem:[%s5898_s1 + $0x6c4] ss:$16 sps:$4 sm:$0xff]   ;;  %v4026_v13 = vld [vmem:[%s5898_s1 + $0x6c0] ss:$16 sps:$4 sm:$0xff]   ;;  %v4894_v37 = vcombine.high %v4880_v33, %v4880_v33 }
  0x36   : > { %v4031_v14 = vld [vmem:[%s5898_s1 + $0x4a4] ss:$16 sps:$4 sm:$0xff]   ;;  %v4029_v16 = vld [vmem:[%s5898_s1 + $0x4a0] ss:$16 sps:$4 sm:$0xff]  }
  0x37   : > { %2659 = vmatpush2.bf16.msra.mxu0 %v3975_v38  ;;  %v4034_v15 = vld [vmem:[%s5898_s1 + $0x6a4] ss:$16 sps:$4 sm:$0xff]   ;;  %v4032_v17 = vld [vmem:[%s5898_s1 + $0x6a0] ss:$16 sps:$4 sm:$0xff]  }
  0x38   : > { %2700 = vmatpush2.bf16.msra.mxu1 %v3976_v39  ;;  %2660 = vmatprep.subr.bf16.mxu0 %v3977_v40  ;;  %v4037_v18 = vld [vmem:[%s5898_s1 + $0x484] ss:$16 sps:$4 sm:$0xff]   ;;  %v4035_v20 = vld [vmem:[%s5898_s1 + $0x480] ss:$16 sps:$4 sm:$0xff]  }
  0x39   : > { %2701 = vmatprep.subr.bf16.mxu1 %v3979_v41  ;;  %v4040_v19 = vld [vmem:[%s5898_s1 + $0x684] ss:$16 sps:$4 sm:$0xff]   ;;  %v4038_v21 = vld [vmem:[%s5898_s1 + $0x680] ss:$16 sps:$4 sm:$0xff]  }
  0x3a   : > { %v4043_v22 = vld [vmem:[%s5898_s1 + $0x464] ss:$16 sps:$4 sm:$0xff]   ;;  %v4041_v24 = vld [vmem:[%s5898_s1 + $0x460] ss:$16 sps:$4 sm:$0xff]  }
  0x3b   : > { %2661 = vmatpush2.bf16.msra.mxu0 %v3981_v42  ;;  %v4046_v23 = vld [vmem:[%s5898_s1 + $0x664] ss:$16 sps:$4 sm:$0xff]   ;;  %v4044_v25 = vld [vmem:[%s5898_s1 + $0x660] ss:$16 sps:$4 sm:$0xff]  }
  0x3c   : > { %2702 = vmatpush2.bf16.msra.mxu1 %v3982_v43  ;;  %2662 = vmatprep.subr.bf16.mxu0 %v3983_v44  ;;  %v4049_v26 = vld [vmem:[%s5898_s1 + $0x444] ss:$16 sps:$4 sm:$0xff]   ;;  %v4047_v28 = vld [vmem:[%s5898_s1 + $0x440] ss:$16 sps:$4 sm:$0xff]  }
  0x3d   : > { %2703 = vmatprep.subr.bf16.mxu1 %v3985_v45  ;;  %v4052_v27 = vld [vmem:[%s5898_s1 + $0x644] ss:$16 sps:$4 sm:$0xff]   ;;  %v4050_v29 = vld [vmem:[%s5898_s1 + $0x640] ss:$16 sps:$4 sm:$0xff]  }
  0x3e   : > { %v4055_v30 = vld [vmem:[%s5898_s1 + $0x424] ss:$16 sps:$4 sm:$0xff]   ;;  %v4053_v34 = vld [vmem:[%s5898_s1 + $0x420] ss:$16 sps:$4 sm:$0xff]  }
  0x3f   : > { %2663 = vmatpush2.bf16.msra.mxu0 %v3987_v49  ;;  %v4058_v31 = vld [vmem:[%s5898_s1 + $0x624] ss:$16 sps:$4 sm:$0xff]   ;;  %v4056_v35 = vld [vmem:[%s5898_s1 + $0x620] ss:$16 sps:$4 sm:$0xff]  }
  0x40   : > { %2704 = vmatpush2.bf16.msra.mxu1 %v3988_v50  ;;  %2664 = vmatprep.subr.bf16.mxu0 %v3989_v52  ;;  %v4875_v32 = vld [vmem:[%s5897_s0 + $0x10] sm:$0xff] }
  0x41   : > { %2705 = vmatprep.subr.bf16.mxu1 %v3991_v53  ;;  %v4890_v36 = vcombine.high %v4875_v32, %v4875_v32  ;;  %v4061_v38 = vld [vmem:[%s5898_s1 + $0x404] ss:$16 sps:$4 sm:$0xff]   ;;  %v4059_v40 = vld [vmem:[%s5898_s1 + $0x400] ss:$16 sps:$4 sm:$0xff]  }
  0x42   : > { %v4064_v39 = vld [vmem:[%s5898_s1 + $0x604] ss:$16 sps:$4 sm:$0xff]   ;;  %v4062_v41 = vld [vmem:[%s5898_s1 + $0x600] ss:$16 sps:$4 sm:$0xff]  }
  0x43   : > { %2665 = vmatpush2.bf16.msra.mxu0 %v3993_v54  ;;  %v4067_v42 = vld [vmem:[%s5898_s1 + $0x5e4] ss:$16 sps:$4 sm:$0xff]   ;;  %v4065_v44 = vld [vmem:[%s5898_s1 + $0x5e0] ss:$16 sps:$4 sm:$0xff]  }
  0x44   : > { %2706 = vmatpush2.bf16.msra.mxu1 %v3994_v55  ;;  %2666 = vmatprep.subr.bf16.mxu0 %v3995_v56  ;;  %v4070_v43 = vld [vmem:[%s5898_s1 + $0x7e4] ss:$16 sps:$4 sm:$0xff]   ;;  %v4068_v45 = vld [vmem:[%s5898_s1 + $0x7e0] ss:$16 sps:$4 sm:$0xff]  }
  0x45   : > { %2707 = vmatprep.subr.bf16.mxu1 %v3997_v57  ;;  %v4073_v46 = vld [vmem:[%s5898_s1 + $0x5c4] ss:$16 sps:$4 sm:$0xff]   ;;  %v4071_v49 = vld [vmem:[%s5898_s1 + $0x5c0] ss:$16 sps:$4 sm:$0xff]  }
  0x46   : > { %v4076_v48 = vld [vmem:[%s5898_s1 + $0x7c4] ss:$16 sps:$4 sm:$0xff]   ;;  %v4074_v50 = vld [vmem:[%s5898_s1 + $0x7c0] ss:$16 sps:$4 sm:$0xff]  }
  0x47   : > { %2667 = vmatpush2.bf16.msra.mxu0 %v3999_v58  ;;  %v4079_v52 = vld [vmem:[%s5898_s1 + $0x5a4] ss:$16 sps:$4 sm:$0xff]   ;;  %v4077_v54 = vld [vmem:[%s5898_s1 + $0x5a0] ss:$16 sps:$4 sm:$0xff]  }
  0x48   : > { %2708 = vmatpush2.bf16.msra.mxu1 %v4000_v59  ;;  %2668 = vmatprep.subr.bf16.mxu0 %v4001_v60  ;;  %v4082_v53 = vld [vmem:[%s5898_s1 + $0x7a4] ss:$16 sps:$4 sm:$0xff]   ;;  %v4080_v55 = vld [vmem:[%s5898_s1 + $0x7a0] ss:$16 sps:$4 sm:$0xff]  }
  0x49   : > { %2709 = vmatprep.subr.bf16.mxu1 %v4003_v61  ;;  %v4085_v56 = vld [vmem:[%s5898_s1 + $0x584] ss:$16 sps:$4 sm:$0xff]   ;;  %v4083_v58 = vld [vmem:[%s5898_s1 + $0x580] ss:$16 sps:$4 sm:$0xff]  }
  0x4a   : > { %v4088_v57 = vld [vmem:[%s5898_s1 + $0x784] ss:$16 sps:$4 sm:$0xff]   ;;  %v4086_v59 = vld [vmem:[%s5898_s1 + $0x780] ss:$16 sps:$4 sm:$0xff]  }
  0x4b   : > { %2669 = vmatpush2.bf16.msra.mxu0 %v4005_v62  ;;  %v4091_v60 = vld [vmem:[%s5898_s1 + $0x564] ss:$16 sps:$4 sm:$0xff]   ;;  %v4089_v62 = vld [vmem:[%s5898_s1 + $0x560] ss:$16 sps:$4 sm:$0xff]  }
  0x4c   : > { %2710 = vmatpush2.bf16.msra.mxu1 %v4006_v63  ;;  %2670 = vmatprep.subr.bf16.mxu0 %v4007_v0  ;;  %v4094_v61 = vld [vmem:[%s5898_s1 + $0x764] ss:$16 sps:$4 sm:$0xff]   ;;  %v4092_v63 = vld [vmem:[%s5898_s1 + $0x760] ss:$16 sps:$4 sm:$0xff]  }
  0x4d   : > { %2711 = vmatprep.subr.bf16.mxu1 %v4009_v1  ;;  %v4097_v0 = vld [vmem:[%s5898_s1 + $0x544] ss:$16 sps:$4 sm:$0xff]  }
  0x4e   : > { %v4100_v1 = vld [vmem:[%s5898_s1 + $0x744] ss:$16 sps:$4 sm:$0xff]  }
  0x4f   : > { %2671 = vmatpush2.bf16.msra.mxu0 %v4011_v2  ;;  %v4095_v2 = vld [vmem:[%s5898_s1 + $0x540] ss:$16 sps:$4 sm:$0xff]  }
  0x50   : > { %2712 = vmatpush2.bf16.msra.mxu1 %v4012_v3  ;;  %2722 = vmatprep.subr.bf16.mxu0 %v4019_v4  ;;  %v4098_v3 = vld [vmem:[%s5898_s1 + $0x740] ss:$16 sps:$4 sm:$0xff]   ;;  %v4103_v4 = vld [vmem:[%s5898_s1 + $0x524] ss:$16 sps:$4 sm:$0xff]  }
  0x51   : > { %2763 = vmatprep.subr.bf16.mxu1 %v4022_v5  ;;  %v4106_v5 = vld [vmem:[%s5898_s1 + $0x724] ss:$16 sps:$4 sm:$0xff]  }
  0x52   : > { %2673 = vmatmul.mubr.bf16.vlgmr.msra.gmra.mxu0 %v4794_v6 }
  0x53   : > { %2714 = vmatmul.mubr.bf16.vlgmr.msra.gmra.mxu1 %v4796_v7  ;;  %2723 = vmatpush1.bf16.msra.mxu0 %v4017_v8  ;;  %v4101_v8 = vld [vmem:[%s5898_s1 + $0x520] ss:$16 sps:$4 sm:$0xff]  }
  0x54   : > { %2764 = vmatpush1.bf16.msra.mxu1 %v4020_v9  ;;  %2724 = vmatprep.subr.bf16.mxu0 %v4025_v10  ;;  %v4104_v9 = vld [vmem:[%s5898_s1 + $0x720] ss:$16 sps:$4 sm:$0xff]   ;;  %v4109_v10 = vld [vmem:[%s5898_s1 + $0x504] ss:$16 sps:$4 sm:$0xff]  }
  0x55   : > { %2765 = vmatprep.subr.bf16.mxu1 %v4028_v11  ;;  %2754 = vmatprep.mubr.bf16.mxu0 %v4890_v36  ;;  %v4112_v11 = vld [vmem:[%s5898_s1 + $0x704] ss:$16 sps:$4 sm:$0xff]  }
  0x56   : > { %2795 = vmatprep.mubr.bf16.mxu1 %v4894_v37 }
  0x57   : > { %2725 = vmatpush1.bf16.msra.mxu0 %v4023_v12  ;;  %v4107_v12 = vld [vmem:[%s5898_s1 + $0x500] ss:$16 sps:$4 sm:$0xff]  }
  0x58   : > { %2766 = vmatpush1.bf16.msra.mxu1 %v4026_v13  ;;  %2726 = vmatprep.subr.bf16.mxu0 %v4031_v14  ;;  %v4110_v13 = vld [vmem:[%s5898_s1 + $0x700] ss:$16 sps:$4 sm:$0xff]   ;;  %v4119_v14 = vld [vmem:[%s5898_s1 + $0x8e4] ss:$16 sps:$4 sm:$0xff]  }
  0x59   : > { %2767 = vmatprep.subr.bf16.mxu1 %v4034_v15  ;;  %v4122_v15 = vld [vmem:[%s5898_s1 + $0xae4] ss:$16 sps:$4 sm:$0xff]  }
  0x5b   : > { %2727 = vmatpush1.bf16.msra.mxu0 %v4029_v16  ;;  %v5014_v16 = vcombine.low %v4875_v32, %v4875_v32  ;;  %v4137_v32 = vld [vmem:[%s5898_s1 + $0x884] ss:$16 sps:$4 sm:$0xff]  }
  0x5c   : > { %2768 = vmatpush1.bf16.msra.mxu1 %v4032_v17  ;;  %2728 = vmatprep.subr.bf16.mxu0 %v4037_v18  ;;  %v5018_v17 = vcombine.low %v4880_v33, %v4880_v33  ;;  %v4117_v18 = vld [vmem:[%s5898_s1 + $0x8e0] ss:$16 sps:$4 sm:$0xff]   ;;  %v4140_v33 = vld [vmem:[%s5898_s1 + $0xa84] ss:$16 sps:$4 sm:$0xff]  }
  0x5d   : > { %2769 = vmatprep.subr.bf16.mxu1 %v4040_v19  ;;  %v4120_v19 = vld [vmem:[%s5898_s1 + $0xae0] ss:$16 sps:$4 sm:$0xff]  }
  0x5f   : > { %2729 = vmatpush1.bf16.msra.mxu0 %v4035_v20  ;;  %v4125_v20 = vld [vmem:[%s5898_s1 + $0x8c4] ss:$16 sps:$4 sm:$0xff]  }
  0x60   : > { %2770 = vmatpush1.bf16.msra.mxu1 %v4038_v21  ;;  %2730 = vmatprep.subr.bf16.mxu0 %v4043_v22  ;;  %v4128_v21 = vld [vmem:[%s5898_s1 + $0xac4] ss:$16 sps:$4 sm:$0xff]  }
  0x61   : > { %2771 = vmatprep.subr.bf16.mxu1 %v4046_v23  ;;  %v5035_v22 = vld [vmem:[%s5897_s0 + $0x20] sm:$0xff]  ;;  %v5040_v23 = vld [vmem:[%s5897_s0 + $0x28] sm:$0xff] }
  0x63   : > { %2731 = vmatpush1.bf16.msra.mxu0 %v4041_v24  ;;  %v5044_v24 = vcombine.high %v5035_v22, %v5035_v22 }
  0x64   : > { %2772 = vmatpush1.bf16.msra.mxu1 %v4044_v25  ;;  %2732 = vmatprep.subr.bf16.mxu0 %v4049_v26  ;;  %v5048_v25 = vcombine.high %v5040_v23, %v5040_v23  ;;  %v4123_v26 = vld [vmem:[%s5898_s1 + $0x8c0] ss:$16 sps:$4 sm:$0xff]  }
  0x65   : > { %2773 = vmatprep.subr.bf16.mxu1 %v4052_v27  ;;  %v4126_v27 = vld [vmem:[%s5898_s1 + $0xac0] ss:$16 sps:$4 sm:$0xff]  }
  0x67   : > { %2733 = vmatpush1.bf16.msra.mxu0 %v4047_v28  ;;  %v4131_v28 = vld [vmem:[%s5898_s1 + $0x8a4] ss:$16 sps:$4 sm:$0xff]  }
  0x68   : > { %2774 = vmatpush1.bf16.msra.mxu1 %v4050_v29  ;;  %2734 = vmatprep.subr.bf16.mxu0 %v4055_v30  ;;  %v4134_v29 = vld [vmem:[%s5898_s1 + $0xaa4] ss:$16 sps:$4 sm:$0xff]   ;;  %v4129_v30 = vld [vmem:[%s5898_s1 + $0x8a0] ss:$16 sps:$4 sm:$0xff]  }
  0x69   : > { %2775 = vmatprep.subr.bf16.mxu1 %v4058_v31  ;;  %v4132_v31 = vld [vmem:[%s5898_s1 + $0xaa0] ss:$16 sps:$4 sm:$0xff]  }
  0x6b   : > { %2735 = vmatpush1.bf16.msra.mxu0 %v4053_v34  ;;  %v4135_v34 = vld [vmem:[%s5898_s1 + $0x880] ss:$16 sps:$4 sm:$0xff]  }
  0x6c   : > { %2776 = vmatpush1.bf16.msra.mxu1 %v4056_v35  ;;  %2736 = vmatprep.subr.bf16.mxu0 %v4061_v38  ;;  %v4138_v35 = vld [vmem:[%s5898_s1 + $0xa80] ss:$16 sps:$4 sm:$0xff]   ;;  %v4143_v38 = vld [vmem:[%s5898_s1 + $0x864] ss:$16 sps:$4 sm:$0xff]  }
  0x6d   : > { %2777 = vmatprep.subr.bf16.mxu1 %v4064_v39  ;;  %v4146_v39 = vld [vmem:[%s5898_s1 + $0xa64] ss:$16 sps:$4 sm:$0xff]  }
  0x6f   : > { %2737 = vmatpush1.bf16.msra.mxu0 %v4059_v40  ;;  %v4141_v40 = vld [vmem:[%s5898_s1 + $0x860] ss:$16 sps:$4 sm:$0xff]  }
  0x70   : > { %2778 = vmatpush1.bf16.msra.mxu1 %v4062_v41  ;;  %2738 = vmatprep.subr.bf16.mxu0 %v4067_v42  ;;  %v4144_v41 = vld [vmem:[%s5898_s1 + $0xa60] ss:$16 sps:$4 sm:$0xff]   ;;  %v4149_v42 = vld [vmem:[%s5898_s1 + $0x844] ss:$16 sps:$4 sm:$0xff]  }
  0x71   : > { %2779 = vmatprep.subr.bf16.mxu1 %v4070_v43  ;;  %v4152_v43 = vld [vmem:[%s5898_s1 + $0xa44] ss:$16 sps:$4 sm:$0xff]  }
  0x73   : > { %2739 = vmatpush2.bf16.msra.mxu0 %v4065_v44  ;;  %v4147_v44 = vld [vmem:[%s5898_s1 + $0x840] ss:$16 sps:$4 sm:$0xff]  }
  0x74   : > { %2780 = vmatpush2.bf16.msra.mxu1 %v4068_v45  ;;  %2740 = vmatprep.subr.bf16.mxu0 %v4073_v46  ;;  %v4150_v45 = vld [vmem:[%s5898_s1 + $0xa40] ss:$16 sps:$4 sm:$0xff]   ;;  %v4155_v46 = vld [vmem:[%s5898_s1 + $0x824] ss:$16 sps:$4 sm:$0xff]  }
  0x75   : > { %2781 = vmatprep.subr.bf16.mxu1 %v4076_v48  ;;  %v4158_v48 = vld [vmem:[%s5898_s1 + $0xa24] ss:$16 sps:$4 sm:$0xff]  }
  0x77   : > { %2741 = vmatpush2.bf16.msra.mxu0 %v4071_v49  ;;  %v4153_v49 = vld [vmem:[%s5898_s1 + $0x820] ss:$16 sps:$4 sm:$0xff]  }
  0x78   : > { %2782 = vmatpush2.bf16.msra.mxu1 %v4074_v50  ;;  %2742 = vmatprep.subr.bf16.mxu0 %v4079_v52  ;;  %v4156_v50 = vld [vmem:[%s5898_s1 + $0xa20] ss:$16 sps:$4 sm:$0xff]   ;;  %v4161_v52 = vld [vmem:[%s5898_s1 + $0x804] ss:$16 sps:$4 sm:$0xff]  }
  0x79   : > { %2783 = vmatprep.subr.bf16.mxu1 %v4082_v53  ;;  %v4164_v53 = vld [vmem:[%s5898_s1 + $0xa04] ss:$16 sps:$4 sm:$0xff]  }
  0x7b   : > { %2743 = vmatpush2.bf16.msra.mxu0 %v4077_v54  ;;  %v4159_v54 = vld [vmem:[%s5898_s1 + $0x800] ss:$16 sps:$4 sm:$0xff]  }
  0x7c   : > { %2784 = vmatpush2.bf16.msra.mxu1 %v4080_v55  ;;  %2744 = vmatprep.subr.bf16.mxu0 %v4085_v56  ;;  %v4162_v55 = vld [vmem:[%s5898_s1 + $0xa00] ss:$16 sps:$4 sm:$0xff]   ;;  %v4167_v56 = vld [vmem:[%s5898_s1 + $0x9e4] ss:$16 sps:$4 sm:$0xff]  }
  0x7d   : > { %2785 = vmatprep.subr.bf16.mxu1 %v4088_v57  ;;  %v4170_v57 = vld [vmem:[%s5898_s1 + $0xbe4] ss:$16 sps:$4 sm:$0xff]  }
  0x7f   : > { %2745 = vmatpush2.bf16.msra.mxu0 %v4083_v58  ;;  %v4165_v58 = vld [vmem:[%s5898_s1 + $0x9e0] ss:$16 sps:$4 sm:$0xff]  }
  0x80   : > { %2786 = vmatpush2.bf16.msra.mxu1 %v4086_v59  ;;  %2746 = vmatprep.subr.bf16.mxu0 %v4091_v60  ;;  %v4168_v59 = vld [vmem:[%s5898_s1 + $0xbe0] ss:$16 sps:$4 sm:$0xff]   ;;  %v4173_v60 = vld [vmem:[%s5898_s1 + $0x9c4] ss:$16 sps:$4 sm:$0xff]  }
  0x81   : > { %2787 = vmatprep.subr.bf16.mxu1 %v4094_v61  ;;  %v4176_v61 = vld [vmem:[%s5898_s1 + $0xbc4] ss:$16 sps:$4 sm:$0xff]  }
  0x83   : > { %2747 = vmatpush2.bf16.msra.mxu0 %v4089_v62  ;;  %v4171_v62 = vld [vmem:[%s5898_s1 + $0x9c0] ss:$16 sps:$4 sm:$0xff]  }
  0x84   : > { %2788 = vmatpush2.bf16.msra.mxu1 %v4092_v63  ;;  %2748 = vmatprep.subr.bf16.mxu0 %v4097_v0  ;;  %v4174_v63 = vld [vmem:[%s5898_s1 + $0xbc0] ss:$16 sps:$4 sm:$0xff]   ;;  %v4179_v0 = vld [vmem:[%s5898_s1 + $0x9a4] ss:$16 sps:$4 sm:$0xff]  }
  0x85   : > { %2789 = vmatprep.subr.bf16.mxu1 %v4100_v1  ;;  %v4182_v1 = vld [vmem:[%s5898_s1 + $0xba4] ss:$16 sps:$4 sm:$0xff]  }
  0x87   : > { %2749 = vmatpush2.bf16.msra.mxu0 %v4095_v2  ;;  %v4177_v2 = vld [vmem:[%s5898_s1 + $0x9a0] ss:$16 sps:$4 sm:$0xff]  }
  0x88   : > { %2790 = vmatpush2.bf16.msra.mxu1 %v4098_v3  ;;  %2750 = vmatprep.subr.bf16.mxu0 %v4103_v4  ;;  %v4180_v3 = vld [vmem:[%s5898_s1 + $0xba0] ss:$16 sps:$4 sm:$0xff]   ;;  %v4185_v4 = vld [vmem:[%s5898_s1 + $0x984] ss:$16 sps:$4 sm:$0xff]  }
  0x89   : > { %2791 = vmatprep.subr.bf16.mxu1 %v4106_v5  ;;  %v4188_v5 = vld [vmem:[%s5898_s1 + $0xb84] ss:$16 sps:$4 sm:$0xff]  }
  0x8b   : > { %2751 = vmatpush2.bf16.msra.mxu0 %v4101_v8  ;;  %v4183_v8 = vld [vmem:[%s5898_s1 + $0x980] ss:$16 sps:$4 sm:$0xff]  }
  0x8c   : > { %2792 = vmatpush2.bf16.msra.mxu1 %v4104_v9  ;;  %2752 = vmatprep.subr.bf16.mxu0 %v4109_v10  ;;  %v4186_v9 = vld [vmem:[%s5898_s1 + $0xb80] ss:$16 sps:$4 sm:$0xff]   ;;  %v4191_v10 = vld [vmem:[%s5898_s1 + $0x964] ss:$16 sps:$4 sm:$0xff]  }
  0x8d   : > { %2793 = vmatprep.subr.bf16.mxu1 %v4112_v11  ;;  %v4194_v11 = vld [vmem:[%s5898_s1 + $0xb64] ss:$16 sps:$4 sm:$0xff]  }
  0x8f   : > { %2753 = vmatpush2.bf16.msra.mxu0 %v4107_v12  ;;  %v4189_v12 = vld [vmem:[%s5898_s1 + $0x960] ss:$16 sps:$4 sm:$0xff]  }
  0x90   : > { %2794 = vmatpush2.bf16.msra.mxu1 %v4110_v13  ;;  %2804 = vmatprep.subr.bf16.mxu0 %v4119_v14  ;;  %v4192_v13 = vld [vmem:[%s5898_s1 + $0xb60] ss:$16 sps:$4 sm:$0xff]   ;;  %v4197_v14 = vld [vmem:[%s5898_s1 + $0x944] ss:$16 sps:$4 sm:$0xff]  }
  0x91   : > { %2845 = vmatprep.subr.bf16.mxu1 %v4122_v15  ;;  %v4200_v15 = vld [vmem:[%s5898_s1 + $0xb44] ss:$16 sps:$4 sm:$0xff]  }
  0x92   : > { %2755 = vmatmul.mubr.bf16.vlgmr.msra.gmra.mxu0 %v5014_v16 }
  0x93   : > { %2796 = vmatmul.mubr.bf16.vlgmr.msra.gmra.mxu1 %v5018_v17  ;;  %2805 = vmatpush1.bf16.msra.mxu0 %v4117_v18  ;;  %v4195_v18 = vld [vmem:[%s5898_s1 + $0x940] ss:$16 sps:$4 sm:$0xff]  }
  0x94   : > { %2846 = vmatpush1.bf16.msra.mxu1 %v4120_v19  ;;  %2806 = vmatprep.subr.bf16.mxu0 %v4125_v20  ;;  %v4198_v19 = vld [vmem:[%s5898_s1 + $0xb40] ss:$16 sps:$4 sm:$0xff]   ;;  %v4203_v20 = vld [vmem:[%s5898_s1 + $0x924] ss:$16 sps:$4 sm:$0xff]  }
  0x95   : > { %2847 = vmatprep.subr.bf16.mxu1 %v4128_v21  ;;  %2836 = vmatprep.mubr.bf16.mxu0 %v5044_v24  ;;  %v4206_v21 = vld [vmem:[%s5898_s1 + $0xb24] ss:$16 sps:$4 sm:$0xff]  }
  0x96   : > { %2877 = vmatprep.mubr.bf16.mxu1 %v5048_v25 }
  0x97   : > { %2807 = vmatpush1.bf16.msra.mxu0 %v4123_v26  ;;  %v4201_v26 = vld [vmem:[%s5898_s1 + $0x920] ss:$16 sps:$4 sm:$0xff]  }
  0x98   : > { %2848 = vmatpush1.bf16.msra.mxu1 %v4126_v27  ;;  %2808 = vmatprep.subr.bf16.mxu0 %v4131_v28  ;;  %v4204_v27 = vld [vmem:[%s5898_s1 + $0xb20] ss:$16 sps:$4 sm:$0xff]   ;;  %v4209_v28 = vld [vmem:[%s5898_s1 + $0x904] ss:$16 sps:$4 sm:$0xff]  }
  0x99   : > { %2849 = vmatprep.subr.bf16.mxu1 %v4134_v29  ;;  %v4212_v29 = vld [vmem:[%s5898_s1 + $0xb04] ss:$16 sps:$4 sm:$0xff]  }
  0x9b   : > { %2809 = vmatpush1.bf16.msra.mxu0 %v4129_v30  ;;  %v4207_v30 = vld [vmem:[%s5898_s1 + $0x900] ss:$16 sps:$4 sm:$0xff]  }
  0x9c   : > { %2850 = vmatpush1.bf16.msra.mxu1 %v4132_v31  ;;  %2810 = vmatprep.subr.bf16.mxu0 %v4137_v32  ;;  %v4210_v31 = vld [vmem:[%s5898_s1 + $0xb00] ss:$16 sps:$4 sm:$0xff]   ;;  %v4219_v32 = vld [vmem:[%s5898_s1 + $0xec] ss:$16 sps:$4 sm:$0xff]  }
  0x9d   : > { %2851 = vmatprep.subr.bf16.mxu1 %v4140_v33  ;;  %v4222_v33 = vld [vmem:[%s5898_s1 + $0x2ec] ss:$16 sps:$4 sm:$0xff]  }
  0x9f   : > { %2811 = vmatpush1.bf16.msra.mxu0 %v4135_v34  ;;  %v5236_v34 = vcombine.low %v5035_v22, %v5035_v22  ;;  %v4225_v22 = vld [vmem:[%s5898_s1 + $0xcc] ss:$16 sps:$4 sm:$0xff]  }
  0xa0   : > { %2852 = vmatpush1.bf16.msra.mxu1 %v4138_v35  ;;  %2812 = vmatprep.subr.bf16.mxu0 %v4143_v38  ;;  %v5240_v35 = vcombine.low %v5040_v23, %v5040_v23  ;;  %v4217_v38 = vld [vmem:[%s5898_s1 + $0xe8] ss:$16 sps:$4 sm:$0xff]   ;;  %v4228_v23 = vld [vmem:[%s5898_s1 + $0x2cc] ss:$16 sps:$4 sm:$0xff]  }
  0xa1   : > { %2853 = vmatprep.subr.bf16.mxu1 %v4146_v39  ;;  %v4220_v39 = vld [vmem:[%s5898_s1 + $0x2e8] ss:$16 sps:$4 sm:$0xff]  }
  0xa3   : > { %2813 = vmatpush1.bf16.msra.mxu0 %v4141_v40  ;;  %v4223_v40 = vld [vmem:[%s5898_s1 + $0xc8] ss:$16 sps:$4 sm:$0xff]  }
  0xa4   : > { %2854 = vmatpush1.bf16.msra.mxu1 %v4144_v41  ;;  %2814 = vmatprep.subr.bf16.mxu0 %v4149_v42  ;;  %v4226_v41 = vld [vmem:[%s5898_s1 + $0x2c8] ss:$16 sps:$4 sm:$0xff]   ;;  %v4231_v42 = vld [vmem:[%s5898_s1 + $0xac] ss:$16 sps:$4 sm:$0xff]  }
  0xa5   : > { %2855 = vmatprep.subr.bf16.mxu1 %v4152_v43  ;;  %v4234_v43 = vld [vmem:[%s5898_s1 + $0x2ac] ss:$16 sps:$4 sm:$0xff]  }
  0xa7   : > { %2815 = vmatpush1.bf16.msra.mxu0 %v4147_v44  ;;  %v4229_v44 = vld [vmem:[%s5898_s1 + $0xa8] ss:$16 sps:$4 sm:$0xff]  }
  0xa8   : > { %2856 = vmatpush1.bf16.msra.mxu1 %v4150_v45  ;;  %2816 = vmatprep.subr.bf16.mxu0 %v4155_v46  ;;  %v4232_v45 = vld [vmem:[%s5898_s1 + $0x2a8] ss:$16 sps:$4 sm:$0xff]   ;;  %v4237_v46 = vld [vmem:[%s5898_s1 + $0x8c] ss:$16 sps:$4 sm:$0xff]  }
  0xa9   : > { %2857 = vmatprep.subr.bf16.mxu1 %v4158_v48  ;;  %v4238_v48 = vld [vmem:[%s5898_s1 + $0x288] ss:$16 sps:$4 sm:$0xff]  }
  0xab   : > { %2817 = vmatpush1.bf16.msra.mxu0 %v4153_v49  ;;  %v4243_v49 = vld [vmem:[%s5898_s1 + $0x6c] ss:$16 sps:$4 sm:$0xff]  }
  0xac   : > { %2858 = vmatpush1.bf16.msra.mxu1 %v4156_v50  ;;  %2818 = vmatprep.subr.bf16.mxu0 %v4161_v52  ;;  %v4246_v50 = vld [vmem:[%s5898_s1 + $0x26c] ss:$16 sps:$4 sm:$0xff]   ;;  %v4241_v52 = vld [vmem:[%s5898_s1 + $0x68] ss:$16 sps:$4 sm:$0xff]  }
  0xad   : > { %2859 = vmatprep.subr.bf16.mxu1 %v4164_v53  ;;  %v4244_v53 = vld [vmem:[%s5898_s1 + $0x268] ss:$16 sps:$4 sm:$0xff]  }
  0xaf   : > { %2819 = vmatpush1.bf16.msra.mxu0 %v4159_v54  ;;  %v4249_v54 = vld [vmem:[%s5898_s1 + $0x4c] ss:$16 sps:$4 sm:$0xff]  }
  0xb0   : > { %2860 = vmatpush1.bf16.msra.mxu1 %v4162_v55  ;;  %2820 = vmatprep.subr.bf16.mxu0 %v4167_v56  ;;  %v4252_v55 = vld [vmem:[%s5898_s1 + $0x24c] ss:$16 sps:$4 sm:$0xff]   ;;  %v4247_v56 = vld [vmem:[%s5898_s1 + $0x48] ss:$16 sps:$4 sm:$0xff]  }
  0xb1   : > { %2861 = vmatprep.subr.bf16.mxu1 %v4170_v57  ;;  %v4250_v57 = vld [vmem:[%s5898_s1 + $0x248] ss:$16 sps:$4 sm:$0xff]  }
  0xb3   : > { %2821 = vmatpush2.bf16.msra.mxu0 %v4165_v58  ;;  %v4255_v58 = vld [vmem:[%s5898_s1 + $0x2c] ss:$16 sps:$4 sm:$0xff]  }
  0xb4   : > { %2862 = vmatpush2.bf16.msra.mxu1 %v4168_v59  ;;  %2822 = vmatprep.subr.bf16.mxu0 %v4173_v60  ;;  %v4258_v59 = vld [vmem:[%s5898_s1 + $0x22c] ss:$16 sps:$4 sm:$0xff]   ;;  %v4253_v60 = vld [vmem:[%s5898_s1 + $0x28] ss:$16 sps:$4 sm:$0xff]  }
  0xb5   : > { %2863 = vmatprep.subr.bf16.mxu1 %v4176_v61  ;;  %v4256_v61 = vld [vmem:[%s5898_s1 + $0x228] ss:$16 sps:$4 sm:$0xff]  }
  0xb7   : > { %2823 = vmatpush2.bf16.msra.mxu0 %v4171_v62  ;;  %v4261_v62 = vld [vmem:[%s5898_s1 + $0xc] ss:$16 sps:$4 sm:$0xff]  }
  0xb8   : > { %2864 = vmatpush2.bf16.msra.mxu1 %v4174_v63  ;;  %2824 = vmatprep.subr.bf16.mxu0 %v4179_v0  ;;  %v4264_v63 = vld [vmem:[%s5898_s1 + $0x20c] ss:$16 sps:$4 sm:$0xff]   ;;  %v4259_v0 = vld [vmem:[%s5898_s1 + $0x8] ss:$16 sps:$4 sm:$0xff]  }
  0xb9   : > { %2865 = vmatprep.subr.bf16.mxu1 %v4182_v1  ;;  %v4262_v1 = vld [vmem:[%s5898_s1 + $0x208] ss:$16 sps:$4 sm:$0xff]  }
  0xbb   : > { %2825 = vmatpush2.bf16.msra.mxu0 %v4177_v2  ;;  %v4267_v2 = vld [vmem:[%s5898_s1 + $0x1ec] ss:$16 sps:$4 sm:$0xff]  }
  0xbc   : > { %2866 = vmatpush2.bf16.msra.mxu1 %v4180_v3  ;;  %2826 = vmatprep.subr.bf16.mxu0 %v4185_v4  ;;  %v4270_v3 = vld [vmem:[%s5898_s1 + $0x3ec] ss:$16 sps:$4 sm:$0xff]   ;;  %v4265_v4 = vld [vmem:[%s5898_s1 + $0x1e8] ss:$16 sps:$4 sm:$0xff]  }
  0xbd   : > { %2867 = vmatprep.subr.bf16.mxu1 %v4188_v5  ;;  %v4268_v5 = vld [vmem:[%s5898_s1 + $0x3e8] ss:$16 sps:$4 sm:$0xff]  }
  0xbf   : > { %2827 = vmatpush2.bf16.msra.mxu0 %v4183_v8  ;;  %v4273_v8 = vld [vmem:[%s5898_s1 + $0x1cc] ss:$16 sps:$4 sm:$0xff]  }
  0xc0   : > { %2868 = vmatpush2.bf16.msra.mxu1 %v4186_v9  ;;  %2828 = vmatprep.subr.bf16.mxu0 %v4191_v10  ;;  %v4276_v9 = vld [vmem:[%s5898_s1 + $0x3cc] ss:$16 sps:$4 sm:$0xff]   ;;  %v4271_v10 = vld [vmem:[%s5898_s1 + $0x1c8] ss:$16 sps:$4 sm:$0xff]  }
  0xc1   : > { %2869 = vmatprep.subr.bf16.mxu1 %v4194_v11  ;;  %v4274_v11 = vld [vmem:[%s5898_s1 + $0x3c8] ss:$16 sps:$4 sm:$0xff]  }
  0xc3   : > { %2829 = vmatpush2.bf16.msra.mxu0 %v4189_v12  ;;  %v4279_v12 = vld [vmem:[%s5898_s1 + $0x1ac] ss:$16 sps:$4 sm:$0xff]  }
  0xc4   : > { %2870 = vmatpush2.bf16.msra.mxu1 %v4192_v13  ;;  %2830 = vmatprep.subr.bf16.mxu0 %v4197_v14  ;;  %v4282_v13 = vld [vmem:[%s5898_s1 + $0x3ac] ss:$16 sps:$4 sm:$0xff]   ;;  %v4277_v14 = vld [vmem:[%s5898_s1 + $0x1a8] ss:$16 sps:$4 sm:$0xff]  }
  0xc5   : > { %2871 = vmatprep.subr.bf16.mxu1 %v4200_v15  ;;  %v4280_v15 = vld [vmem:[%s5898_s1 + $0x3a8] ss:$16 sps:$4 sm:$0xff]  }
  0xc7   : > { %2831 = vmatpush2.bf16.msra.mxu0 %v4195_v18  ;;  %v4285_v18 = vld [vmem:[%s5898_s1 + $0x18c] ss:$16 sps:$4 sm:$0xff]  }
  0xc8   : > { %2872 = vmatpush2.bf16.msra.mxu1 %v4198_v19  ;;  %2832 = vmatprep.subr.bf16.mxu0 %v4203_v20  ;;  %v4288_v19 = vld [vmem:[%s5898_s1 + $0x38c] ss:$16 sps:$4 sm:$0xff]   ;;  %v4283_v20 = vld [vmem:[%s5898_s1 + $0x188] ss:$16 sps:$4 sm:$0xff]  }
  0xc9   : > { %2873 = vmatprep.subr.bf16.mxu1 %v4206_v21  ;;  %v4286_v21 = vld [vmem:[%s5898_s1 + $0x388] ss:$16 sps:$4 sm:$0xff]  }
  0xcb   : > { %2833 = vmatpush2.bf16.msra.mxu0 %v4201_v26  ;;  %v4291_v26 = vld [vmem:[%s5898_s1 + $0x16c] ss:$16 sps:$4 sm:$0xff]  }
  0xcc   : > { %2874 = vmatpush2.bf16.msra.mxu1 %v4204_v27  ;;  %2834 = vmatprep.subr.bf16.mxu0 %v4209_v28  ;;  %v4294_v27 = vld [vmem:[%s5898_s1 + $0x36c] ss:$16 sps:$4 sm:$0xff]   ;;  %v4289_v28 = vld [vmem:[%s5898_s1 + $0x168] ss:$16 sps:$4 sm:$0xff]  }
  0xcd   : > { %2875 = vmatprep.subr.bf16.mxu1 %v4212_v29  ;;  %v4292_v29 = vld [vmem:[%s5898_s1 + $0x368] ss:$16 sps:$4 sm:$0xff]  }
  0xcf   : > { %2835 = vmatpush2.bf16.msra.mxu0 %v4207_v30  ;;  %v4297_v30 = vld [vmem:[%s5898_s1 + $0x14c] ss:$16 sps:$4 sm:$0xff]  }
  0xd0   : > { %2876 = vmatpush2.bf16.msra.mxu1 %v4210_v31  ;;  %2886 = vmatprep.subr.bf16.mxu0 %v4219_v32  ;;  %v4300_v31 = vld [vmem:[%s5898_s1 + $0x34c] ss:$16 sps:$4 sm:$0xff]   ;;  %v4295_v32 = vld [vmem:[%s5898_s1 + $0x148] ss:$16 sps:$4 sm:$0xff]  }
  0xd1   : > { %2927 = vmatprep.subr.bf16.mxu1 %v4222_v33  ;;  %v4298_v33 = vld [vmem:[%s5898_s1 + $0x348] ss:$16 sps:$4 sm:$0xff]  }
  0xd2   : > { %2837 = vmatmul.mubr.bf16.vlgmr.msra.gmra.mxu0 %v5236_v34 }
  0xd3   : > { %2878 = vmatmul.mubr.bf16.vlgmr.msra.gmra.mxu1 %v5240_v35  ;;  %2887 = vmatpush1.bf16.msra.mxu0 %v4217_v38  ;;  %v4303_v38 = vld [vmem:[%s5898_s1 + $0x12c] ss:$16 sps:$4 sm:$0xff]  }
  0xd4   : > { %2928 = vmatpush1.bf16.msra.mxu1 %v4220_v39  ;;  %2888 = vmatprep.subr.bf16.mxu0 %v4225_v22  ;;  %v4306_v39 = vld [vmem:[%s5898_s1 + $0x32c] ss:$16 sps:$4 sm:$0xff]   ;;  %v4301_v22 = vld [vmem:[%s5898_s1 + $0x128] ss:$16 sps:$4 sm:$0xff]  }
  0xd5   : > { %2929 = vmatprep.subr.bf16.mxu1 %v4228_v23  ;;  %2918 = vmatprep.mubr.bf16.mxu0 %v4725_v47  ;;  %v4240_v47 = vld [vmem:[%s5898_s1 + $0x28c] ss:$16 sps:$4 sm:$0xff]   ;;  %v4304_v23 = vld [vmem:[%s5898_s1 + $0x328] ss:$16 sps:$4 sm:$0xff]  }
  0xd6   : > { %2959 = vmatprep.mubr.bf16.mxu1 %v4736_v51  ;;  %v4235_v51 = vld [vmem:[%s5898_s1 + $0x88] ss:$16 sps:$4 sm:$0xff]  }
  0xd7   : > { %2889 = vmatpush1.bf16.msra.mxu0 %v4223_v40  ;;  %v4309_v40 = vld [vmem:[%s5898_s1 + $0x10c] ss:$16 sps:$4 sm:$0xff]  }
  0xd8   : > { %2930 = vmatpush1.bf16.msra.mxu1 %v4226_v41  ;;  %2890 = vmatprep.subr.bf16.mxu0 %v4231_v42  ;;  %v4312_v41 = vld [vmem:[%s5898_s1 + $0x30c] ss:$16 sps:$4 sm:$0xff]   ;;  %v4307_v42 = vld [vmem:[%s5898_s1 + $0x108] ss:$16 sps:$4 sm:$0xff]  }
  0xd9   : > { %2931 = vmatprep.subr.bf16.mxu1 %v4234_v43  ;;  %v4310_v43 = vld [vmem:[%s5898_s1 + $0x308] ss:$16 sps:$4 sm:$0xff]  }
  0xdb   : > { %2891 = vmatpush1.bf16.msra.mxu0 %v4229_v44  ;;  %v4315_v44 = vld [vmem:[%s5898_s1 + $0x4ec] ss:$16 sps:$4 sm:$0xff]  }
  0xdc   : > { %2932 = vmatpush1.bf16.msra.mxu1 %v4232_v45  ;;  %2892 = vmatprep.subr.bf16.mxu0 %v4237_v46  ;;  %v4318_v45 = vld [vmem:[%s5898_s1 + $0x6ec] ss:$16 sps:$4 sm:$0xff]   ;;  %v4313_v46 = vld [vmem:[%s5898_s1 + $0x4e8] ss:$16 sps:$4 sm:$0xff]  }
  0xdd   : > { %2933 = vmatprep.subr.bf16.mxu1 %v4240_v47  ;;  %v4316_v47 = vld [vmem:[%s5898_s1 + $0x6e8] ss:$16 sps:$4 sm:$0xff]  }
  0xdf   : > { %2893 = vmatpush1.bf16.msra.mxu0 %v4235_v51  ;;  %v4321_v51 = vld [vmem:[%s5898_s1 + $0x4cc] ss:$16 sps:$4 sm:$0xff]  }
  0xe0   : > { %2934 = vmatpush1.bf16.msra.mxu1 %v4238_v48  ;;  %2894 = vmatprep.subr.bf16.mxu0 %v4243_v49  ;;  %v4324_v48 = vld [vmem:[%s5898_s1 + $0x6cc] ss:$16 sps:$4 sm:$0xff]  }
  0xe1   : > { %2935 = vmatprep.subr.bf16.mxu1 %v4246_v50 }
  0xe3   : > { %2895 = vmatpush1.bf16.msra.mxu0 %v4241_v52 }
  0xe4   : > { %2936 = vmatpush1.bf16.msra.mxu1 %v4244_v53  ;;  %2896 = vmatprep.subr.bf16.mxu0 %v4249_v54  ;;  %v4319_v53 = vld [vmem:[%s5898_s1 + $0x4c8] ss:$16 sps:$4 sm:$0xff]  }
  0xe5   : > { %2937 = vmatprep.subr.bf16.mxu1 %v4252_v55  ;;  %v4322_v54 = vld [vmem:[%s5898_s1 + $0x6c8] ss:$16 sps:$4 sm:$0xff]  }
  0xe7   : > { %2897 = vmatpush1.bf16.msra.mxu0 %v4247_v56 }
  0xe8   : > { %2938 = vmatpush1.bf16.msra.mxu1 %v4250_v57  ;;  %2898 = vmatprep.subr.bf16.mxu0 %v4255_v58 }
  0xe9   : > { %2939 = vmatprep.subr.bf16.mxu1 %v4258_v59 }
  0xeb   : > { %2899 = vmatpush1.bf16.msra.mxu0 %v4253_v60  ;;  %v4325_v60 = vld [vmem:[%s5898_s1 + $0x4a8] ss:$16 sps:$4 sm:$0xff]  }
  0xec   : > { %2940 = vmatpush1.bf16.msra.mxu1 %v4256_v61  ;;  %2900 = vmatprep.subr.bf16.mxu0 %v4261_v62  ;;  %v4328_v61 = vld [vmem:[%s5898_s1 + $0x6a8] ss:$16 sps:$4 sm:$0xff]  }
  0xed   : > { %2941 = vmatprep.subr.bf16.mxu1 %v4264_v63 }
  0xef   : > { %2901 = vmatpush1.bf16.msra.mxu0 %v4259_v0  ;;  %v4331_v0 = vld [vmem:[%s5898_s1 + $0x488] ss:$16 sps:$4 sm:$0xff]  }
  0xf0   : > { %2942 = vmatpush1.bf16.msra.mxu1 %v4262_v1  ;;  %2902 = vmatprep.subr.bf16.mxu0 %v4267_v2  ;;  %v4334_v1 = vld [vmem:[%s5898_s1 + $0x688] ss:$16 sps:$4 sm:$0xff]   ;;  %v4339_v2 = vld [vmem:[%s5898_s1 + $0x46c] ss:$16 sps:$4 sm:$0xff]  }
  0xf1   : > { %2943 = vmatprep.subr.bf16.mxu1 %v4270_v3  ;;  %v4342_v3 = vld [vmem:[%s5898_s1 + $0x66c] ss:$16 sps:$4 sm:$0xff]  }
  0xf3   : > { %2903 = vmatpush2.bf16.msra.mxu0 %v4265_v4  ;;  %v4337_v4 = vld [vmem:[%s5898_s1 + $0x468] ss:$16 sps:$4 sm:$0xff]  }
  0xf4   : > { %2944 = vmatpush2.bf16.msra.mxu1 %v4268_v5  ;;  %2904 = vmatprep.subr.bf16.mxu0 %v4273_v8  ;;  %v4340_v5 = vld [vmem:[%s5898_s1 + $0x668] ss:$16 sps:$4 sm:$0xff]   ;;  %v4345_v8 = vld [vmem:[%s5898_s1 + $0x44c] ss:$16 sps:$4 sm:$0xff]  }
  0xf5   : > { %2945 = vmatprep.subr.bf16.mxu1 %v4276_v9  ;;  %v4348_v9 = vld [vmem:[%s5898_s1 + $0x64c] ss:$16 sps:$4 sm:$0xff]  }
  0xf7   : > { %2905 = vmatpush2.bf16.msra.mxu0 %v4271_v10  ;;  %v4343_v10 = vld [vmem:[%s5898_s1 + $0x448] ss:$16 sps:$4 sm:$0xff]  }
  0xf8   : > { %2946 = vmatpush2.bf16.msra.mxu1 %v4274_v11  ;;  %2906 = vmatprep.subr.bf16.mxu0 %v4279_v12  ;;  %v4346_v11 = vld [vmem:[%s5898_s1 + $0x648] ss:$16 sps:$4 sm:$0xff]   ;;  %v4351_v12 = vld [vmem:[%s5898_s1 + $0x42c] ss:$16 sps:$4 sm:$0xff]  }
  0xf9   : > { %2947 = vmatprep.subr.bf16.mxu1 %v4282_v13  ;;  %v4354_v13 = vld [vmem:[%s5898_s1 + $0x62c] ss:$16 sps:$4 sm:$0xff]  }
  0xfb   : > { %2907 = vmatpush2.bf16.msra.mxu0 %v4277_v14  ;;  %v4349_v14 = vld [vmem:[%s5898_s1 + $0x428] ss:$16 sps:$4 sm:$0xff]  }
  0xfc   : > { %2948 = vmatpush2.bf16.msra.mxu1 %v4280_v15  ;;  %2908 = vmatprep.subr.bf16.mxu0 %v4285_v18  ;;  %v4352_v15 = vld [vmem:[%s5898_s1 + $0x628] ss:$16 sps:$4 sm:$0xff]   ;;  %v4357_v18 = vld [vmem:[%s5898_s1 + $0x40c] ss:$16 sps:$4 sm:$0xff]  }
  0xfd   : > { %2949 = vmatprep.subr.bf16.mxu1 %v4288_v19  ;;  %v4360_v19 = vld [vmem:[%s5898_s1 + $0x60c] ss:$16 sps:$4 sm:$0xff]  }
  0xff   : > { %2909 = vmatpush2.bf16.msra.mxu0 %v4283_v20  ;;  %v4355_v20 = vld [vmem:[%s5898_s1 + $0x408] ss:$16 sps:$4 sm:$0xff]  }
 0x100   : > { %2950 = vmatpush2.bf16.msra.mxu1 %v4286_v21  ;;  %2910 = vmatprep.subr.bf16.mxu0 %v4291_v26  ;;  %v4358_v21 = vld [vmem:[%s5898_s1 + $0x608] ss:$16 sps:$4 sm:$0xff]   ;;  %v4363_v26 = vld [vmem:[%s5898_s1 + $0x5ec] ss:$16 sps:$4 sm:$0xff]  }
 0x101   : > { %2951 = vmatprep.subr.bf16.mxu1 %v4294_v27  ;;  %v4366_v27 = vld [vmem:[%s5898_s1 + $0x7ec] ss:$16 sps:$4 sm:$0xff]  }
 0x103   : > { %2911 = vmatpush2.bf16.msra.mxu0 %v4289_v28  ;;  %v4361_v28 = vld [vmem:[%s5898_s1 + $0x5e8] ss:$16 sps:$4 sm:$0xff]  }
 0x104   : > { %2952 = vmatpush2.bf16.msra.mxu1 %v4292_v29  ;;  %2912 = vmatprep.subr.bf16.mxu0 %v4297_v30  ;;  %v4364_v29 = vld [vmem:[%s5898_s1 + $0x7e8] ss:$16 sps:$4 sm:$0xff]   ;;  %v4369_v30 = vld [vmem:[%s5898_s1 + $0x5cc] ss:$16 sps:$4 sm:$0xff]  }
 0x105   : > { %2953 = vmatprep.subr.bf16.mxu1 %v4300_v31  ;;  %v4372_v31 = vld [vmem:[%s5898_s1 + $0x7cc] ss:$16 sps:$4 sm:$0xff]  }
 0x107   : > { %2913 = vmatpush2.bf16.msra.mxu0 %v4295_v32  ;;  %v4367_v32 = vld [vmem:[%s5898_s1 + $0x5c8] ss:$16 sps:$4 sm:$0xff]  }
 0x108   : > { %2954 = vmatpush2.bf16.msra.mxu1 %v4298_v33  ;;  %2914 = vmatprep.subr.bf16.mxu0 %v4303_v38  ;;  %v4370_v33 = vld [vmem:[%s5898_s1 + $0x7c8] ss:$16 sps:$4 sm:$0xff]   ;;  %v4375_v38 = vld [vmem:[%s5898_s1 + $0x5ac] ss:$16 sps:$4 sm:$0xff]  }
 0x109   : > { %2955 = vmatprep.subr.bf16.mxu1 %v4306_v39  ;;  %v4378_v39 = vld [vmem:[%s5898_s1 + $0x7ac] ss:$16 sps:$4 sm:$0xff]  }
 0x10b   : > { %2915 = vmatpush2.bf16.msra.mxu0 %v4301_v22  ;;  %v4373_v22 = vld [vmem:[%s5898_s1 + $0x5a8] ss:$16 sps:$4 sm:$0xff]  }
 0x10c   : > { %2956 = vmatpush2.bf16.msra.mxu1 %v4304_v23  ;;  %2916 = vmatprep.subr.bf16.mxu0 %v4309_v40  ;;  %v4376_v23 = vld [vmem:[%s5898_s1 + $0x7a8] ss:$16 sps:$4 sm:$0xff]   ;;  %v4381_v40 = vld [vmem:[%s5898_s1 + $0x58c] ss:$16 sps:$4 sm:$0xff]  }
 0x10d   : > { %2957 = vmatprep.subr.bf16.mxu1 %v4312_v41  ;;  %v4384_v41 = vld [vmem:[%s5898_s1 + $0x78c] ss:$16 sps:$4 sm:$0xff]  }
 0x10f   : > { %2917 = vmatpush2.bf16.msra.mxu0 %v4307_v42  ;;  %v4379_v42 = vld [vmem:[%s5898_s1 + $0x588] ss:$16 sps:$4 sm:$0xff]  }
 0x110   : > { %2958 = vmatpush2.bf16.msra.mxu1 %v4310_v43  ;;  %2968 = vmatprep.subr.bf16.mxu0 %v4315_v44  ;;  %v4382_v43 = vld [vmem:[%s5898_s1 + $0x788] ss:$16 sps:$4 sm:$0xff]   ;;  %v4387_v44 = vld [vmem:[%s5898_s1 + $0x56c] ss:$16 sps:$4 sm:$0xff]  }
 0x111   : > { %3009 = vmatprep.subr.bf16.mxu1 %v4318_v45  ;;  %v4390_v45 = vld [vmem:[%s5898_s1 + $0x76c] ss:$16 sps:$4 sm:$0xff]  }
 0x112   : > { %v2674_v49 = vpop.f32.mrf.mxu0  ;;  %2919 = vmatmul.mubr.bf16.vlgmr.msra.gmra.mxu0 %v4794_v6  ;;  %v4327_v6 = vld [vmem:[%s5898_s1 + $0x4ac] ss:$16 sps:$4 sm:$0xff]  }
 0x113   : > { %v2715_v50 = vpop.f32.mrf.mxu1  ;;  %2960 = vmatmul.mubr.bf16.vlgmr.msra.gmra.mxu1 %v4796_v7  ;;  %2969 = vmatpush1.bf16.msra.mxu0 %v4313_v46  ;;  %v4330_v7 = vld [vmem:[%s5898_s1 + $0x6ac] ss:$16 sps:$4 sm:$0xff]   ;;  %v4385_v46 = vld [vmem:[%s5898_s1 + $0x568] ss:$16 sps:$4 sm:$0xff]  }
 0x114   : > { %v5452_v52 = vadd.f32 %v2715_v50, %v2674_v49  ;;  %3010 = vmatpush1.bf16.msra.mxu1 %v4316_v47  ;;  %v2676_v55 = vpop.f32.mrf.mxu0  ;;  %2970 = vmatprep.subr.bf16.mxu0 %v4321_v51  ;;  %v4388_v47 = vld [vmem:[%s5898_s1 + $0x768] ss:$16 sps:$4 sm:$0xff]   ;;  %v4393_v51 = vld [vmem:[%s5898_s1 + $0x54c] ss:$16 sps:$4 sm:$0xff]  }
 0x115   : > { %v2717_v56 = vpop.f32.mrf.mxu1  ;;  %3011 = vmatprep.subr.bf16.mxu1 %v4324_v48  ;;  %3000 = vmatprep.mubr.bf16.mxu0 %v4890_v36  ;;  %v4333_v36 = vld [vmem:[%s5898_s1 + $0x48c] ss:$16 sps:$4 sm:$0xff]   ;;  %v4391_v49 = vld [vmem:[%s5898_s1 + $0x548] ss:$16 sps:$4 sm:$0xff]  }
 0x116   : > { %v5466_v57 = vadd.f32 %v2717_v56, %v2676_v55  ;;  %3041 = vmatprep.mubr.bf16.mxu1 %v4894_v37  ;;  %v2678_v58 = vpop.f32.mrf.mxu0  ;;  %v4336_v37 = vld [vmem:[%s5898_s1 + $0x68c] ss:$16 sps:$4 sm:$0xff]   ;;  %v4394_v50 = vld [vmem:[%s5898_s1 + $0x748] ss:$16 sps:$4 sm:$0xff]  }
 0x117   : > { %v2719_v59 = vpop.f32.mrf.mxu1  ;;  %2971 = vmatpush1.bf16.msra.mxu0 %v4319_v53  ;;  %v4396_v48 = vld [vmem:[%s5898_s1 + $0x74c] ss:$16 sps:$4 sm:$0xff]   ;;  %v4397_v55 = vld [vmem:[%s5898_s1 + $0x528] ss:$16 sps:$4 sm:$0xff]  }
 0x118   : > { %3012 = vmatpush1.bf16.msra.mxu1 %v4322_v54  ;;  %v2679_v62 = vpop.f32.mrf.mxu0  ;;  %2972 = vmatprep.subr.bf16.mxu0 %v4327_v6  ;;  %v4399_v53 = vld [vmem:[%s5898_s1 + $0x52c] ss:$16 sps:$4 sm:$0xff]   ;;  %v4400_v56 = vld [vmem:[%s5898_s1 + $0x728] ss:$16 sps:$4 sm:$0xff]  }
 0x119   : > { %v2720_v63 = vpop.f32.mrf.mxu1  ;;  %3013 = vmatprep.subr.bf16.mxu1 %v4330_v7  ;;  %v4402_v54 = vld [vmem:[%s5898_s1 + $0x72c] ss:$16 sps:$4 sm:$0xff]   ;;  %v4403_v58 = vld [vmem:[%s5898_s1 + $0x508] ss:$16 sps:$4 sm:$0xff]  }
 0x11a   : > { %v4405_v6 = vld [vmem:[%s5898_s1 + $0x50c] ss:$16 sps:$4 sm:$0xff]   ;;  %v4406_v59 = vld [vmem:[%s5898_s1 + $0x708] ss:$16 sps:$4 sm:$0xff]  }
 0x11b   : > { %2973 = vmatpush1.bf16.msra.mxu0 %v4325_v60  ;;  %v4408_v7 = vld [vmem:[%s5898_s1 + $0x70c] ss:$16 sps:$4 sm:$0xff]   ;;  %v4409_v62 = vld [vmem:[%s5898_s1 + $0x8e8] ss:$16 sps:$4 sm:$0xff]  }
 0x11c   : > { %3014 = vmatpush1.bf16.msra.mxu1 %v4328_v61  ;;  %2974 = vmatprep.subr.bf16.mxu0 %v4333_v36  ;;  %v4411_v60 = vld [vmem:[%s5898_s1 + $0x8ec] ss:$16 sps:$4 sm:$0xff]   ;;  %v4412_v63 = vld [vmem:[%s5898_s1 + $0xae8] ss:$16 sps:$4 sm:$0xff]  }
 0x11d   : > { %3015 = vmatprep.subr.bf16.mxu1 %v4336_v37  ;;  %v4414_v61 = vld [vmem:[%s5898_s1 + $0xaec] ss:$16 sps:$4 sm:$0xff]  }
 0x11e   : > { %v4417_v36 = vld [vmem:[%s5898_s1 + $0x8cc] ss:$16 sps:$4 sm:$0xff]  }
 0x11f   : > { %2975 = vmatpush1.bf16.msra.mxu0 %v4331_v0  ;;  %v4420_v37 = vld [vmem:[%s5898_s1 + $0xacc] ss:$16 sps:$4 sm:$0xff]  }
 0x120   : > { %3016 = vmatpush1.bf16.msra.mxu1 %v4334_v1  ;;  %2976 = vmatprep.subr.bf16.mxu0 %v4339_v2  ;;  %v4415_v2 = vld [vmem:[%s5898_s1 + $0x8c8] ss:$16 sps:$4 sm:$0xff]  }
 0x121   : > { %3017 = vmatprep.subr.bf16.mxu1 %v4342_v3  ;;  %v4418_v3 = vld [vmem:[%s5898_s1 + $0xac8] ss:$16 sps:$4 sm:$0xff]  }
 0x123   : > { %2977 = vmatpush1.bf16.msra.mxu0 %v4337_v4 }
 0x124   : > { %3018 = vmatpush1.bf16.msra.mxu1 %v4340_v5  ;;  %2978 = vmatprep.subr.bf16.mxu0 %v4345_v8 }
 0x125   : > { %3019 = vmatprep.subr.bf16.mxu1 %v4348_v9 }
 0x127   : > { %2979 = vmatpush1.bf16.msra.mxu0 %v4343_v10  ;;  %v4421_v10 = vld [vmem:[%s5898_s1 + $0x8a8] ss:$16 sps:$4 sm:$0xff]  }
 0x128   : > { %3020 = vmatpush1.bf16.msra.mxu1 %v4346_v11  ;;  %2980 = vmatprep.subr.bf16.mxu0 %v4351_v12  ;;  %v4424_v11 = vld [vmem:[%s5898_s1 + $0xaa8] ss:$16 sps:$4 sm:$0xff]  }
 0x129   : > { %3021 = vmatprep.subr.bf16.mxu1 %v4354_v13 }
 0x12b   : > { %2981 = vmatpush1.bf16.msra.mxu0 %v4349_v14  ;;  %v4427_v14 = vld [vmem:[%s5898_s1 + $0x888] ss:$16 sps:$4 sm:$0xff]  }
 0x12c   : > { %3022 = vmatpush1.bf16.msra.mxu1 %v4352_v15  ;;  %2982 = vmatprep.subr.bf16.mxu0 %v4357_v18  ;;  %v4430_v15 = vld [vmem:[%s5898_s1 + $0xa88] ss:$16 sps:$4 sm:$0xff]   ;;  %v4435_v18 = vld [vmem:[%s5898_s1 + $0x86c] ss:$16 sps:$4 sm:$0xff]  }
 0x12d   : > { %3023 = vmatprep.subr.bf16.mxu1 %v4360_v19  ;;  %v4438_v19 = vld [vmem:[%s5898_s1 + $0xa6c] ss:$16 sps:$4 sm:$0xff]  }
 0x12f   : > { %2983 = vmatpush1.bf16.msra.mxu0 %v4355_v20  ;;  %v4433_v20 = vld [vmem:[%s5898_s1 + $0x868] ss:$16 sps:$4 sm:$0xff]  }
 0x130   : > { %3024 = vmatpush1.bf16.msra.mxu1 %v4358_v21  ;;  %2984 = vmatprep.subr.bf16.mxu0 %v4363_v26  ;;  %v4436_v21 = vld [vmem:[%s5898_s1 + $0xa68] ss:$16 sps:$4 sm:$0xff]   ;;  %v4441_v26 = vld [vmem:[%s5898_s1 + $0x84c] ss:$16 sps:$4 sm:$0xff]  }
 0x131   : > { %3025 = vmatprep.subr.bf16.mxu1 %v4366_v27  ;;  %v4444_v27 = vld [vmem:[%s5898_s1 + $0xa4c] ss:$16 sps:$4 sm:$0xff]  }
 0x133   : > { %2985 = vmatpush2.bf16.msra.mxu0 %v4361_v28  ;;  %v4439_v28 = vld [vmem:[%s5898_s1 + $0x848] ss:$16 sps:$4 sm:$0xff]  }
 0x134   : > { %3026 = vmatpush2.bf16.msra.mxu1 %v4364_v29  ;;  %2986 = vmatprep.subr.bf16.mxu0 %v4369_v30  ;;  %v4442_v29 = vld [vmem:[%s5898_s1 + $0xa48] ss:$16 sps:$4 sm:$0xff]   ;;  %v4447_v30 = vld [vmem:[%s5898_s1 + $0x82c] ss:$16 sps:$4 sm:$0xff]  }
 0x135   : > { %3027 = vmatprep.subr.bf16.mxu1 %v4372_v31  ;;  %v4450_v31 = vld [vmem:[%s5898_s1 + $0xa2c] ss:$16 sps:$4 sm:$0xff]  }
 0x137   : > { %2987 = vmatpush2.bf16.msra.mxu0 %v4367_v32  ;;  %v4445_v32 = vld [vmem:[%s5898_s1 + $0x828] ss:$16 sps:$4 sm:$0xff]  }
 0x138   : > { %3028 = vmatpush2.bf16.msra.mxu1 %v4370_v33  ;;  %2988 = vmatprep.subr.bf16.mxu0 %v4375_v38  ;;  %v4448_v33 = vld [vmem:[%s5898_s1 + $0xa28] ss:$16 sps:$4 sm:$0xff]   ;;  %v4453_v38 = vld [vmem:[%s5898_s1 + $0x80c] ss:$16 sps:$4 sm:$0xff]  }
 0x139   : > { %3029 = vmatprep.subr.bf16.mxu1 %v4378_v39  ;;  %v4456_v39 = vld [vmem:[%s5898_s1 + $0xa0c] ss:$16 sps:$4 sm:$0xff]  }
 0x13b   : > { %2989 = vmatpush2.bf16.msra.mxu0 %v4373_v22  ;;  %v4451_v22 = vld [vmem:[%s5898_s1 + $0x808] ss:$16 sps:$4 sm:$0xff]  }
 0x13c   : > { %3030 = vmatpush2.bf16.msra.mxu1 %v4376_v23  ;;  %2990 = vmatprep.subr.bf16.mxu0 %v4381_v40  ;;  %v4454_v23 = vld [vmem:[%s5898_s1 + $0xa08] ss:$16 sps:$4 sm:$0xff]   ;;  %v4459_v40 = vld [vmem:[%s5898_s1 + $0x9ec] ss:$16 sps:$4 sm:$0xff]  }
 0x13d   : > { %3031 = vmatprep.subr.bf16.mxu1 %v4384_v41  ;;  %v4462_v41 = vld [vmem:[%s5898_s1 + $0xbec] ss:$16 sps:$4 sm:$0xff]  }
 0x13f   : > { %2991 = vmatpush2.bf16.msra.mxu0 %v4379_v42  ;;  %v4457_v42 = vld [vmem:[%s5898_s1 + $0x9e8] ss:$16 sps:$4 sm:$0xff]  }
 0x140   : > { %3032 = vmatpush2.bf16.msra.mxu1 %v4382_v43  ;;  %2992 = vmatprep.subr.bf16.mxu0 %v4387_v44  ;;  %v4460_v43 = vld [vmem:[%s5898_s1 + $0xbe8] ss:$16 sps:$4 sm:$0xff]   ;;  %v4465_v44 = vld [vmem:[%s5898_s1 + $0x9cc] ss:$16 sps:$4 sm:$0xff]  }
 0x141   : > { %3033 = vmatprep.subr.bf16.mxu1 %v4390_v45  ;;  %v4468_v45 = vld [vmem:[%s5898_s1 + $0xbcc] ss:$16 sps:$4 sm:$0xff]  }
 0x143   : > { %2993 = vmatpush2.bf16.msra.mxu0 %v4385_v46  ;;  %v4463_v46 = vld [vmem:[%s5898_s1 + $0x9c8] ss:$16 sps:$4 sm:$0xff]  }
 0x144   : > { %3034 = vmatpush2.bf16.msra.mxu1 %v4388_v47  ;;  %2994 = vmatprep.subr.bf16.mxu0 %v4393_v51  ;;  %v4466_v47 = vld [vmem:[%s5898_s1 + $0xbc8] ss:$16 sps:$4 sm:$0xff]   ;;  %v4471_v51 = vld [vmem:[%s5898_s1 + $0x9ac] ss:$16 sps:$4 sm:$0xff]  }
 0x145   : > { %3035 = vmatprep.subr.bf16.mxu1 %v4396_v48  ;;  %v4474_v48 = vld [vmem:[%s5898_s1 + $0xbac] ss:$16 sps:$4 sm:$0xff]  }
 0x147   : > { %2995 = vmatpush2.bf16.msra.mxu0 %v4391_v49  ;;  %v4469_v49 = vld [vmem:[%s5898_s1 + $0x9a8] ss:$16 sps:$4 sm:$0xff]  }
 0x148   : > { %3036 = vmatpush2.bf16.msra.mxu1 %v4394_v50  ;;  %2996 = vmatprep.subr.bf16.mxu0 %v4399_v53  ;;  %v4472_v50 = vld [vmem:[%s5898_s1 + $0xba8] ss:$16 sps:$4 sm:$0xff]   ;;  %v4477_v53 = vld [vmem:[%s5898_s1 + $0x98c] ss:$16 sps:$4 sm:$0xff]  }
 0x149   : > { %3037 = vmatprep.subr.bf16.mxu1 %v4402_v54  ;;  %v4480_v54 = vld [vmem:[%s5898_s1 + $0xb8c] ss:$16 sps:$4 sm:$0xff]  }
 0x14b   : > { %2997 = vmatpush2.bf16.msra.mxu0 %v4397_v55  ;;  %v4475_v55 = vld [vmem:[%s5898_s1 + $0x988] ss:$16 sps:$4 sm:$0xff]  }
 0x14c   : > { %3038 = vmatpush2.bf16.msra.mxu1 %v4400_v56  ;;  %2998 = vmatprep.subr.bf16.mxu0 %v4405_v6  ;;  %v4478_v56 = vld [vmem:[%s5898_s1 + $0xb88] ss:$16 sps:$4 sm:$0xff]   ;;  %v4483_v6 = vld [vmem:[%s5898_s1 + $0x96c] ss:$16 sps:$4 sm:$0xff]  }
 0x14d   : > { %3039 = vmatprep.subr.bf16.mxu1 %v4408_v7  ;;  %v4486_v7 = vld [vmem:[%s5898_s1 + $0xb6c] ss:$16 sps:$4 sm:$0xff]  }
 0x14f   : > { %2999 = vmatpush2.bf16.msra.mxu0 %v4403_v58  ;;  %v4481_v58 = vld [vmem:[%s5898_s1 + $0x968] ss:$16 sps:$4 sm:$0xff]  }
 0x150   : > { %3040 = vmatpush2.bf16.msra.mxu1 %v4406_v59  ;;  %3050 = vmatprep.subr.bf16.mxu0 %v4411_v60  ;;  %v4484_v59 = vld [vmem:[%s5898_s1 + $0xb68] ss:$16 sps:$4 sm:$0xff]   ;;  %v4489_v60 = vld [vmem:[%s5898_s1 + $0x94c] ss:$16 sps:$4 sm:$0xff]  }
 0x151   : > { %3091 = vmatprep.subr.bf16.mxu1 %v4414_v61  ;;  %v4492_v61 = vld [vmem:[%s5898_s1 + $0xb4c] ss:$16 sps:$4 sm:$0xff]  }
 0x152   : > { %v5650_v0 = vpop.f32.mrf.mxu0  ;;  %3001 = vmatmul.mubr.bf16.vlgmr.msra.gmra.mxu0 %v5014_v16  ;;  %v4423_v16 = vld [vmem:[%s5898_s1 + $0x8ac] ss:$16 sps:$4 sm:$0xff]  }
 0x153   : > { %v5652_v1 = vpop.f32.mrf.mxu1  ;;  %3042 = vmatmul.mubr.bf16.vlgmr.msra.gmra.mxu1 %v5018_v17  ;;  %3051 = vmatpush1.bf16.msra.mxu0 %v4409_v62  ;;  %v4426_v17 = vld [vmem:[%s5898_s1 + $0xaac] ss:$16 sps:$4 sm:$0xff]   ;;  %v4487_v62 = vld [vmem:[%s5898_s1 + $0x948] ss:$16 sps:$4 sm:$0xff]  }
 0x154   : > { %3092 = vmatpush1.bf16.msra.mxu1 %v4412_v63  ;;  %v5662_v4 = vpop.f32.mrf.mxu0  ;;  %3052 = vmatprep.subr.bf16.mxu0 %v4417_v36  ;;  %v4490_v63 = vld [vmem:[%s5898_s1 + $0xb48] ss:$16 sps:$4 sm:$0xff]   ;;  %v4495_v36 = vld [vmem:[%s5898_s1 + $0x92c] ss:$16 sps:$4 sm:$0xff]  }
 0x155   : > { %v5664_v5 = vpop.f32.mrf.mxu1  ;;  %3093 = vmatprep.subr.bf16.mxu1 %v4420_v37  ;;  %3082 = vmatprep.mubr.bf16.mxu0 %v5044_v24  ;;  %v4429_v24 = vld [vmem:[%s5898_s1 + $0x88c] ss:$16 sps:$4 sm:$0xff]  }
 0x156   : > { %3123 = vmatprep.mubr.bf16.mxu1 %v5048_v25  ;;  %v2760_v8 = vpop.f32.mrf.mxu0  ;;  %v4432_v25 = vld [vmem:[%s5898_s1 + $0xa8c] ss:$16 sps:$4 sm:$0xff]  }
 0x157   : > { %v2801_v9 = vpop.f32.mrf.mxu1  ;;  %3053 = vmatpush1.bf16.msra.mxu0 %v4415_v2  ;;  %v4498_v37 = vld [vmem:[%s5898_s1 + $0xb2c] ss:$16 sps:$4 sm:$0xff]   ;;  %v4493_v2 = vld [vmem:[%s5898_s1 + $0x928] ss:$16 sps:$4 sm:$0xff]  }
 0x158   : > { %3094 = vmatpush1.bf16.msra.mxu1 %v4418_v3  ;;  %v2761_v12 = vpop.f32.mrf.mxu0  ;;  %3054 = vmatprep.subr.bf16.mxu0 %v4423_v16  ;;  %v4496_v3 = vld [vmem:[%s5898_s1 + $0xb28] ss:$16 sps:$4 sm:$0xff]   ;;  %v4501_v16 = vld [vmem:[%s5898_s1 + $0x90c] ss:$16 sps:$4 sm:$0xff]  }
 0x159   : > { %v2802_v13 = vpop.f32.mrf.mxu1  ;;  %3095 = vmatprep.subr.bf16.mxu1 %v4426_v17  ;;  %v4504_v17 = vld [vmem:[%s5898_s1 + $0xb0c] ss:$16 sps:$4 sm:$0xff]   ;;  %v4499_v8 = vld [vmem:[%s5898_s1 + $0x908] ss:$16 sps:$4 sm:$0xff]  }
 0x15a   : > { %v4502_v9 = vld [vmem:[%s5898_s1 + $0xb08] ss:$16 sps:$4 sm:$0xff]  }
 0x15b   : > { %3055 = vmatpush1.bf16.msra.mxu0 %v4421_v10  ;;  %v2757_v10 = vadd.f32 %v5650_v0, %v5452_v52 }
 0x15c   : > { %3096 = vmatpush1.bf16.msra.mxu1 %v4424_v11  ;;  %3056 = vmatprep.subr.bf16.mxu0 %v4429_v24  ;;  %v2759_v11 = vadd.f32 %v5662_v4, %v5466_v57 }
 0x15d   : > { %3097 = vmatprep.subr.bf16.mxu1 %v4432_v25  ;;  %v2798_v12 = vadd.f32 %v5652_v1, %v2757_v10 }
 0x15e   : > { %v2800_v25 = vadd.f32 %v5664_v5, %v2759_v11 }
 0x15f   : > { %3057 = vmatpush1.bf16.msra.mxu0 %v4427_v14 }
 0x160   : > { %3098 = vmatpush1.bf16.msra.mxu1 %v4430_v15  ;;  %3058 = vmatprep.subr.bf16.mxu0 %v4435_v18 }
 0x161   : > { %3099 = vmatprep.subr.bf16.mxu1 %v4438_v19 }
 0x163   : > { %3059 = vmatpush1.bf16.msra.mxu0 %v4433_v20 }
 0x164   : > { %3100 = vmatpush1.bf16.msra.mxu1 %v4436_v21  ;;  %3060 = vmatprep.subr.bf16.mxu0 %v4441_v26 }
 0x165   : > { %3101 = vmatprep.subr.bf16.mxu1 %v4444_v27 }
 0x167   : > { %3061 = vmatpush1.bf16.msra.mxu0 %v4439_v28 }
 0x168   : > { %3102 = vmatpush1.bf16.msra.mxu1 %v4442_v29  ;;  %3062 = vmatprep.subr.bf16.mxu0 %v4447_v30 }
 0x169   : > { %3103 = vmatprep.subr.bf16.mxu1 %v4450_v31 }
 0x16b   : > { %3063 = vmatpush1.bf16.msra.mxu0 %v4445_v32 }
 0x16c   : > { %3104 = vmatpush1.bf16.msra.mxu1 %v4448_v33  ;;  %3064 = vmatprep.subr.bf16.mxu0 %v4453_v38 }
 0x16d   : > { %3105 = vmatprep.subr.bf16.mxu1 %v4456_v39 }
 0x16f   : > { %3065 = vmatpush1.bf16.msra.mxu0 %v4451_v22 }
 0x170   : > { %3106 = vmatpush1.bf16.msra.mxu1 %v4454_v23  ;;  %3066 = vmatprep.subr.bf16.mxu0 %v4459_v40 }
 0x171   : > { %3107 = vmatprep.subr.bf16.mxu1 %v4462_v41 }
 0x173   : > { %3067 = vmatpush2.bf16.msra.mxu0 %v4457_v42 }
 0x174   : > { %3108 = vmatpush2.bf16.msra.mxu1 %v4460_v43  ;;  %3068 = vmatprep.subr.bf16.mxu0 %v4465_v44 }
 0x175   : > { %3109 = vmatprep.subr.bf16.mxu1 %v4468_v45 }
 0x177   : > { %3069 = vmatpush2.bf16.msra.mxu0 %v4463_v46 }
 0x178   : > { %3110 = vmatpush2.bf16.msra.mxu1 %v4466_v47  ;;  %3070 = vmatprep.subr.bf16.mxu0 %v4471_v51 }
 0x179   : > { %3111 = vmatprep.subr.bf16.mxu1 %v4474_v48 }
 0x17b   : > { %3071 = vmatpush2.bf16.msra.mxu0 %v4469_v49 }
 0x17c   : > { %3112 = vmatpush2.bf16.msra.mxu1 %v4472_v50  ;;  %3072 = vmatprep.subr.bf16.mxu0 %v4477_v53 }
 0x17d   : > { %3113 = vmatprep.subr.bf16.mxu1 %v4480_v54 }
 0x17f   : > { %3073 = vmatpush2.bf16.msra.mxu0 %v4475_v55 }
 0x180   : > { %3114 = vmatpush2.bf16.msra.mxu1 %v4478_v56  ;;  %3074 = vmatprep.subr.bf16.mxu0 %v4483_v6 }
 0x181   : > { %3115 = vmatprep.subr.bf16.mxu1 %v4486_v7 }
 0x183   : > { %3075 = vmatpush2.bf16.msra.mxu0 %v4481_v58 }
 0x184   : > { %3116 = vmatpush2.bf16.msra.mxu1 %v4484_v59  ;;  %3076 = vmatprep.subr.bf16.mxu0 %v4489_v60 }
 0x185   : > { %3117 = vmatprep.subr.bf16.mxu1 %v4492_v61 }
 0x187   : > { %3077 = vmatpush2.bf16.msra.mxu0 %v4487_v62 }
 0x188   : > { %3118 = vmatpush2.bf16.msra.mxu1 %v4490_v63  ;;  %3078 = vmatprep.subr.bf16.mxu0 %v4495_v36 }
 0x189   : > { %3119 = vmatprep.subr.bf16.mxu1 %v4498_v37 }
 0x18b   : > { %3079 = vmatpush2.bf16.msra.mxu0 %v4493_v2 }
 0x18c   : > { %3120 = vmatpush2.bf16.msra.mxu1 %v4496_v3  ;;  %3080 = vmatprep.subr.bf16.mxu0 %v4501_v16 }
 0x18d   : > { %3121 = vmatprep.subr.bf16.mxu1 %v4504_v17 }
 0x18f   : > { %3081 = vmatpush2.bf16.msra.mxu0 %v4499_v8 }
 0x190   : > { %3122 = vmatpush2.bf16.msra.mxu1 %v4502_v9 }
 0x192   : > { %v2838_v13 = vpop.f32.mrf.mxu0  ;;  %3083 = vmatmul.mubr.bf16.vlgmr.msra.gmra.mxu0 %v5236_v34 }
 0x193   : > { %v2879_v24 = vpop.f32.mrf.mxu1  ;;  %3124 = vmatmul.mubr.bf16.vlgmr.msra.gmra.mxu1 %v5240_v35  ;;  %v2839_v14 = vadd.f32 %v2838_v13, %v2798_v12 }
 0x194   : > { %v2840_v15 = vpop.f32.mrf.mxu0 }
 0x195   : > { %v2881_v18 = vpop.f32.mrf.mxu1  ;;  %v2880_v19 = vadd.f32 %v2879_v24, %v2839_v14  ;;  %v2841_v52 = vadd.f32 %v2840_v15, %v2800_v25 }
 0x196   : > { %v2842_v0 = vpop.f32.mrf.mxu0 }
 0x197   : > { %v2883_v20 = vpop.f32.mrf.mxu1  ;;  %3137 = vst [vmem:[#allocation2 + $0x10] sm:$0xff] %v2880_v19  ;;  %v3147_v57 = vrot.slane %v2880_v19, 4  ;;  %v3171_v4 = vmul.f32 %v2880_v19, %v2880_v19  ;;  %v2882_v21 = vadd.f32 %v2881_v18, %v2841_v52 }
 0x198   : > { %v2843_v1 = vpop.f32.mrf.mxu0 }
 0x199   : > { %v2884_v26 = vpop.f32.mrf.mxu1  ;;  %v3148_v27 = vadd.f32 %v3147_v57, %v2880_v19  ;;  %v3175_v28 = vrot.slane %v3171_v4, 4  ;;  %3138 = vst [vmem:[#allocation2] sm:$0xff] %v2882_v21  ;;  %v3153_v34 = vrot.slane %v2882_v21, 4  ;;  %v3172_v35 = vmul.f32 %v2882_v21, %v2882_v21 }
 0x19b   : > { %v3149_v29 = vrot.slane %v3148_v27, 2  ;;  %v3176_v5 = vadd.f32 %v3175_v28, %v3171_v4  ;;  %v3154_v30 = vadd.f32 %v3153_v34, %v2882_v21  ;;  %v3181_v31 = vrot.slane %v3172_v35, 4 }
 0x19d   : > { %v3150_v32 = vadd.f32 %v3149_v29, %v3148_v27  ;;  %v3177_v33 = vrot.slane %v3176_v5, 2  ;;  %v3155_v38 = vrot.slane %v3154_v30, 2  ;;  %v3182_v39 = vadd.f32 %v3181_v31, %v3172_v35 }
 0x19f   : > { %v3178_v22 = vadd.f32 %v3177_v33, %v3176_v5  ;;  %v3156_v23 = vadd.f32 %v3155_v38, %v3154_v30  ;;  %v3183_v40 = vrot.slane %v3182_v39, 2  ;;  %v3151_v41 = vrot.slane %v3150_v32, 1 }
 0x1a1   : > { %v3179_v42 = vrot.slane %v3178_v22, 1  ;;  %v3157_v43 = vrot.slane %v3156_v23, 1  ;;  %v3184_v44 = vadd.f32 %v3183_v40, %v3182_v39  ;;  %v3152_v47 = vadd.f32 %v3151_v41, %v3150_v32 }
 0x1a2   : > { %v4531_v39 = vmov 1983009808  }
 0x1a3   : > { %v3180_v45 = vadd.f32 %v3179_v42, %v3178_v22  ;;  %v3185_v46 = vrot.slane %v3184_v44, 1  ;;  %v3158_v51 = vadd.f32 %v3157_v43, %v3156_v23  ;;  %v3211_v22 = vunpack.c.l.s4 %v4531_v39 }
 0x1a4   : > { %v3213_v23 = vlaneseq }
 0x1a5   : > { %v3186_v48 = vadd.f32 %v3185_v46, %v3184_v44  ;;  %v5845_v49 = vsel %vm3199_vm0, %v3152_v47, %v3180_v45  ;;  %v3212_v47 = vunpack.c.0.s8 %v3211_v22 }
 0x1a7   : > { %v5848_v50 = vsel %vm3199_vm0, %v3158_v51, %v3186_v48  ;;  %v3214_v51 = vshrl.u32 %v3213_v23, 7 }
 0x1a8   : > { %v3208_v53 = vcombine.low %v5845_v49, %v5848_v50 }
 0x1d2   : > { %v2920_v54 = vpop.f32.mrf.mxu0 }
 0x1d3   : > { %v2961_v55 = vpop.f32.mrf.mxu1 }
 0x1d4   : > { %v2962_v56 = vadd.f32 %v2961_v55, %v2920_v54  ;;  %v2922_v6 = vpop.f32.mrf.mxu0 }
 0x1d5   : > { %v2963_v7 = vpop.f32.mrf.mxu1 }
 0x1d6   : > { %v2964_v58 = vadd.f32 %v2963_v7, %v2922_v6  ;;  %v2924_v59 = vpop.f32.mrf.mxu0  ;;  %v3215_v7 = vsub.s32 %v3212_v47, %v3214_v51 }
 0x1d7   : > { %v2965_v60 = vpop.f32.mrf.mxu1 }
 0x1d8   : > { %v2925_v61 = vpop.f32.mrf.mxu0 }
 0x1d9   : > { %v2966_v62 = vpop.f32.mrf.mxu1  ;;  %v3216_v61 = vrot.slane %v3208_v53, %v3215_v7 }
 0x212   : > { %v3002_v63 = vpop.f32.mrf.mxu0 }
 0x213   : > { %v3043_v36 = vpop.f32.mrf.mxu1  ;;  %v3003_v9 = vadd.f32 %v3002_v63, %v2962_v56 }
 0x214   : > { %v3004_v37 = vpop.f32.mrf.mxu0 }
 0x215   : > { %v3045_v2 = vpop.f32.mrf.mxu1  ;;  %v3005_v10 = vadd.f32 %v3004_v37, %v2964_v58  ;;  %v3044_v11 = vadd.f32 %v3043_v36, %v3003_v9 }
 0x216   : > { %v3006_v3 = vpop.f32.mrf.mxu0 }
 0x217   : > { %v3047_v16 = vpop.f32.mrf.mxu1  ;;  %v3046_v24 = vadd.f32 %v3045_v2, %v3005_v10 }
 0x218   : > { %v3007_v17 = vpop.f32.mrf.mxu0 }
 0x219   : > { %v3048_v8 = vpop.f32.mrf.mxu1 }
 0x252   : > { %v3084_v12 = vpop.f32.mrf.mxu0 }
 0x253   : > { %v3125_v13 = vpop.f32.mrf.mxu1  ;;  %v3085_v25 = vadd.f32 %v3084_v12, %v3044_v11 }
 0x254   : > { %v3086_v14 = vpop.f32.mrf.mxu0 }
 0x255   : > { %v3127_v15 = vpop.f32.mrf.mxu1  ;;  %v3126_v18 = vadd.f32 %v3125_v13, %v3085_v25  ;;  %v3087_v19 = vadd.f32 %v3086_v14, %v3046_v24 }
 0x256   : > { %v3088_v52 = vpop.f32.mrf.mxu0 }
 0x257   : > { %v3129_v0 = vpop.f32.mrf.mxu1  ;;  %3139 = vst [vmem:[#allocation2 + $0x18] sm:$0xff] %v3126_v18  ;;  %v3159_v20 = vrot.slane %v3126_v18, 4  ;;  %v3173_v57 = vmul.f32 %v3126_v18, %v3126_v18  ;;  %v3128_v4 = vadd.f32 %v3127_v15, %v3087_v19 }
 0x258   : > { %v3089_v21 = vpop.f32.mrf.mxu0 }
 0x259   : > { %v3130_v1 = vpop.f32.mrf.mxu1  ;;  %v3160_v26 = vadd.f32 %v3159_v20, %v3126_v18  ;;  %v3187_v27 = vrot.slane %v3173_v57, 4  ;;  %3140 = vst [vmem:[#allocation2 + $0x8] sm:$0xff] %v3128_v4  ;;  %v3165_v28 = vrot.slane %v3128_v4, 4  ;;  %v3174_v34 = vmul.f32 %v3128_v4, %v3128_v4 }
 0x25b   : > { %v3161_v35 = vrot.slane %v3160_v26, 2  ;;  %v3188_v29 = vadd.f32 %v3187_v27, %v3173_v57  ;;  %v3166_v5 = vadd.f32 %v3165_v28, %v3128_v4  ;;  %v3193_v30 = vrot.slane %v3174_v34, 4 }
 0x25d   : > { %v3162_v31 = vadd.f32 %v3161_v35, %v3160_v26  ;;  %v3189_v32 = vrot.slane %v3188_v29, 2  ;;  %v3167_v33 = vrot.slane %v3166_v5, 2  ;;  %v3194_v38 = vadd.f32 %v3193_v30, %v3174_v34 }
 0x25f   : > { %v3190_v40 = vadd.f32 %v3189_v32, %v3188_v29  ;;  %v3168_v41 = vadd.f32 %v3167_v33, %v3166_v5  ;;  %v3195_v42 = vrot.slane %v3194_v38, 2  ;;  %v3163_v43 = vrot.slane %v3162_v31, 1 }
 0x261   : > { %v3191_v44 = vrot.slane %v3190_v40, 1  ;;  %v3169_v45 = vrot.slane %v3168_v41, 1  ;;  %v3196_v46 = vadd.f32 %v3195_v42, %v3194_v38  ;;  %v3164_v55 = vadd.f32 %v3163_v43, %v3162_v31 }
 0x263   : > { %v3192_v48 = vadd.f32 %v3191_v44, %v3190_v40  ;;  %v3197_v54 = vrot.slane %v3196_v46, 1  ;;  %v3170_v56 = vadd.f32 %v3169_v45, %v3168_v41 }
 0x265   : > { %v3198_v6 = vadd.f32 %v3197_v54, %v3196_v46  ;;  %v3202_v58 = vsel %vm3199_vm0, %v3164_v55, %v3192_v48 }
 0x267   : > { %v3203_v59 = vsel %vm3199_vm0, %v3170_v56, %v3198_v6 }
 0x268   : > { %v3209_v60 = vcombine.low %v3202_v58, %v3203_v59 }
 0x26a   : > { %v3223_v62 = vrot.slane %v3209_v60, %v3215_v7 }
 0x26c   : > { %v3224_v63 = vcombine.low %v3216_v61, %v3223_v62 }
 0x26e   : > { %3227 = vst [vmem:[#allocation3] sm:$0xff] %v3224_v63 }
 0x26f PF: > { %p3885_p5 = scmp.ne.s32.totalorder %s4521_s18, 1 }
 0x271   : > { %3231 = sbr.rel (%p3885_p5) target bundleno = 688 (0x2b0), region = 52 }
 0x276   : > { %v3236_v36 = vld [vmem:[#allocation3] ss:$2 sm:$0xf]  ;;  %v3239_v37 = vld [vmem:[#allocation3 + $0x1] ss:$2 sm:$0xf]  ;;  %v3251_v9 = vlaneseq }
 0x277   : > { %v3237_v2 = vmul.f32 0.125, %v3236_v36  ;;  %v3240_v3 = vmul.f32 0.125, %v3239_v37  ;;  %v3243_v49 = vld [vmem:[%s5899_s2] sm:$0xf]  ;;  %v4532_v11 = vmov 1983009808  }
 0x278   : > { %v3252_v10 = vshrl.u32 %v3251_v9, 7  ;;  %v3304_v12 = vunpack.c.l.s4 %v4532_v11  ;;  %v3247_v15 = vld [vmem:[%s5900_s3] sm:$0xf]  ;;  %vm3292_vm1 = vcmask 1040384   ;;  %v3325_v39 = vld [vmem:[#allocation2 + $0x10] sm:$0xff]  ;;  %v3327_v43 = vld [vmem:[#allocation2 + $0x18] sm:$0xff] }
 0x279   : > { %v3241_v16 = vmul.f32 %v3237_v2, %v3237_v2  ;;  %v3326_v22 = vld [vmem:[#allocation2] sm:$0xff]  ;;  %v3328_v44 = vld [vmem:[#allocation2 + $0x8] sm:$0xff]  ;;  %v3384_v62 = vld [vmem:[%s5901_s4 + $0x10] sm:$0xff] }
 0x27a   : > { %v3253_v53 = vsub.s32 0, %v3252_v10  ;;  %v3257_v24 = vsub.s32 1, %v3252_v10  ;;  %v3261_v25 = vsub.s32 2, %v3252_v10  ;;  %v3265_v14 = vsub.s32 3, %v3252_v10  ;;  %v3382_v55 = vld [vmem:[%s5901_s4] sm:$0xff]  ;;  %v3383_v56 = vld [vmem:[%s5901_s4 + $0x8] sm:$0xff] }
 0x27b   : > { %v3242_v17 = vsub.f32 %v3240_v3, %v3241_v16  ;;  %v3305_v52 = vunpack.c.0.s8 %v3304_v12  ;;  %v3385_v63 = vld [vmem:[%s5901_s4 + $0x18] sm:$0xff] }
 0x27d   : > { %v3244_v8 = vadd.f32 1e-05, %v3242_v17  ;;  %v3308_v28 = vsub.s32 %v3305_v52, %v3252_v10 }
 0x27f   : > { %4505 = vrsqrt.f32 %v3244_v8 }
 0x28c   : > { %v4506_v50 = vpop.eup %4505 }
 0x28d   : > { %v3246_v13 = vmul.f32 %v4506_v50, %v3243_v49 }
 0x28f   : > { %v3248_v18 = vmul.f32 %v3246_v13, %v3237_v2  ;;  %v3254_v19 = vrot.slane %v3246_v13, %v3253_v53  ;;  %v3258_v20 = vrot.slane %v3246_v13, %v3257_v24  ;;  %v3262_v57 = vrot.slane %v3246_v13, %v3261_v25 }
 0x290   : > { %v3266_v4 = vrot.slane %v3246_v13, %v3265_v14 }
 0x291   : > { %v3249_v0 = vsub.f32 %v3247_v15, %v3248_v18 }
 0x293   : > { %v3275_v21 = vrot.slane %v3249_v0, %v3253_v53  ;;  %v3279_v1 = vrot.slane %v3249_v0, %v3257_v24  ;;  %v3283_v26 = vrot.slane %v3249_v0, %v3261_v25  ;;  %v3287_v27 = vrot.slane %v3249_v0, %v3265_v14 }
 0x295   : > { %v3293_v34 = vsel %vm3292_vm1, %v3254_v19, %v3275_v21  ;;  %v3294_v35 = vsel %vm3292_vm1, %v3258_v20, %v3279_v1  ;;  %v3295_v29 = vsel %vm3292_vm1, %v3262_v57, %v3283_v26  ;;  %v3296_v5 = vsel %vm3292_vm1, %v3266_v4, %v3287_v27 }
 0x296   : > { %v3301_v30 = vcombine.low %v3293_v34, %v3294_v35  ;;  %v3302_v31 = vcombine.low %v3295_v29, %v3296_v5 }
 0x298   : > { %v3309_v32 = vrot.slane %v3301_v30, %v3308_v28  ;;  %v3316_v33 = vrot.slane %v3302_v31, %v3308_v28 }
 0x29a   : > { %v3317_v38 = vcombine.low %v3309_v32, %v3316_v33 }
 0x29c   : > { %3319 = vst [vmem:[#allocation3] sm:$0xff] %v3317_v38 }
 0x2a3   : > { %v3329_v23 = vld [vmem:[#allocation3] ss:$2 sm:$0xf]  ;;  %v3356_v40 = vld [vmem:[#allocation3 + $0x1] ss:$2 sm:$0xf] }
 0x2a4   : > { %v3334_v41 = vrot.slane %v3329_v23, %v3253_v53  ;;  %v3338_v42 = vrot.slane %v3329_v23, %v3257_v24  ;;  %v3342_v45 = vrot.slane %v3329_v23, %v3261_v25  ;;  %v3346_v46 = vrot.slane %v3329_v23, %v3265_v14 }
 0x2a5   : > { %v3361_v51 = vrot.slane %v3356_v40, %v3253_v53  ;;  %v3365_v54 = vrot.slane %v3356_v40, %v3257_v24  ;;  %v3369_v7 = vrot.slane %v3356_v40, %v3261_v25  ;;  %v3373_v59 = vrot.slane %v3356_v40, %v3265_v14 }
 0x2a6   : > { %v3351_v47 = vmul.f32 %v3334_v41, %v3325_v39  ;;  %v3352_v48 = vmul.f32 %v3338_v42, %v3326_v22  ;;  %v3353_v6 = vmul.f32 %v3342_v45, %v3327_v43  ;;  %v3354_v58 = vmul.f32 %v3346_v46, %v3328_v44 }
 0x2a8   : > { %v3378_v60 = vadd.f32 %v3361_v51, %v3351_v47  ;;  %v3379_v61 = vadd.f32 %v3365_v54, %v3352_v48  ;;  %v3380_v36 = vadd.f32 %v3369_v7, %v3353_v6  ;;  %v3381_v37 = vadd.f32 %v3373_v59, %v3354_v58 }
 0x2aa   : > { %v3386_v2 = vadd.f32 %v3382_v55, %v3378_v60  ;;  %v3387_v3 = vadd.f32 %v3383_v56, %v3379_v61  ;;  %v3388_v16 = vadd.f32 %v3384_v62, %v3380_v36  ;;  %v3389_v17 = vadd.f32 %v3385_v63, %v3381_v37 }
 0x2ac   : > { %v3390_v8 = vmax.f32 %v3386_v2, 0.0  ;;  %v3391_v9 = vmax.f32 %v3387_v3, 0.0  ;;  %v3392_v10 = vmax.f32 %v3388_v16, 0.0  ;;  %v3393_v49 = vmax.f32 %v3389_v17, 0.0 }
 0x2ae   : > { %3394 = vst [vmem:[%s5902_s5] sm:$0xff] %v3390_v8  ;;  %3395 = vst [vmem:[%s5902_s5 + $0x8] sm:$0xff] %v3391_v9 }
 0x2af   : > { %3396 = vst [vmem:[%s5902_s5 + $0x10] sm:$0xff] %v3392_v10  ;;  %3397 = vst [vmem:[%s5902_s5 + $0x18] sm:$0xff] %v3393_v49 }
 0x2b0 PF: > { %s15_s20 = sadd.s32 1, %s4529_s20   ;;  %s5903_s18 = smov %s4525_s19 }
 0x2b1   : > { %p12_p6 = scmp.ge.s32.totalorder %s15_s20, 4   ;;  %s5904_s19 = smov %s5906_s21 }
 0x2b3   :  { %14 = sbr.rel (!%p12_p6) target bundleno = 2 (0x2), region = 93 }

</bundles_post_ra>
